<compile_context>
chip_gen: v6e
topology: v6e:2x2x1
jax: 0.10.0
libtpu: 0.0.40
codegen_flags: <defaults>
</compile_context>

<pallas_src>
import functools
import math

import jax
import jax.numpy as jnp
from jax.experimental import pallas as pl
from jax.experimental.pallas import tpu as pltpu

F32 = jnp.float32
NEG_INF = -1e9
LN_EPS = 1e-12

# ---------------- model hyper-parameters (small, synthetic) ----------------
VOCAB = 32           # params.vocab_size
PHONE_VOCAB = 20
HG = 32              # generator hidden size
G_HEADS = 4
G_INTER = 64
E = 16               # params.disc_embedding_size
HD = 32              # params.disc_hidden_size
D_HEADS = 4          # params.disc_num_attention_heads
D_INTER = 64         # params.disc_intermediate_size
MAX_SEQ = 16         # params.max_seq_len
ELECTRA_DISC_WEIGHT = 50.0   # params.electra_disc_weight
MASK_ID = 3

_VMEM_SPEC = pl.BlockSpec(memory_space=pltpu.MemorySpace.VMEM)


def _gelu(x):
    # tanh-approximate GELU (HF ELECTRA uses erf-GELU; numerical diff ~1e-3)
    return 0.5 * x * (1.0 + jnp.tanh(0.7978845608028654 * (x + 0.044715 * x * x * x)))


# ===================== in-kernel building blocks (values + weight refs) =====================

def _ln(x, g, b):
    mu = jnp.mean(x, axis=-1, keepdims=True)
    xc = x - mu
    var = jnp.mean(xc * xc, axis=-1, keepdims=True)
    return xc * jax.lax.rsqrt(var + LN_EPS) * g + b


def _mha(xq2, xkv2, wqkv_ref, bqkv_ref, wo_ref, o_bias, mask_ref, B, Sq, Sk, nh):
    """Multi-head attention, fully inside one kernel.

    xq2:  [B*Sq, H] value    xkv2: [B*Sk, H] value
    wqkv_ref: Ref (3*nh, H, D)  (q heads, then k heads, then v heads)
    bqkv_ref: Ref (3*nh, 1, D)
    wo_ref:   Ref (nh, D, H)    o_bias: value (1, H)
    mask_ref: Ref (B, 1, Sk) additive key mask
    returns:  [B*Sq, H] = concat_heads(attn) @ Wo + bo  (computed as per-head accumulation)
    """
    D = wo_ref.shape[1]
    scale = 1.0 / math.sqrt(D)
    qs, ks, vs = [], [], []
    for h in range(nh):
        qs.append(jnp.dot(xq2, wqkv_ref[h], preferred_element_type=F32) + bqkv_ref[h])
        ks.append(jnp.dot(xkv2, wqkv_ref[nh + h], preferred_element_type=F32) + bqkv_ref[nh + h])
        vs.append(jnp.dot(xkv2, wqkv_ref[2 * nh + h], preferred_element_type=F32) + bqkv_ref[2 * nh + h])
    rows = []
    for b in range(B):
        mask_b = mask_ref[b]                                   # (1, Sk)
        acc = None
        for h in range(nh):
            q = qs[h][b * Sq:(b + 1) * Sq, :]                  # [Sq, D] (sublane-aligned slice)
            k = ks[h][b * Sk:(b + 1) * Sk, :]                  # [Sk, D]
            v = vs[h][b * Sk:(b + 1) * Sk, :]
            s = jax.lax.dot_general(q, k, (((1,), (1,)), ((), ())),
                                    preferred_element_type=F32) * scale
            s = s + mask_b
            s = s - jnp.max(s, axis=-1, keepdims=True)
            pw = jnp.exp(s)
            pw = pw / jnp.sum(pw, axis=-1, keepdims=True)
            ctx = jnp.dot(pw, v, preferred_element_type=F32)                  # [Sq, D]
            head_out = jnp.dot(ctx, wo_ref[h], preferred_element_type=F32)    # [Sq, H]
            acc = head_out if acc is None else acc + head_out
        rows.append(acc)
    att = jnp.concatenate(rows, axis=0) if B > 1 else rows[0]
    return att + o_bias


def _block(x, mask_ref, wqkv_ref, bqkv_ref, wo_ref, o_bias,
           ln1g, ln1b, w1, b1, w2, b2, ln2g, ln2b, B, S, nh):
    """Post-LN transformer encoder block: self-attn + FFN, all in VMEM."""
    att = _mha(x, x, wqkv_ref, bqkv_ref, wo_ref, o_bias, mask_ref, B, S, S, nh)
    x = _ln(x + att, ln1g, ln1b)
    h = _gelu(jnp.dot(x, w1, preferred_element_type=F32) + b1)
    h = jnp.dot(h, w2, preferred_element_type=F32) + b2
    return _ln(x + h, ln2g, ln2b)


# ===================== fused kernels (one pallas_call each) =====================

def _gen_encoder_kernel(pe_ref, pmask_ref,
                        lng_ref, lnb_ref,
                        qkv_w_ref, qkv_b_ref, o_w_ref, o_b_ref,
                        ln1g_ref, ln1b_ref,
                        f1w_ref, f1b_ref, f2w_ref, f2b_ref,
                        ln2g_ref, ln2b_ref,
                        out_ref, *, B, S, nh):
    x = _ln(pe_ref[...], lng_ref[...], lnb_ref[...])
    out_ref[...] = _block(x, pmask_ref,
                          qkv_w_ref, qkv_b_ref, o_w_ref, o_b_ref[...],
                          ln1g_ref[...], ln1b_ref[...],
                          f1w_ref[...], f1b_ref[...], f2w_ref[...], f2b_ref[...],
                          ln2g_ref[...], ln2b_ref[...], B, S, nh)


def _gen_decoder_kernel(ye_ref, penc_ref, ymask_ref, pmask_ref, lbl_ref, lmsk_ref,
                        ylng_ref, ylnb_ref,
                        s_qkv_w_ref, s_qkv_b_ref, s_o_w_ref, s_o_b_ref, ln1g_ref, ln1b_ref,
                        c_qkv_w_ref, c_qkv_b_ref, c_o_w_ref, c_o_b_ref, lncg_ref, lncb_ref,
                        f1w_ref, f1b_ref, f2w_ref, f2b_ref, ln2g_ref, ln2b_ref,
                        outw_ref, outb_ref,
                        logits_ref, loss_ref, *, B, SY, SP, nh):
    # word-embedding layer norm
    ye = _ln(ye_ref[...], ylng_ref[...], ylnb_ref[...])
    # self-attention over words
    att = _mha(ye, ye, s_qkv_w_ref, s_qkv_b_ref, s_o_w_ref, s_o_b_ref[...],
               ymask_ref, B, SY, SY, nh)
    x = _ln(ye + att, ln1g_ref[...], ln1b_ref[...])
    # cross-attention to the phone encoder output
    penc = penc_ref[...]
    catt = _mha(x, penc, c_qkv_w_ref, c_qkv_b_ref, c_o_w_ref, c_o_b_ref[...],
                pmask_ref, B, SY, SP, nh)
    x = _ln(x + catt, lncg_ref[...], lncb_ref[...])
    # FFN
    h = _gelu(jnp.dot(x, f1w_ref[...], preferred_element_type=F32) + f1b_ref[...])
    h = jnp.dot(h, f2w_ref[...], preferred_element_type=F32) + f2b_ref[...]
    x = _ln(x + h, ln2g_ref[...], ln2b_ref[...])
    # vocab head
    logits = jnp.dot(x, outw_ref[...], preferred_element_type=F32) + outb_ref[...]
    logits_ref[...] = logits
    # masked-LM cross entropy (ignore_index == -100 handled via lmsk), mean over masked
    lbl = lbl_ref[...]                                          # [M, 1] int32
    m = jnp.max(logits, axis=-1, keepdims=True)
    lse = jnp.log(jnp.sum(jnp.exp(logits - m), axis=-1, keepdims=True)) + m
    ids = jax.lax.broadcasted_iota(jnp.int32, logits.shape, 1)
    tgt = jnp.sum(jnp.where(ids == lbl, logits, 0.0), axis=-1, keepdims=True)
    nll = lse - tgt                                             # [M, 1]
    mf = lmsk_ref[...]                                          # [M, 1]
    num = jnp.sum(nll * mf, axis=0, keepdims=True)              # [1, 1]
    den = jnp.sum(mf, axis=0, keepdims=True)
    loss_ref[...] = num / jnp.maximum(den, 1.0)


def _disc_kernel(e_ref, ymask_ref, mf_ref, lab_ref,
                 elng_ref, elnb_ref, pw_ref, pb_ref,
                 qkv_w_ref, qkv_b_ref, o_w_ref, o_b_ref, ln1g_ref, ln1b_ref,
                 f1w_ref, f1b_ref, f2w_ref, f2b_ref, ln2g_ref, ln2b_ref,
                 h1w_ref, h1b_ref, h2w_ref, h2b_ref,
                 loss_ref, *, B, S, nh):
    e = _ln(e_ref[...], elng_ref[...], elnb_ref[...])
    x = jnp.dot(e, pw_ref[...], preferred_element_type=F32) + pb_ref[...]     # E -> HD
    x = _block(x, ymask_ref, qkv_w_ref, qkv_b_ref, o_w_ref, o_b_ref[...],
               ln1g_ref[...], ln1b_ref[...], f1w_ref[...], f1b_ref[...],
               f2w_ref[...], f2b_ref[...], ln2g_ref[...], ln2b_ref[...], B, S, nh)
    # discriminator head: dense(H->H) + gelu, then H->1 done as broadcast-mul + lane reduce
    h = _gelu(jnp.dot(x, h1w_ref[...], preferred_element_type=F32) + h1b_ref[...])
    dlog = jnp.sum(h * h2w_ref[...], axis=-1, keepdims=True) + h2b_ref[...]   # [M, 1]
    # numerically stable BCEWithLogits + masked mean over active (non-pad) positions
    y = lab_ref[...]
    per = jnp.maximum(dlog, 0.0) - dlog * y + jnp.log(1.0 + jnp.exp(-jnp.abs(dlog)))
    mf = mf_ref[...]
    num = jnp.sum(per * mf, axis=0, keepdims=True)
    den = jnp.sum(mf, axis=0, keepdims=True)
    loss_ref[...] = num / jnp.maximum(den, 1.0)


# ===================== pallas_call wrappers =====================

def gen_encoder(p, pe2, pmask_add, B, SP):
    args = (pe2, pmask_add,
            p["g_emb_p_ln_g"], p["g_emb_p_ln_b"],
            p["genc_qkv_w"], p["genc_qkv_b"], p["genc_o_w"], p["genc_o_b"],
            p["genc_ln1_g"], p["genc_ln1_b"],
            p["genc_ffn1_w"], p["genc_ffn1_b"], p["genc_ffn2_w"], p["genc_ffn2_b"],
            p["genc_ln2_g"], p["genc_ln2_b"])
    return pl.pallas_call(
        functools.partial(_gen_encoder_kernel, B=B, S=SP, nh=G_HEADS),
        out_shape=jax.ShapeDtypeStruct((B * SP, HG), F32),
        in_specs=[_VMEM_SPEC] * len(args),
        out_specs=_VMEM_SPEC,
    )(*args)


def gen_decoder(p, ye2, penc2, ymask_add, pmask_add, labels, lmask, B, SY, SP):
    args = (ye2, penc2, ymask_add, pmask_add, labels, lmask,
            p["g_emb_y_ln_g"], p["g_emb_y_ln_b"],
            p["gdec_qkv_w"], p["gdec_qkv_b"], p["gdec_o_w"], p["gdec_o_b"],
            p["gdec_ln1_g"], p["gdec_ln1_b"],
            p["gdec_c_qkv_w"], p["gdec_c_qkv_b"], p["gdec_c_o_w"], p["gdec_c_o_b"],
            p["gdec_lnc_g"], p["gdec_lnc_b"],
            p["gdec_ffn1_w"], p["gdec_ffn1_b"], p["gdec_ffn2_w"], p["gdec_ffn2_b"],
            p["gdec_ln2_g"], p["gdec_ln2_b"],
            p["g_out_w"], p["g_out_b"])
    return pl.pallas_call(
        functools.partial(_gen_decoder_kernel, B=B, SY=SY, SP=SP, nh=G_HEADS),
        out_shape=(jax.ShapeDtypeStruct((B * SY, VOCAB), F32),
                   jax.ShapeDtypeStruct((1, 1), F32)),
        in_specs=[_VMEM_SPEC] * len(args),
        out_specs=(_VMEM_SPEC, _VMEM_SPEC),
    )(*args)


def disc_forward(p, e2, ymask_add, maskf, lab, B, SY):
    args = (e2, ymask_add, maskf, lab,
            p["d_emb_ln_g"], p["d_emb_ln_b"], p["d_emb_proj_w"], p["d_emb_proj_b"],
            p["dlayer_qkv_w"], p["dlayer_qkv_b"], p["dlayer_o_w"], p["dlayer_o_b"],
            p["dlayer_ln1_g"], p["dlayer_ln1_b"],
            p["dlayer_ffn1_w"], p["dlayer_ffn1_b"], p["dlayer_ffn2_w"], p["dlayer_ffn2_b"],
            p["dlayer_ln2_g"], p["dlayer_ln2_b"],
            p["d_head1_w"], p["d_head1_b"], p["d_head2_w"], p["d_head2_b"])
    return pl.pallas_call(
        functools.partial(_disc_kernel, B=B, S=SY, nh=D_HEADS),
        out_shape=jax.ShapeDtypeStruct((1, 1), F32),
        in_specs=[_VMEM_SPEC] * len(args),
        out_specs=_VMEM_SPEC,
    )(*args)


# ===================== parameters =====================

def init_params(key):
    keys = iter(jax.random.split(key, 128))
    p = {}

    def nrm(shape, scale=0.02):
        return scale * jax.random.normal(next(keys), shape, dtype=F32)

    def ln(pre, H):
        p[pre + "_g"] = jnp.ones((1, H), F32)
        p[pre + "_b"] = jnp.zeros((1, H), F32)

    def attn(pre, H, nh):
        D = H // nh
        p[pre + "_qkv_w"] = nrm((3 * nh, H, D))      # per-head q / k / v projections
        p[pre + "_qkv_b"] = jnp.zeros((3 * nh, 1, D), F32)
        p[pre + "_o_w"] = nrm((nh, D, H))            # per-head slices of the output proj
        p[pre + "_o_b"] = jnp.zeros((1, H), F32)

    def ffn(pre, H, I):
        p[pre + "_ffn1_w"] = nrm((H, I)); p[pre + "_ffn1_b"] = jnp.zeros((1, I), F32)
        p[pre + "_ffn2_w"] = nrm((I, H)); p[pre + "_ffn2_b"] = jnp.zeros((1, H), F32)

    # ---- generator (P2W: phone encoder + bert-style word decoder, return_logits) ----
    p["g_word_emb"] = nrm((VOCAB, HG))
    p["g_phone_emb"] = nrm((PHONE_VOCAB, HG))
    p["g_pos_y"] = nrm((MAX_SEQ, HG))
    p["g_pos_p"] = nrm((MAX_SEQ, HG))
    ln("g_emb_y_ln", HG)
    ln("g_emb_p_ln", HG)
    attn("genc", HG, G_HEADS); ln("genc_ln1", HG); ffn("genc", HG, G_INTER); ln("genc_ln2", HG)
    attn("gdec", HG, G_HEADS); ln("gdec_ln1", HG)
    attn("gdec_c", HG, G_HEADS); ln("gdec_lnc", HG)          # cross-attn to phones
    ffn("gdec", HG, G_INTER); ln("gdec_ln2", HG)
    p["g_out_w"] = nrm((HG, VOCAB)); p["g_out_b"] = jnp.zeros((1, VOCAB), F32)

    # ---- discriminator (ElectraForPreTraining) ----
    p["d_word_emb"] = nrm((VOCAB, E))
    p["d_pos"] = nrm((MAX_SEQ, E))
    ln("d_emb_ln", E)
    p["d_emb_proj_w"] = nrm((E, HD)); p["d_emb_proj_b"] = jnp.zeros((1, HD), F32)
    attn("dlayer", HD, D_HEADS); ln("dlayer_ln1", HD); ffn("dlayer", HD, D_INTER); ln("dlayer_ln2", HD)
    p["d_head1_w"] = nrm((HD, HD)); p["d_head1_b"] = jnp.zeros((1, HD), F32)
    p["d_head2_w"] = nrm((1, HD));  p["d_head2_b"] = jnp.zeros((1, 1), F32)
    return p


# ===================== full forward (3 pallas_calls + JAX glue, under one jit) =====================

@jax.jit
def pelectra_forward(p, ys, ylens, labels, ps, plens, sample_key):
    B, SY = ys.shape
    SP = ps.shape[1]
    # TODO(synk): generalize with padding if B*SY is not sublane-aligned; here SY=8.
    assert SY % 8 == 0
    SPp = SP + (-SP) % 8          # pad phone length to a sublane multiple; pads are masked

    # make_nopad_mask
    ymask = (jnp.arange(SY)[None, :] < ylens[:, None]).astype(F32)          # [B, SY]
    pmask = (jnp.arange(SPp)[None, :] < plens[:, None]).astype(F32)         # [B, SPp]
    ymask_add = ((1.0 - ymask) * NEG_INF).reshape(B, 1, SY)
    pmask_add = ((1.0 - pmask) * NEG_INF).reshape(B, 1, SPp)

    # ---- generator: phone encoder ----
    # TODO(synk): embedding gather stays in plain JAX (no clean small-scale Pallas gather)
    pe = jnp.take(p["g_phone_emb"], ps, axis=0) + p["g_pos_p"][None, :SP]
    pe = jnp.pad(pe, ((0, 0), (0, SPp - SP), (0, 0)))
    penc = gen_encoder(p, pe.reshape(B * SPp, HG), pmask_add, B, SPp)

    # ---- generator: word decoder + MLM loss (fused) ----
    ye = jnp.take(p["g_word_emb"], ys, axis=0) + p["g_pos_y"][None, :SY]
    mask_tok = labels != -100
    labels_safe = jnp.where(mask_tok, labels, 0).astype(jnp.int32).reshape(B * SY, 1)
    lmask = mask_tok.astype(F32).reshape(B * SY, 1)
    glogits2, gloss = gen_decoder(p, ye.reshape(B * SY, HG), penc, ymask_add, pmask_add,
                                  labels_safe, lmask, B, SY, SPp)
    gloss = gloss[0, 0]
    glogits = glogits2.reshape(B, SY, VOCAB)

    # ---- ELECTRA replaced-token-detection bookkeeping (plain JAX, matches PyTorch) ----
    original_ids = jnp.where(mask_tok, labels, ys)
    # sample_temp(glogits, temp=1.0): multinomial over softmax == categorical over logits
    sample_ids = jax.random.categorical(sample_key, glogits, axis=2)
    generated_ids = jnp.where(mask_tok, sample_ids, ys).astype(jnp.int32)
    labels_replaced = (generated_ids != original_ids.astype(jnp.int32)).astype(jnp.int32)

    # ---- discriminator + BCE loss (fused) ----
    e = jnp.take(p["d_word_emb"], generated_ids, axis=0) + p["d_pos"][None, :SY]
    dloss = disc_forward(p, e.reshape(B * SY, E), ymask_add,
                         ymask.reshape(B * SY, 1),
                         labels_replaced.astype(F32).reshape(B * SY, 1), B, SY)[0, 0]

    loss = gloss + ELECTRA_DISC_WEIGHT * dloss
    loss_dict = {
        "loss_gen": gloss,
        "loss_disc": dloss,
        "num_replaced": jnp.sum(labels_replaced).astype(F32) / B,
        "num_masked": jnp.sum(mask_tok).astype(F32) / B,
    }
    return loss, loss_dict


# ===================== main =====================

if __name__ == "__main__":
    key = jax.random.PRNGKey(0)
    kp, kys, kps, kmask, klab, ksample = jax.random.split(key, 6)

    p = init_params(kp)

    B, SY, SP = 2, 8, 12
    ys = jax.random.randint(kys, (B, SY), 4, VOCAB).astype(jnp.int32)
    ps = jax.random.randint(kps, (B, SP), 1, PHONE_VOCAB).astype(jnp.int32)
    ylens = jnp.array([8, 6], jnp.int32)
    plens = jnp.array([12, 9], jnp.int32)

    # build MLM-style inputs: ~30% of valid positions are masked; labels hold the
    # original token there (and -100 elsewhere); ys holds MASK_ID at masked spots.
    rand_mask = jax.random.uniform(kmask, (B, SY)) < 0.3
    valid = jnp.arange(SY)[None, :] < ylens[:, None]
    masked = rand_mask & valid
    orig_tokens = jax.random.randint(klab, (B, SY), 4, VOCAB)
    labels = jnp.where(masked, orig_tokens, -100).astype(jnp.int32)
    ys = jnp.where(masked, MASK_ID, ys).astype(jnp.int32)

    loss, loss_dict = pelectra_forward(p, ys, ylens, labels, ps, plens, ksample)
    jax.block_until_ready(loss)
    jax.block_until_ready(loss_dict["loss_disc"])
    print("KERNEL_OK")
</pallas_src>

<mosaic_0001>
module attributes {stable_mosaic.version = 11 : i64} {
  func.func @_gen_encoder_kernel(%arg0: memref<32x32xf32, #tpu.memory_space<vmem>>, %arg1: memref<2x1x16xf32, #tpu.memory_space<vmem>>, %arg2: memref<1x32xf32, #tpu.memory_space<vmem>>, %arg3: memref<1x32xf32, #tpu.memory_space<vmem>>, %arg4: memref<12x32x8xf32, #tpu.memory_space<vmem>>, %arg5: memref<12x1x8xf32, #tpu.memory_space<vmem>>, %arg6: memref<4x8x32xf32, #tpu.memory_space<vmem>>, %arg7: memref<1x32xf32, #tpu.memory_space<vmem>>, %arg8: memref<1x32xf32, #tpu.memory_space<vmem>>, %arg9: memref<1x32xf32, #tpu.memory_space<vmem>>, %arg10: memref<32x64xf32, #tpu.memory_space<vmem>>, %arg11: memref<1x64xf32, #tpu.memory_space<vmem>>, %arg12: memref<64x32xf32, #tpu.memory_space<vmem>>, %arg13: memref<1x32xf32, #tpu.memory_space<vmem>>, %arg14: memref<1x32xf32, #tpu.memory_space<vmem>>, %arg15: memref<1x32xf32, #tpu.memory_space<vmem>>, %arg16: memref<32x32xf32, #tpu.memory_space<vmem>>) attributes {dimension_semantics = [], scalar_prefetch = 0 : i64, scratch_operands = 0 : i64, tpu.core_type = #tpu.core_type<tc>} {
    %c0 = arith.constant 0 : index
    %c0_0 = arith.constant 0 : index
    %0 = vector.load %arg0[%c0, %c0_0] : memref<32x32xf32, #tpu.memory_space<vmem>>, vector<32x32xf32>
    %c0_1 = arith.constant 0 : index
    %c0_2 = arith.constant 0 : index
    %1 = vector.load %arg2[%c0_1, %c0_2] : memref<1x32xf32, #tpu.memory_space<vmem>>, vector<1x32xf32>
    %c0_3 = arith.constant 0 : index
    %c0_4 = arith.constant 0 : index
    %2 = vector.load %arg3[%c0_3, %c0_4] : memref<1x32xf32, #tpu.memory_space<vmem>>, vector<1x32xf32>
    %cst = arith.constant dense<0.000000e+00> : vector<32xf32>
    %3 = vector.multi_reduction <add>, %0, %cst [1] : vector<32x32xf32> to vector<32xf32>
    %4 = vector.shape_cast %3 : vector<32xf32> to vector<32x1xf32>
    %cst_5 = arith.constant 3.200000e+01 : f32
    %5 = vector.broadcast %cst_5 : f32 to vector<32x1xf32>
    %6 = arith.divf %4, %5 : vector<32x1xf32>
    %7 = vector.broadcast %6 : vector<32x1xf32> to vector<32x32xf32>
    %8 = arith.subf %0, %7 : vector<32x32xf32>
    %9 = arith.mulf %8, %8 : vector<32x32xf32>
    %cst_6 = arith.constant dense<0.000000e+00> : vector<32xf32>
    %10 = vector.multi_reduction <add>, %9, %cst_6 [1] : vector<32x32xf32> to vector<32xf32>
    %11 = vector.shape_cast %10 : vector<32xf32> to vector<32x1xf32>
    %cst_7 = arith.constant 3.200000e+01 : f32
    %12 = vector.broadcast %cst_7 : f32 to vector<32x1xf32>
    %13 = arith.divf %11, %12 : vector<32x1xf32>
    %cst_8 = arith.constant 9.99999996E-13 : f32
    %14 = vector.broadcast %cst_8 : f32 to vector<32x1xf32>
    %15 = arith.addf %13, %14 : vector<32x1xf32>
    %16 = math.rsqrt %15 : vector<32x1xf32>
    %17 = vector.broadcast %16 : vector<32x1xf32> to vector<32x32xf32>
    %18 = arith.mulf %8, %17 : vector<32x32xf32>
    %19 = vector.broadcast %1 : vector<1x32xf32> to vector<32x32xf32>
    %20 = arith.mulf %18, %19 : vector<32x32xf32>
    %21 = vector.broadcast %2 : vector<1x32xf32> to vector<32x32xf32>
    %22 = arith.addf %20, %21 : vector<32x32xf32>
    %c0_9 = arith.constant 0 : index
    %c0_10 = arith.constant 0 : index
    %23 = vector.load %arg7[%c0_9, %c0_10] : memref<1x32xf32, #tpu.memory_space<vmem>>, vector<1x32xf32>
    %c0_11 = arith.constant 0 : index
    %c0_12 = arith.constant 0 : index
    %24 = vector.load %arg8[%c0_11, %c0_12] : memref<1x32xf32, #tpu.memory_space<vmem>>, vector<1x32xf32>
    %c0_13 = arith.constant 0 : index
    %c0_14 = arith.constant 0 : index
    %25 = vector.load %arg9[%c0_13, %c0_14] : memref<1x32xf32, #tpu.memory_space<vmem>>, vector<1x32xf32>
    %c0_15 = arith.constant 0 : index
    %c0_16 = arith.constant 0 : index
    %26 = vector.load %arg10[%c0_15, %c0_16] : memref<32x64xf32, #tpu.memory_space<vmem>>, vector<32x64xf32>
    %c0_17 = arith.constant 0 : index
    %c0_18 = arith.constant 0 : index
    %27 = vector.load %arg11[%c0_17, %c0_18] : memref<1x64xf32, #tpu.memory_space<vmem>>, vector<1x64xf32>
    %c0_19 = arith.constant 0 : index
    %c0_20 = arith.constant 0 : index
    %28 = vector.load %arg12[%c0_19, %c0_20] : memref<64x32xf32, #tpu.memory_space<vmem>>, vector<64x32xf32>
    %c0_21 = arith.constant 0 : index
    %c0_22 = arith.constant 0 : index
    %29 = vector.load %arg13[%c0_21, %c0_22] : memref<1x32xf32, #tpu.memory_space<vmem>>, vector<1x32xf32>
    %c0_23 = arith.constant 0 : index
    %c0_24 = arith.constant 0 : index
    %30 = vector.load %arg14[%c0_23, %c0_24] : memref<1x32xf32, #tpu.memory_space<vmem>>, vector<1x32xf32>
    %c0_25 = arith.constant 0 : index
    %c0_26 = arith.constant 0 : index
    %31 = vector.load %arg15[%c0_25, %c0_26] : memref<1x32xf32, #tpu.memory_space<vmem>>, vector<1x32xf32>
    %c0_27 = arith.constant 0 : index
    %c0_28 = arith.constant 0 : index
    %c0_29 = arith.constant 0 : index
    %32 = vector.load %arg4[%c0_27, %c0_28, %c0_29] : memref<12x32x8xf32, #tpu.memory_space<vmem>>, vector<1x32x8xf32>
    %33 = vector.shape_cast %32 : vector<1x32x8xf32> to vector<32x8xf32>
    %cst_30 = arith.constant dense<0.000000e+00> : vector<32x8xf32>
    %34 = tpu.matmul %22, %33, %cst_30 {dimension_numbers = #tpu.dot_dimension_numbers<[1], [0], [0], [1], [0, 0, 1, 1], [], []>} : vector<32x32xf32>, vector<32x8xf32>, vector<32x8xf32> -> vector<32x8xf32>
    %c0_31 = arith.constant 0 : index
    %c0_32 = arith.constant 0 : index
    %c0_33 = arith.constant 0 : index
    %35 = vector.load %arg5[%c0_31, %c0_32, %c0_33] : memref<12x1x8xf32, #tpu.memory_space<vmem>>, vector<1x1x8xf32>
    %36 = vector.shape_cast %35 : vector<1x1x8xf32> to vector<1x8xf32>
    %37 = vector.broadcast %36 : vector<1x8xf32> to vector<32x8xf32>
    %38 = arith.addf %34, %37 : vector<32x8xf32>
    %c4 = arith.constant 4 : index
    %c0_34 = arith.constant 0 : index
    %c0_35 = arith.constant 0 : index
    %39 = vector.load %arg4[%c4, %c0_34, %c0_35] : memref<12x32x8xf32, #tpu.memory_space<vmem>>, vector<1x32x8xf32>
    %40 = vector.shape_cast %39 : vector<1x32x8xf32> to vector<32x8xf32>
    %cst_36 = arith.constant dense<0.000000e+00> : vector<32x8xf32>
    %41 = tpu.matmul %22, %40, %cst_36 {dimension_numbers = #tpu.dot_dimension_numbers<[1], [0], [0], [1], [0, 0, 1, 1], [], []>} : vector<32x32xf32>, vector<32x8xf32>, vector<32x8xf32> -> vector<32x8xf32>
    %c4_37 = arith.constant 4 : index
    %c0_38 = arith.constant 0 : index
    %c0_39 = arith.constant 0 : index
    %42 = vector.load %arg5[%c4_37, %c0_38, %c0_39] : memref<12x1x8xf32, #tpu.memory_space<vmem>>, vector<1x1x8xf32>
    %43 = vector.shape_cast %42 : vector<1x1x8xf32> to vector<1x8xf32>
    %44 = vector.broadcast %43 : vector<1x8xf32> to vector<32x8xf32>
    %45 = arith.addf %41, %44 : vector<32x8xf32>
    %c8 = arith.constant 8 : index
    %c0_40 = arith.constant 0 : index
    %c0_41 = arith.constant 0 : index
    %46 = vector.load %arg4[%c8, %c0_40, %c0_41] : memref<12x32x8xf32, #tpu.memory_space<vmem>>, vector<1x32x8xf32>
    %47 = vector.shape_cast %46 : vector<1x32x8xf32> to vector<32x8xf32>
    %cst_42 = arith.constant dense<0.000000e+00> : vector<32x8xf32>
    %48 = tpu.matmul %22, %47, %cst_42 {dimension_numbers = #tpu.dot_dimension_numbers<[1], [0], [0], [1], [0, 0, 1, 1], [], []>} : vector<32x32xf32>, vector<32x8xf32>, vector<32x8xf32> -> vector<32x8xf32>
    %c8_43 = arith.constant 8 : index
    %c0_44 = arith.constant 0 : index
    %c0_45 = arith.constant 0 : index
    %49 = vector.load %arg5[%c8_43, %c0_44, %c0_45] : memref<12x1x8xf32, #tpu.memory_space<vmem>>, vector<1x1x8xf32>
    %50 = vector.shape_cast %49 : vector<1x1x8xf32> to vector<1x8xf32>
    %51 = vector.broadcast %50 : vector<1x8xf32> to vector<32x8xf32>
    %52 = arith.addf %48, %51 : vector<32x8xf32>
    %c1 = arith.constant 1 : index
    %c0_46 = arith.constant 0 : index
    %c0_47 = arith.constant 0 : index
    %53 = vector.load %arg4[%c1, %c0_46, %c0_47] : memref<12x32x8xf32, #tpu.memory_space<vmem>>, vector<1x32x8xf32>
    %54 = vector.shape_cast %53 : vector<1x32x8xf32> to vector<32x8xf32>
    %cst_48 = arith.constant dense<0.000000e+00> : vector<32x8xf32>
    %55 = tpu.matmul %22, %54, %cst_48 {dimension_numbers = #tpu.dot_dimension_numbers<[1], [0], [0], [1], [0, 0, 1, 1], [], []>} : vector<32x32xf32>, vector<32x8xf32>, vector<32x8xf32> -> vector<32x8xf32>
    %c1_49 = arith.constant 1 : index
    %c0_50 = arith.constant 0 : index
    %c0_51 = arith.constant 0 : index
    %56 = vector.load %arg5[%c1_49, %c0_50, %c0_51] : memref<12x1x8xf32, #tpu.memory_space<vmem>>, vector<1x1x8xf32>
    %57 = vector.shape_cast %56 : vector<1x1x8xf32> to vector<1x8xf32>
    %58 = vector.broadcast %57 : vector<1x8xf32> to vector<32x8xf32>
    %59 = arith.addf %55, %58 : vector<32x8xf32>
    %c5 = arith.constant 5 : index
    %c0_52 = arith.constant 0 : index
    %c0_53 = arith.constant 0 : index
    %60 = vector.load %arg4[%c5, %c0_52, %c0_53] : memref<12x32x8xf32, #tpu.memory_space<vmem>>, vector<1x32x8xf32>
    %61 = vector.shape_cast %60 : vector<1x32x8xf32> to vector<32x8xf32>
    %cst_54 = arith.constant dense<0.000000e+00> : vector<32x8xf32>
    %62 = tpu.matmul %22, %61, %cst_54 {dimension_numbers = #tpu.dot_dimension_numbers<[1], [0], [0], [1], [0, 0, 1, 1], [], []>} : vector<32x32xf32>, vector<32x8xf32>, vector<32x8xf32> -> vector<32x8xf32>
    %c5_55 = arith.constant 5 : index
    %c0_56 = arith.constant 0 : index
    %c0_57 = arith.constant 0 : index
    %63 = vector.load %arg5[%c5_55, %c0_56, %c0_57] : memref<12x1x8xf32, #tpu.memory_space<vmem>>, vector<1x1x8xf32>
    %64 = vector.shape_cast %63 : vector<1x1x8xf32> to vector<1x8xf32>
    %65 = vector.broadcast %64 : vector<1x8xf32> to vector<32x8xf32>
    %66 = arith.addf %62, %65 : vector<32x8xf32>
    %c9 = arith.constant 9 : index
    %c0_58 = arith.constant 0 : index
    %c0_59 = arith.constant 0 : index
    %67 = vector.load %arg4[%c9, %c0_58, %c0_59] : memref<12x32x8xf32, #tpu.memory_space<vmem>>, vector<1x32x8xf32>
    %68 = vector.shape_cast %67 : vector<1x32x8xf32> to vector<32x8xf32>
    %cst_60 = arith.constant dense<0.000000e+00> : vector<32x8xf32>
    %69 = tpu.matmul %22, %68, %cst_60 {dimension_numbers = #tpu.dot_dimension_numbers<[1], [0], [0], [1], [0, 0, 1, 1], [], []>} : vector<32x32xf32>, vector<32x8xf32>, vector<32x8xf32> -> vector<32x8xf32>
    %c9_61 = arith.constant 9 : index
    %c0_62 = arith.constant 0 : index
    %c0_63 = arith.constant 0 : index
    %70 = vector.load %arg5[%c9_61, %c0_62, %c0_63] : memref<12x1x8xf32, #tpu.memory_space<vmem>>, vector<1x1x8xf32>
    %71 = vector.shape_cast %70 : vector<1x1x8xf32> to vector<1x8xf32>
    %72 = vector.broadcast %71 : vector<1x8xf32> to vector<32x8xf32>
    %73 = arith.addf %69, %72 : vector<32x8xf32>
    %c2 = arith.constant 2 : index
    %c0_64 = arith.constant 0 : index
    %c0_65 = arith.constant 0 : index
    %74 = vector.load %arg4[%c2, %c0_64, %c0_65] : memref<12x32x8xf32, #tpu.memory_space<vmem>>, vector<1x32x8xf32>
    %75 = vector.shape_cast %74 : vector<1x32x8xf32> to vector<32x8xf32>
    %cst_66 = arith.constant dense<0.000000e+00> : vector<32x8xf32>
    %76 = tpu.matmul %22, %75, %cst_66 {dimension_numbers = #tpu.dot_dimension_numbers<[1], [0], [0], [1], [0, 0, 1, 1], [], []>} : vector<32x32xf32>, vector<32x8xf32>, vector<32x8xf32> -> vector<32x8xf32>
    %c2_67 = arith.constant 2 : index
    %c0_68 = arith.constant 0 : index
    %c0_69 = arith.constant 0 : index
    %77 = vector.load %arg5[%c2_67, %c0_68, %c0_69] : memref<12x1x8xf32, #tpu.memory_space<vmem>>, vector<1x1x8xf32>
    %78 = vector.shape_cast %77 : vector<1x1x8xf32> to vector<1x8xf32>
    %79 = vector.broadcast %78 : vector<1x8xf32> to vector<32x8xf32>
    %80 = arith.addf %76, %79 : vector<32x8xf32>
    %c6 = arith.constant 6 : index
    %c0_70 = arith.constant 0 : index
    %c0_71 = arith.constant 0 : index
    %81 = vector.load %arg4[%c6, %c0_70, %c0_71] : memref<12x32x8xf32, #tpu.memory_space<vmem>>, vector<1x32x8xf32>
    %82 = vector.shape_cast %81 : vector<1x32x8xf32> to vector<32x8xf32>
    %cst_72 = arith.constant dense<0.000000e+00> : vector<32x8xf32>
    %83 = tpu.matmul %22, %82, %cst_72 {dimension_numbers = #tpu.dot_dimension_numbers<[1], [0], [0], [1], [0, 0, 1, 1], [], []>} : vector<32x32xf32>, vector<32x8xf32>, vector<32x8xf32> -> vector<32x8xf32>
    %c6_73 = arith.constant 6 : index
    %c0_74 = arith.constant 0 : index
    %c0_75 = arith.constant 0 : index
    %84 = vector.load %arg5[%c6_73, %c0_74, %c0_75] : memref<12x1x8xf32, #tpu.memory_space<vmem>>, vector<1x1x8xf32>
    %85 = vector.shape_cast %84 : vector<1x1x8xf32> to vector<1x8xf32>
    %86 = vector.broadcast %85 : vector<1x8xf32> to vector<32x8xf32>
    %87 = arith.addf %83, %86 : vector<32x8xf32>
    %c10 = arith.constant 10 : index
    %c0_76 = arith.constant 0 : index
    %c0_77 = arith.constant 0 : index
    %88 = vector.load %arg4[%c10, %c0_76, %c0_77] : memref<12x32x8xf32, #tpu.memory_space<vmem>>, vector<1x32x8xf32>
    %89 = vector.shape_cast %88 : vector<1x32x8xf32> to vector<32x8xf32>
    %cst_78 = arith.constant dense<0.000000e+00> : vector<32x8xf32>
    %90 = tpu.matmul %22, %89, %cst_78 {dimension_numbers = #tpu.dot_dimension_numbers<[1], [0], [0], [1], [0, 0, 1, 1], [], []>} : vector<32x32xf32>, vector<32x8xf32>, vector<32x8xf32> -> vector<32x8xf32>
    %c10_79 = arith.constant 10 : index
    %c0_80 = arith.constant 0 : index
    %c0_81 = arith.constant 0 : index
    %91 = vector.load %arg5[%c10_79, %c0_80, %c0_81] : memref<12x1x8xf32, #tpu.memory_space<vmem>>, vector<1x1x8xf32>
    %92 = vector.shape_cast %91 : vector<1x1x8xf32> to vector<1x8xf32>
    %93 = vector.broadcast %92 : vector<1x8xf32> to vector<32x8xf32>
    %94 = arith.addf %90, %93 : vector<32x8xf32>
    %c3 = arith.constant 3 : index
    %c0_82 = arith.constant 0 : index
    %c0_83 = arith.constant 0 : index
    %95 = vector.load %arg4[%c3, %c0_82, %c0_83] : memref<12x32x8xf32, #tpu.memory_space<vmem>>, vector<1x32x8xf32>
    %96 = vector.shape_cast %95 : vector<1x32x8xf32> to vector<32x8xf32>
    %cst_84 = arith.constant dense<0.000000e+00> : vector<32x8xf32>
    %97 = tpu.matmul %22, %96, %cst_84 {dimension_numbers = #tpu.dot_dimension_numbers<[1], [0], [0], [1], [0, 0, 1, 1], [], []>} : vector<32x32xf32>, vector<32x8xf32>, vector<32x8xf32> -> vector<32x8xf32>
    %c3_85 = arith.constant 3 : index
    %c0_86 = arith.constant 0 : index
    %c0_87 = arith.constant 0 : index
    %98 = vector.load %arg5[%c3_85, %c0_86, %c0_87] : memref<12x1x8xf32, #tpu.memory_space<vmem>>, vector<1x1x8xf32>
    %99 = vector.shape_cast %98 : vector<1x1x8xf32> to vector<1x8xf32>
    %100 = vector.broadcast %99 : vector<1x8xf32> to vector<32x8xf32>
    %101 = arith.addf %97, %100 : vector<32x8xf32>
    %c7 = arith.constant 7 : index
    %c0_88 = arith.constant 0 : index
    %c0_89 = arith.constant 0 : index
    %102 = vector.load %arg4[%c7, %c0_88, %c0_89] : memref<12x32x8xf32, #tpu.memory_space<vmem>>, vector<1x32x8xf32>
    %103 = vector.shape_cast %102 : vector<1x32x8xf32> to vector<32x8xf32>
    %cst_90 = arith.constant dense<0.000000e+00> : vector<32x8xf32>
    %104 = tpu.matmul %22, %103, %cst_90 {dimension_numbers = #tpu.dot_dimension_numbers<[1], [0], [0], [1], [0, 0, 1, 1], [], []>} : vector<32x32xf32>, vector<32x8xf32>, vector<32x8xf32> -> vector<32x8xf32>
    %c7_91 = arith.constant 7 : index
    %c0_92 = arith.constant 0 : index
    %c0_93 = arith.constant 0 : index
    %105 = vector.load %arg5[%c7_91, %c0_92, %c0_93] : memref<12x1x8xf32, #tpu.memory_space<vmem>>, vector<1x1x8xf32>
    %106 = vector.shape_cast %105 : vector<1x1x8xf32> to vector<1x8xf32>
    %107 = vector.broadcast %106 : vector<1x8xf32> to vector<32x8xf32>
    %108 = arith.addf %104, %107 : vector<32x8xf32>
    %c11 = arith.constant 11 : index
    %c0_94 = arith.constant 0 : index
    %c0_95 = arith.constant 0 : index
    %109 = vector.load %arg4[%c11, %c0_94, %c0_95] : memref<12x32x8xf32, #tpu.memory_space<vmem>>, vector<1x32x8xf32>
    %110 = vector.shape_cast %109 : vector<1x32x8xf32> to vector<32x8xf32>
    %cst_96 = arith.constant dense<0.000000e+00> : vector<32x8xf32>
    %111 = tpu.matmul %22, %110, %cst_96 {dimension_numbers = #tpu.dot_dimension_numbers<[1], [0], [0], [1], [0, 0, 1, 1], [], []>} : vector<32x32xf32>, vector<32x8xf32>, vector<32x8xf32> -> vector<32x8xf32>
    %c11_97 = arith.constant 11 : index
    %c0_98 = arith.constant 0 : index
    %c0_99 = arith.constant 0 : index
    %112 = vector.load %arg5[%c11_97, %c0_98, %c0_99] : memref<12x1x8xf32, #tpu.memory_space<vmem>>, vector<1x1x8xf32>
    %113 = vector.shape_cast %112 : vector<1x1x8xf32> to vector<1x8xf32>
    %114 = vector.broadcast %113 : vector<1x8xf32> to vector<32x8xf32>
    %115 = arith.addf %111, %114 : vector<32x8xf32>
    %c0_100 = arith.constant 0 : index
    %c0_101 = arith.constant 0 : index
    %c0_102 = arith.constant 0 : index
    %116 = vector.load %arg1[%c0_100, %c0_101, %c0_102] : memref<2x1x16xf32, #tpu.memory_space<vmem>>, vector<1x1x16xf32>
    %117 = vector.shape_cast %116 : vector<1x1x16xf32> to vector<1x16xf32>
    %118 = vector.extract_strided_slice %38 {offsets = [0, 0], sizes = [16, 8], strides = [1, 1]} : vector<32x8xf32> to vector<16x8xf32>
    %119 = vector.extract_strided_slice %45 {offsets = [0, 0], sizes = [16, 8], strides = [1, 1]} : vector<32x8xf32> to vector<16x8xf32>
    %120 = vector.extract_strided_slice %52 {offsets = [0, 0], sizes = [16, 8], strides = [1, 1]} : vector<32x8xf32> to vector<16x8xf32>
    %cst_103 = arith.constant dense<0.000000e+00> : vector<16x16xf32>
    %121 = tpu.matmul %118, %119, %cst_103 {dimension_numbers = #tpu.dot_dimension_numbers<[1], [1], [0], [0], [0, 0, 1, 0], [], []>} : vector<16x8xf32>, vector<16x8xf32>, vector<16x16xf32> -> vector<16x16xf32>
    %cst_104 = arith.constant 0.353553385 : f32
    %122 = vector.broadcast %cst_104 : f32 to vector<16x16xf32>
    %123 = arith.mulf %121, %122 : vector<16x16xf32>
    %124 = vector.broadcast %117 : vector<1x16xf32> to vector<16x16xf32>
    %125 = arith.addf %123, %124 : vector<16x16xf32>
    %cst_105 = arith.constant dense<0xFF800000> : vector<16xf32>
    %126 = vector.multi_reduction <maximumf>, %125, %cst_105 [1] : vector<16x16xf32> to vector<16xf32>
    %127 = vector.shape_cast %126 : vector<16xf32> to vector<16x1xf32>
    %128 = vector.broadcast %127 : vector<16x1xf32> to vector<16x16xf32>
    %129 = arith.subf %125, %128 : vector<16x16xf32>
    %130 = math.exp %129 : vector<16x16xf32>
    %cst_106 = arith.constant dense<0.000000e+00> : vector<16xf32>
    %131 = vector.multi_reduction <add>, %130, %cst_106 [1] : vector<16x16xf32> to vector<16xf32>
    %132 = vector.shape_cast %131 : vector<16xf32> to vector<16x1xf32>
    %133 = vector.broadcast %132 : vector<16x1xf32> to vector<16x16xf32>
    %134 = arith.divf %130, %133 : vector<16x16xf32>
    %cst_107 = arith.constant dense<0.000000e+00> : vector<16x8xf32>
    %135 = tpu.matmul %134, %120, %cst_107 {dimension_numbers = #tpu.dot_dimension_numbers<[1], [0], [0], [1], [0, 0, 1, 1], [], []>} : vector<16x16xf32>, vector<16x8xf32>, vector<16x8xf32> -> vector<16x8xf32>
    %c0_108 = arith.constant 0 : index
    %c0_109 = arith.constant 0 : index
    %c0_110 = arith.constant 0 : index
    %136 = vector.load %arg6[%c0_108, %c0_109, %c0_110] : memref<4x8x32xf32, #tpu.memory_space<vmem>>, vector<1x8x32xf32>
    %137 = vector.shape_cast %136 : vector<1x8x32xf32> to vector<8x32xf32>
    %cst_111 = arith.constant dense<0.000000e+00> : vector<16x32xf32>
    %138 = tpu.matmul %135, %137, %cst_111 {dimension_numbers = #tpu.dot_dimension_numbers<[1], [0], [0], [1], [0, 0, 1, 1], [], []>} : vector<16x8xf32>, vector<8x32xf32>, vector<16x32xf32> -> vector<16x32xf32>
    %139 = vector.extract_strided_slice %59 {offsets = [0, 0], sizes = [16, 8], strides = [1, 1]} : vector<32x8xf32> to vector<16x8xf32>
    %140 = vector.extract_strided_slice %66 {offsets = [0, 0], sizes = [16, 8], strides = [1, 1]} : vector<32x8xf32> to vector<16x8xf32>
    %141 = vector.extract_strided_slice %73 {offsets = [0, 0], sizes = [16, 8], strides = [1, 1]} : vector<32x8xf32> to vector<16x8xf32>
    %cst_112 = arith.constant dense<0.000000e+00> : vector<16x16xf32>
    %142 = tpu.matmul %139, %140, %cst_112 {dimension_numbers = #tpu.dot_dimension_numbers<[1], [1], [0], [0], [0, 0, 1, 0], [], []>} : vector<16x8xf32>, vector<16x8xf32>, vector<16x16xf32> -> vector<16x16xf32>
    %cst_113 = arith.constant 0.353553385 : f32
    %143 = vector.broadcast %cst_113 : f32 to vector<16x16xf32>
    %144 = arith.mulf %142, %143 : vector<16x16xf32>
    %145 = vector.broadcast %117 : vector<1x16xf32> to vector<16x16xf32>
    %146 = arith.addf %144, %145 : vector<16x16xf32>
    %cst_114 = arith.constant dense<0xFF800000> : vector<16xf32>
    %147 = vector.multi_reduction <maximumf>, %146, %cst_114 [1] : vector<16x16xf32> to vector<16xf32>
    %148 = vector.shape_cast %147 : vector<16xf32> to vector<16x1xf32>
    %149 = vector.broadcast %148 : vector<16x1xf32> to vector<16x16xf32>
    %150 = arith.subf %146, %149 : vector<16x16xf32>
    %151 = math.exp %150 : vector<16x16xf32>
    %cst_115 = arith.constant dense<0.000000e+00> : vector<16xf32>
    %152 = vector.multi_reduction <add>, %151, %cst_115 [1] : vector<16x16xf32> to vector<16xf32>
    %153 = vector.shape_cast %152 : vector<16xf32> to vector<16x1xf32>
    %154 = vector.broadcast %153 : vector<16x1xf32> to vector<16x16xf32>
    %155 = arith.divf %151, %154 : vector<16x16xf32>
    %cst_116 = arith.constant dense<0.000000e+00> : vector<16x8xf32>
    %156 = tpu.matmul %155, %141, %cst_116 {dimension_numbers = #tpu.dot_dimension_numbers<[1], [0], [0], [1], [0, 0, 1, 1], [], []>} : vector<16x16xf32>, vector<16x8xf32>, vector<16x8xf32> -> vector<16x8xf32>
    %c1_117 = arith.constant 1 : index
    %c0_118 = arith.constant 0 : index
    %c0_119 = arith.constant 0 : index
    %157 = vector.load %arg6[%c1_117, %c0_118, %c0_119] : memref<4x8x32xf32, #tpu.memory_space<vmem>>, vector<1x8x32xf32>
    %158 = vector.shape_cast %157 : vector<1x8x32xf32> to vector<8x32xf32>
    %cst_120 = arith.constant dense<0.000000e+00> : vector<16x32xf32>
    %159 = tpu.matmul %156, %158, %cst_120 {dimension_numbers = #tpu.dot_dimension_numbers<[1], [0], [0], [1], [0, 0, 1, 1], [], []>} : vector<16x8xf32>, vector<8x32xf32>, vector<16x32xf32> -> vector<16x32xf32>
    %160 = arith.addf %138, %159 : vector<16x32xf32>
    %161 = vector.extract_strided_slice %80 {offsets = [0, 0], sizes = [16, 8], strides = [1, 1]} : vector<32x8xf32> to vector<16x8xf32>
    %162 = vector.extract_strided_slice %87 {offsets = [0, 0], sizes = [16, 8], strides = [1, 1]} : vector<32x8xf32> to vector<16x8xf32>
    %163 = vector.extract_strided_slice %94 {offsets = [0, 0], sizes = [16, 8], strides = [1, 1]} : vector<32x8xf32> to vector<16x8xf32>
    %cst_121 = arith.constant dense<0.000000e+00> : vector<16x16xf32>
    %164 = tpu.matmul %161, %162, %cst_121 {dimension_numbers = #tpu.dot_dimension_numbers<[1], [1], [0], [0], [0, 0, 1, 0], [], []>} : vector<16x8xf32>, vector<16x8xf32>, vector<16x16xf32> -> vector<16x16xf32>
    %cst_122 = arith.constant 0.353553385 : f32
    %165 = vector.broadcast %cst_122 : f32 to vector<16x16xf32>
    %166 = arith.mulf %164, %165 : vector<16x16xf32>
    %167 = vector.broadcast %117 : vector<1x16xf32> to vector<16x16xf32>
    %168 = arith.addf %166, %167 : vector<16x16xf32>
    %cst_123 = arith.constant dense<0xFF800000> : vector<16xf32>
    %169 = vector.multi_reduction <maximumf>, %168, %cst_123 [1] : vector<16x16xf32> to vector<16xf32>
    %170 = vector.shape_cast %169 : vector<16xf32> to vector<16x1xf32>
    %171 = vector.broadcast %170 : vector<16x1xf32> to vector<16x16xf32>
    %172 = arith.subf %168, %171 : vector<16x16xf32>
    %173 = math.exp %172 : vector<16x16xf32>
    %cst_124 = arith.constant dense<0.000000e+00> : vector<16xf32>
    %174 = vector.multi_reduction <add>, %173, %cst_124 [1] : vector<16x16xf32> to vector<16xf32>
    %175 = vector.shape_cast %174 : vector<16xf32> to vector<16x1xf32>
    %176 = vector.broadcast %175 : vector<16x1xf32> to vector<16x16xf32>
    %177 = arith.divf %173, %176 : vector<16x16xf32>
    %cst_125 = arith.constant dense<0.000000e+00> : vector<16x8xf32>
    %178 = tpu.matmul %177, %163, %cst_125 {dimension_numbers = #tpu.dot_dimension_numbers<[1], [0], [0], [1], [0, 0, 1, 1], [], []>} : vector<16x16xf32>, vector<16x8xf32>, vector<16x8xf32> -> vector<16x8xf32>
    %c2_126 = arith.constant 2 : index
    %c0_127 = arith.constant 0 : index
    %c0_128 = arith.constant 0 : index
    %179 = vector.load %arg6[%c2_126, %c0_127, %c0_128] : memref<4x8x32xf32, #tpu.memory_space<vmem>>, vector<1x8x32xf32>
    %180 = vector.shape_cast %179 : vector<1x8x32xf32> to vector<8x32xf32>
    %cst_129 = arith.constant dense<0.000000e+00> : vector<16x32xf32>
    %181 = tpu.matmul %178, %180, %cst_129 {dimension_numbers = #tpu.dot_dimension_numbers<[1], [0], [0], [1], [0, 0, 1, 1], [], []>} : vector<16x8xf32>, vector<8x32xf32>, vector<16x32xf32> -> vector<16x32xf32>
    %182 = arith.addf %160, %181 : vector<16x32xf32>
    %183 = vector.extract_strided_slice %101 {offsets = [0, 0], sizes = [16, 8], strides = [1, 1]} : vector<32x8xf32> to vector<16x8xf32>
    %184 = vector.extract_strided_slice %108 {offsets = [0, 0], sizes = [16, 8], strides = [1, 1]} : vector<32x8xf32> to vector<16x8xf32>
    %185 = vector.extract_strided_slice %115 {offsets = [0, 0], sizes = [16, 8], strides = [1, 1]} : vector<32x8xf32> to vector<16x8xf32>
    %cst_130 = arith.constant dense<0.000000e+00> : vector<16x16xf32>
    %186 = tpu.matmul %183, %184, %cst_130 {dimension_numbers = #tpu.dot_dimension_numbers<[1], [1], [0], [0], [0, 0, 1, 0], [], []>} : vector<16x8xf32>, vector<16x8xf32>, vector<16x16xf32> -> vector<16x16xf32>
    %cst_131 = arith.constant 0.353553385 : f32
    %187 = vector.broadcast %cst_131 : f32 to vector<16x16xf32>
    %188 = arith.mulf %186, %187 : vector<16x16xf32>
    %189 = vector.broadcast %117 : vector<1x16xf32> to vector<16x16xf32>
    %190 = arith.addf %188, %189 : vector<16x16xf32>
    %cst_132 = arith.constant dense<0xFF800000> : vector<16xf32>
    %191 = vector.multi_reduction <maximumf>, %190, %cst_132 [1] : vector<16x16xf32> to vector<16xf32>
    %192 = vector.shape_cast %191 : vector<16xf32> to vector<16x1xf32>
    %193 = vector.broadcast %192 : vector<16x1xf32> to vector<16x16xf32>
    %194 = arith.subf %190, %193 : vector<16x16xf32>
    %195 = math.exp %194 : vector<16x16xf32>
    %cst_133 = arith.constant dense<0.000000e+00> : vector<16xf32>
    %196 = vector.multi_reduction <add>, %195, %cst_133 [1] : vector<16x16xf32> to vector<16xf32>
    %197 = vector.shape_cast %196 : vector<16xf32> to vector<16x1xf32>
    %198 = vector.broadcast %197 : vector<16x1xf32> to vector<16x16xf32>
    %199 = arith.divf %195, %198 : vector<16x16xf32>
    %cst_134 = arith.constant dense<0.000000e+00> : vector<16x8xf32>
    %200 = tpu.matmul %199, %185, %cst_134 {dimension_numbers = #tpu.dot_dimension_numbers<[1], [0], [0], [1], [0, 0, 1, 1], [], []>} : vector<16x16xf32>, vector<16x8xf32>, vector<16x8xf32> -> vector<16x8xf32>
    %c3_135 = arith.constant 3 : index
    %c0_136 = arith.constant 0 : index
    %c0_137 = arith.constant 0 : index
    %201 = vector.load %arg6[%c3_135, %c0_136, %c0_137] : memref<4x8x32xf32, #tpu.memory_space<vmem>>, vector<1x8x32xf32>
    %202 = vector.shape_cast %201 : vector<1x8x32xf32> to vector<8x32xf32>
    %cst_138 = arith.constant dense<0.000000e+00> : vector<16x32xf32>
    %203 = tpu.matmul %200, %202, %cst_138 {dimension_numbers = #tpu.dot_dimension_numbers<[1], [0], [0], [1], [0, 0, 1, 1], [], []>} : vector<16x8xf32>, vector<8x32xf32>, vector<16x32xf32> -> vector<16x32xf32>
    %204 = arith.addf %182, %203 : vector<16x32xf32>
    %c1_139 = arith.constant 1 : index
    %c0_140 = arith.constant 0 : index
    %c0_141 = arith.constant 0 : index
    %205 = vector.load %arg1[%c1_139, %c0_140, %c0_141] : memref<2x1x16xf32, #tpu.memory_space<vmem>>, vector<1x1x16xf32>
    %206 = vector.shape_cast %205 : vector<1x1x16xf32> to vector<1x16xf32>
    %207 = vector.extract_strided_slice %38 {offsets = [16, 0], sizes = [16, 8], strides = [1, 1]} : vector<32x8xf32> to vector<16x8xf32>
    %208 = vector.extract_strided_slice %45 {offsets = [16, 0], sizes = [16, 8], strides = [1, 1]} : vector<32x8xf32> to vector<16x8xf32>
    %209 = vector.extract_strided_slice %52 {offsets = [16, 0], sizes = [16, 8], strides = [1, 1]} : vector<32x8xf32> to vector<16x8xf32>
    %cst_142 = arith.constant dense<0.000000e+00> : vector<16x16xf32>
    %210 = tpu.matmul %207, %208, %cst_142 {dimension_numbers = #tpu.dot_dimension_numbers<[1], [1], [0], [0], [0, 0, 1, 0], [], []>} : vector<16x8xf32>, vector<16x8xf32>, vector<16x16xf32> -> vector<16x16xf32>
    %cst_143 = arith.constant 0.353553385 : f32
    %211 = vector.broadcast %cst_143 : f32 to vector<16x16xf32>
    %212 = arith.mulf %210, %211 : vector<16x16xf32>
    %213 = vector.broadcast %206 : vector<1x16xf32> to vector<16x16xf32>
    %214 = arith.addf %212, %213 : vector<16x16xf32>
    %cst_144 = arith.constant dense<0xFF800000> : vector<16xf32>
    %215 = vector.multi_reduction <maximumf>, %214, %cst_144 [1] : vector<16x16xf32> to vector<16xf32>
    %216 = vector.shape_cast %215 : vector<16xf32> to vector<16x1xf32>
    %217 = vector.broadcast %216 : vector<16x1xf32> to vector<16x16xf32>
    %218 = arith.subf %214, %217 : vector<16x16xf32>
    %219 = math.exp %218 : vector<16x16xf32>
    %cst_145 = arith.constant dense<0.000000e+00> : vector<16xf32>
    %220 = vector.multi_reduction <add>, %219, %cst_145 [1] : vector<16x16xf32> to vector<16xf32>
    %221 = vector.shape_cast %220 : vector<16xf32> to vector<16x1xf32>
    %222 = vector.broadcast %221 : vector<16x1xf32> to vector<16x16xf32>
    %223 = arith.divf %219, %222 : vector<16x16xf32>
    %cst_146 = arith.constant dense<0.000000e+00> : vector<16x8xf32>
    %224 = tpu.matmul %223, %209, %cst_146 {dimension_numbers = #tpu.dot_dimension_numbers<[1], [0], [0], [1], [0, 0, 1, 1], [], []>} : vector<16x16xf32>, vector<16x8xf32>, vector<16x8xf32> -> vector<16x8xf32>
    %c0_147 = arith.constant 0 : index
    %c0_148 = arith.constant 0 : index
    %c0_149 = arith.constant 0 : index
    %225 = vector.load %arg6[%c0_147, %c0_148, %c0_149] : memref<4x8x32xf32, #tpu.memory_space<vmem>>, vector<1x8x32xf32>
    %226 = vector.shape_cast %225 : vector<1x8x32xf32> to vector<8x32xf32>
    %cst_150 = arith.constant dense<0.000000e+00> : vector<16x32xf32>
    %227 = tpu.matmul %224, %226, %cst_150 {dimension_numbers = #tpu.dot_dimension_numbers<[1], [0], [0], [1], [0, 0, 1, 1], [], []>} : vector<16x8xf32>, vector<8x32xf32>, vector<16x32xf32> -> vector<16x32xf32>
    %228 = vector.extract_strided_slice %59 {offsets = [16, 0], sizes = [16, 8], strides = [1, 1]} : vector<32x8xf32> to vector<16x8xf32>
    %229 = vector.extract_strided_slice %66 {offsets = [16, 0], sizes = [16, 8], strides = [1, 1]} : vector<32x8xf32> to vector<16x8xf32>
    %230 = vector.extract_strided_slice %73 {offsets = [16, 0], sizes = [16, 8], strides = [1, 1]} : vector<32x8xf32> to vector<16x8xf32>
    %cst_151 = arith.constant dense<0.000000e+00> : vector<16x16xf32>
    %231 = tpu.matmul %228, %229, %cst_151 {dimension_numbers = #tpu.dot_dimension_numbers<[1], [1], [0], [0], [0, 0, 1, 0], [], []>} : vector<16x8xf32>, vector<16x8xf32>, vector<16x16xf32> -> vector<16x16xf32>
    %cst_152 = arith.constant 0.353553385 : f32
    %232 = vector.broadcast %cst_152 : f32 to vector<16x16xf32>
    %233 = arith.mulf %231, %232 : vector<16x16xf32>
    %234 = vector.broadcast %206 : vector<1x16xf32> to vector<16x16xf32>
    %235 = arith.addf %233, %234 : vector<16x16xf32>
    %cst_153 = arith.constant dense<0xFF800000> : vector<16xf32>
    %236 = vector.multi_reduction <maximumf>, %235, %cst_153 [1] : vector<16x16xf32> to vector<16xf32>
    %237 = vector.shape_cast %236 : vector<16xf32> to vector<16x1xf32>
    %238 = vector.broadcast %237 : vector<16x1xf32> to vector<16x16xf32>
    %239 = arith.subf %235, %238 : vector<16x16xf32>
    %240 = math.exp %239 : vector<16x16xf32>
    %cst_154 = arith.constant dense<0.000000e+00> : vector<16xf32>
    %241 = vector.multi_reduction <add>, %240, %cst_154 [1] : vector<16x16xf32> to vector<16xf32>
    %242 = vector.shape_cast %241 : vector<16xf32> to vector<16x1xf32>
    %243 = vector.broadcast %242 : vector<16x1xf32> to vector<16x16xf32>
    %244 = arith.divf %240, %243 : vector<16x16xf32>
    %cst_155 = arith.constant dense<0.000000e+00> : vector<16x8xf32>
    %245 = tpu.matmul %244, %230, %cst_155 {dimension_numbers = #tpu.dot_dimension_numbers<[1], [0], [0], [1], [0, 0, 1, 1], [], []>} : vector<16x16xf32>, vector<16x8xf32>, vector<16x8xf32> -> vector<16x8xf32>
    %c1_156 = arith.constant 1 : index
    %c0_157 = arith.constant 0 : index
    %c0_158 = arith.constant 0 : index
    %246 = vector.load %arg6[%c1_156, %c0_157, %c0_158] : memref<4x8x32xf32, #tpu.memory_space<vmem>>, vector<1x8x32xf32>
    %247 = vector.shape_cast %246 : vector<1x8x32xf32> to vector<8x32xf32>
    %cst_159 = arith.constant dense<0.000000e+00> : vector<16x32xf32>
    %248 = tpu.matmul %245, %247, %cst_159 {dimension_numbers = #tpu.dot_dimension_numbers<[1], [0], [0], [1], [0, 0, 1, 1], [], []>} : vector<16x8xf32>, vector<8x32xf32>, vector<16x32xf32> -> vector<16x32xf32>
    %249 = arith.addf %227, %248 : vector<16x32xf32>
    %250 = vector.extract_strided_slice %80 {offsets = [16, 0], sizes = [16, 8], strides = [1, 1]} : vector<32x8xf32> to vector<16x8xf32>
    %251 = vector.extract_strided_slice %87 {offsets = [16, 0], sizes = [16, 8], strides = [1, 1]} : vector<32x8xf32> to vector<16x8xf32>
    %252 = vector.extract_strided_slice %94 {offsets = [16, 0], sizes = [16, 8], strides = [1, 1]} : vector<32x8xf32> to vector<16x8xf32>
    %cst_160 = arith.constant dense<0.000000e+00> : vector<16x16xf32>
    %253 = tpu.matmul %250, %251, %cst_160 {dimension_numbers = #tpu.dot_dimension_numbers<[1], [1], [0], [0], [0, 0, 1, 0], [], []>} : vector<16x8xf32>, vector<16x8xf32>, vector<16x16xf32> -> vector<16x16xf32>
    %cst_161 = arith.constant 0.353553385 : f32
    %254 = vector.broadcast %cst_161 : f32 to vector<16x16xf32>
    %255 = arith.mulf %253, %254 : vector<16x16xf32>
    %256 = vector.broadcast %206 : vector<1x16xf32> to vector<16x16xf32>
    %257 = arith.addf %255, %256 : vector<16x16xf32>
    %cst_162 = arith.constant dense<0xFF800000> : vector<16xf32>
    %258 = vector.multi_reduction <maximumf>, %257, %cst_162 [1] : vector<16x16xf32> to vector<16xf32>
    %259 = vector.shape_cast %258 : vector<16xf32> to vector<16x1xf32>
    %260 = vector.broadcast %259 : vector<16x1xf32> to vector<16x16xf32>
    %261 = arith.subf %257, %260 : vector<16x16xf32>
    %262 = math.exp %261 : vector<16x16xf32>
    %cst_163 = arith.constant dense<0.000000e+00> : vector<16xf32>
    %263 = vector.multi_reduction <add>, %262, %cst_163 [1] : vector<16x16xf32> to vector<16xf32>
    %264 = vector.shape_cast %263 : vector<16xf32> to vector<16x1xf32>
    %265 = vector.broadcast %264 : vector<16x1xf32> to vector<16x16xf32>
    %266 = arith.divf %262, %265 : vector<16x16xf32>
    %cst_164 = arith.constant dense<0.000000e+00> : vector<16x8xf32>
    %267 = tpu.matmul %266, %252, %cst_164 {dimension_numbers = #tpu.dot_dimension_numbers<[1], [0], [0], [1], [0, 0, 1, 1], [], []>} : vector<16x16xf32>, vector<16x8xf32>, vector<16x8xf32> -> vector<16x8xf32>
    %c2_165 = arith.constant 2 : index
    %c0_166 = arith.constant 0 : index
    %c0_167 = arith.constant 0 : index
    %268 = vector.load %arg6[%c2_165, %c0_166, %c0_167] : memref<4x8x32xf32, #tpu.memory_space<vmem>>, vector<1x8x32xf32>
    %269 = vector.shape_cast %268 : vector<1x8x32xf32> to vector<8x32xf32>
    %cst_168 = arith.constant dense<0.000000e+00> : vector<16x32xf32>
    %270 = tpu.matmul %267, %269, %cst_168 {dimension_numbers = #tpu.dot_dimension_numbers<[1], [0], [0], [1], [0, 0, 1, 1], [], []>} : vector<16x8xf32>, vector<8x32xf32>, vector<16x32xf32> -> vector<16x32xf32>
    %271 = arith.addf %249, %270 : vector<16x32xf32>
    %272 = vector.extract_strided_slice %101 {offsets = [16, 0], sizes = [16, 8], strides = [1, 1]} : vector<32x8xf32> to vector<16x8xf32>
    %273 = vector.extract_strided_slice %108 {offsets = [16, 0], sizes = [16, 8], strides = [1, 1]} : vector<32x8xf32> to vector<16x8xf32>
    %274 = vector.extract_strided_slice %115 {offsets = [16, 0], sizes = [16, 8], strides = [1, 1]} : vector<32x8xf32> to vector<16x8xf32>
    %cst_169 = arith.constant dense<0.000000e+00> : vector<16x16xf32>
    %275 = tpu.matmul %272, %273, %cst_169 {dimension_numbers = #tpu.dot_dimension_numbers<[1], [1], [0], [0], [0, 0, 1, 0], [], []>} : vector<16x8xf32>, vector<16x8xf32>, vector<16x16xf32> -> vector<16x16xf32>
    %cst_170 = arith.constant 0.353553385 : f32
    %276 = vector.broadcast %cst_170 : f32 to vector<16x16xf32>
    %277 = arith.mulf %275, %276 : vector<16x16xf32>
    %278 = vector.broadcast %206 : vector<1x16xf32> to vector<16x16xf32>
    %279 = arith.addf %277, %278 : vector<16x16xf32>
    %cst_171 = arith.constant dense<0xFF800000> : vector<16xf32>
    %280 = vector.multi_reduction <maximumf>, %279, %cst_171 [1] : vector<16x16xf32> to vector<16xf32>
    %281 = vector.shape_cast %280 : vector<16xf32> to vector<16x1xf32>
    %282 = vector.broadcast %281 : vector<16x1xf32> to vector<16x16xf32>
    %283 = arith.subf %279, %282 : vector<16x16xf32>
    %284 = math.exp %283 : vector<16x16xf32>
    %cst_172 = arith.constant dense<0.000000e+00> : vector<16xf32>
    %285 = vector.multi_reduction <add>, %284, %cst_172 [1] : vector<16x16xf32> to vector<16xf32>
    %286 = vector.shape_cast %285 : vector<16xf32> to vector<16x1xf32>
    %287 = vector.broadcast %286 : vector<16x1xf32> to vector<16x16xf32>
    %288 = arith.divf %284, %287 : vector<16x16xf32>
    %cst_173 = arith.constant dense<0.000000e+00> : vector<16x8xf32>
    %289 = tpu.matmul %288, %274, %cst_173 {dimension_numbers = #tpu.dot_dimension_numbers<[1], [0], [0], [1], [0, 0, 1, 1], [], []>} : vector<16x16xf32>, vector<16x8xf32>, vector<16x8xf32> -> vector<16x8xf32>
    %c3_174 = arith.constant 3 : index
    %c0_175 = arith.constant 0 : index
    %c0_176 = arith.constant 0 : index
    %290 = vector.load %arg6[%c3_174, %c0_175, %c0_176] : memref<4x8x32xf32, #tpu.memory_space<vmem>>, vector<1x8x32xf32>
    %291 = vector.shape_cast %290 : vector<1x8x32xf32> to vector<8x32xf32>
    %cst_177 = arith.constant dense<0.000000e+00> : vector<16x32xf32>
    %292 = tpu.matmul %289, %291, %cst_177 {dimension_numbers = #tpu.dot_dimension_numbers<[1], [0], [0], [1], [0, 0, 1, 1], [], []>} : vector<16x8xf32>, vector<8x32xf32>, vector<16x32xf32> -> vector<16x32xf32>
    %293 = arith.addf %271, %292 : vector<16x32xf32>
    %294 = tpu.concatenate %204, %293 in 0 : vector<16x32xf32>, vector<16x32xf32> -> vector<32x32xf32>
    %295 = vector.broadcast %23 : vector<1x32xf32> to vector<32x32xf32>
    %296 = arith.addf %294, %295 : vector<32x32xf32>
    %297 = arith.addf %22, %296 : vector<32x32xf32>
    %cst_178 = arith.constant dense<0.000000e+00> : vector<32xf32>
    %298 = vector.multi_reduction <add>, %297, %cst_178 [1] : vector<32x32xf32> to vector<32xf32>
    %299 = vector.shape_cast %298 : vector<32xf32> to vector<32x1xf32>
    %cst_179 = arith.constant 3.200000e+01 : f32
    %300 = vector.broadcast %cst_179 : f32 to vector<32x1xf32>
    %301 = arith.divf %299, %300 : vector<32x1xf32>
    %302 = vector.broadcast %301 : vector<32x1xf32> to vector<32x32xf32>
    %303 = arith.subf %297, %302 : vector<32x32xf32>
    %304 = arith.mulf %303, %303 : vector<32x32xf32>
    %cst_180 = arith.constant dense<0.000000e+00> : vector<32xf32>
    %305 = vector.multi_reduction <add>, %304, %cst_180 [1] : vector<32x32xf32> to vector<32xf32>
    %306 = vector.shape_cast %305 : vector<32xf32> to vector<32x1xf32>
    %cst_181 = arith.constant 3.200000e+01 : f32
    %307 = vector.broadcast %cst_181 : f32 to vector<32x1xf32>
    %308 = arith.divf %306, %307 : vector<32x1xf32>
    %cst_182 = arith.constant 9.99999996E-13 : f32
    %309 = vector.broadcast %cst_182 : f32 to vector<32x1xf32>
    %310 = arith.addf %308, %309 : vector<32x1xf32>
    %311 = math.rsqrt %310 : vector<32x1xf32>
    %312 = vector.broadcast %311 : vector<32x1xf32> to vector<32x32xf32>
    %313 = arith.mulf %303, %312 : vector<32x32xf32>
    %314 = vector.broadcast %24 : vector<1x32xf32> to vector<32x32xf32>
    %315 = arith.mulf %313, %314 : vector<32x32xf32>
    %316 = vector.broadcast %25 : vector<1x32xf32> to vector<32x32xf32>
    %317 = arith.addf %315, %316 : vector<32x32xf32>
    %cst_183 = arith.constant dense<0.000000e+00> : vector<32x64xf32>
    %318 = tpu.matmul %317, %26, %cst_183 {dimension_numbers = #tpu.dot_dimension_numbers<[1], [0], [0], [1], [0, 0, 1, 1], [], []>} : vector<32x32xf32>, vector<32x64xf32>, vector<32x64xf32> -> vector<32x64xf32>
    %319 = vector.broadcast %27 : vector<1x64xf32> to vector<32x64xf32>
    %320 = arith.addf %318, %319 : vector<32x64xf32>
    %cst_184 = arith.constant 5.000000e-01 : f32
    %321 = vector.broadcast %cst_184 : f32 to vector<32x64xf32>
    %322 = arith.mulf %321, %320 : vector<32x64xf32>
    %cst_185 = arith.constant 4.471500e-02 : f32
    %323 = vector.broadcast %cst_185 : f32 to vector<32x64xf32>
    %324 = arith.mulf %323, %320 : vector<32x64xf32>
    %325 = arith.mulf %324, %320 : vector<32x64xf32>
    %326 = arith.mulf %325, %320 : vector<32x64xf32>
    %327 = arith.addf %320, %326 : vector<32x64xf32>
    %cst_186 = arith.constant 0.797884583 : f32
    %328 = vector.broadcast %cst_186 : f32 to vector<32x64xf32>
    %329 = arith.mulf %328, %327 : vector<32x64xf32>
    %330 = math.tanh %329 : vector<32x64xf32>
    %cst_187 = arith.constant 1.000000e+00 : f32
    %331 = vector.broadcast %cst_187 : f32 to vector<32x64xf32>
    %332 = arith.addf %331, %330 : vector<32x64xf32>
    %333 = arith.mulf %322, %332 : vector<32x64xf32>
    %cst_188 = arith.constant dense<0.000000e+00> : vector<32x32xf32>
    %334 = tpu.matmul %333, %28, %cst_188 {dimension_numbers = #tpu.dot_dimension_numbers<[1], [0], [0], [1], [0, 0, 1, 1], [], []>} : vector<32x64xf32>, vector<64x32xf32>, vector<32x32xf32> -> vector<32x32xf32>
    %335 = vector.broadcast %29 : vector<1x32xf32> to vector<32x32xf32>
    %336 = arith.addf %334, %335 : vector<32x32xf32>
    %337 = arith.addf %317, %336 : vector<32x32xf32>
    %cst_189 = arith.constant dense<0.000000e+00> : vector<32xf32>
    %338 = vector.multi_reduction <add>, %337, %cst_189 [1] : vector<32x32xf32> to vector<32xf32>
    %339 = vector.shape_cast %338 : vector<32xf32> to vector<32x1xf32>
    %cst_190 = arith.constant 3.200000e+01 : f32
    %340 = vector.broadcast %cst_190 : f32 to vector<32x1xf32>
    %341 = arith.divf %339, %340 : vector<32x1xf32>
    %342 = vector.broadcast %341 : vector<32x1xf32> to vector<32x32xf32>
    %343 = arith.subf %337, %342 : vector<32x32xf32>
    %344 = arith.mulf %343, %343 : vector<32x32xf32>
    %cst_191 = arith.constant dense<0.000000e+00> : vector<32xf32>
    %345 = vector.multi_reduction <add>, %344, %cst_191 [1] : vector<32x32xf32> to vector<32xf32>
    %346 = vector.shape_cast %345 : vector<32xf32> to vector<32x1xf32>
    %cst_192 = arith.constant 3.200000e+01 : f32
    %347 = vector.broadcast %cst_192 : f32 to vector<32x1xf32>
    %348 = arith.divf %346, %347 : vector<32x1xf32>
    %cst_193 = arith.constant 9.99999996E-13 : f32
    %349 = vector.broadcast %cst_193 : f32 to vector<32x1xf32>
    %350 = arith.addf %348, %349 : vector<32x1xf32>
    %351 = math.rsqrt %350 : vector<32x1xf32>
    %352 = vector.broadcast %351 : vector<32x1xf32> to vector<32x32xf32>
    %353 = arith.mulf %343, %352 : vector<32x32xf32>
    %354 = vector.broadcast %30 : vector<1x32xf32> to vector<32x32xf32>
    %355 = arith.mulf %353, %354 : vector<32x32xf32>
    %356 = vector.broadcast %31 : vector<1x32xf32> to vector<32x32xf32>
    %357 = arith.addf %355, %356 : vector<32x32xf32>
    %c0_194 = arith.constant 0 : index
    %c0_195 = arith.constant 0 : index
    %358 = vector.load %arg16[%c0_194, %c0_195] : memref<32x32xf32, #tpu.memory_space<vmem>>, vector<32x32xf32>
    tpu.vector_store %arg16[%c0_194, %c0_195], %357 {strides = array<i32>} : memref<32x32xf32, #tpu.memory_space<vmem>>, vector<32x32xf32>,
    return
  }
}

module attributes {stable_mosaic.version = 11 : i64} {
  func.func @_gen_decoder_kernel(%arg0: memref<16x32xf32, #tpu.memory_space<vmem>>, %arg1: memref<32x32xf32, #tpu.memory_space<vmem>>, %arg2: memref<2x1x8xf32, #tpu.memory_space<vmem>>, %arg3: memref<2x1x16xf32, #tpu.memory_space<vmem>>, %arg4: memref<16x1xi32, #tpu.memory_space<vmem>>, %arg5: memref<16x1xf32, #tpu.memory_space<vmem>>, %arg6: memref<1x32xf32, #tpu.memory_space<vmem>>, %arg7: memref<1x32xf32, #tpu.memory_space<vmem>>, %arg8: memref<12x32x8xf32, #tpu.memory_space<vmem>>, %arg9: memref<12x1x8xf32, #tpu.memory_space<vmem>>, %arg10: memref<4x8x32xf32, #tpu.memory_space<vmem>>, %arg11: memref<1x32xf32, #tpu.memory_space<vmem>>, %arg12: memref<1x32xf32, #tpu.memory_space<vmem>>, %arg13: memref<1x32xf32, #tpu.memory_space<vmem>>, %arg14: memref<12x32x8xf32, #tpu.memory_space<vmem>>, %arg15: memref<12x1x8xf32, #tpu.memory_space<vmem>>, %arg16: memref<4x8x32xf32, #tpu.memory_space<vmem>>, %arg17: memref<1x32xf32, #tpu.memory_space<vmem>>, %arg18: memref<1x32xf32, #tpu.memory_space<vmem>>, %arg19: memref<1x32xf32, #tpu.memory_space<vmem>>, %arg20: memref<32x64xf32, #tpu.memory_space<vmem>>, %arg21: memref<1x64xf32, #tpu.memory_space<vmem>>, %arg22: memref<64x32xf32, #tpu.memory_space<vmem>>, %arg23: memref<1x32xf32, #tpu.memory_space<vmem>>, %arg24: memref<1x32xf32, #tpu.memory_space<vmem>>, %arg25: memref<1x32xf32, #tpu.memory_space<vmem>>, %arg26: memref<32x32xf32, #tpu.memory_space<vmem>>, %arg27: memref<1x32xf32, #tpu.memory_space<vmem>>, %arg28: memref<16x32xf32, #tpu.memory_space<vmem>>, %arg29: memref<1x1xf32, #tpu.memory_space<vmem>>) attributes {dimension_semantics = [], scalar_prefetch = 0 : i64, scratch_operands = 0 : i64, tpu.core_type = #tpu.core_type<tc>} {
    %c0 = arith.constant 0 : index
    %c0_0 = arith.constant 0 : index
    %0 = vector.load %arg0[%c0, %c0_0] : memref<16x32xf32, #tpu.memory_space<vmem>>, vector<16x32xf32>
    %c0_1 = arith.constant 0 : index
    %c0_2 = arith.constant 0 : index
    %1 = vector.load %arg6[%c0_1, %c0_2] : memref<1x32xf32, #tpu.memory_space<vmem>>, vector<1x32xf32>
    %c0_3 = arith.constant 0 : index
    %c0_4 = arith.constant 0 : index
    %2 = vector.load %arg7[%c0_3, %c0_4] : memref<1x32xf32, #tpu.memory_space<vmem>>, vector<1x32xf32>
    %cst = arith.constant dense<0.000000e+00> : vector<16xf32>
    %3 = vector.multi_reduction <add>, %0, %cst [1] : vector<16x32xf32> to vector<16xf32>
    %4 = vector.shape_cast %3 : vector<16xf32> to vector<16x1xf32>
    %cst_5 = arith.constant 3.200000e+01 : f32
    %5 = vector.broadcast %cst_5 : f32 to vector<16x1xf32>
    %6 = arith.divf %4, %5 : vector<16x1xf32>
    %7 = vector.broadcast %6 : vector<16x1xf32> to vector<16x32xf32>
    %8 = arith.subf %0, %7 : vector<16x32xf32>
    %9 = arith.mulf %8, %8 : vector<16x32xf32>
    %cst_6 = arith.constant dense<0.000000e+00> : vector<16xf32>
    %10 = vector.multi_reduction <add>, %9, %cst_6 [1] : vector<16x32xf32> to vector<16xf32>
    %11 = vector.shape_cast %10 : vector<16xf32> to vector<16x1xf32>
    %cst_7 = arith.constant 3.200000e+01 : f32
    %12 = vector.broadcast %cst_7 : f32 to vector<16x1xf32>
    %13 = arith.divf %11, %12 : vector<16x1xf32>
    %cst_8 = arith.constant 9.99999996E-13 : f32
    %14 = vector.broadcast %cst_8 : f32 to vector<16x1xf32>
    %15 = arith.addf %13, %14 : vector<16x1xf32>
    %16 = math.rsqrt %15 : vector<16x1xf32>
    %17 = vector.broadcast %16 : vector<16x1xf32> to vector<16x32xf32>
    %18 = arith.mulf %8, %17 : vector<16x32xf32>
    %19 = vector.broadcast %1 : vector<1x32xf32> to vector<16x32xf32>
    %20 = arith.mulf %18, %19 : vector<16x32xf32>
    %21 = vector.broadcast %2 : vector<1x32xf32> to vector<16x32xf32>
    %22 = arith.addf %20, %21 : vector<16x32xf32>
    %c0_9 = arith.constant 0 : index
    %c0_10 = arith.constant 0 : index
    %23 = vector.load %arg11[%c0_9, %c0_10] : memref<1x32xf32, #tpu.memory_space<vmem>>, vector<1x32xf32>
    %c0_11 = arith.constant 0 : index
    %c0_12 = arith.constant 0 : index
    %c0_13 = arith.constant 0 : index
    %24 = vector.load %arg8[%c0_11, %c0_12, %c0_13] : memref<12x32x8xf32, #tpu.memory_space<vmem>>, vector<1x32x8xf32>
    %25 = vector.shape_cast %24 : vector<1x32x8xf32> to vector<32x8xf32>
    %cst_14 = arith.constant dense<0.000000e+00> : vector<16x8xf32>
    %26 = tpu.matmul %22, %25, %cst_14 {dimension_numbers = #tpu.dot_dimension_numbers<[1], [0], [0], [1], [0, 0, 1, 1], [], []>} : vector<16x32xf32>, vector<32x8xf32>, vector<16x8xf32> -> vector<16x8xf32>
    %c0_15 = arith.constant 0 : index
    %c0_16 = arith.constant 0 : index
    %c0_17 = arith.constant 0 : index
    %27 = vector.load %arg9[%c0_15, %c0_16, %c0_17] : memref<12x1x8xf32, #tpu.memory_space<vmem>>, vector<1x1x8xf32>
    %28 = vector.shape_cast %27 : vector<1x1x8xf32> to vector<1x8xf32>
    %29 = vector.broadcast %28 : vector<1x8xf32> to vector<16x8xf32>
    %30 = arith.addf %26, %29 : vector<16x8xf32>
    %c4 = arith.constant 4 : index
    %c0_18 = arith.constant 0 : index
    %c0_19 = arith.constant 0 : index
    %31 = vector.load %arg8[%c4, %c0_18, %c0_19] : memref<12x32x8xf32, #tpu.memory_space<vmem>>, vector<1x32x8xf32>
    %32 = vector.shape_cast %31 : vector<1x32x8xf32> to vector<32x8xf32>
    %cst_20 = arith.constant dense<0.000000e+00> : vector<16x8xf32>
    %33 = tpu.matmul %22, %32, %cst_20 {dimension_numbers = #tpu.dot_dimension_numbers<[1], [0], [0], [1], [0, 0, 1, 1], [], []>} : vector<16x32xf32>, vector<32x8xf32>, vector<16x8xf32> -> vector<16x8xf32>
    %c4_21 = arith.constant 4 : index
    %c0_22 = arith.constant 0 : index
    %c0_23 = arith.constant 0 : index
    %34 = vector.load %arg9[%c4_21, %c0_22, %c0_23] : memref<12x1x8xf32, #tpu.memory_space<vmem>>, vector<1x1x8xf32>
    %35 = vector.shape_cast %34 : vector<1x1x8xf32> to vector<1x8xf32>
    %36 = vector.broadcast %35 : vector<1x8xf32> to vector<16x8xf32>
    %37 = arith.addf %33, %36 : vector<16x8xf32>
    %c8 = arith.constant 8 : index
    %c0_24 = arith.constant 0 : index
    %c0_25 = arith.constant 0 : index
    %38 = vector.load %arg8[%c8, %c0_24, %c0_25] : memref<12x32x8xf32, #tpu.memory_space<vmem>>, vector<1x32x8xf32>
    %39 = vector.shape_cast %38 : vector<1x32x8xf32> to vector<32x8xf32>
    %cst_26 = arith.constant dense<0.000000e+00> : vector<16x8xf32>
    %40 = tpu.matmul %22, %39, %cst_26 {dimension_numbers = #tpu.dot_dimension_numbers<[1], [0], [0], [1], [0, 0, 1, 1], [], []>} : vector<16x32xf32>, vector<32x8xf32>, vector<16x8xf32> -> vector<16x8xf32>
    %c8_27 = arith.constant 8 : index
    %c0_28 = arith.constant 0 : index
    %c0_29 = arith.constant 0 : index
    %41 = vector.load %arg9[%c8_27, %c0_28, %c0_29] : memref<12x1x8xf32, #tpu.memory_space<vmem>>, vector<1x1x8xf32>
    %42 = vector.shape_cast %41 : vector<1x1x8xf32> to vector<1x8xf32>
    %43 = vector.broadcast %42 : vector<1x8xf32> to vector<16x8xf32>
    %44 = arith.addf %40, %43 : vector<16x8xf32>
    %c1 = arith.constant 1 : index
    %c0_30 = arith.constant 0 : index
    %c0_31 = arith.constant 0 : index
    %45 = vector.load %arg8[%c1, %c0_30, %c0_31] : memref<12x32x8xf32, #tpu.memory_space<vmem>>, vector<1x32x8xf32>
    %46 = vector.shape_cast %45 : vector<1x32x8xf32> to vector<32x8xf32>
    %cst_32 = arith.constant dense<0.000000e+00> : vector<16x8xf32>
    %47 = tpu.matmul %22, %46, %cst_32 {dimension_numbers = #tpu.dot_dimension_numbers<[1], [0], [0], [1], [0, 0, 1, 1], [], []>} : vector<16x32xf32>, vector<32x8xf32>, vector<16x8xf32> -> vector<16x8xf32>
    %c1_33 = arith.constant 1 : index
    %c0_34 = arith.constant 0 : index
    %c0_35 = arith.constant 0 : index
    %48 = vector.load %arg9[%c1_33, %c0_34, %c0_35] : memref<12x1x8xf32, #tpu.memory_space<vmem>>, vector<1x1x8xf32>
    %49 = vector.shape_cast %48 : vector<1x1x8xf32> to vector<1x8xf32>
    %50 = vector.broadcast %49 : vector<1x8xf32> to vector<16x8xf32>
    %51 = arith.addf %47, %50 : vector<16x8xf32>
    %c5 = arith.constant 5 : index
    %c0_36 = arith.constant 0 : index
    %c0_37 = arith.constant 0 : index
    %52 = vector.load %arg8[%c5, %c0_36, %c0_37] : memref<12x32x8xf32, #tpu.memory_space<vmem>>, vector<1x32x8xf32>
    %53 = vector.shape_cast %52 : vector<1x32x8xf32> to vector<32x8xf32>
    %cst_38 = arith.constant dense<0.000000e+00> : vector<16x8xf32>
    %54 = tpu.matmul %22, %53, %cst_38 {dimension_numbers = #tpu.dot_dimension_numbers<[1], [0], [0], [1], [0, 0, 1, 1], [], []>} : vector<16x32xf32>, vector<32x8xf32>, vector<16x8xf32> -> vector<16x8xf32>
    %c5_39 = arith.constant 5 : index
    %c0_40 = arith.constant 0 : index
    %c0_41 = arith.constant 0 : index
    %55 = vector.load %arg9[%c5_39, %c0_40, %c0_41] : memref<12x1x8xf32, #tpu.memory_space<vmem>>, vector<1x1x8xf32>
    %56 = vector.shape_cast %55 : vector<1x1x8xf32> to vector<1x8xf32>
    %57 = vector.broadcast %56 : vector<1x8xf32> to vector<16x8xf32>
    %58 = arith.addf %54, %57 : vector<16x8xf32>
    %c9 = arith.constant 9 : index
    %c0_42 = arith.constant 0 : index
    %c0_43 = arith.constant 0 : index
    %59 = vector.load %arg8[%c9, %c0_42, %c0_43] : memref<12x32x8xf32, #tpu.memory_space<vmem>>, vector<1x32x8xf32>
    %60 = vector.shape_cast %59 : vector<1x32x8xf32> to vector<32x8xf32>
    %cst_44 = arith.constant dense<0.000000e+00> : vector<16x8xf32>
    %61 = tpu.matmul %22, %60, %cst_44 {dimension_numbers = #tpu.dot_dimension_numbers<[1], [0], [0], [1], [0, 0, 1, 1], [], []>} : vector<16x32xf32>, vector<32x8xf32>, vector<16x8xf32> -> vector<16x8xf32>
    %c9_45 = arith.constant 9 : index
    %c0_46 = arith.constant 0 : index
    %c0_47 = arith.constant 0 : index
    %62 = vector.load %arg9[%c9_45, %c0_46, %c0_47] : memref<12x1x8xf32, #tpu.memory_space<vmem>>, vector<1x1x8xf32>
    %63 = vector.shape_cast %62 : vector<1x1x8xf32> to vector<1x8xf32>
    %64 = vector.broadcast %63 : vector<1x8xf32> to vector<16x8xf32>
    %65 = arith.addf %61, %64 : vector<16x8xf32>
    %c2 = arith.constant 2 : index
    %c0_48 = arith.constant 0 : index
    %c0_49 = arith.constant 0 : index
    %66 = vector.load %arg8[%c2, %c0_48, %c0_49] : memref<12x32x8xf32, #tpu.memory_space<vmem>>, vector<1x32x8xf32>
    %67 = vector.shape_cast %66 : vector<1x32x8xf32> to vector<32x8xf32>
    %cst_50 = arith.constant dense<0.000000e+00> : vector<16x8xf32>
    %68 = tpu.matmul %22, %67, %cst_50 {dimension_numbers = #tpu.dot_dimension_numbers<[1], [0], [0], [1], [0, 0, 1, 1], [], []>} : vector<16x32xf32>, vector<32x8xf32>, vector<16x8xf32> -> vector<16x8xf32>
    %c2_51 = arith.constant 2 : index
    %c0_52 = arith.constant 0 : index
    %c0_53 = arith.constant 0 : index
    %69 = vector.load %arg9[%c2_51, %c0_52, %c0_53] : memref<12x1x8xf32, #tpu.memory_space<vmem>>, vector<1x1x8xf32>
    %70 = vector.shape_cast %69 : vector<1x1x8xf32> to vector<1x8xf32>
    %71 = vector.broadcast %70 : vector<1x8xf32> to vector<16x8xf32>
    %72 = arith.addf %68, %71 : vector<16x8xf32>
    %c6 = arith.constant 6 : index
    %c0_54 = arith.constant 0 : index
    %c0_55 = arith.constant 0 : index
    %73 = vector.load %arg8[%c6, %c0_54, %c0_55] : memref<12x32x8xf32, #tpu.memory_space<vmem>>, vector<1x32x8xf32>
    %74 = vector.shape_cast %73 : vector<1x32x8xf32> to vector<32x8xf32>
    %cst_56 = arith.constant dense<0.000000e+00> : vector<16x8xf32>
    %75 = tpu.matmul %22, %74, %cst_56 {dimension_numbers = #tpu.dot_dimension_numbers<[1], [0], [0], [1], [0, 0, 1, 1], [], []>} : vector<16x32xf32>, vector<32x8xf32>, vector<16x8xf32> -> vector<16x8xf32>
    %c6_57 = arith.constant 6 : index
    %c0_58 = arith.constant 0 : index
    %c0_59 = arith.constant 0 : index
    %76 = vector.load %arg9[%c6_57, %c0_58, %c0_59] : memref<12x1x8xf32, #tpu.memory_space<vmem>>, vector<1x1x8xf32>
    %77 = vector.shape_cast %76 : vector<1x1x8xf32> to vector<1x8xf32>
    %78 = vector.broadcast %77 : vector<1x8xf32> to vector<16x8xf32>
    %79 = arith.addf %75, %78 : vector<16x8xf32>
    %c10 = arith.constant 10 : index
    %c0_60 = arith.constant 0 : index
    %c0_61 = arith.constant 0 : index
    %80 = vector.load %arg8[%c10, %c0_60, %c0_61] : memref<12x32x8xf32, #tpu.memory_space<vmem>>, vector<1x32x8xf32>
    %81 = vector.shape_cast %80 : vector<1x32x8xf32> to vector<32x8xf32>
    %cst_62 = arith.constant dense<0.000000e+00> : vector<16x8xf32>
    %82 = tpu.matmul %22, %81, %cst_62 {dimension_numbers = #tpu.dot_dimension_numbers<[1], [0], [0], [1], [0, 0, 1, 1], [], []>} : vector<16x32xf32>, vector<32x8xf32>, vector<16x8xf32> -> vector<16x8xf32>
    %c10_63 = arith.constant 10 : index
    %c0_64 = arith.constant 0 : index
    %c0_65 = arith.constant 0 : index
    %83 = vector.load %arg9[%c10_63, %c0_64, %c0_65] : memref<12x1x8xf32, #tpu.memory_space<vmem>>, vector<1x1x8xf32>
    %84 = vector.shape_cast %83 : vector<1x1x8xf32> to vector<1x8xf32>
    %85 = vector.broadcast %84 : vector<1x8xf32> to vector<16x8xf32>
    %86 = arith.addf %82, %85 : vector<16x8xf32>
    %c3 = arith.constant 3 : index
    %c0_66 = arith.constant 0 : index
    %c0_67 = arith.constant 0 : index
    %87 = vector.load %arg8[%c3, %c0_66, %c0_67] : memref<12x32x8xf32, #tpu.memory_space<vmem>>, vector<1x32x8xf32>
    %88 = vector.shape_cast %87 : vector<1x32x8xf32> to vector<32x8xf32>
    %cst_68 = arith.constant dense<0.000000e+00> : vector<16x8xf32>
    %89 = tpu.matmul %22, %88, %cst_68 {dimension_numbers = #tpu.dot_dimension_numbers<[1], [0], [0], [1], [0, 0, 1, 1], [], []>} : vector<16x32xf32>, vector<32x8xf32>, vector<16x8xf32> -> vector<16x8xf32>
    %c3_69 = arith.constant 3 : index
    %c0_70 = arith.constant 0 : index
    %c0_71 = arith.constant 0 : index
    %90 = vector.load %arg9[%c3_69, %c0_70, %c0_71] : memref<12x1x8xf32, #tpu.memory_space<vmem>>, vector<1x1x8xf32>
    %91 = vector.shape_cast %90 : vector<1x1x8xf32> to vector<1x8xf32>
    %92 = vector.broadcast %91 : vector<1x8xf32> to vector<16x8xf32>
    %93 = arith.addf %89, %92 : vector<16x8xf32>
    %c7 = arith.constant 7 : index
    %c0_72 = arith.constant 0 : index
    %c0_73 = arith.constant 0 : index
    %94 = vector.load %arg8[%c7, %c0_72, %c0_73] : memref<12x32x8xf32, #tpu.memory_space<vmem>>, vector<1x32x8xf32>
    %95 = vector.shape_cast %94 : vector<1x32x8xf32> to vector<32x8xf32>
    %cst_74 = arith.constant dense<0.000000e+00> : vector<16x8xf32>
    %96 = tpu.matmul %22, %95, %cst_74 {dimension_numbers = #tpu.dot_dimension_numbers<[1], [0], [0], [1], [0, 0, 1, 1], [], []>} : vector<16x32xf32>, vector<32x8xf32>, vector<16x8xf32> -> vector<16x8xf32>
    %c7_75 = arith.constant 7 : index
    %c0_76 = arith.constant 0 : index
    %c0_77 = arith.constant 0 : index
    %97 = vector.load %arg9[%c7_75, %c0_76, %c0_77] : memref<12x1x8xf32, #tpu.memory_space<vmem>>, vector<1x1x8xf32>
    %98 = vector.shape_cast %97 : vector<1x1x8xf32> to vector<1x8xf32>
    %99 = vector.broadcast %98 : vector<1x8xf32> to vector<16x8xf32>
    %100 = arith.addf %96, %99 : vector<16x8xf32>
    %c11 = arith.constant 11 : index
    %c0_78 = arith.constant 0 : index
    %c0_79 = arith.constant 0 : index
    %101 = vector.load %arg8[%c11, %c0_78, %c0_79] : memref<12x32x8xf32, #tpu.memory_space<vmem>>, vector<1x32x8xf32>
    %102 = vector.shape_cast %101 : vector<1x32x8xf32> to vector<32x8xf32>
    %cst_80 = arith.constant dense<0.000000e+00> : vector<16x8xf32>
    %103 = tpu.matmul %22, %102, %cst_80 {dimension_numbers = #tpu.dot_dimension_numbers<[1], [0], [0], [1], [0, 0, 1, 1], [], []>} : vector<16x32xf32>, vector<32x8xf32>, vector<16x8xf32> -> vector<16x8xf32>
    %c11_81 = arith.constant 11 : index
    %c0_82 = arith.constant 0 : index
    %c0_83 = arith.constant 0 : index
    %104 = vector.load %arg9[%c11_81, %c0_82, %c0_83] : memref<12x1x8xf32, #tpu.memory_space<vmem>>, vector<1x1x8xf32>
    %105 = vector.shape_cast %104 : vector<1x1x8xf32> to vector<1x8xf32>
    %106 = vector.broadcast %105 : vector<1x8xf32> to vector<16x8xf32>
    %107 = arith.addf %103, %106 : vector<16x8xf32>
    %c0_84 = arith.constant 0 : index
    %c0_85 = arith.constant 0 : index
    %c0_86 = arith.constant 0 : index
    %108 = vector.load %arg2[%c0_84, %c0_85, %c0_86] : memref<2x1x8xf32, #tpu.memory_space<vmem>>, vector<1x1x8xf32>
    %109 = vector.shape_cast %108 : vector<1x1x8xf32> to vector<1x8xf32>
    %110 = vector.extract_strided_slice %30 {offsets = [0, 0], sizes = [8, 8], strides = [1, 1]} : vector<16x8xf32> to vector<8x8xf32>
    %111 = vector.extract_strided_slice %37 {offsets = [0, 0], sizes = [8, 8], strides = [1, 1]} : vector<16x8xf32> to vector<8x8xf32>
    %112 = vector.extract_strided_slice %44 {offsets = [0, 0], sizes = [8, 8], strides = [1, 1]} : vector<16x8xf32> to vector<8x8xf32>
    %cst_87 = arith.constant dense<0.000000e+00> : vector<8x8xf32>
    %113 = tpu.matmul %110, %111, %cst_87 {dimension_numbers = #tpu.dot_dimension_numbers<[1], [1], [0], [0], [0, 0, 1, 0], [], []>} : vector<8x8xf32>, vector<8x8xf32>, vector<8x8xf32> -> vector<8x8xf32>
    %cst_88 = arith.constant 0.353553385 : f32
    %114 = vector.broadcast %cst_88 : f32 to vector<8x8xf32>
    %115 = arith.mulf %113, %114 : vector<8x8xf32>
    %116 = vector.broadcast %109 : vector<1x8xf32> to vector<8x8xf32>
    %117 = arith.addf %115, %116 : vector<8x8xf32>
    %cst_89 = arith.constant dense<0xFF800000> : vector<8xf32>
    %118 = vector.multi_reduction <maximumf>, %117, %cst_89 [1] : vector<8x8xf32> to vector<8xf32>
    %119 = vector.shape_cast %118 : vector<8xf32> to vector<8x1xf32>
    %120 = vector.broadcast %119 : vector<8x1xf32> to vector<8x8xf32>
    %121 = arith.subf %117, %120 : vector<8x8xf32>
    %122 = math.exp %121 : vector<8x8xf32>
    %cst_90 = arith.constant dense<0.000000e+00> : vector<8xf32>
    %123 = vector.multi_reduction <add>, %122, %cst_90 [1] : vector<8x8xf32> to vector<8xf32>
    %124 = vector.shape_cast %123 : vector<8xf32> to vector<8x1xf32>
    %125 = vector.broadcast %124 : vector<8x1xf32> to vector<8x8xf32>
    %126 = arith.divf %122, %125 : vector<8x8xf32>
    %cst_91 = arith.constant dense<0.000000e+00> : vector<8x8xf32>
    %127 = tpu.matmul %126, %112, %cst_91 {dimension_numbers = #tpu.dot_dimension_numbers<[1], [0], [0], [1], [0, 0, 1, 1], [], []>} : vector<8x8xf32>, vector<8x8xf32>, vector<8x8xf32> -> vector<8x8xf32>
    %c0_92 = arith.constant 0 : index
    %c0_93 = arith.constant 0 : index
    %c0_94 = arith.constant 0 : index
    %128 = vector.load %arg10[%c0_92, %c0_93, %c0_94] : memref<4x8x32xf32, #tpu.memory_space<vmem>>, vector<1x8x32xf32>
    %129 = vector.shape_cast %128 : vector<1x8x32xf32> to vector<8x32xf32>
    %cst_95 = arith.constant dense<0.000000e+00> : vector<8x32xf32>
    %130 = tpu.matmul %127, %129, %cst_95 {dimension_numbers = #tpu.dot_dimension_numbers<[1], [0], [0], [1], [0, 0, 1, 1], [], []>} : vector<8x8xf32>, vector<8x32xf32>, vector<8x32xf32> -> vector<8x32xf32>
    %131 = vector.extract_strided_slice %51 {offsets = [0, 0], sizes = [8, 8], strides = [1, 1]} : vector<16x8xf32> to vector<8x8xf32>
    %132 = vector.extract_strided_slice %58 {offsets = [0, 0], sizes = [8, 8], strides = [1, 1]} : vector<16x8xf32> to vector<8x8xf32>
    %133 = vector.extract_strided_slice %65 {offsets = [0, 0], sizes = [8, 8], strides = [1, 1]} : vector<16x8xf32> to vector<8x8xf32>
    %cst_96 = arith.constant dense<0.000000e+00> : vector<8x8xf32>
    %134 = tpu.matmul %131, %132, %cst_96 {dimension_numbers = #tpu.dot_dimension_numbers<[1], [1], [0], [0], [0, 0, 1, 0], [], []>} : vector<8x8xf32>, vector<8x8xf32>, vector<8x8xf32> -> vector<8x8xf32>
    %cst_97 = arith.constant 0.353553385 : f32
    %135 = vector.broadcast %cst_97 : f32 to vector<8x8xf32>
    %136 = arith.mulf %134, %135 : vector<8x8xf32>
    %137 = vector.broadcast %109 : vector<1x8xf32> to vector<8x8xf32>
    %138 = arith.addf %136, %137 : vector<8x8xf32>
    %cst_98 = arith.constant dense<0xFF800000> : vector<8xf32>
    %139 = vector.multi_reduction <maximumf>, %138, %cst_98 [1] : vector<8x8xf32> to vector<8xf32>
    %140 = vector.shape_cast %139 : vector<8xf32> to vector<8x1xf32>
    %141 = vector.broadcast %140 : vector<8x1xf32> to vector<8x8xf32>
    %142 = arith.subf %138, %141 : vector<8x8xf32>
    %143 = math.exp %142 : vector<8x8xf32>
    %cst_99 = arith.constant dense<0.000000e+00> : vector<8xf32>
    %144 = vector.multi_reduction <add>, %143, %cst_99 [1] : vector<8x8xf32> to vector<8xf32>
    %145 = vector.shape_cast %144 : vector<8xf32> to vector<8x1xf32>
    %146 = vector.broadcast %145 : vector<8x1xf32> to vector<8x8xf32>
    %147 = arith.divf %143, %146 : vector<8x8xf32>
    %cst_100 = arith.constant dense<0.000000e+00> : vector<8x8xf32>
    %148 = tpu.matmul %147, %133, %cst_100 {dimension_numbers = #tpu.dot_dimension_numbers<[1], [0], [0], [1], [0, 0, 1, 1], [], []>} : vector<8x8xf32>, vector<8x8xf32>, vector<8x8xf32> -> vector<8x8xf32>
    %c1_101 = arith.constant 1 : index
    %c0_102 = arith.constant 0 : index
    %c0_103 = arith.constant 0 : index
    %149 = vector.load %arg10[%c1_101, %c0_102, %c0_103] : memref<4x8x32xf32, #tpu.memory_space<vmem>>, vector<1x8x32xf32>
    %150 = vector.shape_cast %149 : vector<1x8x32xf32> to vector<8x32xf32>
    %cst_104 = arith.constant dense<0.000000e+00> : vector<8x32xf32>
    %151 = tpu.matmul %148, %150, %cst_104 {dimension_numbers = #tpu.dot_dimension_numbers<[1], [0], [0], [1], [0, 0, 1, 1], [], []>} : vector<8x8xf32>, vector<8x32xf32>, vector<8x32xf32> -> vector<8x32xf32>
    %152 = arith.addf %130, %151 : vector<8x32xf32>
    %153 = vector.extract_strided_slice %72 {offsets = [0, 0], sizes = [8, 8], strides = [1, 1]} : vector<16x8xf32> to vector<8x8xf32>
    %154 = vector.extract_strided_slice %79 {offsets = [0, 0], sizes = [8, 8], strides = [1, 1]} : vector<16x8xf32> to vector<8x8xf32>
    %155 = vector.extract_strided_slice %86 {offsets = [0, 0], sizes = [8, 8], strides = [1, 1]} : vector<16x8xf32> to vector<8x8xf32>
    %cst_105 = arith.constant dense<0.000000e+00> : vector<8x8xf32>
    %156 = tpu.matmul %153, %154, %cst_105 {dimension_numbers = #tpu.dot_dimension_numbers<[1], [1], [0], [0], [0, 0, 1, 0], [], []>} : vector<8x8xf32>, vector<8x8xf32>, vector<8x8xf32> -> vector<8x8xf32>
    %cst_106 = arith.constant 0.353553385 : f32
    %157 = vector.broadcast %cst_106 : f32 to vector<8x8xf32>
    %158 = arith.mulf %156, %157 : vector<8x8xf32>
    %159 = vector.broadcast %109 : vector<1x8xf32> to vector<8x8xf32>
    %160 = arith.addf %158, %159 : vector<8x8xf32>
    %cst_107 = arith.constant dense<0xFF800000> : vector<8xf32>
    %161 = vector.multi_reduction <maximumf>, %160, %cst_107 [1] : vector<8x8xf32> to vector<8xf32>
    %162 = vector.shape_cast %161 : vector<8xf32> to vector<8x1xf32>
    %163 = vector.broadcast %162 : vector<8x1xf32> to vector<8x8xf32>
    %164 = arith.subf %160, %163 : vector<8x8xf32>
    %165 = math.exp %164 : vector<8x8xf32>
    %cst_108 = arith.constant dense<0.000000e+00> : vector<8xf32>
    %166 = vector.multi_reduction <add>, %165, %cst_108 [1] : vector<8x8xf32> to vector<8xf32>
    %167 = vector.shape_cast %166 : vector<8xf32> to vector<8x1xf32>
    %168 = vector.broadcast %167 : vector<8x1xf32> to vector<8x8xf32>
    %169 = arith.divf %165, %168 : vector<8x8xf32>
    %cst_109 = arith.constant dense<0.000000e+00> : vector<8x8xf32>
    %170 = tpu.matmul %169, %155, %cst_109 {dimension_numbers = #tpu.dot_dimension_numbers<[1], [0], [0], [1], [0, 0, 1, 1], [], []>} : vector<8x8xf32>, vector<8x8xf32>, vector<8x8xf32> -> vector<8x8xf32>
    %c2_110 = arith.constant 2 : index
    %c0_111 = arith.constant 0 : index
    %c0_112 = arith.constant 0 : index
    %171 = vector.load %arg10[%c2_110, %c0_111, %c0_112] : memref<4x8x32xf32, #tpu.memory_space<vmem>>, vector<1x8x32xf32>
    %172 = vector.shape_cast %171 : vector<1x8x32xf32> to vector<8x32xf32>
    %cst_113 = arith.constant dense<0.000000e+00> : vector<8x32xf32>
    %173 = tpu.matmul %170, %172, %cst_113 {dimension_numbers = #tpu.dot_dimension_numbers<[1], [0], [0], [1], [0, 0, 1, 1], [], []>} : vector<8x8xf32>, vector<8x32xf32>, vector<8x32xf32> -> vector<8x32xf32>
    %174 = arith.addf %152, %173 : vector<8x32xf32>
    %175 = vector.extract_strided_slice %93 {offsets = [0, 0], sizes = [8, 8], strides = [1, 1]} : vector<16x8xf32> to vector<8x8xf32>
    %176 = vector.extract_strided_slice %100 {offsets = [0, 0], sizes = [8, 8], strides = [1, 1]} : vector<16x8xf32> to vector<8x8xf32>
    %177 = vector.extract_strided_slice %107 {offsets = [0, 0], sizes = [8, 8], strides = [1, 1]} : vector<16x8xf32> to vector<8x8xf32>
    %cst_114 = arith.constant dense<0.000000e+00> : vector<8x8xf32>
    %178 = tpu.matmul %175, %176, %cst_114 {dimension_numbers = #tpu.dot_dimension_numbers<[1], [1], [0], [0], [0, 0, 1, 0], [], []>} : vector<8x8xf32>, vector<8x8xf32>, vector<8x8xf32> -> vector<8x8xf32>
    %cst_115 = arith.constant 0.353553385 : f32
    %179 = vector.broadcast %cst_115 : f32 to vector<8x8xf32>
    %180 = arith.mulf %178, %179 : vector<8x8xf32>
    %181 = vector.broadcast %109 : vector<1x8xf32> to vector<8x8xf32>
    %182 = arith.addf %180, %181 : vector<8x8xf32>
    %cst_116 = arith.constant dense<0xFF800000> : vector<8xf32>
    %183 = vector.multi_reduction <maximumf>, %182, %cst_116 [1] : vector<8x8xf32> to vector<8xf32>
    %184 = vector.shape_cast %183 : vector<8xf32> to vector<8x1xf32>
    %185 = vector.broadcast %184 : vector<8x1xf32> to vector<8x8xf32>
    %186 = arith.subf %182, %185 : vector<8x8xf32>
    %187 = math.exp %186 : vector<8x8xf32>
    %cst_117 = arith.constant dense<0.000000e+00> : vector<8xf32>
    %188 = vector.multi_reduction <add>, %187, %cst_117 [1] : vector<8x8xf32> to vector<8xf32>
    %189 = vector.shape_cast %188 : vector<8xf32> to vector<8x1xf32>
    %190 = vector.broadcast %189 : vector<8x1xf32> to vector<8x8xf32>
    %191 = arith.divf %187, %190 : vector<8x8xf32>
    %cst_118 = arith.constant dense<0.000000e+00> : vector<8x8xf32>
    %192 = tpu.matmul %191, %177, %cst_118 {dimension_numbers = #tpu.dot_dimension_numbers<[1], [0], [0], [1], [0, 0, 1, 1], [], []>} : vector<8x8xf32>, vector<8x8xf32>, vector<8x8xf32> -> vector<8x8xf32>
    %c3_119 = arith.constant 3 : index
    %c0_120 = arith.constant 0 : index
    %c0_121 = arith.constant 0 : index
    %193 = vector.load %arg10[%c3_119, %c0_120, %c0_121] : memref<4x8x32xf32, #tpu.memory_space<vmem>>, vector<1x8x32xf32>
    %194 = vector.shape_cast %193 : vector<1x8x32xf32> to vector<8x32xf32>
    %cst_122 = arith.constant dense<0.000000e+00> : vector<8x32xf32>
    %195 = tpu.matmul %192, %194, %cst_122 {dimension_numbers = #tpu.dot_dimension_numbers<[1], [0], [0], [1], [0, 0, 1, 1], [], []>} : vector<8x8xf32>, vector<8x32xf32>, vector<8x32xf32> -> vector<8x32xf32>
    %196 = arith.addf %174, %195 : vector<8x32xf32>
    %c1_123 = arith.constant 1 : index
    %c0_124 = arith.constant 0 : index
    %c0_125 = arith.constant 0 : index
    %197 = vector.load %arg2[%c1_123, %c0_124, %c0_125] : memref<2x1x8xf32, #tpu.memory_space<vmem>>, vector<1x1x8xf32>
    %198 = vector.shape_cast %197 : vector<1x1x8xf32> to vector<1x8xf32>
    %199 = vector.extract_strided_slice %30 {offsets = [8, 0], sizes = [8, 8], strides = [1, 1]} : vector<16x8xf32> to vector<8x8xf32>
    %200 = vector.extract_strided_slice %37 {offsets = [8, 0], sizes = [8, 8], strides = [1, 1]} : vector<16x8xf32> to vector<8x8xf32>
    %201 = vector.extract_strided_slice %44 {offsets = [8, 0], sizes = [8, 8], strides = [1, 1]} : vector<16x8xf32> to vector<8x8xf32>
    %cst_126 = arith.constant dense<0.000000e+00> : vector<8x8xf32>
    %202 = tpu.matmul %199, %200, %cst_126 {dimension_numbers = #tpu.dot_dimension_numbers<[1], [1], [0], [0], [0, 0, 1, 0], [], []>} : vector<8x8xf32>, vector<8x8xf32>, vector<8x8xf32> -> vector<8x8xf32>
    %cst_127 = arith.constant 0.353553385 : f32
    %203 = vector.broadcast %cst_127 : f32 to vector<8x8xf32>
    %204 = arith.mulf %202, %203 : vector<8x8xf32>
    %205 = vector.broadcast %198 : vector<1x8xf32> to vector<8x8xf32>
    %206 = arith.addf %204, %205 : vector<8x8xf32>
    %cst_128 = arith.constant dense<0xFF800000> : vector<8xf32>
    %207 = vector.multi_reduction <maximumf>, %206, %cst_128 [1] : vector<8x8xf32> to vector<8xf32>
    %208 = vector.shape_cast %207 : vector<8xf32> to vector<8x1xf32>
    %209 = vector.broadcast %208 : vector<8x1xf32> to vector<8x8xf32>
    %210 = arith.subf %206, %209 : vector<8x8xf32>
    %211 = math.exp %210 : vector<8x8xf32>
    %cst_129 = arith.constant dense<0.000000e+00> : vector<8xf32>
    %212 = vector.multi_reduction <add>, %211, %cst_129 [1] : vector<8x8xf32> to vector<8xf32>
    %213 = vector.shape_cast %212 : vector<8xf32> to vector<8x1xf32>
    %214 = vector.broadcast %213 : vector<8x1xf32> to vector<8x8xf32>
    %215 = arith.divf %211, %214 : vector<8x8xf32>
    %cst_130 = arith.constant dense<0.000000e+00> : vector<8x8xf32>
    %216 = tpu.matmul %215, %201, %cst_130 {dimension_numbers = #tpu.dot_dimension_numbers<[1], [0], [0], [1], [0, 0, 1, 1], [], []>} : vector<8x8xf32>, vector<8x8xf32>, vector<8x8xf32> -> vector<8x8xf32>
    %c0_131 = arith.constant 0 : index
    %c0_132 = arith.constant 0 : index
    %c0_133 = arith.constant 0 : index
    %217 = vector.load %arg10[%c0_131, %c0_132, %c0_133] : memref<4x8x32xf32, #tpu.memory_space<vmem>>, vector<1x8x32xf32>
    %218 = vector.shape_cast %217 : vector<1x8x32xf32> to vector<8x32xf32>
    %cst_134 = arith.constant dense<0.000000e+00> : vector<8x32xf32>
    %219 = tpu.matmul %216, %218, %cst_134 {dimension_numbers = #tpu.dot_dimension_numbers<[1], [0], [0], [1], [0, 0, 1, 1], [], []>} : vector<8x8xf32>, vector<8x32xf32>, vector<8x32xf32> -> vector<8x32xf32>
    %220 = vector.extract_strided_slice %51 {offsets = [8, 0], sizes = [8, 8], strides = [1, 1]} : vector<16x8xf32> to vector<8x8xf32>
    %221 = vector.extract_strided_slice %58 {offsets = [8, 0], sizes = [8, 8], strides = [1, 1]} : vector<16x8xf32> to vector<8x8xf32>
    %222 = vector.extract_strided_slice %65 {offsets = [8, 0], sizes = [8, 8], strides = [1, 1]} : vector<16x8xf32> to vector<8x8xf32>
    %cst_135 = arith.constant dense<0.000000e+00> : vector<8x8xf32>
    %223 = tpu.matmul %220, %221, %cst_135 {dimension_numbers = #tpu.dot_dimension_numbers<[1], [1], [0], [0], [0, 0, 1, 0], [], []>} : vector<8x8xf32>, vector<8x8xf32>, vector<8x8xf32> -> vector<8x8xf32>
    %cst_136 = arith.constant 0.353553385 : f32
    %224 = vector.broadcast %cst_136 : f32 to vector<8x8xf32>
    %225 = arith.mulf %223, %224 : vector<8x8xf32>
    %226 = vector.broadcast %198 : vector<1x8xf32> to vector<8x8xf32>
    %227 = arith.addf %225, %226 : vector<8x8xf32>
    %cst_137 = arith.constant dense<0xFF800000> : vector<8xf32>
    %228 = vector.multi_reduction <maximumf>, %227, %cst_137 [1] : vector<8x8xf32> to vector<8xf32>
    %229 = vector.shape_cast %228 : vector<8xf32> to vector<8x1xf32>
    %230 = vector.broadcast %229 : vector<8x1xf32> to vector<8x8xf32>
    %231 = arith.subf %227, %230 : vector<8x8xf32>
    %232 = math.exp %231 : vector<8x8xf32>
    %cst_138 = arith.constant dense<0.000000e+00> : vector<8xf32>
    %233 = vector.multi_reduction <add>, %232, %cst_138 [1] : vector<8x8xf32> to vector<8xf32>
    %234 = vector.shape_cast %233 : vector<8xf32> to vector<8x1xf32>
    %235 = vector.broadcast %234 : vector<8x1xf32> to vector<8x8xf32>
    %236 = arith.divf %232, %235 : vector<8x8xf32>
    %cst_139 = arith.constant dense<0.000000e+00> : vector<8x8xf32>
    %237 = tpu.matmul %236, %222, %cst_139 {dimension_numbers = #tpu.dot_dimension_numbers<[1], [0], [0], [1], [0, 0, 1, 1], [], []>} : vector<8x8xf32>, vector<8x8xf32>, vector<8x8xf32> -> vector<8x8xf32>
    %c1_140 = arith.constant 1 : index
    %c0_141 = arith.constant 0 : index
    %c0_142 = arith.constant 0 : index
    %238 = vector.load %arg10[%c1_140, %c0_141, %c0_142] : memref<4x8x32xf32, #tpu.memory_space<vmem>>, vector<1x8x32xf32>
    %239 = vector.shape_cast %238 : vector<1x8x32xf32> to vector<8x32xf32>
    %cst_143 = arith.constant dense<0.000000e+00> : vector<8x32xf32>
    %240 = tpu.matmul %237, %239, %cst_143 {dimension_numbers = #tpu.dot_dimension_numbers<[1], [0], [0], [1], [0, 0, 1, 1], [], []>} : vector<8x8xf32>, vector<8x32xf32>, vector<8x32xf32> -> vector<8x32xf32>
    %241 = arith.addf %219, %240 : vector<8x32xf32>
    %242 = vector.extract_strided_slice %72 {offsets = [8, 0], sizes = [8, 8], strides = [1, 1]} : vector<16x8xf32> to vector<8x8xf32>
    %243 = vector.extract_strided_slice %79 {offsets = [8, 0], sizes = [8, 8], strides = [1, 1]} : vector<16x8xf32> to vector<8x8xf32>
    %244 = vector.extract_strided_slice %86 {offsets = [8, 0], sizes = [8, 8], strides = [1, 1]} : vector<16x8xf32> to vector<8x8xf32>
    %cst_144 = arith.constant dense<0.000000e+00> : vector<8x8xf32>
    %245 = tpu.matmul %242, %243, %cst_144 {dimension_numbers = #tpu.dot_dimension_numbers<[1], [1], [0], [0], [0, 0, 1, 0], [], []>} : vector<8x8xf32>, vector<8x8xf32>, vector<8x8xf32> -> vector<8x8xf32>
    %cst_145 = arith.constant 0.353553385 : f32
    %246 = vector.broadcast %cst_145 : f32 to vector<8x8xf32>
    %247 = arith.mulf %245, %246 : vector<8x8xf32>
    %248 = vector.broadcast %198 : vector<1x8xf32> to vector<8x8xf32>
    %249 = arith.addf %247, %248 : vector<8x8xf32>
    %cst_146 = arith.constant dense<0xFF800000> : vector<8xf32>
    %250 = vector.multi_reduction <maximumf>, %249, %cst_146 [1] : vector<8x8xf32> to vector<8xf32>
    %251 = vector.shape_cast %250 : vector<8xf32> to vector<8x1xf32>
    %252 = vector.broadcast %251 : vector<8x1xf32> to vector<8x8xf32>
    %253 = arith.subf %249, %252 : vector<8x8xf32>
    %254 = math.exp %253 : vector<8x8xf32>
    %cst_147 = arith.constant dense<0.000000e+00> : vector<8xf32>
    %255 = vector.multi_reduction <add>, %254, %cst_147 [1] : vector<8x8xf32> to vector<8xf32>
    %256 = vector.shape_cast %255 : vector<8xf32> to vector<8x1xf32>
    %257 = vector.broadcast %256 : vector<8x1xf32> to vector<8x8xf32>
    %258 = arith.divf %254, %257 : vector<8x8xf32>
    %cst_148 = arith.constant dense<0.000000e+00> : vector<8x8xf32>
    %259 = tpu.matmul %258, %244, %cst_148 {dimension_numbers = #tpu.dot_dimension_numbers<[1], [0], [0], [1], [0, 0, 1, 1], [], []>} : vector<8x8xf32>, vector<8x8xf32>, vector<8x8xf32> -> vector<8x8xf32>
    %c2_149 = arith.constant 2 : index
    %c0_150 = arith.constant 0 : index
    %c0_151 = arith.constant 0 : index
    %260 = vector.load %arg10[%c2_149, %c0_150, %c0_151] : memref<4x8x32xf32, #tpu.memory_space<vmem>>, vector<1x8x32xf32>
    %261 = vector.shape_cast %260 : vector<1x8x32xf32> to vector<8x32xf32>
    %cst_152 = arith.constant dense<0.000000e+00> : vector<8x32xf32>
    %262 = tpu.matmul %259, %261, %cst_152 {dimension_numbers = #tpu.dot_dimension_numbers<[1], [0], [0], [1], [0, 0, 1, 1], [], []>} : vector<8x8xf32>, vector<8x32xf32>, vector<8x32xf32> -> vector<8x32xf32>
    %263 = arith.addf %241, %262 : vector<8x32xf32>
    %264 = vector.extract_strided_slice %93 {offsets = [8, 0], sizes = [8, 8], strides = [1, 1]} : vector<16x8xf32> to vector<8x8xf32>
    %265 = vector.extract_strided_slice %100 {offsets = [8, 0], sizes = [8, 8], strides = [1, 1]} : vector<16x8xf32> to vector<8x8xf32>
    %266 = vector.extract_strided_slice %107 {offsets = [8, 0], sizes = [8, 8], strides = [1, 1]} : vector<16x8xf32> to vector<8x8xf32>
    %cst_153 = arith.constant dense<0.000000e+00> : vector<8x8xf32>
    %267 = tpu.matmul %264, %265, %cst_153 {dimension_numbers = #tpu.dot_dimension_numbers<[1], [1], [0], [0], [0, 0, 1, 0], [], []>} : vector<8x8xf32>, vector<8x8xf32>, vector<8x8xf32> -> vector<8x8xf32>
    %cst_154 = arith.constant 0.353553385 : f32
    %268 = vector.broadcast %cst_154 : f32 to vector<8x8xf32>
    %269 = arith.mulf %267, %268 : vector<8x8xf32>
    %270 = vector.broadcast %198 : vector<1x8xf32> to vector<8x8xf32>
    %271 = arith.addf %269, %270 : vector<8x8xf32>
    %cst_155 = arith.constant dense<0xFF800000> : vector<8xf32>
    %272 = vector.multi_reduction <maximumf>, %271, %cst_155 [1] : vector<8x8xf32> to vector<8xf32>
    %273 = vector.shape_cast %272 : vector<8xf32> to vector<8x1xf32>
    %274 = vector.broadcast %273 : vector<8x1xf32> to vector<8x8xf32>
    %275 = arith.subf %271, %274 : vector<8x8xf32>
    %276 = math.exp %275 : vector<8x8xf32>
    %cst_156 = arith.constant dense<0.000000e+00> : vector<8xf32>
    %277 = vector.multi_reduction <add>, %276, %cst_156 [1] : vector<8x8xf32> to vector<8xf32>
    %278 = vector.shape_cast %277 : vector<8xf32> to vector<8x1xf32>
    %279 = vector.broadcast %278 : vector<8x1xf32> to vector<8x8xf32>
    %280 = arith.divf %276, %279 : vector<8x8xf32>
    %cst_157 = arith.constant dense<0.000000e+00> : vector<8x8xf32>
    %281 = tpu.matmul %280, %266, %cst_157 {dimension_numbers = #tpu.dot_dimension_numbers<[1], [0], [0], [1], [0, 0, 1, 1], [], []>} : vector<8x8xf32>, vector<8x8xf32>, vector<8x8xf32> -> vector<8x8xf32>
    %c3_158 = arith.constant 3 : index
    %c0_159 = arith.constant 0 : index
    %c0_160 = arith.constant 0 : index
    %282 = vector.load %arg10[%c3_158, %c0_159, %c0_160] : memref<4x8x32xf32, #tpu.memory_space<vmem>>, vector<1x8x32xf32>
    %283 = vector.shape_cast %282 : vector<1x8x32xf32> to vector<8x32xf32>
    %cst_161 = arith.constant dense<0.000000e+00> : vector<8x32xf32>
    %284 = tpu.matmul %281, %283, %cst_161 {dimension_numbers = #tpu.dot_dimension_numbers<[1], [0], [0], [1], [0, 0, 1, 1], [], []>} : vector<8x8xf32>, vector<8x32xf32>, vector<8x32xf32> -> vector<8x32xf32>
    %285 = arith.addf %263, %284 : vector<8x32xf32>
    %286 = tpu.concatenate %196, %285 in 0 : vector<8x32xf32>, vector<8x32xf32> -> vector<16x32xf32>
    %287 = vector.broadcast %23 : vector<1x32xf32> to vector<16x32xf32>
    %288 = arith.addf %286, %287 : vector<16x32xf32>
    %289 = arith.addf %22, %288 : vector<16x32xf32>
    %c0_162 = arith.constant 0 : index
    %c0_163 = arith.constant 0 : index
    %290 = vector.load %arg12[%c0_162, %c0_163] : memref<1x32xf32, #tpu.memory_space<vmem>>, vector<1x32xf32>
    %c0_164 = arith.constant 0 : index
    %c0_165 = arith.constant 0 : index
    %291 = vector.load %arg13[%c0_164, %c0_165] : memref<1x32xf32, #tpu.memory_space<vmem>>, vector<1x32xf32>
    %cst_166 = arith.constant dense<0.000000e+00> : vector<16xf32>
    %292 = vector.multi_reduction <add>, %289, %cst_166 [1] : vector<16x32xf32> to vector<16xf32>
    %293 = vector.shape_cast %292 : vector<16xf32> to vector<16x1xf32>
    %cst_167 = arith.constant 3.200000e+01 : f32
    %294 = vector.broadcast %cst_167 : f32 to vector<16x1xf32>
    %295 = arith.divf %293, %294 : vector<16x1xf32>
    %296 = vector.broadcast %295 : vector<16x1xf32> to vector<16x32xf32>
    %297 = arith.subf %289, %296 : vector<16x32xf32>
    %298 = arith.mulf %297, %297 : vector<16x32xf32>
    %cst_168 = arith.constant dense<0.000000e+00> : vector<16xf32>
    %299 = vector.multi_reduction <add>, %298, %cst_168 [1] : vector<16x32xf32> to vector<16xf32>
    %300 = vector.shape_cast %299 : vector<16xf32> to vector<16x1xf32>
    %cst_169 = arith.constant 3.200000e+01 : f32
    %301 = vector.broadcast %cst_169 : f32 to vector<16x1xf32>
    %302 = arith.divf %300, %301 : vector<16x1xf32>
    %cst_170 = arith.constant 9.99999996E-13 : f32
    %303 = vector.broadcast %cst_170 : f32 to vector<16x1xf32>
    %304 = arith.addf %302, %303 : vector<16x1xf32>
    %305 = math.rsqrt %304 : vector<16x1xf32>
    %306 = vector.broadcast %305 : vector<16x1xf32> to vector<16x32xf32>
    %307 = arith.mulf %297, %306 : vector<16x32xf32>
    %308 = vector.broadcast %290 : vector<1x32xf32> to vector<16x32xf32>
    %309 = arith.mulf %307, %308 : vector<16x32xf32>
    %310 = vector.broadcast %291 : vector<1x32xf32> to vector<16x32xf32>
    %311 = arith.addf %309, %310 : vector<16x32xf32>
    %c0_171 = arith.constant 0 : index
    %c0_172 = arith.constant 0 : index
    %312 = vector.load %arg1[%c0_171, %c0_172] : memref<32x32xf32, #tpu.memory_space<vmem>>, vector<32x32xf32>
    %c0_173 = arith.constant 0 : index
    %c0_174 = arith.constant 0 : index
    %313 = vector.load %arg17[%c0_173, %c0_174] : memref<1x32xf32, #tpu.memory_space<vmem>>, vector<1x32xf32>
    %c0_175 = arith.constant 0 : index
    %c0_176 = arith.constant 0 : index
    %c0_177 = arith.constant 0 : index
    %314 = vector.load %arg14[%c0_175, %c0_176, %c0_177] : memref<12x32x8xf32, #tpu.memory_space<vmem>>, vector<1x32x8xf32>
    %315 = vector.shape_cast %314 : vector<1x32x8xf32> to vector<32x8xf32>
    %cst_178 = arith.constant dense<0.000000e+00> : vector<16x8xf32>
    %316 = tpu.matmul %311, %315, %cst_178 {dimension_numbers = #tpu.dot_dimension_numbers<[1], [0], [0], [1], [0, 0, 1, 1], [], []>} : vector<16x32xf32>, vector<32x8xf32>, vector<16x8xf32> -> vector<16x8xf32>
    %c0_179 = arith.constant 0 : index
    %c0_180 = arith.constant 0 : index
    %c0_181 = arith.constant 0 : index
    %317 = vector.load %arg15[%c0_179, %c0_180, %c0_181] : memref<12x1x8xf32, #tpu.memory_space<vmem>>, vector<1x1x8xf32>
    %318 = vector.shape_cast %317 : vector<1x1x8xf32> to vector<1x8xf32>
    %319 = vector.broadcast %318 : vector<1x8xf32> to vector<16x8xf32>
    %320 = arith.addf %316, %319 : vector<16x8xf32>
    %c4_182 = arith.constant 4 : index
    %c0_183 = arith.constant 0 : index
    %c0_184 = arith.constant 0 : index
    %321 = vector.load %arg14[%c4_182, %c0_183, %c0_184] : memref<12x32x8xf32, #tpu.memory_space<vmem>>, vector<1x32x8xf32>
    %322 = vector.shape_cast %321 : vector<1x32x8xf32> to vector<32x8xf32>
    %cst_185 = arith.constant dense<0.000000e+00> : vector<32x8xf32>
    %323 = tpu.matmul %312, %322, %cst_185 {dimension_numbers = #tpu.dot_dimension_numbers<[1], [0], [0], [1], [0, 0, 1, 1], [], []>} : vector<32x32xf32>, vector<32x8xf32>, vector<32x8xf32> -> vector<32x8xf32>
    %c4_186 = arith.constant 4 : index
    %c0_187 = arith.constant 0 : index
    %c0_188 = arith.constant 0 : index
    %324 = vector.load %arg15[%c4_186, %c0_187, %c0_188] : memref<12x1x8xf32, #tpu.memory_space<vmem>>, vector<1x1x8xf32>
    %325 = vector.shape_cast %324 : vector<1x1x8xf32> to vector<1x8xf32>
    %326 = vector.broadcast %325 : vector<1x8xf32> to vector<32x8xf32>
    %327 = arith.addf %323, %326 : vector<32x8xf32>
    %c8_189 = arith.constant 8 : index
    %c0_190 = arith.constant 0 : index
    %c0_191 = arith.constant 0 : index
    %328 = vector.load %arg14[%c8_189, %c0_190, %c0_191] : memref<12x32x8xf32, #tpu.memory_space<vmem>>, vector<1x32x8xf32>
    %329 = vector.shape_cast %328 : vector<1x32x8xf32> to vector<32x8xf32>
    %cst_192 = arith.constant dense<0.000000e+00> : vector<32x8xf32>
    %330 = tpu.matmul %312, %329, %cst_192 {dimension_numbers = #tpu.dot_dimension_numbers<[1], [0], [0], [1], [0, 0, 1, 1], [], []>} : vector<32x32xf32>, vector<32x8xf32>, vector<32x8xf32> -> vector<32x8xf32>
    %c8_193 = arith.constant 8 : index
    %c0_194 = arith.constant 0 : index
    %c0_195 = arith.constant 0 : index
    %331 = vector.load %arg15[%c8_193, %c0_194, %c0_195] : memref<12x1x8xf32, #tpu.memory_space<vmem>>, vector<1x1x8xf32>
    %332 = vector.shape_cast %331 : vector<1x1x8xf32> to vector<1x8xf32>
    %333 = vector.broadcast %332 : vector<1x8xf32> to vector<32x8xf32>
    %334 = arith.addf %330, %333 : vector<32x8xf32>
    %c1_196 = arith.constant 1 : index
    %c0_197 = arith.constant 0 : index
    %c0_198 = arith.constant 0 : index
    %335 = vector.load %arg14[%c1_196, %c0_197, %c0_198] : memref<12x32x8xf32, #tpu.memory_space<vmem>>, vector<1x32x8xf32>
    %336 = vector.shape_cast %335 : vector<1x32x8xf32> to vector<32x8xf32>
    %cst_199 = arith.constant dense<0.000000e+00> : vector<16x8xf32>
    %337 = tpu.matmul %311, %336, %cst_199 {dimension_numbers = #tpu.dot_dimension_numbers<[1], [0], [0], [1], [0, 0, 1, 1], [], []>} : vector<16x32xf32>, vector<32x8xf32>, vector<16x8xf32> -> vector<16x8xf32>
    %c1_200 = arith.constant 1 : index
    %c0_201 = arith.constant 0 : index
    %c0_202 = arith.constant 0 : index
    %338 = vector.load %arg15[%c1_200, %c0_201, %c0_202] : memref<12x1x8xf32, #tpu.memory_space<vmem>>, vector<1x1x8xf32>
    %339 = vector.shape_cast %338 : vector<1x1x8xf32> to vector<1x8xf32>
    %340 = vector.broadcast %339 : vector<1x8xf32> to vector<16x8xf32>
    %341 = arith.addf %337, %340 : vector<16x8xf32>
    %c5_203 = arith.constant 5 : index
    %c0_204 = arith.constant 0 : index
    %c0_205 = arith.constant 0 : index
    %342 = vector.load %arg14[%c5_203, %c0_204, %c0_205] : memref<12x32x8xf32, #tpu.memory_space<vmem>>, vector<1x32x8xf32>
    %343 = vector.shape_cast %342 : vector<1x32x8xf32> to vector<32x8xf32>
    %cst_206 = arith.constant dense<0.000000e+00> : vector<32x8xf32>
    %344 = tpu.matmul %312, %343, %cst_206 {dimension_numbers = #tpu.dot_dimension_numbers<[1], [0], [0], [1], [0, 0, 1, 1], [], []>} : vector<32x32xf32>, vector<32x8xf32>, vector<32x8xf32> -> vector<32x8xf32>
    %c5_207 = arith.constant 5 : index
    %c0_208 = arith.constant 0 : index
    %c0_209 = arith.constant 0 : index
    %345 = vector.load %arg15[%c5_207, %c0_208, %c0_209] : memref<12x1x8xf32, #tpu.memory_space<vmem>>, vector<1x1x8xf32>
    %346 = vector.shape_cast %345 : vector<1x1x8xf32> to vector<1x8xf32>
    %347 = vector.broadcast %346 : vector<1x8xf32> to vector<32x8xf32>
    %348 = arith.addf %344, %347 : vector<32x8xf32>
    %c9_210 = arith.constant 9 : index
    %c0_211 = arith.constant 0 : index
    %c0_212 = arith.constant 0 : index
    %349 = vector.load %arg14[%c9_210, %c0_211, %c0_212] : memref<12x32x8xf32, #tpu.memory_space<vmem>>, vector<1x32x8xf32>
    %350 = vector.shape_cast %349 : vector<1x32x8xf32> to vector<32x8xf32>
    %cst_213 = arith.constant dense<0.000000e+00> : vector<32x8xf32>
    %351 = tpu.matmul %312, %350, %cst_213 {dimension_numbers = #tpu.dot_dimension_numbers<[1], [0], [0], [1], [0, 0, 1, 1], [], []>} : vector<32x32xf32>, vector<32x8xf32>, vector<32x8xf32> -> vector<32x8xf32>
    %c9_214 = arith.constant 9 : index
    %c0_215 = arith.constant 0 : index
    %c0_216 = arith.constant 0 : index
    %352 = vector.load %arg15[%c9_214, %c0_215, %c0_216] : memref<12x1x8xf32, #tpu.memory_space<vmem>>, vector<1x1x8xf32>
    %353 = vector.shape_cast %352 : vector<1x1x8xf32> to vector<1x8xf32>
    %354 = vector.broadcast %353 : vector<1x8xf32> to vector<32x8xf32>
    %355 = arith.addf %351, %354 : vector<32x8xf32>
    %c2_217 = arith.constant 2 : index
    %c0_218 = arith.constant 0 : index
    %c0_219 = arith.constant 0 : index
    %356 = vector.load %arg14[%c2_217, %c0_218, %c0_219] : memref<12x32x8xf32, #tpu.memory_space<vmem>>, vector<1x32x8xf32>
    %357 = vector.shape_cast %356 : vector<1x32x8xf32> to vector<32x8xf32>
    %cst_220 = arith.constant dense<0.000000e+00> : vector<16x8xf32>
    %358 = tpu.matmul %311, %357, %cst_220 {dimension_numbers = #tpu.dot_dimension_numbers<[1], [0], [0], [1], [0, 0, 1, 1], [], []>} : vector<16x32xf32>, vector<32x8xf32>, vector<16x8xf32> -> vector<16x8xf32>
    %c2_221 = arith.constant 2 : index
    %c0_222 = arith.constant 0 : index
    %c0_223 = arith.constant 0 : index
    %359 = vector.load %arg15[%c2_221, %c0_222, %c0_223] : memref<12x1x8xf32, #tpu.memory_space<vmem>>, vector<1x1x8xf32>
    %360 = vector.shape_cast %359 : vector<1x1x8xf32> to vector<1x8xf32>
    %361 = vector.broadcast %360 : vector<1x8xf32> to vector<16x8xf32>
    %362 = arith.addf %358, %361 : vector<16x8xf32>
    %c6_224 = arith.constant 6 : index
    %c0_225 = arith.constant 0 : index
    %c0_226 = arith.constant 0 : index
    %363 = vector.load %arg14[%c6_224, %c0_225, %c0_226] : memref<12x32x8xf32, #tpu.memory_space<vmem>>, vector<1x32x8xf32>
    %364 = vector.shape_cast %363 : vector<1x32x8xf32> to vector<32x8xf32>
    %cst_227 = arith.constant dense<0.000000e+00> : vector<32x8xf32>
    %365 = tpu.matmul %312, %364, %cst_227 {dimension_numbers = #tpu.dot_dimension_numbers<[1], [0], [0], [1], [0, 0, 1, 1], [], []>} : vector<32x32xf32>, vector<32x8xf32>, vector<32x8xf32> -> vector<32x8xf32>
    %c6_228 = arith.constant 6 : index
    %c0_229 = arith.constant 0 : index
    %c0_230 = arith.constant 0 : index
    %366 = vector.load %arg15[%c6_228, %c0_229, %c0_230] : memref<12x1x8xf32, #tpu.memory_space<vmem>>, vector<1x1x8xf32>
    %367 = vector.shape_cast %366 : vector<1x1x8xf32> to vector<1x8xf32>
    %368 = vector.broadcast %367 : vector<1x8xf32> to vector<32x8xf32>
    %369 = arith.addf %365, %368 : vector<32x8xf32>
    %c10_231 = arith.constant 10 : index
    %c0_232 = arith.constant 0 : index
    %c0_233 = arith.constant 0 : index
    %370 = vector.load %arg14[%c10_231, %c0_232, %c0_233] : memref<12x32x8xf32, #tpu.memory_space<vmem>>, vector<1x32x8xf32>
    %371 = vector.shape_cast %370 : vector<1x32x8xf32> to vector<32x8xf32>
    %cst_234 = arith.constant dense<0.000000e+00> : vector<32x8xf32>
    %372 = tpu.matmul %312, %371, %cst_234 {dimension_numbers = #tpu.dot_dimension_numbers<[1], [0], [0], [1], [0, 0, 1, 1], [], []>} : vector<32x32xf32>, vector<32x8xf32>, vector<32x8xf32> -> vector<32x8xf32>
    %c10_235 = arith.constant 10 : index
    %c0_236 = arith.constant 0 : index
    %c0_237 = arith.constant 0 : index
    %373 = vector.load %arg15[%c10_235, %c0_236, %c0_237] : memref<12x1x8xf32, #tpu.memory_space<vmem>>, vector<1x1x8xf32>
    %374 = vector.shape_cast %373 : vector<1x1x8xf32> to vector<1x8xf32>
    %375 = vector.broadcast %374 : vector<1x8xf32> to vector<32x8xf32>
    %376 = arith.addf %372, %375 : vector<32x8xf32>
    %c3_238 = arith.constant 3 : index
    %c0_239 = arith.constant 0 : index
    %c0_240 = arith.constant 0 : index
    %377 = vector.load %arg14[%c3_238, %c0_239, %c0_240] : memref<12x32x8xf32, #tpu.memory_space<vmem>>, vector<1x32x8xf32>
    %378 = vector.shape_cast %377 : vector<1x32x8xf32> to vector<32x8xf32>
    %cst_241 = arith.constant dense<0.000000e+00> : vector<16x8xf32>
    %379 = tpu.matmul %311, %378, %cst_241 {dimension_numbers = #tpu.dot_dimension_numbers<[1], [0], [0], [1], [0, 0, 1, 1], [], []>} : vector<16x32xf32>, vector<32x8xf32>, vector<16x8xf32> -> vector<16x8xf32>
    %c3_242 = arith.constant 3 : index
    %c0_243 = arith.constant 0 : index
    %c0_244 = arith.constant 0 : index
    %380 = vector.load %arg15[%c3_242, %c0_243, %c0_244] : memref<12x1x8xf32, #tpu.memory_space<vmem>>, vector<1x1x8xf32>
    %381 = vector.shape_cast %380 : vector<1x1x8xf32> to vector<1x8xf32>
    %382 = vector.broadcast %381 : vector<1x8xf32> to vector<16x8xf32>
    %383 = arith.addf %379, %382 : vector<16x8xf32>
    %c7_245 = arith.constant 7 : index
    %c0_246 = arith.constant 0 : index
    %c0_247 = arith.constant 0 : index
    %384 = vector.load %arg14[%c7_245, %c0_246, %c0_247] : memref<12x32x8xf32, #tpu.memory_space<vmem>>, vector<1x32x8xf32>
    %385 = vector.shape_cast %384 : vector<1x32x8xf32> to vector<32x8xf32>
    %cst_248 = arith.constant dense<0.000000e+00> : vector<32x8xf32>
    %386 = tpu.matmul %312, %385, %cst_248 {dimension_numbers = #tpu.dot_dimension_numbers<[1], [0], [0], [1], [0, 0, 1, 1], [], []>} : vector<32x32xf32>, vector<32x8xf32>, vector<32x8xf32> -> vector<32x8xf32>
    %c7_249 = arith.constant 7 : index
    %c0_250 = arith.constant 0 : index
    %c0_251 = arith.constant 0 : index
    %387 = vector.load %arg15[%c7_249, %c0_250, %c0_251] : memref<12x1x8xf32, #tpu.memory_space<vmem>>, vector<1x1x8xf32>
    %388 = vector.shape_cast %387 : vector<1x1x8xf32> to vector<1x8xf32>
    %389 = vector.broadcast %388 : vector<1x8xf32> to vector<32x8xf32>
    %390 = arith.addf %386, %389 : vector<32x8xf32>
    %c11_252 = arith.constant 11 : index
    %c0_253 = arith.constant 0 : index
    %c0_254 = arith.constant 0 : index
    %391 = vector.load %arg14[%c11_252, %c0_253, %c0_254] : memref<12x32x8xf32, #tpu.memory_space<vmem>>, vector<1x32x8xf32>
    %392 = vector.shape_cast %391 : vector<1x32x8xf32> to vector<32x8xf32>
    %cst_255 = arith.constant dense<0.000000e+00> : vector<32x8xf32>
    %393 = tpu.matmul %312, %392, %cst_255 {dimension_numbers = #tpu.dot_dimension_numbers<[1], [0], [0], [1], [0, 0, 1, 1], [], []>} : vector<32x32xf32>, vector<32x8xf32>, vector<32x8xf32> -> vector<32x8xf32>
    %c11_256 = arith.constant 11 : index
    %c0_257 = arith.constant 0 : index
    %c0_258 = arith.constant 0 : index
    %394 = vector.load %arg15[%c11_256, %c0_257, %c0_258] : memref<12x1x8xf32, #tpu.memory_space<vmem>>, vector<1x1x8xf32>
    %395 = vector.shape_cast %394 : vector<1x1x8xf32> to vector<1x8xf32>
    %396 = vector.broadcast %395 : vector<1x8xf32> to vector<32x8xf32>
    %397 = arith.addf %393, %396 : vector<32x8xf32>
    %c0_259 = arith.constant 0 : index
    %c0_260 = arith.constant 0 : index
    %c0_261 = arith.constant 0 : index
    %398 = vector.load %arg3[%c0_259, %c0_260, %c0_261] : memref<2x1x16xf32, #tpu.memory_space<vmem>>, vector<1x1x16xf32>
    %399 = vector.shape_cast %398 : vector<1x1x16xf32> to vector<1x16xf32>
    %400 = vector.extract_strided_slice %320 {offsets = [0, 0], sizes = [8, 8], strides = [1, 1]} : vector<16x8xf32> to vector<8x8xf32>
    %401 = vector.extract_strided_slice %327 {offsets = [0, 0], sizes = [16, 8], strides = [1, 1]} : vector<32x8xf32> to vector<16x8xf32>
    %402 = vector.extract_strided_slice %334 {offsets = [0, 0], sizes = [16, 8], strides = [1, 1]} : vector<32x8xf32> to vector<16x8xf32>
    %cst_262 = arith.constant dense<0.000000e+00> : vector<8x16xf32>
    %403 = tpu.matmul %400, %401, %cst_262 {dimension_numbers = #tpu.dot_dimension_numbers<[1], [1], [0], [0], [0, 0, 1, 0], [], []>} : vector<8x8xf32>, vector<16x8xf32>, vector<8x16xf32> -> vector<8x16xf32>
    %cst_263 = arith.constant 0.353553385 : f32
    %404 = vector.broadcast %cst_263 : f32 to vector<8x16xf32>
    %405 = arith.mulf %403, %404 : vector<8x16xf32>
    %406 = vector.broadcast %399 : vector<1x16xf32> to vector<8x16xf32>
    %407 = arith.addf %405, %406 : vector<8x16xf32>
    %cst_264 = arith.constant dense<0xFF800000> : vector<8xf32>
    %408 = vector.multi_reduction <maximumf>, %407, %cst_264 [1] : vector<8x16xf32> to vector<8xf32>
    %409 = vector.shape_cast %408 : vector<8xf32> to vector<8x1xf32>
    %410 = vector.broadcast %409 : vector<8x1xf32> to vector<8x16xf32>
    %411 = arith.subf %407, %410 : vector<8x16xf32>
    %412 = math.exp %411 : vector<8x16xf32>
    %cst_265 = arith.constant dense<0.000000e+00> : vector<8xf32>
    %413 = vector.multi_reduction <add>, %412, %cst_265 [1] : vector<8x16xf32> to vector<8xf32>
    %414 = vector.shape_cast %413 : vector<8xf32> to vector<8x1xf32>
    %415 = vector.broadcast %414 : vector<8x1xf32> to vector<8x16xf32>
    %416 = arith.divf %412, %415 : vector<8x16xf32>
    %cst_266 = arith.constant dense<0.000000e+00> : vector<8x8xf32>
    %417 = tpu.matmul %416, %402, %cst_266 {dimension_numbers = #tpu.dot_dimension_numbers<[1], [0], [0], [1], [0, 0, 1, 1], [], []>} : vector<8x16xf32>, vector<16x8xf32>, vector<8x8xf32> -> vector<8x8xf32>
    %c0_267 = arith.constant 0 : index
    %c0_268 = arith.constant 0 : index
    %c0_269 = arith.constant 0 : index
    %418 = vector.load %arg16[%c0_267, %c0_268, %c0_269] : memref<4x8x32xf32, #tpu.memory_space<vmem>>, vector<1x8x32xf32>
    %419 = vector.shape_cast %418 : vector<1x8x32xf32> to vector<8x32xf32>
    %cst_270 = arith.constant dense<0.000000e+00> : vector<8x32xf32>
    %420 = tpu.matmul %417, %419, %cst_270 {dimension_numbers = #tpu.dot_dimension_numbers<[1], [0], [0], [1], [0, 0, 1, 1], [], []>} : vector<8x8xf32>, vector<8x32xf32>, vector<8x32xf32> -> vector<8x32xf32>
    %421 = vector.extract_strided_slice %341 {offsets = [0, 0], sizes = [8, 8], strides = [1, 1]} : vector<16x8xf32> to vector<8x8xf32>
    %422 = vector.extract_strided_slice %348 {offsets = [0, 0], sizes = [16, 8], strides = [1, 1]} : vector<32x8xf32> to vector<16x8xf32>
    %423 = vector.extract_strided_slice %355 {offsets = [0, 0], sizes = [16, 8], strides = [1, 1]} : vector<32x8xf32> to vector<16x8xf32>
    %cst_271 = arith.constant dense<0.000000e+00> : vector<8x16xf32>
    %424 = tpu.matmul %421, %422, %cst_271 {dimension_numbers = #tpu.dot_dimension_numbers<[1], [1], [0], [0], [0, 0, 1, 0], [], []>} : vector<8x8xf32>, vector<16x8xf32>, vector<8x16xf32> -> vector<8x16xf32>
    %cst_272 = arith.constant 0.353553385 : f32
    %425 = vector.broadcast %cst_272 : f32 to vector<8x16xf32>
    %426 = arith.mulf %424, %425 : vector<8x16xf32>
    %427 = vector.broadcast %399 : vector<1x16xf32> to vector<8x16xf32>
    %428 = arith.addf %426, %427 : vector<8x16xf32>
    %cst_273 = arith.constant dense<0xFF800000> : vector<8xf32>
    %429 = vector.multi_reduction <maximumf>, %428, %cst_273 [1] : vector<8x16xf32> to vector<8xf32>
    %430 = vector.shape_cast %429 : vector<8xf32> to vector<8x1xf32>
    %431 = vector.broadcast %430 : vector<8x1xf32> to vector<8x16xf32>
    %432 = arith.subf %428, %431 : vector<8x16xf32>
    %433 = math.exp %432 : vector<8x16xf32>
    %cst_274 = arith.constant dense<0.000000e+00> : vector<8xf32>
    %434 = vector.multi_reduction <add>, %433, %cst_274 [1] : vector<8x16xf32> to vector<8xf32>
    %435 = vector.shape_cast %434 : vector<8xf32> to vector<8x1xf32>
    %436 = vector.broadcast %435 : vector<8x1xf32> to vector<8x16xf32>
    %437 = arith.divf %433, %436 : vector<8x16xf32>
    %cst_275 = arith.constant dense<0.000000e+00> : vector<8x8xf32>
    %438 = tpu.matmul %437, %423, %cst_275 {dimension_numbers = #tpu.dot_dimension_numbers<[1], [0], [0], [1], [0, 0, 1, 1], [], []>} : vector<8x16xf32>, vector<16x8xf32>, vector<8x8xf32> -> vector<8x8xf32>
    %c1_276 = arith.constant 1 : index
    %c0_277 = arith.constant 0 : index
    %c0_278 = arith.constant 0 : index
    %439 = vector.load %arg16[%c1_276, %c0_277, %c0_278] : memref<4x8x32xf32, #tpu.memory_space<vmem>>, vector<1x8x32xf32>
    %440 = vector.shape_cast %439 : vector<1x8x32xf32> to vector<8x32xf32>
    %cst_279 = arith.constant dense<0.000000e+00> : vector<8x32xf32>
    %441 = tpu.matmul %438, %440, %cst_279 {dimension_numbers = #tpu.dot_dimension_numbers<[1], [0], [0], [1], [0, 0, 1, 1], [], []>} : vector<8x8xf32>, vector<8x32xf32>, vector<8x32xf32> -> vector<8x32xf32>
    %442 = arith.addf %420, %441 : vector<8x32xf32>
    %443 = vector.extract_strided_slice %362 {offsets = [0, 0], sizes = [8, 8], strides = [1, 1]} : vector<16x8xf32> to vector<8x8xf32>
    %444 = vector.extract_strided_slice %369 {offsets = [0, 0], sizes = [16, 8], strides = [1, 1]} : vector<32x8xf32> to vector<16x8xf32>
    %445 = vector.extract_strided_slice %376 {offsets = [0, 0], sizes = [16, 8], strides = [1, 1]} : vector<32x8xf32> to vector<16x8xf32>
    %cst_280 = arith.constant dense<0.000000e+00> : vector<8x16xf32>
    %446 = tpu.matmul %443, %444, %cst_280 {dimension_numbers = #tpu.dot_dimension_numbers<[1], [1], [0], [0], [0, 0, 1, 0], [], []>} : vector<8x8xf32>, vector<16x8xf32>, vector<8x16xf32> -> vector<8x16xf32>
    %cst_281 = arith.constant 0.353553385 : f32
    %447 = vector.broadcast %cst_281 : f32 to vector<8x16xf32>
    %448 = arith.mulf %446, %447 : vector<8x16xf32>
    %449 = vector.broadcast %399 : vector<1x16xf32> to vector<8x16xf32>
    %450 = arith.addf %448, %449 : vector<8x16xf32>
    %cst_282 = arith.constant dense<0xFF800000> : vector<8xf32>
    %451 = vector.multi_reduction <maximumf>, %450, %cst_282 [1] : vector<8x16xf32> to vector<8xf32>
    %452 = vector.shape_cast %451 : vector<8xf32> to vector<8x1xf32>
    %453 = vector.broadcast %452 : vector<8x1xf32> to vector<8x16xf32>
    %454 = arith.subf %450, %453 : vector<8x16xf32>
    %455 = math.exp %454 : vector<8x16xf32>
    %cst_283 = arith.constant dense<0.000000e+00> : vector<8xf32>
    %456 = vector.multi_reduction <add>, %455, %cst_283 [1] : vector<8x16xf32> to vector<8xf32>
    %457 = vector.shape_cast %456 : vector<8xf32> to vector<8x1xf32>
    %458 = vector.broadcast %457 : vector<8x1xf32> to vector<8x16xf32>
    %459 = arith.divf %455, %458 : vector<8x16xf32>
    %cst_284 = arith.constant dense<0.000000e+00> : vector<8x8xf32>
    %460 = tpu.matmul %459, %445, %cst_284 {dimension_numbers = #tpu.dot_dimension_numbers<[1], [0], [0], [1], [0, 0, 1, 1], [], []>} : vector<8x16xf32>, vector<16x8xf32>, vector<8x8xf32> -> vector<8x8xf32>
    %c2_285 = arith.constant 2 : index
    %c0_286 = arith.constant 0 : index
    %c0_287 = arith.constant 0 : index
    %461 = vector.load %arg16[%c2_285, %c0_286, %c0_287] : memref<4x8x32xf32, #tpu.memory_space<vmem>>, vector<1x8x32xf32>
    %462 = vector.shape_cast %461 : vector<1x8x32xf32> to vector<8x32xf32>
    %cst_288 = arith.constant dense<0.000000e+00> : vector<8x32xf32>
    %463 = tpu.matmul %460, %462, %cst_288 {dimension_numbers = #tpu.dot_dimension_numbers<[1], [0], [0], [1], [0, 0, 1, 1], [], []>} : vector<8x8xf32>, vector<8x32xf32>, vector<8x32xf32> -> vector<8x32xf32>
    %464 = arith.addf %442, %463 : vector<8x32xf32>
    %465 = vector.extract_strided_slice %383 {offsets = [0, 0], sizes = [8, 8], strides = [1, 1]} : vector<16x8xf32> to vector<8x8xf32>
    %466 = vector.extract_strided_slice %390 {offsets = [0, 0], sizes = [16, 8], strides = [1, 1]} : vector<32x8xf32> to vector<16x8xf32>
    %467 = vector.extract_strided_slice %397 {offsets = [0, 0], sizes = [16, 8], strides = [1, 1]} : vector<32x8xf32> to vector<16x8xf32>
    %cst_289 = arith.constant dense<0.000000e+00> : vector<8x16xf32>
    %468 = tpu.matmul %465, %466, %cst_289 {dimension_numbers = #tpu.dot_dimension_numbers<[1], [1], [0], [0], [0, 0, 1, 0], [], []>} : vector<8x8xf32>, vector<16x8xf32>, vector<8x16xf32> -> vector<8x16xf32>
    %cst_290 = arith.constant 0.353553385 : f32
    %469 = vector.broadcast %cst_290 : f32 to vector<8x16xf32>
    %470 = arith.mulf %468, %469 : vector<8x16xf32>
    %471 = vector.broadcast %399 : vector<1x16xf32> to vector<8x16xf32>
    %472 = arith.addf %470, %471 : vector<8x16xf32>
    %cst_291 = arith.constant dense<0xFF800000> : vector<8xf32>
    %473 = vector.multi_reduction <maximumf>, %472, %cst_291 [1] : vector<8x16xf32> to vector<8xf32>
    %474 = vector.shape_cast %473 : vector<8xf32> to vector<8x1xf32>
    %475 = vector.broadcast %474 : vector<8x1xf32> to vector<8x16xf32>
    %476 = arith.subf %472, %475 : vector<8x16xf32>
    %477 = math.exp %476 : vector<8x16xf32>
    %cst_292 = arith.constant dense<0.000000e+00> : vector<8xf32>
    %478 = vector.multi_reduction <add>, %477, %cst_292 [1] : vector<8x16xf32> to vector<8xf32>
    %479 = vector.shape_cast %478 : vector<8xf32> to vector<8x1xf32>
    %480 = vector.broadcast %479 : vector<8x1xf32> to vector<8x16xf32>
    %481 = arith.divf %477, %480 : vector<8x16xf32>
    %cst_293 = arith.constant dense<0.000000e+00> : vector<8x8xf32>
    %482 = tpu.matmul %481, %467, %cst_293 {dimension_numbers = #tpu.dot_dimension_numbers<[1], [0], [0], [1], [0, 0, 1, 1], [], []>} : vector<8x16xf32>, vector<16x8xf32>, vector<8x8xf32> -> vector<8x8xf32>
    %c3_294 = arith.constant 3 : index
    %c0_295 = arith.constant 0 : index
    %c0_296 = arith.constant 0 : index
    %483 = vector.load %arg16[%c3_294, %c0_295, %c0_296] : memref<4x8x32xf32, #tpu.memory_space<vmem>>, vector<1x8x32xf32>
    %484 = vector.shape_cast %483 : vector<1x8x32xf32> to vector<8x32xf32>
    %cst_297 = arith.constant dense<0.000000e+00> : vector<8x32xf32>
    %485 = tpu.matmul %482, %484, %cst_297 {dimension_numbers = #tpu.dot_dimension_numbers<[1], [0], [0], [1], [0, 0, 1, 1], [], []>} : vector<8x8xf32>, vector<8x32xf32>, vector<8x32xf32> -> vector<8x32xf32>
    %486 = arith.addf %464, %485 : vector<8x32xf32>
    %c1_298 = arith.constant 1 : index
    %c0_299 = arith.constant 0 : index
    %c0_300 = arith.constant 0 : index
    %487 = vector.load %arg3[%c1_298, %c0_299, %c0_300] : memref<2x1x16xf32, #tpu.memory_space<vmem>>, vector<1x1x16xf32>
    %488 = vector.shape_cast %487 : vector<1x1x16xf32> to vector<1x16xf32>
    %489 = vector.extract_strided_slice %320 {offsets = [8, 0], sizes = [8, 8], strides = [1, 1]} : vector<16x8xf32> to vector<8x8xf32>
    %490 = vector.extract_strided_slice %327 {offsets = [16, 0], sizes = [16, 8], strides = [1, 1]} : vector<32x8xf32> to vector<16x8xf32>
    %491 = vector.extract_strided_slice %334 {offsets = [16, 0], sizes = [16, 8], strides = [1, 1]} : vector<32x8xf32> to vector<16x8xf32>
    %cst_301 = arith.constant dense<0.000000e+00> : vector<8x16xf32>
    %492 = tpu.matmul %489, %490, %cst_301 {dimension_numbers = #tpu.dot_dimension_numbers<[1], [1], [0], [0], [0, 0, 1, 0], [], []>} : vector<8x8xf32>, vector<16x8xf32>, vector<8x16xf32> -> vector<8x16xf32>
    %cst_302 = arith.constant 0.353553385 : f32
    %493 = vector.broadcast %cst_302 : f32 to vector<8x16xf32>
    %494 = arith.mulf %492, %493 : vector<8x16xf32>
    %495 = vector.broadcast %488 : vector<1x16xf32> to vector<8x16xf32>
    %496 = arith.addf %494, %495 : vector<8x16xf32>
    %cst_303 = arith.constant dense<0xFF800000> : vector<8xf32>
    %497 = vector.multi_reduction <maximumf>, %496, %cst_303 [1] : vector<8x16xf32> to vector<8xf32>
    %498 = vector.shape_cast %497 : vector<8xf32> to vector<8x1xf32>
    %499 = vector.broadcast %498 : vector<8x1xf32> to vector<8x16xf32>
    %500 = arith.subf %496, %499 : vector<8x16xf32>
    %501 = math.exp %500 : vector<8x16xf32>
    %cst_304 = arith.constant dense<0.000000e+00> : vector<8xf32>
    %502 = vector.multi_reduction <add>, %501, %cst_304 [1] : vector<8x16xf32> to vector<8xf32>
    %503 = vector.shape_cast %502 : vector<8xf32> to vector<8x1xf32>
    %504 = vector.broadcast %503 : vector<8x1xf32> to vector<8x16xf32>
    %505 = arith.divf %501, %504 : vector<8x16xf32>
    %cst_305 = arith.constant dense<0.000000e+00> : vector<8x8xf32>
    %506 = tpu.matmul %505, %491, %cst_305 {dimension_numbers = #tpu.dot_dimension_numbers<[1], [0], [0], [1], [0, 0, 1, 1], [], []>} : vector<8x16xf32>, vector<16x8xf32>, vector<8x8xf32> -> vector<8x8xf32>
    %c0_306 = arith.constant 0 : index
    %c0_307 = arith.constant 0 : index
    %c0_308 = arith.constant 0 : index
    %507 = vector.load %arg16[%c0_306, %c0_307, %c0_308] : memref<4x8x32xf32, #tpu.memory_space<vmem>>, vector<1x8x32xf32>
    %508 = vector.shape_cast %507 : vector<1x8x32xf32> to vector<8x32xf32>
    %cst_309 = arith.constant dense<0.000000e+00> : vector<8x32xf32>
    %509 = tpu.matmul %506, %508, %cst_309 {dimension_numbers = #tpu.dot_dimension_numbers<[1], [0], [0], [1], [0, 0, 1, 1], [], []>} : vector<8x8xf32>, vector<8x32xf32>, vector<8x32xf32> -> vector<8x32xf32>
    %510 = vector.extract_strided_slice %341 {offsets = [8, 0], sizes = [8, 8], strides = [1, 1]} : vector<16x8xf32> to vector<8x8xf32>
    %511 = vector.extract_strided_slice %348 {offsets = [16, 0], sizes = [16, 8], strides = [1, 1]} : vector<32x8xf32> to vector<16x8xf32>
    %512 = vector.extract_strided_slice %355 {offsets = [16, 0], sizes = [16, 8], strides = [1, 1]} : vector<32x8xf32> to vector<16x8xf32>
    %cst_310 = arith.constant dense<0.000000e+00> : vector<8x16xf32>
    %513 = tpu.matmul %510, %511, %cst_310 {dimension_numbers = #tpu.dot_dimension_numbers<[1], [1], [0], [0], [0, 0, 1, 0], [], []>} : vector<8x8xf32>, vector<16x8xf32>, vector<8x16xf32> -> vector<8x16xf32>
    %cst_311 = arith.constant 0.353553385 : f32
    %514 = vector.broadcast %cst_311 : f32 to vector<8x16xf32>
    %515 = arith.mulf %513, %514 : vector<8x16xf32>
    %516 = vector.broadcast %488 : vector<1x16xf32> to vector<8x16xf32>
    %517 = arith.addf %515, %516 : vector<8x16xf32>
    %cst_312 = arith.constant dense<0xFF800000> : vector<8xf32>
    %518 = vector.multi_reduction <maximumf>, %517, %cst_312 [1] : vector<8x16xf32> to vector<8xf32>
    %519 = vector.shape_cast %518 : vector<8xf32> to vector<8x1xf32>
    %520 = vector.broadcast %519 : vector<8x1xf32> to vector<8x16xf32>
    %521 = arith.subf %517, %520 : vector<8x16xf32>
    %522 = math.exp %521 : vector<8x16xf32>
    %cst_313 = arith.constant dense<0.000000e+00> : vector<8xf32>
    %523 = vector.multi_reduction <add>, %522, %cst_313 [1] : vector<8x16xf32> to vector<8xf32>
    %524 = vector.shape_cast %523 : vector<8xf32> to vector<8x1xf32>
    %525 = vector.broadcast %524 : vector<8x1xf32> to vector<8x16xf32>
    %526 = arith.divf %522, %525 : vector<8x16xf32>
    %cst_314 = arith.constant dense<0.000000e+00> : vector<8x8xf32>
    %527 = tpu.matmul %526, %512, %cst_314 {dimension_numbers = #tpu.dot_dimension_numbers<[1], [0], [0], [1], [0, 0, 1, 1], [], []>} : vector<8x16xf32>, vector<16x8xf32>, vector<8x8xf32> -> vector<8x8xf32>
    %c1_315 = arith.constant 1 : index
    %c0_316 = arith.constant 0 : index
    %c0_317 = arith.constant 0 : index
    %528 = vector.load %arg16[%c1_315, %c0_316, %c0_317] : memref<4x8x32xf32, #tpu.memory_space<vmem>>, vector<1x8x32xf32>
    %529 = vector.shape_cast %528 : vector<1x8x32xf32> to vector<8x32xf32>
    %cst_318 = arith.constant dense<0.000000e+00> : vector<8x32xf32>
    %530 = tpu.matmul %527, %529, %cst_318 {dimension_numbers = #tpu.dot_dimension_numbers<[1], [0], [0], [1], [0, 0, 1, 1], [], []>} : vector<8x8xf32>, vector<8x32xf32>, vector<8x32xf32> -> vector<8x32xf32>
    %531 = arith.addf %509, %530 : vector<8x32xf32>
    %532 = vector.extract_strided_slice %362 {offsets = [8, 0], sizes = [8, 8], strides = [1, 1]} : vector<16x8xf32> to vector<8x8xf32>
    %533 = vector.extract_strided_slice %369 {offsets = [16, 0], sizes = [16, 8], strides = [1, 1]} : vector<32x8xf32> to vector<16x8xf32>
    %534 = vector.extract_strided_slice %376 {offsets = [16, 0], sizes = [16, 8], strides = [1, 1]} : vector<32x8xf32> to vector<16x8xf32>
    %cst_319 = arith.constant dense<0.000000e+00> : vector<8x16xf32>
    %535 = tpu.matmul %532, %533, %cst_319 {dimension_numbers = #tpu.dot_dimension_numbers<[1], [1], [0], [0], [0, 0, 1, 0], [], []>} : vector<8x8xf32>, vector<16x8xf32>, vector<8x16xf32> -> vector<8x16xf32>
    %cst_320 = arith.constant 0.353553385 : f32
    %536 = vector.broadcast %cst_320 : f32 to vector<8x16xf32>
    %537 = arith.mulf %535, %536 : vector<8x16xf32>
    %538 = vector.broadcast %488 : vector<1x16xf32> to vector<8x16xf32>
    %539 = arith.addf %537, %538 : vector<8x16xf32>
    %cst_321 = arith.constant dense<0xFF800000> : vector<8xf32>
    %540 = vector.multi_reduction <maximumf>, %539, %cst_321 [1] : vector<8x16xf32> to vector<8xf32>
    %541 = vector.shape_cast %540 : vector<8xf32> to vector<8x1xf32>
    %542 = vector.broadcast %541 : vector<8x1xf32> to vector<8x16xf32>
    %543 = arith.subf %539, %542 : vector<8x16xf32>
    %544 = math.exp %543 : vector<8x16xf32>
    %cst_322 = arith.constant dense<0.000000e+00> : vector<8xf32>
    %545 = vector.multi_reduction <add>, %544, %cst_322 [1] : vector<8x16xf32> to vector<8xf32>
    %546 = vector.shape_cast %545 : vector<8xf32> to vector<8x1xf32>
    %547 = vector.broadcast %546 : vector<8x1xf32> to vector<8x16xf32>
    %548 = arith.divf %544, %547 : vector<8x16xf32>
    %cst_323 = arith.constant dense<0.000000e+00> : vector<8x8xf32>
    %549 = tpu.matmul %548, %534, %cst_323 {dimension_numbers = #tpu.dot_dimension_numbers<[1], [0], [0], [1], [0, 0, 1, 1], [], []>} : vector<8x16xf32>, vector<16x8xf32>, vector<8x8xf32> -> vector<8x8xf32>
    %c2_324 = arith.constant 2 : index
    %c0_325 = arith.constant 0 : index
    %c0_326 = arith.constant 0 : index
    %550 = vector.load %arg16[%c2_324, %c0_325, %c0_326] : memref<4x8x32xf32, #tpu.memory_space<vmem>>, vector<1x8x32xf32>
    %551 = vector.shape_cast %550 : vector<1x8x32xf32> to vector<8x32xf32>
    %cst_327 = arith.constant dense<0.000000e+00> : vector<8x32xf32>
    %552 = tpu.matmul %549, %551, %cst_327 {dimension_numbers = #tpu.dot_dimension_numbers<[1], [0], [0], [1], [0, 0, 1, 1], [], []>} : vector<8x8xf32>, vector<8x32xf32>, vector<8x32xf32> -> vector<8x32xf32>
    %553 = arith.addf %531, %552 : vector<8x32xf32>
    %554 = vector.extract_strided_slice %383 {offsets = [8, 0], sizes = [8, 8], strides = [1, 1]} : vector<16x8xf32> to vector<8x8xf32>
    %555 = vector.extract_strided_slice %390 {offsets = [16, 0], sizes = [16, 8], strides = [1, 1]} : vector<32x8xf32> to vector<16x8xf32>
    %556 = vector.extract_strided_slice %397 {offsets = [16, 0], sizes = [16, 8], strides = [1, 1]} : vector<32x8xf32> to vector<16x8xf32>
    %cst_328 = arith.constant dense<0.000000e+00> : vector<8x16xf32>
    %557 = tpu.matmul %554, %555, %cst_328 {dimension_numbers = #tpu.dot_dimension_numbers<[1], [1], [0], [0], [0, 0, 1, 0], [], []>} : vector<8x8xf32>, vector<16x8xf32>, vector<8x16xf32> -> vector<8x16xf32>
    %cst_329 = arith.constant 0.353553385 : f32
    %558 = vector.broadcast %cst_329 : f32 to vector<8x16xf32>
    %559 = arith.mulf %557, %558 : vector<8x16xf32>
    %560 = vector.broadcast %488 : vector<1x16xf32> to vector<8x16xf32>
    %561 = arith.addf %559, %560 : vector<8x16xf32>
    %cst_330 = arith.constant dense<0xFF800000> : vector<8xf32>
    %562 = vector.multi_reduction <maximumf>, %561, %cst_330 [1] : vector<8x16xf32> to vector<8xf32>
    %563 = vector.shape_cast %562 : vector<8xf32> to vector<8x1xf32>
    %564 = vector.broadcast %563 : vector<8x1xf32> to vector<8x16xf32>
    %565 = arith.subf %561, %564 : vector<8x16xf32>
    %566 = math.exp %565 : vector<8x16xf32>
    %cst_331 = arith.constant dense<0.000000e+00> : vector<8xf32>
    %567 = vector.multi_reduction <add>, %566, %cst_331 [1] : vector<8x16xf32> to vector<8xf32>
    %568 = vector.shape_cast %567 : vector<8xf32> to vector<8x1xf32>
    %569 = vector.broadcast %568 : vector<8x1xf32> to vector<8x16xf32>
    %570 = arith.divf %566, %569 : vector<8x16xf32>
    %cst_332 = arith.constant dense<0.000000e+00> : vector<8x8xf32>
    %571 = tpu.matmul %570, %556, %cst_332 {dimension_numbers = #tpu.dot_dimension_numbers<[1], [0], [0], [1], [0, 0, 1, 1], [], []>} : vector<8x16xf32>, vector<16x8xf32>, vector<8x8xf32> -> vector<8x8xf32>
    %c3_333 = arith.constant 3 : index
    %c0_334 = arith.constant 0 : index
    %c0_335 = arith.constant 0 : index
    %572 = vector.load %arg16[%c3_333, %c0_334, %c0_335] : memref<4x8x32xf32, #tpu.memory_space<vmem>>, vector<1x8x32xf32>
    %573 = vector.shape_cast %572 : vector<1x8x32xf32> to vector<8x32xf32>
    %cst_336 = arith.constant dense<0.000000e+00> : vector<8x32xf32>
    %574 = tpu.matmul %571, %573, %cst_336 {dimension_numbers = #tpu.dot_dimension_numbers<[1], [0], [0], [1], [0, 0, 1, 1], [], []>} : vector<8x8xf32>, vector<8x32xf32>, vector<8x32xf32> -> vector<8x32xf32>
    %575 = arith.addf %553, %574 : vector<8x32xf32>
    %576 = tpu.concatenate %486, %575 in 0 : vector<8x32xf32>, vector<8x32xf32> -> vector<16x32xf32>
    %577 = vector.broadcast %313 : vector<1x32xf32> to vector<16x32xf32>
    %578 = arith.addf %576, %577 : vector<16x32xf32>
    %579 = arith.addf %311, %578 : vector<16x32xf32>
    %c0_337 = arith.constant 0 : index
    %c0_338 = arith.constant 0 : index
    %580 = vector.load %arg18[%c0_337, %c0_338] : memref<1x32xf32, #tpu.memory_space<vmem>>, vector<1x32xf32>
    %c0_339 = arith.constant 0 : index
    %c0_340 = arith.constant 0 : index
    %581 = vector.load %arg19[%c0_339, %c0_340] : memref<1x32xf32, #tpu.memory_space<vmem>>, vector<1x32xf32>
    %cst_341 = arith.constant dense<0.000000e+00> : vector<16xf32>
    %582 = vector.multi_reduction <add>, %579, %cst_341 [1] : vector<16x32xf32> to vector<16xf32>
    %583 = vector.shape_cast %582 : vector<16xf32> to vector<16x1xf32>
    %cst_342 = arith.constant 3.200000e+01 : f32
    %584 = vector.broadcast %cst_342 : f32 to vector<16x1xf32>
    %585 = arith.divf %583, %584 : vector<16x1xf32>
    %586 = vector.broadcast %585 : vector<16x1xf32> to vector<16x32xf32>
    %587 = arith.subf %579, %586 : vector<16x32xf32>
    %588 = arith.mulf %587, %587 : vector<16x32xf32>
    %cst_343 = arith.constant dense<0.000000e+00> : vector<16xf32>
    %589 = vector.multi_reduction <add>, %588, %cst_343 [1] : vector<16x32xf32> to vector<16xf32>
    %590 = vector.shape_cast %589 : vector<16xf32> to vector<16x1xf32>
    %cst_344 = arith.constant 3.200000e+01 : f32
    %591 = vector.broadcast %cst_344 : f32 to vector<16x1xf32>
    %592 = arith.divf %590, %591 : vector<16x1xf32>
    %cst_345 = arith.constant 9.99999996E-13 : f32
    %593 = vector.broadcast %cst_345 : f32 to vector<16x1xf32>
    %594 = arith.addf %592, %593 : vector<16x1xf32>
    %595 = math.rsqrt %594 : vector<16x1xf32>
    %596 = vector.broadcast %595 : vector<16x1xf32> to vector<16x32xf32>
    %597 = arith.mulf %587, %596 : vector<16x32xf32>
    %598 = vector.broadcast %580 : vector<1x32xf32> to vector<16x32xf32>
    %599 = arith.mulf %597, %598 : vector<16x32xf32>
    %600 = vector.broadcast %581 : vector<1x32xf32> to vector<16x32xf32>
    %601 = arith.addf %599, %600 : vector<16x32xf32>
    %c0_346 = arith.constant 0 : index
    %c0_347 = arith.constant 0 : index
    %602 = vector.load %arg20[%c0_346, %c0_347] : memref<32x64xf32, #tpu.memory_space<vmem>>, vector<32x64xf32>
    %cst_348 = arith.constant dense<0.000000e+00> : vector<16x64xf32>
    %603 = tpu.matmul %601, %602, %cst_348 {dimension_numbers = #tpu.dot_dimension_numbers<[1], [0], [0], [1], [0, 0, 1, 1], [], []>} : vector<16x32xf32>, vector<32x64xf32>, vector<16x64xf32> -> vector<16x64xf32>
    %c0_349 = arith.constant 0 : index
    %c0_350 = arith.constant 0 : index
    %604 = vector.load %arg21[%c0_349, %c0_350] : memref<1x64xf32, #tpu.memory_space<vmem>>, vector<1x64xf32>
    %605 = vector.broadcast %604 : vector<1x64xf32> to vector<16x64xf32>
    %606 = arith.addf %603, %605 : vector<16x64xf32>
    %cst_351 = arith.constant 5.000000e-01 : f32
    %607 = vector.broadcast %cst_351 : f32 to vector<16x64xf32>
    %608 = arith.mulf %607, %606 : vector<16x64xf32>
    %cst_352 = arith.constant 4.471500e-02 : f32
    %609 = vector.broadcast %cst_352 : f32 to vector<16x64xf32>
    %610 = arith.mulf %609, %606 : vector<16x64xf32>
    %611 = arith.mulf %610, %606 : vector<16x64xf32>
    %612 = arith.mulf %611, %606 : vector<16x64xf32>
    %613 = arith.addf %606, %612 : vector<16x64xf32>
    %cst_353 = arith.constant 0.797884583 : f32
    %614 = vector.broadcast %cst_353 : f32 to vector<16x64xf32>
    %615 = arith.mulf %614, %613 : vector<16x64xf32>
    %616 = math.tanh %615 : vector<16x64xf32>
    %cst_354 = arith.constant 1.000000e+00 : f32
    %617 = vector.broadcast %cst_354 : f32 to vector<16x64xf32>
    %618 = arith.addf %617, %616 : vector<16x64xf32>
    %619 = arith.mulf %608, %618 : vector<16x64xf32>
    %c0_355 = arith.constant 0 : index
    %c0_356 = arith.constant 0 : index
    %620 = vector.load %arg22[%c0_355, %c0_356] : memref<64x32xf32, #tpu.memory_space<vmem>>, vector<64x32xf32>
    %cst_357 = arith.constant dense<0.000000e+00> : vector<16x32xf32>
    %621 = tpu.matmul %619, %620, %cst_357 {dimension_numbers = #tpu.dot_dimension_numbers<[1], [0], [0], [1], [0, 0, 1, 1], [], []>} : vector<16x64xf32>, vector<64x32xf32>, vector<16x32xf32> -> vector<16x32xf32>
    %c0_358 = arith.constant 0 : index
    %c0_359 = arith.constant 0 : index
    %622 = vector.load %arg23[%c0_358, %c0_359] : memref<1x32xf32, #tpu.memory_space<vmem>>, vector<1x32xf32>
    %623 = vector.broadcast %622 : vector<1x32xf32> to vector<16x32xf32>
    %624 = arith.addf %621, %623 : vector<16x32xf32>
    %625 = arith.addf %601, %624 : vector<16x32xf32>
    %c0_360 = arith.constant 0 : index
    %c0_361 = arith.constant 0 : index
    %626 = vector.load %arg24[%c0_360, %c0_361] : memref<1x32xf32, #tpu.memory_space<vmem>>, vector<1x32xf32>
    %c0_362 = arith.constant 0 : index
    %c0_363 = arith.constant 0 : index
    %627 = vector.load %arg25[%c0_362, %c0_363] : memref<1x32xf32, #tpu.memory_space<vmem>>, vector<1x32xf32>
    %cst_364 = arith.constant dense<0.000000e+00> : vector<16xf32>
    %628 = vector.multi_reduction <add>, %625, %cst_364 [1] : vector<16x32xf32> to vector<16xf32>
    %629 = vector.shape_cast %628 : vector<16xf32> to vector<16x1xf32>
    %cst_365 = arith.constant 3.200000e+01 : f32
    %630 = vector.broadcast %cst_365 : f32 to vector<16x1xf32>
    %631 = arith.divf %629, %630 : vector<16x1xf32>
    %632 = vector.broadcast %631 : vector<16x1xf32> to vector<16x32xf32>
    %633 = arith.subf %625, %632 : vector<16x32xf32>
    %634 = arith.mulf %633, %633 : vector<16x32xf32>
    %cst_366 = arith.constant dense<0.000000e+00> : vector<16xf32>
    %635 = vector.multi_reduction <add>, %634, %cst_366 [1] : vector<16x32xf32> to vector<16xf32>
    %636 = vector.shape_cast %635 : vector<16xf32> to vector<16x1xf32>
    %cst_367 = arith.constant 3.200000e+01 : f32
    %637 = vector.broadcast %cst_367 : f32 to vector<16x1xf32>
    %638 = arith.divf %636, %637 : vector<16x1xf32>
    %cst_368 = arith.constant 9.99999996E-13 : f32
    %639 = vector.broadcast %cst_368 : f32 to vector<16x1xf32>
    %640 = arith.addf %638, %639 : vector<16x1xf32>
    %641 = math.rsqrt %640 : vector<16x1xf32>
    %642 = vector.broadcast %641 : vector<16x1xf32> to vector<16x32xf32>
    %643 = arith.mulf %633, %642 : vector<16x32xf32>
    %644 = vector.broadcast %626 : vector<1x32xf32> to vector<16x32xf32>
    %645 = arith.mulf %643, %644 : vector<16x32xf32>
    %646 = vector.broadcast %627 : vector<1x32xf32> to vector<16x32xf32>
    %647 = arith.addf %645, %646 : vector<16x32xf32>
    %c0_369 = arith.constant 0 : index
    %c0_370 = arith.constant 0 : index
    %648 = vector.load %arg26[%c0_369, %c0_370] : memref<32x32xf32, #tpu.memory_space<vmem>>, vector<32x32xf32>
    %cst_371 = arith.constant dense<0.000000e+00> : vector<16x32xf32>
    %649 = tpu.matmul %647, %648, %cst_371 {dimension_numbers = #tpu.dot_dimension_numbers<[1], [0], [0], [1], [0, 0, 1, 1], [], []>} : vector<16x32xf32>, vector<32x32xf32>, vector<16x32xf32> -> vector<16x32xf32>
    %c0_372 = arith.constant 0 : index
    %c0_373 = arith.constant 0 : index
    %650 = vector.load %arg27[%c0_372, %c0_373] : memref<1x32xf32, #tpu.memory_space<vmem>>, vector<1x32xf32>
    %651 = vector.broadcast %650 : vector<1x32xf32> to vector<16x32xf32>
    %652 = arith.addf %649, %651 : vector<16x32xf32>
    %c0_374 = arith.constant 0 : index
    %c0_375 = arith.constant 0 : index
    %653 = vector.load %arg28[%c0_374, %c0_375] : memref<16x32xf32, #tpu.memory_space<vmem>>, vector<16x32xf32>
    tpu.vector_store %arg28[%c0_374, %c0_375], %652 {strides = array<i32>} : memref<16x32xf32, #tpu.memory_space<vmem>>, vector<16x32xf32>,
    %c0_376 = arith.constant 0 : index
    %c0_377 = arith.constant 0 : index
    %654 = vector.load %arg4[%c0_376, %c0_377] : memref<16x1xi32, #tpu.memory_space<vmem>>, vector<16x1xi32>
    %cst_378 = arith.constant dense<0xFF800000> : vector<16xf32>
    %655 = vector.multi_reduction <maximumf>, %652, %cst_378 [1] : vector<16x32xf32> to vector<16xf32>
    %656 = vector.shape_cast %655 : vector<16xf32> to vector<16x1xf32>
    %657 = vector.broadcast %656 : vector<16x1xf32> to vector<16x32xf32>
    %658 = arith.subf %652, %657 : vector<16x32xf32>
    %659 = math.exp %658 : vector<16x32xf32>
    %cst_379 = arith.constant dense<0.000000e+00> : vector<16xf32>
    %660 = vector.multi_reduction <add>, %659, %cst_379 [1] : vector<16x32xf32> to vector<16xf32>
    %661 = vector.shape_cast %660 : vector<16xf32> to vector<16x1xf32>
    %662 = math.log %661 : vector<16x1xf32>
    %663 = arith.addf %662, %656 : vector<16x1xf32>
    %664 = tpu.iota {dimensions = array<i32: 1>} : vector<16x32xi32>
    %665 = vector.broadcast %654 : vector<16x1xi32> to vector<16x32xi32>
    %666 = arith.cmpi eq, %664, %665 : vector<16x32xi32>
    %cst_380 = arith.constant 0.000000e+00 : f32
    %667 = vector.broadcast %cst_380 : f32 to vector<16x32xf32>
    %668 = arith.select %666, %652, %667 : vector<16x32xi1>, vector<16x32xf32>
    %cst_381 = arith.constant dense<0.000000e+00> : vector<16xf32>
    %669 = vector.multi_reduction <add>, %668, %cst_381 [1] : vector<16x32xf32> to vector<16xf32>
    %670 = vector.shape_cast %669 : vector<16xf32> to vector<16x1xf32>
    %671 = arith.subf %663, %670 : vector<16x1xf32>
    %c0_382 = arith.constant 0 : index
    %c0_383 = arith.constant 0 : index
    %672 = vector.load %arg5[%c0_382, %c0_383] : memref<16x1xf32, #tpu.memory_space<vmem>>, vector<16x1xf32>
    %673 = arith.mulf %671, %672 : vector<16x1xf32>
    %cst_384 = arith.constant dense<0.000000e+00> : vector<1xf32>
    %674 = vector.multi_reduction <add>, %673, %cst_384 [0] : vector<16x1xf32> to vector<1xf32>
    %675 = vector.shape_cast %674 : vector<1xf32> to vector<1x1xf32>
    %cst_385 = arith.constant dense<0.000000e+00> : vector<1xf32>
    %676 = vector.multi_reduction <add>, %672, %cst_385 [0] : vector<16x1xf32> to vector<1xf32>
    %677 = vector.shape_cast %676 : vector<1xf32> to vector<1x1xf32>
    %cst_386 = arith.constant 1.000000e+00 : f32
    %678 = vector.broadcast %cst_386 : f32 to vector<1x1xf32>
    %679 = arith.maximumf %677, %678 : vector<1x1xf32>
    %680 = arith.divf %675, %679 : vector<1x1xf32>
    %c0_387 = arith.constant 0 : index
    %c0_388 = arith.constant 0 : index
    %681 = vector.load %arg29[%c0_387, %c0_388] : memref<1x1xf32, #tpu.memory_space<vmem>>, vector<1x1xf32>
    tpu.vector_store %arg29[%c0_387, %c0_388], %680 {strides = array<i32>} : memref<1x1xf32, #tpu.memory_space<vmem>>, vector<1x1xf32>,
    return
  }
}

module attributes {stable_mosaic.version = 11 : i64} {
  func.func @_disc_kernel(%arg0: memref<16x16xf32, #tpu.memory_space<vmem>>, %arg1: memref<2x1x8xf32, #tpu.memory_space<vmem>>, %arg2: memref<16x1xf32, #tpu.memory_space<vmem>>, %arg3: memref<16x1xf32, #tpu.memory_space<vmem>>, %arg4: memref<1x16xf32, #tpu.memory_space<vmem>>, %arg5: memref<1x16xf32, #tpu.memory_space<vmem>>, %arg6: memref<16x32xf32, #tpu.memory_space<vmem>>, %arg7: memref<1x32xf32, #tpu.memory_space<vmem>>, %arg8: memref<12x32x8xf32, #tpu.memory_space<vmem>>, %arg9: memref<12x1x8xf32, #tpu.memory_space<vmem>>, %arg10: memref<4x8x32xf32, #tpu.memory_space<vmem>>, %arg11: memref<1x32xf32, #tpu.memory_space<vmem>>, %arg12: memref<1x32xf32, #tpu.memory_space<vmem>>, %arg13: memref<1x32xf32, #tpu.memory_space<vmem>>, %arg14: memref<32x64xf32, #tpu.memory_space<vmem>>, %arg15: memref<1x64xf32, #tpu.memory_space<vmem>>, %arg16: memref<64x32xf32, #tpu.memory_space<vmem>>, %arg17: memref<1x32xf32, #tpu.memory_space<vmem>>, %arg18: memref<1x32xf32, #tpu.memory_space<vmem>>, %arg19: memref<1x32xf32, #tpu.memory_space<vmem>>, %arg20: memref<32x32xf32, #tpu.memory_space<vmem>>, %arg21: memref<1x32xf32, #tpu.memory_space<vmem>>, %arg22: memref<1x32xf32, #tpu.memory_space<vmem>>, %arg23: memref<1x1xf32, #tpu.memory_space<vmem>>, %arg24: memref<1x1xf32, #tpu.memory_space<vmem>>) attributes {dimension_semantics = [], scalar_prefetch = 0 : i64, scratch_operands = 0 : i64, tpu.core_type = #tpu.core_type<tc>} {
    %c0 = arith.constant 0 : index
    %c0_0 = arith.constant 0 : index
    %0 = vector.load %arg0[%c0, %c0_0] : memref<16x16xf32, #tpu.memory_space<vmem>>, vector<16x16xf32>
    %c0_1 = arith.constant 0 : index
    %c0_2 = arith.constant 0 : index
    %1 = vector.load %arg4[%c0_1, %c0_2] : memref<1x16xf32, #tpu.memory_space<vmem>>, vector<1x16xf32>
    %c0_3 = arith.constant 0 : index
    %c0_4 = arith.constant 0 : index
    %2 = vector.load %arg5[%c0_3, %c0_4] : memref<1x16xf32, #tpu.memory_space<vmem>>, vector<1x16xf32>
    %cst = arith.constant dense<0.000000e+00> : vector<16xf32>
    %3 = vector.multi_reduction <add>, %0, %cst [1] : vector<16x16xf32> to vector<16xf32>
    %4 = vector.shape_cast %3 : vector<16xf32> to vector<16x1xf32>
    %cst_5 = arith.constant 1.600000e+01 : f32
    %5 = vector.broadcast %cst_5 : f32 to vector<16x1xf32>
    %6 = arith.divf %4, %5 : vector<16x1xf32>
    %7 = vector.broadcast %6 : vector<16x1xf32> to vector<16x16xf32>
    %8 = arith.subf %0, %7 : vector<16x16xf32>
    %9 = arith.mulf %8, %8 : vector<16x16xf32>
    %cst_6 = arith.constant dense<0.000000e+00> : vector<16xf32>
    %10 = vector.multi_reduction <add>, %9, %cst_6 [1] : vector<16x16xf32> to vector<16xf32>
    %11 = vector.shape_cast %10 : vector<16xf32> to vector<16x1xf32>
    %cst_7 = arith.constant 1.600000e+01 : f32
    %12 = vector.broadcast %cst_7 : f32 to vector<16x1xf32>
    %13 = arith.divf %11, %12 : vector<16x1xf32>
    %cst_8 = arith.constant 9.99999996E-13 : f32
    %14 = vector.broadcast %cst_8 : f32 to vector<16x1xf32>
    %15 = arith.addf %13, %14 : vector<16x1xf32>
    %16 = math.rsqrt %15 : vector<16x1xf32>
    %17 = vector.broadcast %16 : vector<16x1xf32> to vector<16x16xf32>
    %18 = arith.mulf %8, %17 : vector<16x16xf32>
    %19 = vector.broadcast %1 : vector<1x16xf32> to vector<16x16xf32>
    %20 = arith.mulf %18, %19 : vector<16x16xf32>
    %21 = vector.broadcast %2 : vector<1x16xf32> to vector<16x16xf32>
    %22 = arith.addf %20, %21 : vector<16x16xf32>
    %c0_9 = arith.constant 0 : index
    %c0_10 = arith.constant 0 : index
    %23 = vector.load %arg6[%c0_9, %c0_10] : memref<16x32xf32, #tpu.memory_space<vmem>>, vector<16x32xf32>
    %cst_11 = arith.constant dense<0.000000e+00> : vector<16x32xf32>
    %24 = tpu.matmul %22, %23, %cst_11 {dimension_numbers = #tpu.dot_dimension_numbers<[1], [0], [0], [1], [0, 0, 1, 1], [], []>} : vector<16x16xf32>, vector<16x32xf32>, vector<16x32xf32> -> vector<16x32xf32>
    %c0_12 = arith.constant 0 : index
    %c0_13 = arith.constant 0 : index
    %25 = vector.load %arg7[%c0_12, %c0_13] : memref<1x32xf32, #tpu.memory_space<vmem>>, vector<1x32xf32>
    %26 = vector.broadcast %25 : vector<1x32xf32> to vector<16x32xf32>
    %27 = arith.addf %24, %26 : vector<16x32xf32>
    %c0_14 = arith.constant 0 : index
    %c0_15 = arith.constant 0 : index
    %28 = vector.load %arg11[%c0_14, %c0_15] : memref<1x32xf32, #tpu.memory_space<vmem>>, vector<1x32xf32>
    %c0_16 = arith.constant 0 : index
    %c0_17 = arith.constant 0 : index
    %29 = vector.load %arg12[%c0_16, %c0_17] : memref<1x32xf32, #tpu.memory_space<vmem>>, vector<1x32xf32>
    %c0_18 = arith.constant 0 : index
    %c0_19 = arith.constant 0 : index
    %30 = vector.load %arg13[%c0_18, %c0_19] : memref<1x32xf32, #tpu.memory_space<vmem>>, vector<1x32xf32>
    %c0_20 = arith.constant 0 : index
    %c0_21 = arith.constant 0 : index
    %31 = vector.load %arg14[%c0_20, %c0_21] : memref<32x64xf32, #tpu.memory_space<vmem>>, vector<32x64xf32>
    %c0_22 = arith.constant 0 : index
    %c0_23 = arith.constant 0 : index
    %32 = vector.load %arg15[%c0_22, %c0_23] : memref<1x64xf32, #tpu.memory_space<vmem>>, vector<1x64xf32>
    %c0_24 = arith.constant 0 : index
    %c0_25 = arith.constant 0 : index
    %33 = vector.load %arg16[%c0_24, %c0_25] : memref<64x32xf32, #tpu.memory_space<vmem>>, vector<64x32xf32>
    %c0_26 = arith.constant 0 : index
    %c0_27 = arith.constant 0 : index
    %34 = vector.load %arg17[%c0_26, %c0_27] : memref<1x32xf32, #tpu.memory_space<vmem>>, vector<1x32xf32>
    %c0_28 = arith.constant 0 : index
    %c0_29 = arith.constant 0 : index
    %35 = vector.load %arg18[%c0_28, %c0_29] : memref<1x32xf32, #tpu.memory_space<vmem>>, vector<1x32xf32>
    %c0_30 = arith.constant 0 : index
    %c0_31 = arith.constant 0 : index
    %36 = vector.load %arg19[%c0_30, %c0_31] : memref<1x32xf32, #tpu.memory_space<vmem>>, vector<1x32xf32>
    %c0_32 = arith.constant 0 : index
    %c0_33 = arith.constant 0 : index
    %c0_34 = arith.constant 0 : index
    %37 = vector.load %arg8[%c0_32, %c0_33, %c0_34] : memref<12x32x8xf32, #tpu.memory_space<vmem>>, vector<1x32x8xf32>
    %38 = vector.shape_cast %37 : vector<1x32x8xf32> to vector<32x8xf32>
    %cst_35 = arith.constant dense<0.000000e+00> : vector<16x8xf32>
    %39 = tpu.matmul %27, %38, %cst_35 {dimension_numbers = #tpu.dot_dimension_numbers<[1], [0], [0], [1], [0, 0, 1, 1], [], []>} : vector<16x32xf32>, vector<32x8xf32>, vector<16x8xf32> -> vector<16x8xf32>
    %c0_36 = arith.constant 0 : index
    %c0_37 = arith.constant 0 : index
    %c0_38 = arith.constant 0 : index
    %40 = vector.load %arg9[%c0_36, %c0_37, %c0_38] : memref<12x1x8xf32, #tpu.memory_space<vmem>>, vector<1x1x8xf32>
    %41 = vector.shape_cast %40 : vector<1x1x8xf32> to vector<1x8xf32>
    %42 = vector.broadcast %41 : vector<1x8xf32> to vector<16x8xf32>
    %43 = arith.addf %39, %42 : vector<16x8xf32>
    %c4 = arith.constant 4 : index
    %c0_39 = arith.constant 0 : index
    %c0_40 = arith.constant 0 : index
    %44 = vector.load %arg8[%c4, %c0_39, %c0_40] : memref<12x32x8xf32, #tpu.memory_space<vmem>>, vector<1x32x8xf32>
    %45 = vector.shape_cast %44 : vector<1x32x8xf32> to vector<32x8xf32>
    %cst_41 = arith.constant dense<0.000000e+00> : vector<16x8xf32>
    %46 = tpu.matmul %27, %45, %cst_41 {dimension_numbers = #tpu.dot_dimension_numbers<[1], [0], [0], [1], [0, 0, 1, 1], [], []>} : vector<16x32xf32>, vector<32x8xf32>, vector<16x8xf32> -> vector<16x8xf32>
    %c4_42 = arith.constant 4 : index
    %c0_43 = arith.constant 0 : index
    %c0_44 = arith.constant 0 : index
    %47 = vector.load %arg9[%c4_42, %c0_43, %c0_44] : memref<12x1x8xf32, #tpu.memory_space<vmem>>, vector<1x1x8xf32>
    %48 = vector.shape_cast %47 : vector<1x1x8xf32> to vector<1x8xf32>
    %49 = vector.broadcast %48 : vector<1x8xf32> to vector<16x8xf32>
    %50 = arith.addf %46, %49 : vector<16x8xf32>
    %c8 = arith.constant 8 : index
    %c0_45 = arith.constant 0 : index
    %c0_46 = arith.constant 0 : index
    %51 = vector.load %arg8[%c8, %c0_45, %c0_46] : memref<12x32x8xf32, #tpu.memory_space<vmem>>, vector<1x32x8xf32>
    %52 = vector.shape_cast %51 : vector<1x32x8xf32> to vector<32x8xf32>
    %cst_47 = arith.constant dense<0.000000e+00> : vector<16x8xf32>
    %53 = tpu.matmul %27, %52, %cst_47 {dimension_numbers = #tpu.dot_dimension_numbers<[1], [0], [0], [1], [0, 0, 1, 1], [], []>} : vector<16x32xf32>, vector<32x8xf32>, vector<16x8xf32> -> vector<16x8xf32>
    %c8_48 = arith.constant 8 : index
    %c0_49 = arith.constant 0 : index
    %c0_50 = arith.constant 0 : index
    %54 = vector.load %arg9[%c8_48, %c0_49, %c0_50] : memref<12x1x8xf32, #tpu.memory_space<vmem>>, vector<1x1x8xf32>
    %55 = vector.shape_cast %54 : vector<1x1x8xf32> to vector<1x8xf32>
    %56 = vector.broadcast %55 : vector<1x8xf32> to vector<16x8xf32>
    %57 = arith.addf %53, %56 : vector<16x8xf32>
    %c1 = arith.constant 1 : index
    %c0_51 = arith.constant 0 : index
    %c0_52 = arith.constant 0 : index
    %58 = vector.load %arg8[%c1, %c0_51, %c0_52] : memref<12x32x8xf32, #tpu.memory_space<vmem>>, vector<1x32x8xf32>
    %59 = vector.shape_cast %58 : vector<1x32x8xf32> to vector<32x8xf32>
    %cst_53 = arith.constant dense<0.000000e+00> : vector<16x8xf32>
    %60 = tpu.matmul %27, %59, %cst_53 {dimension_numbers = #tpu.dot_dimension_numbers<[1], [0], [0], [1], [0, 0, 1, 1], [], []>} : vector<16x32xf32>, vector<32x8xf32>, vector<16x8xf32> -> vector<16x8xf32>
    %c1_54 = arith.constant 1 : index
    %c0_55 = arith.constant 0 : index
    %c0_56 = arith.constant 0 : index
    %61 = vector.load %arg9[%c1_54, %c0_55, %c0_56] : memref<12x1x8xf32, #tpu.memory_space<vmem>>, vector<1x1x8xf32>
    %62 = vector.shape_cast %61 : vector<1x1x8xf32> to vector<1x8xf32>
    %63 = vector.broadcast %62 : vector<1x8xf32> to vector<16x8xf32>
    %64 = arith.addf %60, %63 : vector<16x8xf32>
    %c5 = arith.constant 5 : index
    %c0_57 = arith.constant 0 : index
    %c0_58 = arith.constant 0 : index
    %65 = vector.load %arg8[%c5, %c0_57, %c0_58] : memref<12x32x8xf32, #tpu.memory_space<vmem>>, vector<1x32x8xf32>
    %66 = vector.shape_cast %65 : vector<1x32x8xf32> to vector<32x8xf32>
    %cst_59 = arith.constant dense<0.000000e+00> : vector<16x8xf32>
    %67 = tpu.matmul %27, %66, %cst_59 {dimension_numbers = #tpu.dot_dimension_numbers<[1], [0], [0], [1], [0, 0, 1, 1], [], []>} : vector<16x32xf32>, vector<32x8xf32>, vector<16x8xf32> -> vector<16x8xf32>
    %c5_60 = arith.constant 5 : index
    %c0_61 = arith.constant 0 : index
    %c0_62 = arith.constant 0 : index
    %68 = vector.load %arg9[%c5_60, %c0_61, %c0_62] : memref<12x1x8xf32, #tpu.memory_space<vmem>>, vector<1x1x8xf32>
    %69 = vector.shape_cast %68 : vector<1x1x8xf32> to vector<1x8xf32>
    %70 = vector.broadcast %69 : vector<1x8xf32> to vector<16x8xf32>
    %71 = arith.addf %67, %70 : vector<16x8xf32>
    %c9 = arith.constant 9 : index
    %c0_63 = arith.constant 0 : index
    %c0_64 = arith.constant 0 : index
    %72 = vector.load %arg8[%c9, %c0_63, %c0_64] : memref<12x32x8xf32, #tpu.memory_space<vmem>>, vector<1x32x8xf32>
    %73 = vector.shape_cast %72 : vector<1x32x8xf32> to vector<32x8xf32>
    %cst_65 = arith.constant dense<0.000000e+00> : vector<16x8xf32>
    %74 = tpu.matmul %27, %73, %cst_65 {dimension_numbers = #tpu.dot_dimension_numbers<[1], [0], [0], [1], [0, 0, 1, 1], [], []>} : vector<16x32xf32>, vector<32x8xf32>, vector<16x8xf32> -> vector<16x8xf32>
    %c9_66 = arith.constant 9 : index
    %c0_67 = arith.constant 0 : index
    %c0_68 = arith.constant 0 : index
    %75 = vector.load %arg9[%c9_66, %c0_67, %c0_68] : memref<12x1x8xf32, #tpu.memory_space<vmem>>, vector<1x1x8xf32>
    %76 = vector.shape_cast %75 : vector<1x1x8xf32> to vector<1x8xf32>
    %77 = vector.broadcast %76 : vector<1x8xf32> to vector<16x8xf32>
    %78 = arith.addf %74, %77 : vector<16x8xf32>
    %c2 = arith.constant 2 : index
    %c0_69 = arith.constant 0 : index
    %c0_70 = arith.constant 0 : index
    %79 = vector.load %arg8[%c2, %c0_69, %c0_70] : memref<12x32x8xf32, #tpu.memory_space<vmem>>, vector<1x32x8xf32>
    %80 = vector.shape_cast %79 : vector<1x32x8xf32> to vector<32x8xf32>
    %cst_71 = arith.constant dense<0.000000e+00> : vector<16x8xf32>
    %81 = tpu.matmul %27, %80, %cst_71 {dimension_numbers = #tpu.dot_dimension_numbers<[1], [0], [0], [1], [0, 0, 1, 1], [], []>} : vector<16x32xf32>, vector<32x8xf32>, vector<16x8xf32> -> vector<16x8xf32>
    %c2_72 = arith.constant 2 : index
    %c0_73 = arith.constant 0 : index
    %c0_74 = arith.constant 0 : index
    %82 = vector.load %arg9[%c2_72, %c0_73, %c0_74] : memref<12x1x8xf32, #tpu.memory_space<vmem>>, vector<1x1x8xf32>
    %83 = vector.shape_cast %82 : vector<1x1x8xf32> to vector<1x8xf32>
    %84 = vector.broadcast %83 : vector<1x8xf32> to vector<16x8xf32>
    %85 = arith.addf %81, %84 : vector<16x8xf32>
    %c6 = arith.constant 6 : index
    %c0_75 = arith.constant 0 : index
    %c0_76 = arith.constant 0 : index
    %86 = vector.load %arg8[%c6, %c0_75, %c0_76] : memref<12x32x8xf32, #tpu.memory_space<vmem>>, vector<1x32x8xf32>
    %87 = vector.shape_cast %86 : vector<1x32x8xf32> to vector<32x8xf32>
    %cst_77 = arith.constant dense<0.000000e+00> : vector<16x8xf32>
    %88 = tpu.matmul %27, %87, %cst_77 {dimension_numbers = #tpu.dot_dimension_numbers<[1], [0], [0], [1], [0, 0, 1, 1], [], []>} : vector<16x32xf32>, vector<32x8xf32>, vector<16x8xf32> -> vector<16x8xf32>
    %c6_78 = arith.constant 6 : index
    %c0_79 = arith.constant 0 : index
    %c0_80 = arith.constant 0 : index
    %89 = vector.load %arg9[%c6_78, %c0_79, %c0_80] : memref<12x1x8xf32, #tpu.memory_space<vmem>>, vector<1x1x8xf32>
    %90 = vector.shape_cast %89 : vector<1x1x8xf32> to vector<1x8xf32>
    %91 = vector.broadcast %90 : vector<1x8xf32> to vector<16x8xf32>
    %92 = arith.addf %88, %91 : vector<16x8xf32>
    %c10 = arith.constant 10 : index
    %c0_81 = arith.constant 0 : index
    %c0_82 = arith.constant 0 : index
    %93 = vector.load %arg8[%c10, %c0_81, %c0_82] : memref<12x32x8xf32, #tpu.memory_space<vmem>>, vector<1x32x8xf32>
    %94 = vector.shape_cast %93 : vector<1x32x8xf32> to vector<32x8xf32>
    %cst_83 = arith.constant dense<0.000000e+00> : vector<16x8xf32>
    %95 = tpu.matmul %27, %94, %cst_83 {dimension_numbers = #tpu.dot_dimension_numbers<[1], [0], [0], [1], [0, 0, 1, 1], [], []>} : vector<16x32xf32>, vector<32x8xf32>, vector<16x8xf32> -> vector<16x8xf32>
    %c10_84 = arith.constant 10 : index
    %c0_85 = arith.constant 0 : index
    %c0_86 = arith.constant 0 : index
    %96 = vector.load %arg9[%c10_84, %c0_85, %c0_86] : memref<12x1x8xf32, #tpu.memory_space<vmem>>, vector<1x1x8xf32>
    %97 = vector.shape_cast %96 : vector<1x1x8xf32> to vector<1x8xf32>
    %98 = vector.broadcast %97 : vector<1x8xf32> to vector<16x8xf32>
    %99 = arith.addf %95, %98 : vector<16x8xf32>
    %c3 = arith.constant 3 : index
    %c0_87 = arith.constant 0 : index
    %c0_88 = arith.constant 0 : index
    %100 = vector.load %arg8[%c3, %c0_87, %c0_88] : memref<12x32x8xf32, #tpu.memory_space<vmem>>, vector<1x32x8xf32>
    %101 = vector.shape_cast %100 : vector<1x32x8xf32> to vector<32x8xf32>
    %cst_89 = arith.constant dense<0.000000e+00> : vector<16x8xf32>
    %102 = tpu.matmul %27, %101, %cst_89 {dimension_numbers = #tpu.dot_dimension_numbers<[1], [0], [0], [1], [0, 0, 1, 1], [], []>} : vector<16x32xf32>, vector<32x8xf32>, vector<16x8xf32> -> vector<16x8xf32>
    %c3_90 = arith.constant 3 : index
    %c0_91 = arith.constant 0 : index
    %c0_92 = arith.constant 0 : index
    %103 = vector.load %arg9[%c3_90, %c0_91, %c0_92] : memref<12x1x8xf32, #tpu.memory_space<vmem>>, vector<1x1x8xf32>
    %104 = vector.shape_cast %103 : vector<1x1x8xf32> to vector<1x8xf32>
    %105 = vector.broadcast %104 : vector<1x8xf32> to vector<16x8xf32>
    %106 = arith.addf %102, %105 : vector<16x8xf32>
    %c7 = arith.constant 7 : index
    %c0_93 = arith.constant 0 : index
    %c0_94 = arith.constant 0 : index
    %107 = vector.load %arg8[%c7, %c0_93, %c0_94] : memref<12x32x8xf32, #tpu.memory_space<vmem>>, vector<1x32x8xf32>
    %108 = vector.shape_cast %107 : vector<1x32x8xf32> to vector<32x8xf32>
    %cst_95 = arith.constant dense<0.000000e+00> : vector<16x8xf32>
    %109 = tpu.matmul %27, %108, %cst_95 {dimension_numbers = #tpu.dot_dimension_numbers<[1], [0], [0], [1], [0, 0, 1, 1], [], []>} : vector<16x32xf32>, vector<32x8xf32>, vector<16x8xf32> -> vector<16x8xf32>
    %c7_96 = arith.constant 7 : index
    %c0_97 = arith.constant 0 : index
    %c0_98 = arith.constant 0 : index
    %110 = vector.load %arg9[%c7_96, %c0_97, %c0_98] : memref<12x1x8xf32, #tpu.memory_space<vmem>>, vector<1x1x8xf32>
    %111 = vector.shape_cast %110 : vector<1x1x8xf32> to vector<1x8xf32>
    %112 = vector.broadcast %111 : vector<1x8xf32> to vector<16x8xf32>
    %113 = arith.addf %109, %112 : vector<16x8xf32>
    %c11 = arith.constant 11 : index
    %c0_99 = arith.constant 0 : index
    %c0_100 = arith.constant 0 : index
    %114 = vector.load %arg8[%c11, %c0_99, %c0_100] : memref<12x32x8xf32, #tpu.memory_space<vmem>>, vector<1x32x8xf32>
    %115 = vector.shape_cast %114 : vector<1x32x8xf32> to vector<32x8xf32>
    %cst_101 = arith.constant dense<0.000000e+00> : vector<16x8xf32>
    %116 = tpu.matmul %27, %115, %cst_101 {dimension_numbers = #tpu.dot_dimension_numbers<[1], [0], [0], [1], [0, 0, 1, 1], [], []>} : vector<16x32xf32>, vector<32x8xf32>, vector<16x8xf32> -> vector<16x8xf32>
    %c11_102 = arith.constant 11 : index
    %c0_103 = arith.constant 0 : index
    %c0_104 = arith.constant 0 : index
    %117 = vector.load %arg9[%c11_102, %c0_103, %c0_104] : memref<12x1x8xf32, #tpu.memory_space<vmem>>, vector<1x1x8xf32>
    %118 = vector.shape_cast %117 : vector<1x1x8xf32> to vector<1x8xf32>
    %119 = vector.broadcast %118 : vector<1x8xf32> to vector<16x8xf32>
    %120 = arith.addf %116, %119 : vector<16x8xf32>
    %c0_105 = arith.constant 0 : index
    %c0_106 = arith.constant 0 : index
    %c0_107 = arith.constant 0 : index
    %121 = vector.load %arg1[%c0_105, %c0_106, %c0_107] : memref<2x1x8xf32, #tpu.memory_space<vmem>>, vector<1x1x8xf32>
    %122 = vector.shape_cast %121 : vector<1x1x8xf32> to vector<1x8xf32>
    %123 = vector.extract_strided_slice %43 {offsets = [0, 0], sizes = [8, 8], strides = [1, 1]} : vector<16x8xf32> to vector<8x8xf32>
    %124 = vector.extract_strided_slice %50 {offsets = [0, 0], sizes = [8, 8], strides = [1, 1]} : vector<16x8xf32> to vector<8x8xf32>
    %125 = vector.extract_strided_slice %57 {offsets = [0, 0], sizes = [8, 8], strides = [1, 1]} : vector<16x8xf32> to vector<8x8xf32>
    %cst_108 = arith.constant dense<0.000000e+00> : vector<8x8xf32>
    %126 = tpu.matmul %123, %124, %cst_108 {dimension_numbers = #tpu.dot_dimension_numbers<[1], [1], [0], [0], [0, 0, 1, 0], [], []>} : vector<8x8xf32>, vector<8x8xf32>, vector<8x8xf32> -> vector<8x8xf32>
    %cst_109 = arith.constant 0.353553385 : f32
    %127 = vector.broadcast %cst_109 : f32 to vector<8x8xf32>
    %128 = arith.mulf %126, %127 : vector<8x8xf32>
    %129 = vector.broadcast %122 : vector<1x8xf32> to vector<8x8xf32>
    %130 = arith.addf %128, %129 : vector<8x8xf32>
    %cst_110 = arith.constant dense<0xFF800000> : vector<8xf32>
    %131 = vector.multi_reduction <maximumf>, %130, %cst_110 [1] : vector<8x8xf32> to vector<8xf32>
    %132 = vector.shape_cast %131 : vector<8xf32> to vector<8x1xf32>
    %133 = vector.broadcast %132 : vector<8x1xf32> to vector<8x8xf32>
    %134 = arith.subf %130, %133 : vector<8x8xf32>
    %135 = math.exp %134 : vector<8x8xf32>
    %cst_111 = arith.constant dense<0.000000e+00> : vector<8xf32>
    %136 = vector.multi_reduction <add>, %135, %cst_111 [1] : vector<8x8xf32> to vector<8xf32>
    %137 = vector.shape_cast %136 : vector<8xf32> to vector<8x1xf32>
    %138 = vector.broadcast %137 : vector<8x1xf32> to vector<8x8xf32>
    %139 = arith.divf %135, %138 : vector<8x8xf32>
    %cst_112 = arith.constant dense<0.000000e+00> : vector<8x8xf32>
    %140 = tpu.matmul %139, %125, %cst_112 {dimension_numbers = #tpu.dot_dimension_numbers<[1], [0], [0], [1], [0, 0, 1, 1], [], []>} : vector<8x8xf32>, vector<8x8xf32>, vector<8x8xf32> -> vector<8x8xf32>
    %c0_113 = arith.constant 0 : index
    %c0_114 = arith.constant 0 : index
    %c0_115 = arith.constant 0 : index
    %141 = vector.load %arg10[%c0_113, %c0_114, %c0_115] : memref<4x8x32xf32, #tpu.memory_space<vmem>>, vector<1x8x32xf32>
    %142 = vector.shape_cast %141 : vector<1x8x32xf32> to vector<8x32xf32>
    %cst_116 = arith.constant dense<0.000000e+00> : vector<8x32xf32>
    %143 = tpu.matmul %140, %142, %cst_116 {dimension_numbers = #tpu.dot_dimension_numbers<[1], [0], [0], [1], [0, 0, 1, 1], [], []>} : vector<8x8xf32>, vector<8x32xf32>, vector<8x32xf32> -> vector<8x32xf32>
    %144 = vector.extract_strided_slice %64 {offsets = [0, 0], sizes = [8, 8], strides = [1, 1]} : vector<16x8xf32> to vector<8x8xf32>
    %145 = vector.extract_strided_slice %71 {offsets = [0, 0], sizes = [8, 8], strides = [1, 1]} : vector<16x8xf32> to vector<8x8xf32>
    %146 = vector.extract_strided_slice %78 {offsets = [0, 0], sizes = [8, 8], strides = [1, 1]} : vector<16x8xf32> to vector<8x8xf32>
    %cst_117 = arith.constant dense<0.000000e+00> : vector<8x8xf32>
    %147 = tpu.matmul %144, %145, %cst_117 {dimension_numbers = #tpu.dot_dimension_numbers<[1], [1], [0], [0], [0, 0, 1, 0], [], []>} : vector<8x8xf32>, vector<8x8xf32>, vector<8x8xf32> -> vector<8x8xf32>
    %cst_118 = arith.constant 0.353553385 : f32
    %148 = vector.broadcast %cst_118 : f32 to vector<8x8xf32>
    %149 = arith.mulf %147, %148 : vector<8x8xf32>
    %150 = vector.broadcast %122 : vector<1x8xf32> to vector<8x8xf32>
    %151 = arith.addf %149, %150 : vector<8x8xf32>
    %cst_119 = arith.constant dense<0xFF800000> : vector<8xf32>
    %152 = vector.multi_reduction <maximumf>, %151, %cst_119 [1] : vector<8x8xf32> to vector<8xf32>
    %153 = vector.shape_cast %152 : vector<8xf32> to vector<8x1xf32>
    %154 = vector.broadcast %153 : vector<8x1xf32> to vector<8x8xf32>
    %155 = arith.subf %151, %154 : vector<8x8xf32>
    %156 = math.exp %155 : vector<8x8xf32>
    %cst_120 = arith.constant dense<0.000000e+00> : vector<8xf32>
    %157 = vector.multi_reduction <add>, %156, %cst_120 [1] : vector<8x8xf32> to vector<8xf32>
    %158 = vector.shape_cast %157 : vector<8xf32> to vector<8x1xf32>
    %159 = vector.broadcast %158 : vector<8x1xf32> to vector<8x8xf32>
    %160 = arith.divf %156, %159 : vector<8x8xf32>
    %cst_121 = arith.constant dense<0.000000e+00> : vector<8x8xf32>
    %161 = tpu.matmul %160, %146, %cst_121 {dimension_numbers = #tpu.dot_dimension_numbers<[1], [0], [0], [1], [0, 0, 1, 1], [], []>} : vector<8x8xf32>, vector<8x8xf32>, vector<8x8xf32> -> vector<8x8xf32>
    %c1_122 = arith.constant 1 : index
    %c0_123 = arith.constant 0 : index
    %c0_124 = arith.constant 0 : index
    %162 = vector.load %arg10[%c1_122, %c0_123, %c0_124] : memref<4x8x32xf32, #tpu.memory_space<vmem>>, vector<1x8x32xf32>
    %163 = vector.shape_cast %162 : vector<1x8x32xf32> to vector<8x32xf32>
    %cst_125 = arith.constant dense<0.000000e+00> : vector<8x32xf32>
    %164 = tpu.matmul %161, %163, %cst_125 {dimension_numbers = #tpu.dot_dimension_numbers<[1], [0], [0], [1], [0, 0, 1, 1], [], []>} : vector<8x8xf32>, vector<8x32xf32>, vector<8x32xf32> -> vector<8x32xf32>
    %165 = arith.addf %143, %164 : vector<8x32xf32>
    %166 = vector.extract_strided_slice %85 {offsets = [0, 0], sizes = [8, 8], strides = [1, 1]} : vector<16x8xf32> to vector<8x8xf32>
    %167 = vector.extract_strided_slice %92 {offsets = [0, 0], sizes = [8, 8], strides = [1, 1]} : vector<16x8xf32> to vector<8x8xf32>
    %168 = vector.extract_strided_slice %99 {offsets = [0, 0], sizes = [8, 8], strides = [1, 1]} : vector<16x8xf32> to vector<8x8xf32>
    %cst_126 = arith.constant dense<0.000000e+00> : vector<8x8xf32>
    %169 = tpu.matmul %166, %167, %cst_126 {dimension_numbers = #tpu.dot_dimension_numbers<[1], [1], [0], [0], [0, 0, 1, 0], [], []>} : vector<8x8xf32>, vector<8x8xf32>, vector<8x8xf32> -> vector<8x8xf32>
    %cst_127 = arith.constant 0.353553385 : f32
    %170 = vector.broadcast %cst_127 : f32 to vector<8x8xf32>
    %171 = arith.mulf %169, %170 : vector<8x8xf32>
    %172 = vector.broadcast %122 : vector<1x8xf32> to vector<8x8xf32>
    %173 = arith.addf %171, %172 : vector<8x8xf32>
    %cst_128 = arith.constant dense<0xFF800000> : vector<8xf32>
    %174 = vector.multi_reduction <maximumf>, %173, %cst_128 [1] : vector<8x8xf32> to vector<8xf32>
    %175 = vector.shape_cast %174 : vector<8xf32> to vector<8x1xf32>
    %176 = vector.broadcast %175 : vector<8x1xf32> to vector<8x8xf32>
    %177 = arith.subf %173, %176 : vector<8x8xf32>
    %178 = math.exp %177 : vector<8x8xf32>
    %cst_129 = arith.constant dense<0.000000e+00> : vector<8xf32>
    %179 = vector.multi_reduction <add>, %178, %cst_129 [1] : vector<8x8xf32> to vector<8xf32>
    %180 = vector.shape_cast %179 : vector<8xf32> to vector<8x1xf32>
    %181 = vector.broadcast %180 : vector<8x1xf32> to vector<8x8xf32>
    %182 = arith.divf %178, %181 : vector<8x8xf32>
    %cst_130 = arith.constant dense<0.000000e+00> : vector<8x8xf32>
    %183 = tpu.matmul %182, %168, %cst_130 {dimension_numbers = #tpu.dot_dimension_numbers<[1], [0], [0], [1], [0, 0, 1, 1], [], []>} : vector<8x8xf32>, vector<8x8xf32>, vector<8x8xf32> -> vector<8x8xf32>
    %c2_131 = arith.constant 2 : index
    %c0_132 = arith.constant 0 : index
    %c0_133 = arith.constant 0 : index
    %184 = vector.load %arg10[%c2_131, %c0_132, %c0_133] : memref<4x8x32xf32, #tpu.memory_space<vmem>>, vector<1x8x32xf32>
    %185 = vector.shape_cast %184 : vector<1x8x32xf32> to vector<8x32xf32>
    %cst_134 = arith.constant dense<0.000000e+00> : vector<8x32xf32>
    %186 = tpu.matmul %183, %185, %cst_134 {dimension_numbers = #tpu.dot_dimension_numbers<[1], [0], [0], [1], [0, 0, 1, 1], [], []>} : vector<8x8xf32>, vector<8x32xf32>, vector<8x32xf32> -> vector<8x32xf32>
    %187 = arith.addf %165, %186 : vector<8x32xf32>
    %188 = vector.extract_strided_slice %106 {offsets = [0, 0], sizes = [8, 8], strides = [1, 1]} : vector<16x8xf32> to vector<8x8xf32>
    %189 = vector.extract_strided_slice %113 {offsets = [0, 0], sizes = [8, 8], strides = [1, 1]} : vector<16x8xf32> to vector<8x8xf32>
    %190 = vector.extract_strided_slice %120 {offsets = [0, 0], sizes = [8, 8], strides = [1, 1]} : vector<16x8xf32> to vector<8x8xf32>
    %cst_135 = arith.constant dense<0.000000e+00> : vector<8x8xf32>
    %191 = tpu.matmul %188, %189, %cst_135 {dimension_numbers = #tpu.dot_dimension_numbers<[1], [1], [0], [0], [0, 0, 1, 0], [], []>} : vector<8x8xf32>, vector<8x8xf32>, vector<8x8xf32> -> vector<8x8xf32>
    %cst_136 = arith.constant 0.353553385 : f32
    %192 = vector.broadcast %cst_136 : f32 to vector<8x8xf32>
    %193 = arith.mulf %191, %192 : vector<8x8xf32>
    %194 = vector.broadcast %122 : vector<1x8xf32> to vector<8x8xf32>
    %195 = arith.addf %193, %194 : vector<8x8xf32>
    %cst_137 = arith.constant dense<0xFF800000> : vector<8xf32>
    %196 = vector.multi_reduction <maximumf>, %195, %cst_137 [1] : vector<8x8xf32> to vector<8xf32>
    %197 = vector.shape_cast %196 : vector<8xf32> to vector<8x1xf32>
    %198 = vector.broadcast %197 : vector<8x1xf32> to vector<8x8xf32>
    %199 = arith.subf %195, %198 : vector<8x8xf32>
    %200 = math.exp %199 : vector<8x8xf32>
    %cst_138 = arith.constant dense<0.000000e+00> : vector<8xf32>
    %201 = vector.multi_reduction <add>, %200, %cst_138 [1] : vector<8x8xf32> to vector<8xf32>
    %202 = vector.shape_cast %201 : vector<8xf32> to vector<8x1xf32>
    %203 = vector.broadcast %202 : vector<8x1xf32> to vector<8x8xf32>
    %204 = arith.divf %200, %203 : vector<8x8xf32>
    %cst_139 = arith.constant dense<0.000000e+00> : vector<8x8xf32>
    %205 = tpu.matmul %204, %190, %cst_139 {dimension_numbers = #tpu.dot_dimension_numbers<[1], [0], [0], [1], [0, 0, 1, 1], [], []>} : vector<8x8xf32>, vector<8x8xf32>, vector<8x8xf32> -> vector<8x8xf32>
    %c3_140 = arith.constant 3 : index
    %c0_141 = arith.constant 0 : index
    %c0_142 = arith.constant 0 : index
    %206 = vector.load %arg10[%c3_140, %c0_141, %c0_142] : memref<4x8x32xf32, #tpu.memory_space<vmem>>, vector<1x8x32xf32>
    %207 = vector.shape_cast %206 : vector<1x8x32xf32> to vector<8x32xf32>
    %cst_143 = arith.constant dense<0.000000e+00> : vector<8x32xf32>
    %208 = tpu.matmul %205, %207, %cst_143 {dimension_numbers = #tpu.dot_dimension_numbers<[1], [0], [0], [1], [0, 0, 1, 1], [], []>} : vector<8x8xf32>, vector<8x32xf32>, vector<8x32xf32> -> vector<8x32xf32>
    %209 = arith.addf %187, %208 : vector<8x32xf32>
    %c1_144 = arith.constant 1 : index
    %c0_145 = arith.constant 0 : index
    %c0_146 = arith.constant 0 : index
    %210 = vector.load %arg1[%c1_144, %c0_145, %c0_146] : memref<2x1x8xf32, #tpu.memory_space<vmem>>, vector<1x1x8xf32>
    %211 = vector.shape_cast %210 : vector<1x1x8xf32> to vector<1x8xf32>
    %212 = vector.extract_strided_slice %43 {offsets = [8, 0], sizes = [8, 8], strides = [1, 1]} : vector<16x8xf32> to vector<8x8xf32>
    %213 = vector.extract_strided_slice %50 {offsets = [8, 0], sizes = [8, 8], strides = [1, 1]} : vector<16x8xf32> to vector<8x8xf32>
    %214 = vector.extract_strided_slice %57 {offsets = [8, 0], sizes = [8, 8], strides = [1, 1]} : vector<16x8xf32> to vector<8x8xf32>
    %cst_147 = arith.constant dense<0.000000e+00> : vector<8x8xf32>
    %215 = tpu.matmul %212, %213, %cst_147 {dimension_numbers = #tpu.dot_dimension_numbers<[1], [1], [0], [0], [0, 0, 1, 0], [], []>} : vector<8x8xf32>, vector<8x8xf32>, vector<8x8xf32> -> vector<8x8xf32>
    %cst_148 = arith.constant 0.353553385 : f32
    %216 = vector.broadcast %cst_148 : f32 to vector<8x8xf32>
    %217 = arith.mulf %215, %216 : vector<8x8xf32>
    %218 = vector.broadcast %211 : vector<1x8xf32> to vector<8x8xf32>
    %219 = arith.addf %217, %218 : vector<8x8xf32>
    %cst_149 = arith.constant dense<0xFF800000> : vector<8xf32>
    %220 = vector.multi_reduction <maximumf>, %219, %cst_149 [1] : vector<8x8xf32> to vector<8xf32>
    %221 = vector.shape_cast %220 : vector<8xf32> to vector<8x1xf32>
    %222 = vector.broadcast %221 : vector<8x1xf32> to vector<8x8xf32>
    %223 = arith.subf %219, %222 : vector<8x8xf32>
    %224 = math.exp %223 : vector<8x8xf32>
    %cst_150 = arith.constant dense<0.000000e+00> : vector<8xf32>
    %225 = vector.multi_reduction <add>, %224, %cst_150 [1] : vector<8x8xf32> to vector<8xf32>
    %226 = vector.shape_cast %225 : vector<8xf32> to vector<8x1xf32>
    %227 = vector.broadcast %226 : vector<8x1xf32> to vector<8x8xf32>
    %228 = arith.divf %224, %227 : vector<8x8xf32>
    %cst_151 = arith.constant dense<0.000000e+00> : vector<8x8xf32>
    %229 = tpu.matmul %228, %214, %cst_151 {dimension_numbers = #tpu.dot_dimension_numbers<[1], [0], [0], [1], [0, 0, 1, 1], [], []>} : vector<8x8xf32>, vector<8x8xf32>, vector<8x8xf32> -> vector<8x8xf32>
    %c0_152 = arith.constant 0 : index
    %c0_153 = arith.constant 0 : index
    %c0_154 = arith.constant 0 : index
    %230 = vector.load %arg10[%c0_152, %c0_153, %c0_154] : memref<4x8x32xf32, #tpu.memory_space<vmem>>, vector<1x8x32xf32>
    %231 = vector.shape_cast %230 : vector<1x8x32xf32> to vector<8x32xf32>
    %cst_155 = arith.constant dense<0.000000e+00> : vector<8x32xf32>
    %232 = tpu.matmul %229, %231, %cst_155 {dimension_numbers = #tpu.dot_dimension_numbers<[1], [0], [0], [1], [0, 0, 1, 1], [], []>} : vector<8x8xf32>, vector<8x32xf32>, vector<8x32xf32> -> vector<8x32xf32>
    %233 = vector.extract_strided_slice %64 {offsets = [8, 0], sizes = [8, 8], strides = [1, 1]} : vector<16x8xf32> to vector<8x8xf32>
    %234 = vector.extract_strided_slice %71 {offsets = [8, 0], sizes = [8, 8], strides = [1, 1]} : vector<16x8xf32> to vector<8x8xf32>
    %235 = vector.extract_strided_slice %78 {offsets = [8, 0], sizes = [8, 8], strides = [1, 1]} : vector<16x8xf32> to vector<8x8xf32>
    %cst_156 = arith.constant dense<0.000000e+00> : vector<8x8xf32>
    %236 = tpu.matmul %233, %234, %cst_156 {dimension_numbers = #tpu.dot_dimension_numbers<[1], [1], [0], [0], [0, 0, 1, 0], [], []>} : vector<8x8xf32>, vector<8x8xf32>, vector<8x8xf32> -> vector<8x8xf32>
    %cst_157 = arith.constant 0.353553385 : f32
    %237 = vector.broadcast %cst_157 : f32 to vector<8x8xf32>
    %238 = arith.mulf %236, %237 : vector<8x8xf32>
    %239 = vector.broadcast %211 : vector<1x8xf32> to vector<8x8xf32>
    %240 = arith.addf %238, %239 : vector<8x8xf32>
    %cst_158 = arith.constant dense<0xFF800000> : vector<8xf32>
    %241 = vector.multi_reduction <maximumf>, %240, %cst_158 [1] : vector<8x8xf32> to vector<8xf32>
    %242 = vector.shape_cast %241 : vector<8xf32> to vector<8x1xf32>
    %243 = vector.broadcast %242 : vector<8x1xf32> to vector<8x8xf32>
    %244 = arith.subf %240, %243 : vector<8x8xf32>
    %245 = math.exp %244 : vector<8x8xf32>
    %cst_159 = arith.constant dense<0.000000e+00> : vector<8xf32>
    %246 = vector.multi_reduction <add>, %245, %cst_159 [1] : vector<8x8xf32> to vector<8xf32>
    %247 = vector.shape_cast %246 : vector<8xf32> to vector<8x1xf32>
    %248 = vector.broadcast %247 : vector<8x1xf32> to vector<8x8xf32>
    %249 = arith.divf %245, %248 : vector<8x8xf32>
    %cst_160 = arith.constant dense<0.000000e+00> : vector<8x8xf32>
    %250 = tpu.matmul %249, %235, %cst_160 {dimension_numbers = #tpu.dot_dimension_numbers<[1], [0], [0], [1], [0, 0, 1, 1], [], []>} : vector<8x8xf32>, vector<8x8xf32>, vector<8x8xf32> -> vector<8x8xf32>
    %c1_161 = arith.constant 1 : index
    %c0_162 = arith.constant 0 : index
    %c0_163 = arith.constant 0 : index
    %251 = vector.load %arg10[%c1_161, %c0_162, %c0_163] : memref<4x8x32xf32, #tpu.memory_space<vmem>>, vector<1x8x32xf32>
    %252 = vector.shape_cast %251 : vector<1x8x32xf32> to vector<8x32xf32>
    %cst_164 = arith.constant dense<0.000000e+00> : vector<8x32xf32>
    %253 = tpu.matmul %250, %252, %cst_164 {dimension_numbers = #tpu.dot_dimension_numbers<[1], [0], [0], [1], [0, 0, 1, 1], [], []>} : vector<8x8xf32>, vector<8x32xf32>, vector<8x32xf32> -> vector<8x32xf32>
    %254 = arith.addf %232, %253 : vector<8x32xf32>
    %255 = vector.extract_strided_slice %85 {offsets = [8, 0], sizes = [8, 8], strides = [1, 1]} : vector<16x8xf32> to vector<8x8xf32>
    %256 = vector.extract_strided_slice %92 {offsets = [8, 0], sizes = [8, 8], strides = [1, 1]} : vector<16x8xf32> to vector<8x8xf32>
    %257 = vector.extract_strided_slice %99 {offsets = [8, 0], sizes = [8, 8], strides = [1, 1]} : vector<16x8xf32> to vector<8x8xf32>
    %cst_165 = arith.constant dense<0.000000e+00> : vector<8x8xf32>
    %258 = tpu.matmul %255, %256, %cst_165 {dimension_numbers = #tpu.dot_dimension_numbers<[1], [1], [0], [0], [0, 0, 1, 0], [], []>} : vector<8x8xf32>, vector<8x8xf32>, vector<8x8xf32> -> vector<8x8xf32>
    %cst_166 = arith.constant 0.353553385 : f32
    %259 = vector.broadcast %cst_166 : f32 to vector<8x8xf32>
    %260 = arith.mulf %258, %259 : vector<8x8xf32>
    %261 = vector.broadcast %211 : vector<1x8xf32> to vector<8x8xf32>
    %262 = arith.addf %260, %261 : vector<8x8xf32>
    %cst_167 = arith.constant dense<0xFF800000> : vector<8xf32>
    %263 = vector.multi_reduction <maximumf>, %262, %cst_167 [1] : vector<8x8xf32> to vector<8xf32>
    %264 = vector.shape_cast %263 : vector<8xf32> to vector<8x1xf32>
    %265 = vector.broadcast %264 : vector<8x1xf32> to vector<8x8xf32>
    %266 = arith.subf %262, %265 : vector<8x8xf32>
    %267 = math.exp %266 : vector<8x8xf32>
    %cst_168 = arith.constant dense<0.000000e+00> : vector<8xf32>
    %268 = vector.multi_reduction <add>, %267, %cst_168 [1] : vector<8x8xf32> to vector<8xf32>
    %269 = vector.shape_cast %268 : vector<8xf32> to vector<8x1xf32>
    %270 = vector.broadcast %269 : vector<8x1xf32> to vector<8x8xf32>
    %271 = arith.divf %267, %270 : vector<8x8xf32>
    %cst_169 = arith.constant dense<0.000000e+00> : vector<8x8xf32>
    %272 = tpu.matmul %271, %257, %cst_169 {dimension_numbers = #tpu.dot_dimension_numbers<[1], [0], [0], [1], [0, 0, 1, 1], [], []>} : vector<8x8xf32>, vector<8x8xf32>, vector<8x8xf32> -> vector<8x8xf32>
    %c2_170 = arith.constant 2 : index
    %c0_171 = arith.constant 0 : index
    %c0_172 = arith.constant 0 : index
    %273 = vector.load %arg10[%c2_170, %c0_171, %c0_172] : memref<4x8x32xf32, #tpu.memory_space<vmem>>, vector<1x8x32xf32>
    %274 = vector.shape_cast %273 : vector<1x8x32xf32> to vector<8x32xf32>
    %cst_173 = arith.constant dense<0.000000e+00> : vector<8x32xf32>
    %275 = tpu.matmul %272, %274, %cst_173 {dimension_numbers = #tpu.dot_dimension_numbers<[1], [0], [0], [1], [0, 0, 1, 1], [], []>} : vector<8x8xf32>, vector<8x32xf32>, vector<8x32xf32> -> vector<8x32xf32>
    %276 = arith.addf %254, %275 : vector<8x32xf32>
    %277 = vector.extract_strided_slice %106 {offsets = [8, 0], sizes = [8, 8], strides = [1, 1]} : vector<16x8xf32> to vector<8x8xf32>
    %278 = vector.extract_strided_slice %113 {offsets = [8, 0], sizes = [8, 8], strides = [1, 1]} : vector<16x8xf32> to vector<8x8xf32>
    %279 = vector.extract_strided_slice %120 {offsets = [8, 0], sizes = [8, 8], strides = [1, 1]} : vector<16x8xf32> to vector<8x8xf32>
    %cst_174 = arith.constant dense<0.000000e+00> : vector<8x8xf32>
    %280 = tpu.matmul %277, %278, %cst_174 {dimension_numbers = #tpu.dot_dimension_numbers<[1], [1], [0], [0], [0, 0, 1, 0], [], []>} : vector<8x8xf32>, vector<8x8xf32>, vector<8x8xf32> -> vector<8x8xf32>
    %cst_175 = arith.constant 0.353553385 : f32
    %281 = vector.broadcast %cst_175 : f32 to vector<8x8xf32>
    %282 = arith.mulf %280, %281 : vector<8x8xf32>
    %283 = vector.broadcast %211 : vector<1x8xf32> to vector<8x8xf32>
    %284 = arith.addf %282, %283 : vector<8x8xf32>
    %cst_176 = arith.constant dense<0xFF800000> : vector<8xf32>
    %285 = vector.multi_reduction <maximumf>, %284, %cst_176 [1] : vector<8x8xf32> to vector<8xf32>
    %286 = vector.shape_cast %285 : vector<8xf32> to vector<8x1xf32>
    %287 = vector.broadcast %286 : vector<8x1xf32> to vector<8x8xf32>
    %288 = arith.subf %284, %287 : vector<8x8xf32>
    %289 = math.exp %288 : vector<8x8xf32>
    %cst_177 = arith.constant dense<0.000000e+00> : vector<8xf32>
    %290 = vector.multi_reduction <add>, %289, %cst_177 [1] : vector<8x8xf32> to vector<8xf32>
    %291 = vector.shape_cast %290 : vector<8xf32> to vector<8x1xf32>
    %292 = vector.broadcast %291 : vector<8x1xf32> to vector<8x8xf32>
    %293 = arith.divf %289, %292 : vector<8x8xf32>
    %cst_178 = arith.constant dense<0.000000e+00> : vector<8x8xf32>
    %294 = tpu.matmul %293, %279, %cst_178 {dimension_numbers = #tpu.dot_dimension_numbers<[1], [0], [0], [1], [0, 0, 1, 1], [], []>} : vector<8x8xf32>, vector<8x8xf32>, vector<8x8xf32> -> vector<8x8xf32>
    %c3_179 = arith.constant 3 : index
    %c0_180 = arith.constant 0 : index
    %c0_181 = arith.constant 0 : index
    %295 = vector.load %arg10[%c3_179, %c0_180, %c0_181] : memref<4x8x32xf32, #tpu.memory_space<vmem>>, vector<1x8x32xf32>
    %296 = vector.shape_cast %295 : vector<1x8x32xf32> to vector<8x32xf32>
    %cst_182 = arith.constant dense<0.000000e+00> : vector<8x32xf32>
    %297 = tpu.matmul %294, %296, %cst_182 {dimension_numbers = #tpu.dot_dimension_numbers<[1], [0], [0], [1], [0, 0, 1, 1], [], []>} : vector<8x8xf32>, vector<8x32xf32>, vector<8x32xf32> -> vector<8x32xf32>
    %298 = arith.addf %276, %297 : vector<8x32xf32>
    %299 = tpu.concatenate %209, %298 in 0 : vector<8x32xf32>, vector<8x32xf32> -> vector<16x32xf32>
    %300 = vector.broadcast %28 : vector<1x32xf32> to vector<16x32xf32>
    %301 = arith.addf %299, %300 : vector<16x32xf32>
    %302 = arith.addf %27, %301 : vector<16x32xf32>
    %cst_183 = arith.constant dense<0.000000e+00> : vector<16xf32>
    %303 = vector.multi_reduction <add>, %302, %cst_183 [1] : vector<16x32xf32> to vector<16xf32>
    %304 = vector.shape_cast %303 : vector<16xf32> to vector<16x1xf32>
    %cst_184 = arith.constant 3.200000e+01 : f32
    %305 = vector.broadcast %cst_184 : f32 to vector<16x1xf32>
    %306 = arith.divf %304, %305 : vector<16x1xf32>
    %307 = vector.broadcast %306 : vector<16x1xf32> to vector<16x32xf32>
    %308 = arith.subf %302, %307 : vector<16x32xf32>
    %309 = arith.mulf %308, %308 : vector<16x32xf32>
    %cst_185 = arith.constant dense<0.000000e+00> : vector<16xf32>
    %310 = vector.multi_reduction <add>, %309, %cst_185 [1] : vector<16x32xf32> to vector<16xf32>
    %311 = vector.shape_cast %310 : vector<16xf32> to vector<16x1xf32>
    %cst_186 = arith.constant 3.200000e+01 : f32
    %312 = vector.broadcast %cst_186 : f32 to vector<16x1xf32>
    %313 = arith.divf %311, %312 : vector<16x1xf32>
    %cst_187 = arith.constant 9.99999996E-13 : f32
    %314 = vector.broadcast %cst_187 : f32 to vector<16x1xf32>
    %315 = arith.addf %313, %314 : vector<16x1xf32>
    %316 = math.rsqrt %315 : vector<16x1xf32>
    %317 = vector.broadcast %316 : vector<16x1xf32> to vector<16x32xf32>
    %318 = arith.mulf %308, %317 : vector<16x32xf32>
    %319 = vector.broadcast %29 : vector<1x32xf32> to vector<16x32xf32>
    %320 = arith.mulf %318, %319 : vector<16x32xf32>
    %321 = vector.broadcast %30 : vector<1x32xf32> to vector<16x32xf32>
    %322 = arith.addf %320, %321 : vector<16x32xf32>
    %cst_188 = arith.constant dense<0.000000e+00> : vector<16x64xf32>
    %323 = tpu.matmul %322, %31, %cst_188 {dimension_numbers = #tpu.dot_dimension_numbers<[1], [0], [0], [1], [0, 0, 1, 1], [], []>} : vector<16x32xf32>, vector<32x64xf32>, vector<16x64xf32> -> vector<16x64xf32>
    %324 = vector.broadcast %32 : vector<1x64xf32> to vector<16x64xf32>
    %325 = arith.addf %323, %324 : vector<16x64xf32>
    %cst_189 = arith.constant 5.000000e-01 : f32
    %326 = vector.broadcast %cst_189 : f32 to vector<16x64xf32>
    %327 = arith.mulf %326, %325 : vector<16x64xf32>
    %cst_190 = arith.constant 4.471500e-02 : f32
    %328 = vector.broadcast %cst_190 : f32 to vector<16x64xf32>
    %329 = arith.mulf %328, %325 : vector<16x64xf32>
    %330 = arith.mulf %329, %325 : vector<16x64xf32>
    %331 = arith.mulf %330, %325 : vector<16x64xf32>
    %332 = arith.addf %325, %331 : vector<16x64xf32>
    %cst_191 = arith.constant 0.797884583 : f32
    %333 = vector.broadcast %cst_191 : f32 to vector<16x64xf32>
    %334 = arith.mulf %333, %332 : vector<16x64xf32>
    %335 = math.tanh %334 : vector<16x64xf32>
    %cst_192 = arith.constant 1.000000e+00 : f32
    %336 = vector.broadcast %cst_192 : f32 to vector<16x64xf32>
    %337 = arith.addf %336, %335 : vector<16x64xf32>
    %338 = arith.mulf %327, %337 : vector<16x64xf32>
    %cst_193 = arith.constant dense<0.000000e+00> : vector<16x32xf32>
    %339 = tpu.matmul %338, %33, %cst_193 {dimension_numbers = #tpu.dot_dimension_numbers<[1], [0], [0], [1], [0, 0, 1, 1], [], []>} : vector<16x64xf32>, vector<64x32xf32>, vector<16x32xf32> -> vector<16x32xf32>
    %340 = vector.broadcast %34 : vector<1x32xf32> to vector<16x32xf32>
    %341 = arith.addf %339, %340 : vector<16x32xf32>
    %342 = arith.addf %322, %341 : vector<16x32xf32>
    %cst_194 = arith.constant dense<0.000000e+00> : vector<16xf32>
    %343 = vector.multi_reduction <add>, %342, %cst_194 [1] : vector<16x32xf32> to vector<16xf32>
    %344 = vector.shape_cast %343 : vector<16xf32> to vector<16x1xf32>
    %cst_195 = arith.constant 3.200000e+01 : f32
    %345 = vector.broadcast %cst_195 : f32 to vector<16x1xf32>
    %346 = arith.divf %344, %345 : vector<16x1xf32>
    %347 = vector.broadcast %346 : vector<16x1xf32> to vector<16x32xf32>
    %348 = arith.subf %342, %347 : vector<16x32xf32>
    %349 = arith.mulf %348, %348 : vector<16x32xf32>
    %cst_196 = arith.constant dense<0.000000e+00> : vector<16xf32>
    %350 = vector.multi_reduction <add>, %349, %cst_196 [1] : vector<16x32xf32> to vector<16xf32>
    %351 = vector.shape_cast %350 : vector<16xf32> to vector<16x1xf32>
    %cst_197 = arith.constant 3.200000e+01 : f32
    %352 = vector.broadcast %cst_197 : f32 to vector<16x1xf32>
    %353 = arith.divf %351, %352 : vector<16x1xf32>
    %cst_198 = arith.constant 9.99999996E-13 : f32
    %354 = vector.broadcast %cst_198 : f32 to vector<16x1xf32>
    %355 = arith.addf %353, %354 : vector<16x1xf32>
    %356 = math.rsqrt %355 : vector<16x1xf32>
    %357 = vector.broadcast %356 : vector<16x1xf32> to vector<16x32xf32>
    %358 = arith.mulf %348, %357 : vector<16x32xf32>
    %359 = vector.broadcast %35 : vector<1x32xf32> to vector<16x32xf32>
    %360 = arith.mulf %358, %359 : vector<16x32xf32>
    %361 = vector.broadcast %36 : vector<1x32xf32> to vector<16x32xf32>
    %362 = arith.addf %360, %361 : vector<16x32xf32>
    %c0_199 = arith.constant 0 : index
    %c0_200 = arith.constant 0 : index
    %363 = vector.load %arg20[%c0_199, %c0_200] : memref<32x32xf32, #tpu.memory_space<vmem>>, vector<32x32xf32>
    %cst_201 = arith.constant dense<0.000000e+00> : vector<16x32xf32>
    %364 = tpu.matmul %362, %363, %cst_201 {dimension_numbers = #tpu.dot_dimension_numbers<[1], [0], [0], [1], [0, 0, 1, 1], [], []>} : vector<16x32xf32>, vector<32x32xf32>, vector<16x32xf32> -> vector<16x32xf32>
    %c0_202 = arith.constant 0 : index
    %c0_203 = arith.constant 0 : index
    %365 = vector.load %arg21[%c0_202, %c0_203] : memref<1x32xf32, #tpu.memory_space<vmem>>, vector<1x32xf32>
    %366 = vector.broadcast %365 : vector<1x32xf32> to vector<16x32xf32>
    %367 = arith.addf %364, %366 : vector<16x32xf32>
    %cst_204 = arith.constant 5.000000e-01 : f32
    %368 = vector.broadcast %cst_204 : f32 to vector<16x32xf32>
    %369 = arith.mulf %368, %367 : vector<16x32xf32>
    %cst_205 = arith.constant 4.471500e-02 : f32
    %370 = vector.broadcast %cst_205 : f32 to vector<16x32xf32>
    %371 = arith.mulf %370, %367 : vector<16x32xf32>
    %372 = arith.mulf %371, %367 : vector<16x32xf32>
    %373 = arith.mulf %372, %367 : vector<16x32xf32>
    %374 = arith.addf %367, %373 : vector<16x32xf32>
    %cst_206 = arith.constant 0.797884583 : f32
    %375 = vector.broadcast %cst_206 : f32 to vector<16x32xf32>
    %376 = arith.mulf %375, %374 : vector<16x32xf32>
    %377 = math.tanh %376 : vector<16x32xf32>
    %cst_207 = arith.constant 1.000000e+00 : f32
    %378 = vector.broadcast %cst_207 : f32 to vector<16x32xf32>
    %379 = arith.addf %378, %377 : vector<16x32xf32>
    %380 = arith.mulf %369, %379 : vector<16x32xf32>
    %c0_208 = arith.constant 0 : index
    %c0_209 = arith.constant 0 : index
    %381 = vector.load %arg22[%c0_208, %c0_209] : memref<1x32xf32, #tpu.memory_space<vmem>>, vector<1x32xf32>
    %382 = vector.broadcast %381 : vector<1x32xf32> to vector<16x32xf32>
    %383 = arith.mulf %380, %382 : vector<16x32xf32>
    %cst_210 = arith.constant dense<0.000000e+00> : vector<16xf32>
    %384 = vector.multi_reduction <add>, %383, %cst_210 [1] : vector<16x32xf32> to vector<16xf32>
    %385 = vector.shape_cast %384 : vector<16xf32> to vector<16x1xf32>
    %c0_211 = arith.constant 0 : index
    %c0_212 = arith.constant 0 : index
    %386 = vector.load %arg23[%c0_211, %c0_212] : memref<1x1xf32, #tpu.memory_space<vmem>>, vector<1x1xf32>
    %387 = vector.broadcast %386 : vector<1x1xf32> to vector<16x1xf32>
    %388 = arith.addf %385, %387 : vector<16x1xf32>
    %c0_213 = arith.constant 0 : index
    %c0_214 = arith.constant 0 : index
    %389 = vector.load %arg3[%c0_213, %c0_214] : memref<16x1xf32, #tpu.memory_space<vmem>>, vector<16x1xf32>
    %cst_215 = arith.constant 0.000000e+00 : f32
    %390 = vector.broadcast %cst_215 : f32 to vector<16x1xf32>
    %391 = arith.maximumf %388, %390 : vector<16x1xf32>
    %392 = arith.mulf %388, %389 : vector<16x1xf32>
    %393 = arith.subf %391, %392 : vector<16x1xf32>
    %394 = math.absf %388 : vector<16x1xf32>
    %cst_216 = arith.constant 0.000000e+00 : f32
    %395 = vector.broadcast %cst_216 : f32 to vector<16x1xf32>
    %396 = arith.subf %395, %394 : vector<16x1xf32>
    %397 = math.exp %396 : vector<16x1xf32>
    %cst_217 = arith.constant 1.000000e+00 : f32
    %398 = vector.broadcast %cst_217 : f32 to vector<16x1xf32>
    %399 = arith.addf %398, %397 : vector<16x1xf32>
    %400 = math.log %399 : vector<16x1xf32>
    %401 = arith.addf %393, %400 : vector<16x1xf32>
    %c0_218 = arith.constant 0 : index
    %c0_219 = arith.constant 0 : index
    %402 = vector.load %arg2[%c0_218, %c0_219] : memref<16x1xf32, #tpu.memory_space<vmem>>, vector<16x1xf32>
    %403 = arith.mulf %401, %402 : vector<16x1xf32>
    %cst_220 = arith.constant dense<0.000000e+00> : vector<1xf32>
    %404 = vector.multi_reduction <add>, %403, %cst_220 [0] : vector<16x1xf32> to vector<1xf32>
    %405 = vector.shape_cast %404 : vector<1xf32> to vector<1x1xf32>
    %cst_221 = arith.constant dense<0.000000e+00> : vector<1xf32>
    %406 = vector.multi_reduction <add>, %402, %cst_221 [0] : vector<16x1xf32> to vector<1xf32>
    %407 = vector.shape_cast %406 : vector<1xf32> to vector<1x1xf32>
    %cst_222 = arith.constant 1.000000e+00 : f32
    %408 = vector.broadcast %cst_222 : f32 to vector<1x1xf32>
    %409 = arith.maximumf %407, %408 : vector<1x1xf32>
    %410 = arith.divf %405, %409 : vector<1x1xf32>
    %c0_223 = arith.constant 0 : index
    %c0_224 = arith.constant 0 : index
    %411 = vector.load %arg24[%c0_223, %c0_224] : memref<1x1xf32, #tpu.memory_space<vmem>>, vector<1x1xf32>
    tpu.vector_store %arg24[%c0_223, %c0_224], %410 {strides = array<i32>} : memref<1x1xf32, #tpu.memory_space<vmem>>, vector<1x1xf32>,
    return
  }
}

</mosaic_0001>

<bundles_post_ra>
// kernel: pelectra_forward.5
= control target key start
LH: loop header
LB: loop body
LE: loop exit
PB: predicated region body
PF: predicated region fallthrough
CT: control target
= control target key end

     0   :  { %s5127_s0 = inlined_call_operand.vmem [shape: f32[16,16], index: 0, kind: input, shape index: {}]   ;;  %s5128_s1 = inlined_call_operand.vmem [shape: f32[2,1,8], index: 1, kind: input, shape index: {}]   ;;  %s5129_s2 = inlined_call_operand.vmem [shape: f32[16,1], index: 2, kind: input, shape index: {}]   ;;  %s5130_s3 = inlined_call_operand.vmem [shape: f32[16,1], index: 3, kind: input, shape index: {}]   ;;  %s5131_s4 = inlined_call_operand.vmem [shape: f32[1,16], index: 4, kind: input, shape index: {}]   ;;  %s5132_s5 = inlined_call_operand.vmem [shape: f32[1,16], index: 5, kind: input, shape index: {}]   ;;  %s5133_s6 = inlined_call_operand.vmem [shape: f32[16,32], index: 6, kind: input, shape index: {}]   ;;  %s5134_s7 = inlined_call_operand.vmem [shape: f32[1,32], index: 7, kind: input, shape index: {}]   ;;  %s5135_s8 = inlined_call_operand.vmem [shape: f32[12,32,8], index: 8, kind: input, shape index: {}]   ;;  %s5136_s9 = inlined_call_operand.vmem [shape: f32[12,1,8], index: 9, kind: input, shape index: {}]   ;;  %s5137_s10 = inlined_call_operand.vmem [shape: f32[4,8,32], index: 10, kind: input, shape index: {}]   ;;  %s5138_s11 = inlined_call_operand.vmem [shape: f32[1,32], index: 11, kind: input, shape index: {}]   ;;  %s5139_s12 = inlined_call_operand.vmem [shape: f32[1,32], index: 12, kind: input, shape index: {}]   ;;  %s5140_s13 = inlined_call_operand.vmem [shape: f32[1,32], index: 13, kind: input, shape index: {}]   ;;  %s5141_s14 = inlined_call_operand.vmem [shape: f32[32,64], index: 14, kind: input, shape index: {}]   ;;  %s5142_s15 = inlined_call_operand.vmem [shape: f32[1,64], index: 15, kind: input, shape index: {}]   ;;  %s5143_s16 = inlined_call_operand.vmem [shape: f32[64,32], index: 16, kind: input, shape index: {}]   ;;  %s5144_s17 = inlined_call_operand.vmem [shape: f32[1,32], index: 17, kind: input, shape index: {}]   ;;  %s5145_s18 = inlined_call_operand.vmem [shape: f32[1,32], index: 18, kind: input, shape index: {}]   ;;  %s5146_s19 = inlined_call_operand.vmem [shape: f32[1,32], index: 19, kind: input, shape index: {}]   ;;  %s5147_s20 = inlined_call_operand.vmem [shape: f32[32,32], index: 20, kind: input, shape index: {}]   ;;  %s5148_s21 = inlined_call_operand.vmem [shape: f32[1,32], index: 21, kind: input, shape index: {}]   ;;  %s5149_s22 = inlined_call_operand.vmem [shape: f32[1,32], index: 22, kind: input, shape index: {}]   ;;  %s5150_s23 = inlined_call_operand.<no memory space> [shape: f32[1,1], index: 23, kind: input, shape index: {}]   ;;  %s5151_s24 = inlined_call_operand.hbm [shape: f32[1,1], index: 24, kind: output, shape index: {}]  }
   0x1   :  { %5158 = sst [smem:[#allocation6_spill]] %s5127_s0  ;;  %v29_v0 = vstv %s5150_s23 }
   0x2   :  { %5159 = sst [smem:[#allocation7_spill]] %s5128_s1  ;;  %30 = vst [vmem:[#allocation2] sm:$0x1] %v29_v0 }
   0x3   :  { %5160 = sst [smem:[#allocation8_spill]] %s5129_s2 }
   0x4   :  { %5161 = sst [smem:[#allocation9_spill]] %s5130_s3 }
   0x5   :  { %5162 = sst [smem:[#allocation10_spill]] %s5131_s4 }
   0x6   :  { %5163 = sst [smem:[#allocation11_spill]] %s5132_s5 }
   0x7   :  { %5164 = sst [smem:[#allocation12_spill]] %s5133_s6 }
   0x8   :  { %5165 = sst [smem:[#allocation13_spill]] %s5134_s7 }
   0x9   :  { %5166 = sst [smem:[#allocation14_spill]] %s5135_s8 }
   0xa   :  { %s5167_s6 = sld [smem:[#allocation6_spill]]  ;;  %vm84_vm0 = vcmask 130048  }
  0x10   :  { %v80_v1 = vld [vmem:[%s5167_s6] sm:$0xff]  ;;  %v81_v2 = vld [vmem:[%s5167_s6 + $0x8] sm:$0xff] }
  0x11   :  { %31 = vsyncpa [#allocation4], 0  ;;  %v85_v3 = vsel %vm84_vm0, %v80_v1, 0.0  ;;  %v88_v4 = vsel %vm84_vm0, %v81_v2, 0.0  ;;  %s5168_s7 = sld [smem:[#allocation12_spill]]  ;;  %vm248_vm1 = vcmask 261120  }
  0x12   :  { %86 = vadd.xlane.f32.xlu0 %v85_v3  ;;  %s5169_s4 = sld [smem:[#allocation14_spill]]  ;;  %vm4379_vm2 = vmmov 0   ;;  %vm1299_vm3 = vcmask 64512   ;;  %vm3369_vm4 = vcmask 523264   ;;  %vm3657_vm5 = vcmask 7168   ;;  %s4380_s6 = smov [#allocation3]  }
  0x13   :  { %s5170_s2 = sld [smem:[#allocation10_spill]]  ;;  %vm3679_vm6 = vcmask 0  }
  0x14   :  { %s5171_s0 = sld [smem:[#allocation11_spill]] }
  0x15   :  { %s5172_s30 = sld [smem:[#allocation13_spill]] }
  0x16   :  { %89 = vadd.xlane.f32.xlu0 %v88_v4  ;;  %s5173_s29 = sld [smem:[#allocation7_spill]] }
  0x17   :  { %v129_v15 = vld [vmem:[%s5168_s7 + $0x8] sm:$0xff]  ;;  %v128_v16 = vld [vmem:[%s5168_s7] sm:$0xff]  ;;  %s5174_s1 = sld [smem:[#allocation8_spill]] }
  0x18   :  { %3991 = vmatprep.subr.mxu0 %v129_v15  ;;  %v240_v17 = vld [vmem:[%s5169_s4 + $0x18] sm:$0xff]  ;;  %v239_v19 = vld [vmem:[%s5169_s4 + $0x10] sm:$0xff]  ;;  %v238_v37 = vld [vmem:[%s5169_s4 + $0x8] sm:$0xff]  ;;  %s5175_s28 = sld [smem:[#allocation9_spill]] }
  0x19   :  { %3992 = vmatpush3.msra.mxu0 %v129_v15  ;;  %v3706_v18 = vld [vmem:[%s5169_s4 + $0x98] sm:$0xff]  ;;  %3998 = vmatprep.subr.mxu1 %v240_v17  ;;  %v3695_v27 = vld [vmem:[%s5170_s2] ss:$0 sm:$0xff]  ;;  %v3705_v36 = vld [vmem:[%s5169_s4 + $0x90] sm:$0xff]  ;;  %s3687_s2 = sshll.u32 %s4380_s6, 4  ;;  %s3688_s2 = int_to_ptr.vmem [resolvable:$true] %s3687_s2 }
  0x1a   :  { %3993 = vmatprep.subr.mxu0 %v128_v16  ;;  %3999 = vmatpush3.msra.mxu1 %v240_v17  ;;  %v3696_v29 = vld [vmem:[%s5171_s0] ss:$0 sm:$0xff]  ;;  %v3704_v38 = vld [vmem:[%s5169_s4 + $0x88] sm:$0xff]  ;;  %v3714_v41 = vld [vmem:[%s5169_s4 + $0x118] sm:$0xff]  ;;  %p4361_p1 = scmp.lt.s32.totalorder %s3688_s2, %s3688_s2 }
  0x1b   :  { %3994 = vmatpush3.msra.mxu0 %v128_v16  ;;  %4000 = vmatprep.subr.mxu1 %v239_v19  ;;  %v237_v39 = vld [vmem:[%s5169_s4] sm:$0xff]  ;;  %v3722_v42 = vld [vmem:[%s5169_s4 + $0x38] sm:$0xff]  ;;  %v3713_v48 = vld [vmem:[%s5169_s4 + $0x110] sm:$0xff] }
  0x1c   :  { %4009 = vmatprep.subr.mxu0 %v3706_v18  ;;  %4001 = vmatpush3.msra.mxu1 %v239_v19  ;;  %v3703_v40 = vld [vmem:[%s5169_s4 + $0x80] sm:$0xff]  ;;  %v3721_v49 = vld [vmem:[%s5169_s4 + $0x30] sm:$0xff]  ;;  %v3712_v50 = vld [vmem:[%s5169_s4 + $0x108] sm:$0xff] }
  0x1d   :  { %4002 = vmatprep.subr.mxu1 %v238_v37  ;;  %v3697_v44 = vld [vmem:[%s5172_s30] ss:$0 sm:$0xff]  ;;  %v3720_v51 = vld [vmem:[%s5169_s4 + $0x28] sm:$0xff]  ;;  %v3730_v54 = vld [vmem:[%s5169_s4 + $0xb8] sm:$0xff] }
  0x1e   :  { %4003 = vmatpush3.msra.mxu1 %v238_v37  ;;  %v3711_v52 = vld [vmem:[%s5169_s4 + $0x100] sm:$0xff]  ;;  %v3738_v55 = vld [vmem:[%s5169_s4 + $0x138] sm:$0xff]  ;;  %v3729_v56 = vld [vmem:[%s5169_s4 + $0xb0] sm:$0xff] }
  0x1f   :  { %4004 = vmatprep.subr.mxu1 %v237_v39  ;;  %v3719_v53 = vld [vmem:[%s5169_s4 + $0x20] sm:$0xff]  ;;  %v3737_v57 = vld [vmem:[%s5169_s4 + $0x130] sm:$0xff]  ;;  %v3728_v58 = vld [vmem:[%s5169_s4 + $0xa8] sm:$0xff] }
  0x20   :  { %4005 = vmatpush3.msra.mxu1 %v237_v39  ;;  %v3736_v59 = vld [vmem:[%s5169_s4 + $0x128] sm:$0xff]  ;;  %v3727_v60 = vld [vmem:[%s5169_s4 + $0xa0] sm:$0xff]  ;;  %v3746_v62 = vld [vmem:[%s5169_s4 + $0x58] sm:$0xff] }
  0x21   :  { %4020 = vmatprep.subr.mxu1 %v3714_v41  ;;  %v3735_v61 = vld [vmem:[%s5169_s4 + $0x120] sm:$0xff]  ;;  %v3754_v63 = vld [vmem:[%s5169_s4 + $0xd8] sm:$0xff]  ;;  %v3745_v0 = vld [vmem:[%s5169_s4 + $0x50] sm:$0xff] }
  0x22   :  { %v3752_v3 = vld [vmem:[%s5169_s4 + $0xc8] sm:$0xff]  ;;  %v3743_v4 = vld [vmem:[%s5169_s4 + $0x40] sm:$0xff]  ;;  %v3786_v15 = vld [vmem:[%s5169_s4 + $0x178] sm:$0xff] }
  0x23   :  { %v3777_v16 = vld [vmem:[%s5169_s4 + $0xf0] sm:$0xff]  ;;  %v3784_v19 = vld [vmem:[%s5169_s4 + $0x168] sm:$0xff] }
  0x24   :  { %v3785_v17 = vld [vmem:[%s5169_s4 + $0x170] sm:$0xff] }
  0x9b   :  { %v87_v5 = vpop.xlane.xlu0 %86 }
  0x9c   :  { %v92_v6 = vmul.f32 0.0625, %v87_v5  ;;  %v3751_v5 = vld [vmem:[%s5169_s4 + $0xc0] sm:$0xff] }
  0x9e   :  { %v94_v7 = vsub.f32 %v80_v1, %v92_v6  ;;  %v3753_v1 = vld [vmem:[%s5169_s4 + $0xd0] sm:$0xff]  ;;  %v3762_v6 = vld [vmem:[%s5169_s4 + $0x158] sm:$0xff] }
  0x9f   :  { %v90_v8 = vpop.xlane.xlu0 %89 }
  0xa0   :  { %v93_v9 = vmul.f32 0.0625, %v90_v8  ;;  %v96_v10 = vmul.f32 %v94_v7, %v94_v7  ;;  %v3761_v8 = vld [vmem:[%s5169_s4 + $0x150] sm:$0xff] }
  0xa2   :  { %v95_v11 = vsub.f32 %v81_v2, %v93_v9  ;;  %v98_v12 = vsel %vm84_vm0, %v96_v10, 0.0  ;;  %v3744_v2 = vld [vmem:[%s5169_s4 + $0x48] sm:$0xff]  ;;  %v3769_v9 = vld [vmem:[%s5169_s4 + $0x70] sm:$0xff] }
  0xa3   :  { %99 = vadd.xlane.f32.xlu1 %v98_v12  ;;  %v3760_v10 = vld [vmem:[%s5169_s4 + $0x148] sm:$0xff]  ;;  %v3759_v12 = vld [vmem:[%s5169_s4 + $0x140] sm:$0xff] }
  0xa4   :  { %v97_v13 = vmul.f32 %v95_v11, %v95_v11 }
  0xa6   :  { %v101_v14 = vsel %vm84_vm0, %v97_v13, 0.0  ;;  %v3767_v13 = vld [vmem:[%s5169_s4 + $0x60] sm:$0xff] }
  0xa7   :  { %102 = vadd.xlane.f32.xlu1 %v101_v14  ;;  %v3778_v14 = vld [vmem:[%s5169_s4 + $0xf8] sm:$0xff] }
 0x12c   :  { %v100_v20 = vpop.xlane.xlu1 %99 }
 0x12d   :  { %v104_v21 = vmul.f32 0.0625, %v100_v20  ;;  %v3775_v20 = vld [vmem:[%s5169_s4 + $0xe0] sm:$0xff] }
 0x12f   :  { %v106_v22 = vadd.f32 1e-12, %v104_v21  ;;  %v3783_v21 = vld [vmem:[%s5169_s4 + $0x160] sm:$0xff] }
 0x130   :  { %v103_v23 = vpop.xlane.xlu1 %102 }
 0x131   :  { %4294 = vrsqrt.f32 %v106_v22  ;;  %v105_v24 = vmul.f32 0.0625, %v103_v23  ;;  %v4378_v22 = vmov 0.0   ;;  %v3700_v23 = vld [vmem:[%s5136_s9] ss:$0 sm:$0xff] }
 0x133   :  { %v107_v25 = vadd.f32 1e-12, %v105_v24  ;;  %v3708_v24 = vld [vmem:[%s5136_s9 + $0x4] ss:$0 sm:$0xff] }
 0x135   :  { %4296 = vrsqrt.f32 %v107_v25 }
 0x13e   :  { %v4295_v26 = vpop.eup %4294 }
 0x13f   :  { %v110_v28 = vmul.f32 %v4295_v26, %v94_v7  ;;  %v3770_v7 = vld [vmem:[%s5169_s4 + $0x78] sm:$0xff] }
 0x141   :  { %v118_v30 = vmul.f32 %v3695_v27, %v110_v28 }
 0x142   :  { %v4297_v31 = vpop.eup %4296 }
 0x143   :  { %v111_v32 = vmul.f32 %v4297_v31, %v95_v11  ;;  %v126_v33 = vadd.f32 %v3696_v29, %v118_v30  ;;  %v3768_v11 = vld [vmem:[%s5169_s4 + $0x68] sm:$0xff] }
 0x145   :  { %v119_v34 = vmul.f32 %v3695_v27, %v111_v32  ;;  %3995 = vmatprep.mubr.msk.f32.mxu0 %vm84_vm0, %v126_v33  ;;  %v3716_v33 = vld [vmem:[%s5136_s9 + $0x8] ss:$0 sm:$0xff] }
 0x147   :  { %v127_v35 = vadd.f32 %v3696_v29, %v119_v34  ;;  %v3724_v34 = vld [vmem:[%s5136_s9 + $0x1] ss:$0 sm:$0xff] }
 0x149   :  { %3996 = vmatmul.mubr.msk.f32.vlgmr.msra.gmra.mxu0 %vm84_vm0, %v127_v35 }
 0x14a   :  { %4010 = vmatpush3.msra.mxu0 %v3706_v18  ;;  %v3776_v18 = vld [vmem:[%s5169_s4 + $0xe8] sm:$0xff] }
 0x14b   :  { %4011 = vmatprep.subr.mxu0 %v3705_v36 }
 0x14c   :  { %4012 = vmatpush3.msra.mxu0 %v3705_v36 }
 0x14d   :  { %4013 = vmatprep.subr.mxu0 %v3704_v38 }
 0x14e   :  { %4014 = vmatpush3.msra.mxu0 %v3704_v38 }
 0x14f   :  { %4015 = vmatprep.subr.mxu0 %v3703_v40 }
 0x150   :  { %4016 = vmatpush3.msra.mxu0 %v3703_v40 }
 0x151   :  { %4031 = vmatprep.subr.mxu0 %v3722_v42 }
 0x209   :  { %v3997_v43 = vpop.f32.mrf.mxu0 }
 0x20a   :  { %v4568_v47 = vadd.f32 %v3997_v43, %v3697_v44  ;;  %v4770_v43 = vld [vmem:[%s5136_s9 + $0x9] ss:$0 sm:$0xff] }
 0x20b   :  { %v209_v45 = vpop.f32.mrf.mxu0 }
 0x20c   :  { %v4566_v46 = vadd.f32 %v3697_v44, %v209_v45 }
 0x20e   :  { %4006 = vmatprep.mubr.msk.f32.mxu1 %vm248_vm1, %v4566_v46  ;;  %4017 = vmatprep.mubr.msk.f32.mxu0 %vm248_vm1, %v4566_v46 }
 0x20f   :  { %4007 = vmatmul.mubr.msk.f32.vlgmr.msra.gmra.mxu1 %vm248_vm1, %v4568_v47  ;;  %4018 = vmatmul.mubr.msk.f32.vlgmr.msra.gmra.mxu0 %vm248_vm1, %v4568_v47 }
 0x210   :  { %4021 = vmatpush3.msra.mxu1 %v3714_v41  ;;  %4032 = vmatpush3.msra.mxu0 %v3722_v42  ;;  %v3732_v42 = vld [vmem:[%s5136_s9 + $0x5] ss:$0 sm:$0xff] }
 0x211   :  { %4022 = vmatprep.subr.mxu1 %v3713_v48  ;;  %4028 = vmatprep.mubr.msk.f32.mxu1 %vm248_vm1, %v4566_v46 }
 0x212   :  { %4033 = vmatprep.subr.mxu0 %v3721_v49  ;;  %4039 = vmatprep.mubr.msk.f32.mxu0 %vm248_vm1, %v4566_v46 }
 0x213   :  { %4023 = vmatpush3.msra.mxu1 %v3713_v48  ;;  %4034 = vmatpush3.msra.mxu0 %v3721_v49 }
 0x214   :  { %4024 = vmatprep.subr.mxu1 %v3712_v50  ;;  %4035 = vmatprep.subr.mxu0 %v3720_v51 }
 0x215   :  { %4025 = vmatpush3.msra.mxu1 %v3712_v50  ;;  %4036 = vmatpush3.msra.mxu0 %v3720_v51 }
 0x216   :  { %4026 = vmatprep.subr.mxu1 %v3711_v52  ;;  %4037 = vmatprep.subr.mxu0 %v3719_v53 }
 0x217   :  { %4027 = vmatpush3.msra.mxu1 %v3711_v52  ;;  %4038 = vmatpush3.msra.mxu0 %v3719_v53 }
 0x218   :  { %4029 = vmatmul.mubr.msk.f32.vlgmr.msra.gmra.mxu1 %vm248_vm1, %v4568_v47  ;;  %4040 = vmatmul.mubr.msk.f32.vlgmr.msra.gmra.mxu0 %vm248_vm1, %v4568_v47 }
 0x219   :  { %4042 = vmatprep.subr.mxu1 %v3730_v54  ;;  %4053 = vmatprep.subr.mxu0 %v3738_v55 }
 0x21a   :  { %4043 = vmatpush3.msra.mxu1 %v3730_v54  ;;  %4050 = vmatprep.mubr.msk.f32.mxu1 %vm248_vm1, %v4566_v46  ;;  %v4782_v54 = vld [vmem:[%s5136_s9 + $0x2] ss:$0 sm:$0xff] }
 0x21b   :  { %4054 = vmatpush3.msra.mxu0 %v3738_v55  ;;  %4061 = vmatprep.mubr.msk.f32.mxu0 %vm248_vm1, %v4566_v46  ;;  %v4787_v55 = vld [vmem:[%s5136_s9 + $0x6] ss:$0 sm:$0xff] }
 0x21c   :  { %4044 = vmatprep.subr.mxu1 %v3729_v56  ;;  %4055 = vmatprep.subr.mxu0 %v3737_v57 }
 0x21d   :  { %4045 = vmatpush3.msra.mxu1 %v3729_v56  ;;  %4056 = vmatpush3.msra.mxu0 %v3737_v57 }
 0x21e   :  { %4046 = vmatprep.subr.mxu1 %v3728_v58  ;;  %4057 = vmatprep.subr.mxu0 %v3736_v59 }
 0x21f   :  { %4047 = vmatpush3.msra.mxu1 %v3728_v58  ;;  %4058 = vmatpush3.msra.mxu0 %v3736_v59 }
 0x220   :  { %4048 = vmatprep.subr.mxu1 %v3727_v60  ;;  %4059 = vmatprep.subr.mxu0 %v3735_v61 }
 0x221   :  { %4049 = vmatpush3.msra.mxu1 %v3727_v60  ;;  %4060 = vmatpush3.msra.mxu0 %v3735_v61 }
 0x222   :  { %4051 = vmatmul.mubr.msk.f32.vlgmr.msra.gmra.mxu1 %vm248_vm1, %v4568_v47  ;;  %4062 = vmatmul.mubr.msk.f32.vlgmr.msra.gmra.mxu0 %vm248_vm1, %v4568_v47 }
 0x223   :  { %4064 = vmatprep.subr.mxu1 %v3746_v62  ;;  %4075 = vmatprep.subr.mxu0 %v3754_v63 }
 0x224   :  { %4065 = vmatpush3.msra.mxu1 %v3746_v62  ;;  %4072 = vmatprep.mubr.msk.f32.mxu1 %vm248_vm1, %v4566_v46  ;;  %v4805_v62 = vld [vmem:[%s5136_s9 + $0xa] ss:$0 sm:$0xff] }
 0x225   :  { %4076 = vmatpush3.msra.mxu0 %v3754_v63  ;;  %4083 = vmatprep.mubr.msk.f32.mxu0 %vm248_vm1, %v4566_v46  ;;  %v4810_v63 = vld [vmem:[%s5136_s9 + $0x3] ss:$0 sm:$0xff] }
 0x226   :  { %4066 = vmatprep.subr.mxu1 %v3745_v0  ;;  %4077 = vmatprep.subr.mxu0 %v3753_v1 }
 0x227   :  { %4067 = vmatpush3.msra.mxu1 %v3745_v0  ;;  %4078 = vmatpush3.msra.mxu0 %v3753_v1 }
 0x228   :  { %4068 = vmatprep.subr.mxu1 %v3744_v2  ;;  %4079 = vmatprep.subr.mxu0 %v3752_v3 }
 0x229   :  { %4069 = vmatpush3.msra.mxu1 %v3744_v2  ;;  %4080 = vmatpush3.msra.mxu0 %v3752_v3 }
 0x22a   :  { %4070 = vmatprep.subr.mxu1 %v3743_v4  ;;  %4081 = vmatprep.subr.mxu0 %v3751_v5 }
 0x22b   :  { %4071 = vmatpush3.msra.mxu1 %v3743_v4  ;;  %4082 = vmatpush3.msra.mxu0 %v3751_v5 }
 0x22c   :  { %4073 = vmatmul.mubr.msk.f32.vlgmr.msra.gmra.mxu1 %vm248_vm1, %v4568_v47  ;;  %4084 = vmatmul.mubr.msk.f32.vlgmr.msra.gmra.mxu0 %vm248_vm1, %v4568_v47 }
 0x22d   :  { %4086 = vmatprep.subr.mxu1 %v3762_v6  ;;  %4097 = vmatprep.subr.mxu0 %v3770_v7 }
 0x22e   :  { %4087 = vmatpush3.msra.mxu1 %v3762_v6  ;;  %4094 = vmatprep.mubr.msk.f32.mxu1 %vm248_vm1, %v4566_v46  ;;  %v4823_v6 = vld [vmem:[%s5136_s9 + $0x7] ss:$0 sm:$0xff] }
 0x22f   :  { %4098 = vmatpush3.msra.mxu0 %v3770_v7  ;;  %4105 = vmatprep.mubr.msk.f32.mxu0 %vm248_vm1, %v4566_v46  ;;  %v4828_v7 = vld [vmem:[%s5136_s9 + $0xb] ss:$0 sm:$0xff] }
 0x230   :  { %4088 = vmatprep.subr.mxu1 %v3761_v8  ;;  %4099 = vmatprep.subr.mxu0 %v3769_v9 }
 0x231   :  { %4089 = vmatpush3.msra.mxu1 %v3761_v8  ;;  %4100 = vmatpush3.msra.mxu0 %v3769_v9 }
 0x232   :  { %4090 = vmatprep.subr.mxu1 %v3760_v10  ;;  %4101 = vmatprep.subr.mxu0 %v3768_v11 }
 0x233   :  { %4091 = vmatpush3.msra.mxu1 %v3760_v10  ;;  %4102 = vmatpush3.msra.mxu0 %v3768_v11 }
 0x234   :  { %4092 = vmatprep.subr.mxu1 %v3759_v12  ;;  %4103 = vmatprep.subr.mxu0 %v3767_v13 }
 0x235   :  { %4093 = vmatpush3.msra.mxu1 %v3759_v12  ;;  %4104 = vmatpush3.msra.mxu0 %v3767_v13 }
 0x236   :  { %4095 = vmatmul.mubr.msk.f32.vlgmr.msra.gmra.mxu1 %vm248_vm1, %v4568_v47  ;;  %4106 = vmatmul.mubr.msk.f32.vlgmr.msra.gmra.mxu0 %vm248_vm1, %v4568_v47 }
 0x237   :  { %4108 = vmatprep.subr.mxu1 %v3778_v14  ;;  %4119 = vmatprep.subr.mxu0 %v3786_v15 }
 0x238   :  { %4109 = vmatpush3.msra.mxu1 %v3778_v14  ;;  %4116 = vmatprep.mubr.msk.f32.mxu1 %vm248_vm1, %v4566_v46  ;;  %v4841_v14 = vld [vmem:[%s5173_s29] ss:$0 sm:$0xff] }
 0x239   :  { %4120 = vmatpush3.msra.mxu0 %v3786_v15  ;;  %4127 = vmatprep.mubr.msk.f32.mxu0 %vm248_vm1, %v4566_v46 }
 0x23a   :  { %4110 = vmatprep.subr.mxu1 %v3777_v16  ;;  %4121 = vmatprep.subr.mxu0 %v3785_v17 }
 0x23b   :  { %4111 = vmatpush3.msra.mxu1 %v3777_v16  ;;  %4122 = vmatpush3.msra.mxu0 %v3785_v17 }
 0x23c   :  { %4112 = vmatprep.subr.mxu1 %v3776_v18  ;;  %4123 = vmatprep.subr.mxu0 %v3784_v19 }
 0x23d   :  { %4113 = vmatpush3.msra.mxu1 %v3776_v18  ;;  %4124 = vmatpush3.msra.mxu0 %v3784_v19 }
 0x23e   :  { %4114 = vmatprep.subr.mxu1 %v3775_v20  ;;  %4125 = vmatprep.subr.mxu0 %v3783_v21 }
 0x23f   :  { %4115 = vmatpush3.msra.mxu1 %v3775_v20  ;;  %4126 = vmatpush3.msra.mxu0 %v3783_v21 }
 0x240   :  { %4117 = vmatmul.mubr.msk.f32.vlgmr.msra.gmra.mxu1 %vm248_vm1, %v4568_v47  ;;  %4128 = vmatmul.mubr.msk.f32.vlgmr.msra.gmra.mxu0 %vm248_vm1, %v4568_v47 }
 0x241   :  { %4130 = vmatprep.subr.mxu1 %v4378_v22  ;;  %4135 = vmatprep.subr.mxu0 %v4378_v22 }
 0x242   :  { %4132 = vmatprep.mubr.msk.f32.mxu1 %vm4379_vm2, %v4378_v22  ;;  %4137 = vmatprep.mubr.msk.f32.mxu0 %vm4379_vm2, %v4378_v22 }
 0x2cf   :  { %v4008_v25 = vpop.f32.mrf.mxu1  ;;  %v4019_v26 = vpop.f32.mrf.mxu0 }
 0x2d0   :  { %v4744_v27 = vadd.f32 %v4008_v25, %v3700_v23  ;;  %v4746_v28 = vadd.f32 %v4019_v26, %v3708_v24 }
 0x2d1   :  { %v409_v29 = vpop.f32.mrf.mxu0  ;;  %v321_v30 = vpop.f32.mrf.mxu1 }
 0x2d2   :  { %v410_v31 = vadd.f32 %v3708_v24, %v409_v29  ;;  %v322_v32 = vadd.f32 %v3700_v23, %v321_v30 }
 0x2d4   :  { %4131 = vmatpush3.xpose.msk.msra.mxu1 %vm1299_vm3, %v410_v31 }
 0x2d5   :  { %4140 = vmatprep.subr.mxu1 %v4378_v22 }
 0x2d7   :  { %4133 = vmatmul.mubr.msk.f32.vlgmr.msra.gmra.mxu1 %vm1299_vm3, %v322_v32 }
 0x2d8   :  { %v4030_v35 = vpop.f32.mrf.mxu1  ;;  %v4041_v36 = vpop.f32.mrf.mxu0  ;;  %4142 = vmatprep.mubr.msk.f32.mxu1 %vm4379_vm2, %v4378_v22 }
 0x2d9   :  { %v4759_v37 = vadd.f32 %v4030_v35, %v3716_v33  ;;  %v4761_v38 = vadd.f32 %v4041_v36, %v3724_v34 }
 0x2da   :  { %v497_v39 = vpop.f32.mrf.mxu1  ;;  %v585_v41 = vpop.f32.mrf.mxu0 }
 0x2db   :  { %v498_v40 = vadd.f32 %v3716_v33, %v497_v39  ;;  %v586_v52 = vadd.f32 %v3724_v34, %v585_v41 }
 0x2dd   :  { %4136 = vmatpush3.msra.mxu0 %v498_v40 }
 0x2de   :  { %4145 = vmatprep.subr.mxu0 %v4378_v22 }
 0x2e2   :  { %v4052_v44 = vpop.f32.mrf.mxu1  ;;  %v4063_v45 = vpop.f32.mrf.mxu0 }
 0x2e3   :  { %v4772_v48 = vadd.f32 %v4052_v44, %v3732_v42  ;;  %v4775_v49 = vadd.f32 %v4063_v45, %v4770_v43 }
 0x2e4   :  { %v673_v50 = vpop.f32.mrf.mxu1  ;;  %v761_v53 = vpop.f32.mrf.mxu0 }
 0x2e5   :  { %v674_v51 = vadd.f32 %v3732_v42, %v673_v50  ;;  %v762_v42 = vadd.f32 %v4770_v43, %v761_v53  ;;  %v4867_v43 = vld [vmem:[%s5137_s10 + $0x8] sm:$0xff] }
 0x2e7   :  { %4141 = vmatpush3.xpose.msk.msra.mxu1 %vm1299_vm3, %v674_v51  ;;  %v4857_v51 = vld [vmem:[%s5137_s10] sm:$0xff] }
 0x2e8   :  { %4150 = vmatprep.subr.mxu1 %v4378_v22 }
 0x2ea   :  { %4143 = vmatmul.mubr.msk.f32.vlgmr.msra.gmra.mxu1 %vm1299_vm3, %v586_v52 }
 0x2eb   :  { %4152 = vmatprep.mubr.msk.f32.mxu1 %vm4379_vm2, %v4378_v22  ;;  %4151 = vmatpush3.msra.mxu1 %v4867_v43 }
 0x2ec   :  { %v4074_v56 = vpop.f32.mrf.mxu1  ;;  %v4085_v57 = vpop.f32.mrf.mxu0  ;;  %4160 = vmatprep.subr.mxu1 %v4378_v22 }
 0x2ed   :  { %v4793_v58 = vadd.f32 %v4074_v56, %v4782_v54  ;;  %v4796_v59 = vadd.f32 %v4085_v57, %v4787_v55 }
 0x2ee   :  { %v4798_v60 = vpop.f32.mrf.mxu1  ;;  %v4800_v61 = vpop.f32.mrf.mxu0 }
 0x2f6   :  { %v4096_v0 = vpop.f32.mrf.mxu1  ;;  %v4107_v1 = vpop.f32.mrf.mxu0 }
 0x2f7   :  { %v4813_v2 = vadd.f32 %v4096_v0, %v4805_v62  ;;  %v4816_v3 = vadd.f32 %v4107_v1, %v4810_v63  ;;  %v938_v0 = vadd.f32 %v4787_v55, %v4800_v61 }
 0x2f8   :  { %v1025_v4 = vpop.f32.mrf.mxu1  ;;  %v4818_v5 = vpop.f32.mrf.mxu0 }
 0x2f9   :  { %v1026_v53 = vadd.f32 %v4805_v62, %v1025_v4  ;;  %v850_v62 = vadd.f32 %v4782_v54, %v4798_v60 }
 0x300   :  { %v4118_v8 = vpop.f32.mrf.mxu1  ;;  %v4129_v9 = vpop.f32.mrf.mxu0 }
 0x301   :  { %v4831_v10 = vadd.f32 %v4118_v8, %v4823_v6  ;;  %v4834_v11 = vadd.f32 %v4129_v9, %v4828_v7 }
 0x302   :  { %v4836_v12 = vpop.f32.mrf.mxu1  ;;  %v1289_v52 = vpop.f32.mrf.mxu0 }
 0x397   :  { %v1372_v13 = vpop.f32.mrf.mxu1 }
 0x398   :  { %v1376_v15 = vmul.f32 0.35355338, %v1372_v13 }
 0x399   :  { %v4134_v16 = vpop.f32.mrf.mxu1 }
 0x39a   :  { %v1383_v17 = vadd.f32 %v4841_v14, %v1376_v15 }
 0x39c   :  { %v1384_v18 = vsel %vm1299_vm3, %v1383_v17, -inf }
 0x39d   :  { %1385 = vmax.xlane.f32.xlu0 %v1384_v18 }
 0x3aa   :  { %v1541_v19 = vpop.f32.mrf.mxu1 }
 0x3ab   :  { %v1545_v20 = vmul.f32 0.35355338, %v1541_v19 }
 0x3ac   :  { %v4144_v21 = vpop.f32.mrf.mxu1 }
 0x3ad   :  { %v1546_v23 = vadd.f32 %v4841_v14, %v1545_v20 }
 0x3af   :  { %v1547_v24 = vsel %vm1299_vm3, %v1546_v23, -inf }
 0x3b0   :  { %1548 = vmax.xlane.f32.xlu1 %v1547_v24  ;;  %v4894_v24 = vld [vmem:[%s5137_s10 + $0x10] sm:$0xff] }
 0x426   :  { %v1386_v25 = vpop.xlane.xlu0 %1385 }
 0x427   :  { %v1387_v26 = vsub.f32 %v1383_v17, %v1386_v25 }
 0x429   :  { %v1388_v29 = vmul.f32 1.442695, %v1387_v26 }
 0x42b   :  { %4298 = vpow2.f32 %v1388_v29 }
 0x438   :  { %v4299_v30 = vpop.eup %4298 }
 0x439   :  { %v1549_v31 = vpop.xlane.xlu1 %1548  ;;  %v1390_v32 = vsel %vm1299_vm3, %v4299_v30, 0.0 }
 0x43a   :  { %v1550_v33 = vsub.f32 %v1546_v23, %v1549_v31  ;;  %1391 = vadd.xlane.f32.xlu0 %v1390_v32  ;;  %v1114_v31 = vadd.f32 %v4810_v63, %v4818_v5  ;;  %v1290_v32 = vadd.f32 %v4828_v7, %v1289_v52 }
 0x43c   :  { %v1551_v34 = vmul.f32 1.442695, %v1550_v33 }
 0x43e   :  { %4300 = vpow2.f32 %v1551_v34 }
 0x44b   :  { %v4301_v35 = vpop.eup %4300 }
 0x44c   :  { %v1553_v36 = vsel %vm1299_vm3, %v4301_v35, 0.0 }
 0x44d   :  { %1554 = vadd.xlane.f32.xlu1 %v1553_v36 }
 0x4c3   :  { %v1392_v39 = vpop.xlane.xlu0 %1391 }
 0x4c4   :  { %4302 = vrcp.f32 %v1392_v39 }
 0x4d1   :  { %v4303_v40 = vpop.eup %4302 }
 0x4d2   :  { %v1394_v41 = vmul.f32 %v4303_v40, %v4299_v30  ;;  %v1202_v30 = vadd.f32 %v4823_v6, %v4836_v12 }
 0x4d4   :  { %4138 = vmatmul.mubr.msk.f32.vlgmr.msra.gmra.mxu0 %vm1299_vm3, %v1394_v41 }
 0x4d5   :  { %4146 = vmatpush3.msra.mxu0 %v762_v42  ;;  %4147 = vmatprep.mubr.msk.f32.mxu0 %vm4379_vm2, %v4378_v22 }
 0x4d6   :  { %v1555_v44 = vpop.xlane.xlu1 %1554  ;;  %4155 = vmatprep.subr.mxu0 %v4378_v22 }
 0x4d7   :  { %4304 = vrcp.f32 %v1555_v44 }
 0x4e4   :  { %v4305_v45 = vpop.eup %4304 }
 0x4e5   :  { %v1557_v50 = vmul.f32 %v4305_v45, %v4301_v35 }
 0x4e7   :  { %4148 = vmatmul.mubr.msk.f32.vlgmr.msra.gmra.mxu0 %vm1299_vm3, %v1557_v50  ;;  %v4921_v50 = vld [vmem:[%s5137_s10 + $0x18] sm:$0xff] }
 0x4e8   :  { %4156 = vmatpush3.msra.mxu0 %v4857_v51  ;;  %4157 = vmatprep.mubr.msk.f32.mxu0 %vm4379_vm2, %v4378_v22 }
 0x4e9   :  { %4165 = vmatprep.subr.mxu0 %v4378_v22 }
 0x594   :  { %v1464_v56 = vpop.f32.mrf.mxu0 }
 0x595   :  { %4158 = vmatmul.mubr.msk.f32.vlgmr.msra.gmra.mxu0 %vm1299_vm3, %v1464_v56 }
 0x596   :  { %4166 = vmatpush3.msra.mxu0 %v1026_v53  ;;  %v4139_v57 = vpop.f32.mrf.mxu0  ;;  %4167 = vmatprep.mubr.msk.f32.mxu0 %vm4379_vm2, %v4378_v22 }
 0x597   :  { %4175 = vmatprep.subr.mxu0 %v4378_v22 }
 0x5a7   :  { %v1627_v1 = vpop.f32.mrf.mxu0 }
 0x5a8   :  { %4153 = vmatmul.mubr.msk.f32.vlgmr.msra.gmra.mxu1 %vm1299_vm3, %v1627_v1 }
 0x5a9   :  { %4161 = vmatpush3.xpose.msk.msra.mxu1 %vm1299_vm3, %v938_v0  ;;  %v4149_v8 = vpop.f32.mrf.mxu0  ;;  %4162 = vmatprep.mubr.msk.f32.mxu1 %vm4379_vm2, %v4378_v22 }
 0x5aa   :  { %4170 = vmatprep.subr.mxu1 %v4378_v22 }
 0x5ac   :  { %4163 = vmatmul.mubr.msk.f32.vlgmr.msra.gmra.mxu1 %vm1299_vm3, %v850_v62 }
 0x5ad   :  { %4172 = vmatprep.mubr.msk.f32.mxu1 %vm4379_vm2, %v4378_v22  ;;  %4171 = vmatpush3.msra.mxu1 %v4894_v24 }
 0x5ae   :  { %4180 = vmatprep.subr.mxu1 %v4378_v22 }
 0x655   :  { %v1775_v55 = vpop.f32.mrf.mxu0 }
 0x657   :  { %v4159_v61 = vpop.f32.mrf.mxu0 }
 0x668   :  { %v1702_v4 = vpop.f32.mrf.mxu1 }
 0x669   :  { %v1776_v9 = vadd.f32 %v1775_v55, %v1702_v4 }
 0x66a   :  { %v4154_v13 = vpop.f32.mrf.mxu1 }
 0x66c   :  { %v1851_v15 = vpop.f32.mrf.mxu1 }
 0x66d   :  { %v1855_v16 = vmul.f32 0.35355338, %v1851_v15 }
 0x66e   :  { %v4164_v17 = vpop.f32.mrf.mxu1 }
 0x66f   :  { %v1856_v18 = vadd.f32 %v4841_v14, %v1855_v16 }
 0x671   :  { %v1857_v19 = vsel %vm1299_vm3, %v1856_v18, -inf }
 0x672   :  { %1858 = vmax.xlane.f32.xlu0 %v1857_v19 }
 0x6fb   :  { %v1859_v54 = vpop.xlane.xlu0 %1858 }
 0x6fc   :  { %v1860_v60 = vsub.f32 %v1856_v18, %v1859_v54 }
 0x6fe   :  { %v1861_v20 = vmul.f32 1.442695, %v1860_v60 }
 0x700   :  { %4306 = vpow2.f32 %v1861_v20 }
 0x70d   :  { %v4307_v21 = vpop.eup %4306 }
 0x70e   :  { %v1863_v23 = vsel %vm1299_vm3, %v4307_v21, 0.0 }
 0x70f   :  { %1864 = vadd.xlane.f32.xlu1 %v1863_v23 }
 0x798   :  { %v1865_v25 = vpop.xlane.xlu1 %1864 }
 0x799   :  { %4308 = vrcp.f32 %v1865_v25 }
 0x7a6   :  { %v4309_v26 = vpop.eup %4308 }
 0x7a7   :  { %v1867_v29 = vmul.f32 %v4309_v26, %v4307_v21 }
 0x7a9   :  { %4168 = vmatmul.mubr.msk.f32.vlgmr.msra.gmra.mxu0 %vm1299_vm3, %v1867_v29 }
 0x7aa   :  { %4176 = vmatpush3.xpose.msk.msra.mxu0 %vm1299_vm3, %v1202_v30  ;;  %4177 = vmatprep.mubr.msk.f32.mxu0 %vm4379_vm2, %v4378_v22 }
 0x7ab   :  { %4185 = vmatprep.subr.mxu0 %v4378_v22 }
 0x7ad   :  { %4178 = vmatmul.mubr.msk.f32.vlgmr.msra.gmra.mxu0 %vm1299_vm3, %v1114_v31 }
 0x7ae   :  { %4187 = vmatprep.mubr.msk.f32.mxu0 %vm4379_vm2, %v4378_v22  ;;  %4186 = vmatpush3.msra.mxu0 %v4921_v50 }
 0x7af   :  { %4195 = vmatprep.subr.mxu0 %v4378_v22 }
 0x869   :  { %v1937_v6 = vpop.f32.mrf.mxu0 }
 0x86a   :  { %4173 = vmatmul.mubr.msk.f32.vlgmr.msra.gmra.mxu1 %vm1299_vm3, %v1937_v6 }
 0x86b   :  { %4181 = vmatpush3.msra.mxu1 %v1290_v32  ;;  %v4169_v12 = vpop.f32.mrf.mxu0  ;;  %4182 = vmatprep.mubr.msk.f32.mxu1 %vm4379_vm2, %v4378_v22 }
 0x86c   :  { %4190 = vmatprep.subr.mxu1 %v4378_v22 }
 0x86d   :  { %v2089_v63 = vpop.f32.mrf.mxu0 }
 0x86e   :  { %v2093_v5 = vmul.f32 0.35355338, %v2089_v63 }
 0x86f   :  { %v4179_v33 = vpop.f32.mrf.mxu0 }
 0x870   :  { %v2094_v34 = vadd.f32 %v4841_v14, %v2093_v5 }
 0x872   :  { %v2095_v35 = vsel %vm1299_vm3, %v2094_v34, -inf }
 0x873   :  { %2096 = vmax.xlane.f32.xlu0 %v2095_v35 }
 0x8fc   :  { %v2097_v36 = vpop.xlane.xlu0 %2096 }
 0x8fd   :  { %v2098_v7 = vsub.f32 %v2094_v34, %v2097_v36 }
 0x8ff   :  { %v2099_v39 = vmul.f32 1.442695, %v2098_v7 }
 0x901   :  { %4310 = vpow2.f32 %v2099_v39 }
 0x90e   :  { %v4311_v40 = vpop.eup %4310 }
 0x90f   :  { %v2101_v41 = vsel %vm1299_vm3, %v4311_v40, 0.0 }
 0x910   :  { %2102 = vadd.xlane.f32.xlu1 %v2101_v41 }
 0x92a   :  { %v2012_v42 = vpop.f32.mrf.mxu1 }
 0x92b   :  { %v2016_v44 = vadd.f32 %v2012_v42, %v1776_v9 }
 0x92c   :  { %v4174_v45 = vpop.f32.mrf.mxu1 }
 0x999   :  { %v2103_v14 = vpop.xlane.xlu1 %2102 }
 0x99a   :  { %4312 = vrcp.f32 %v2103_v14 }
 0x9a7   :  { %v4313_v52 = vpop.eup %4312 }
 0x9a8   :  { %v2105_v53 = vmul.f32 %v4313_v52, %v4311_v40 }
 0x9aa   :  { %4183 = vmatmul.mubr.msk.f32.vlgmr.msra.gmra.mxu1 %vm1299_vm3, %v2105_v53 }
 0x9ab   :  { %4191 = vmatpush3.xpose.msk.msra.mxu1 %vm1299_vm3, %v4746_v28  ;;  %4192 = vmatprep.mubr.msk.f32.mxu1 %vm4379_vm2, %v4378_v22 }
 0x9ac   :  { %4200 = vmatprep.subr.mxu1 %v4378_v22 }
 0x9ae   :  { %4193 = vmatmul.mubr.msk.f32.vlgmr.msra.gmra.mxu1 %vm1299_vm3, %v4744_v27 }
 0x9af   :  { %4201 = vmatpush3.xpose.msk.msra.mxu1 %vm1299_vm3, %v4772_v48  ;;  %4202 = vmatprep.mubr.msk.f32.mxu1 %vm4379_vm2, %v4378_v22 }
 0x9b0   :  { %4210 = vmatprep.subr.mxu1 %v4378_v22 }
 0x9b2   :  { %4203 = vmatmul.mubr.msk.f32.vlgmr.msra.gmra.mxu1 %vm1299_vm3, %v4761_v38  ;;  %v4952_v38 = vld [vmem:[%s5173_s29 + $0x1] ss:$0 sm:$0xff] }
 0x9b3   :  { %4211 = vmatpush3.msra.mxu1 %v4867_v43  ;;  %4212 = vmatprep.mubr.msk.f32.mxu1 %vm4379_vm2, %v4378_v22 }
 0x9b4   :  { %4220 = vmatprep.subr.mxu1 %v4378_v22 }
 0xa6a   :  { %v2175_v28 = vpop.f32.mrf.mxu1 }
 0xa6b   :  { %4188 = vmatmul.mubr.msk.f32.vlgmr.msra.gmra.mxu0 %vm1299_vm3, %v2175_v28 }
 0xa6c   :  { %4196 = vmatpush3.msra.mxu0 %v4759_v37  ;;  %v4184_v27 = vpop.f32.mrf.mxu1  ;;  %4197 = vmatprep.mubr.msk.f32.mxu0 %vm4379_vm2, %v4378_v22 }
 0xa6d   :  { %4205 = vmatprep.subr.mxu0 %v4378_v22 }
 0xa6e   :  { %v2329_v48 = vpop.f32.mrf.mxu1 }
 0xa6f   :  { %v2333_v43 = vmul.f32 0.35355338, %v2329_v48 }
 0xa70   :  { %v4194_v56 = vpop.f32.mrf.mxu1 }
 0xa71   :  { %v2340_v57 = vadd.f32 %v4952_v38, %v2333_v43 }
 0xa72   :  { %v2497_v0 = vpop.f32.mrf.mxu1 }
 0xa73   :  { %v2501_v1 = vmul.f32 0.35355338, %v2497_v0  ;;  %v2341_v37 = vsel %vm1299_vm3, %v2340_v57, -inf }
 0xa74   :  { %2342 = vmax.xlane.f32.xlu0 %v2341_v37  ;;  %v4204_v8 = vpop.f32.mrf.mxu1 }
 0xa75   :  { %v2502_v62 = vadd.f32 %v4952_v38, %v2501_v1 }
 0xa77   :  { %v2503_v55 = vsel %vm1299_vm3, %v2502_v62, -inf }
 0xa78   :  { %2504 = vmax.xlane.f32.xlu1 %v2503_v55 }
 0xafd   :  { %v2343_v61 = vpop.xlane.xlu0 %2342 }
 0xafe   :  { %v2344_v4 = vsub.f32 %v2340_v57, %v2343_v61 }
 0xb00   :  { %v2345_v9 = vmul.f32 1.442695, %v2344_v4 }
 0xb01   :  { %v2505_v13 = vpop.xlane.xlu1 %2504 }
 0xb02   :  { %4314 = vpow2.f32 %v2345_v9  ;;  %v2506_v15 = vsub.f32 %v2502_v62, %v2505_v13 }
 0xb04   :  { %v2507_v16 = vmul.f32 1.442695, %v2506_v15 }
 0xb06   :  { %4316 = vpow2.f32 %v2507_v16 }
 0xb0f   :  { %v4315_v17 = vpop.eup %4314 }
 0xb10   :  { %v2347_v18 = vsel %vm1299_vm3, %v4315_v17, 0.0 }
 0xb11   :  { %2348 = vadd.xlane.f32.xlu0 %v2347_v18  ;;  %v3830_v18 = vld [vmem:[%s5139_s12] ss:$0 sm:$0xff] }
 0xb13   :  { %v4317_v19 = vpop.eup %4316 }
 0xb14   :  { %v2509_v54 = vsel %vm1299_vm3, %v4317_v19, 0.0 }
 0xb15   :  { %2510 = vadd.xlane.f32.xlu1 %v2509_v54  ;;  %v3831_v54 = vld [vmem:[%s5140_s13] ss:$0 sm:$0xff] }
 0xb2b   :  { %v2250_v60 = vpop.f32.mrf.mxu0 }
 0xb2c   :  { %v4960_v20 = vadd.f32 %v2250_v60, %v2016_v44 }
 0xb2d   :  { %v4189_v21 = vpop.f32.mrf.mxu0 }
 0xb9a   :  { %v2349_v23 = vpop.xlane.xlu0 %2348 }
 0xb9b   :  { %4318 = vrcp.f32 %v2349_v23 }
 0xb9e   :  { %v2511_v25 = vpop.xlane.xlu1 %2510 }
 0xb9f   :  { %4320 = vrcp.f32 %v2511_v25 }
 0xba8   :  { %v4319_v26 = vpop.eup %4318 }
 0xba9   :  { %v2351_v29 = vmul.f32 %v4319_v26, %v4315_v17 }
 0xbab   :  { %4198 = vmatmul.mubr.msk.f32.vlgmr.msra.gmra.mxu0 %vm1299_vm3, %v2351_v29 }
 0xbac   :  { %v4321_v30 = vpop.eup %4320  ;;  %4206 = vmatpush3.msra.mxu0 %v4775_v49  ;;  %4207 = vmatprep.mubr.msk.f32.mxu0 %vm4379_vm2, %v4378_v22 }
 0xbad   :  { %v2513_v31 = vmul.f32 %v4321_v30, %v4317_v19  ;;  %4215 = vmatprep.subr.mxu0 %v4378_v22 }
 0xbaf   :  { %4208 = vmatmul.mubr.msk.f32.vlgmr.msra.gmra.mxu0 %vm1299_vm3, %v2513_v31 }
 0xbb0   :  { %4216 = vmatpush3.msra.mxu0 %v4857_v51  ;;  %4217 = vmatprep.mubr.msk.f32.mxu0 %vm4379_vm2, %v4378_v22 }
 0xbb1   :  { %4225 = vmatprep.subr.mxu0 %v4378_v22 }
 0xc6b   :  { %v2421_v32 = vpop.f32.mrf.mxu0 }
 0xc6c   :  { %4218 = vmatmul.mubr.msk.f32.vlgmr.msra.gmra.mxu0 %vm1299_vm3, %v2421_v32 }
 0xc6d   :  { %4226 = vmatpush3.msra.mxu0 %v4813_v2  ;;  %v4199_v49 = vpop.f32.mrf.mxu0  ;;  %4227 = vmatprep.mubr.msk.f32.mxu0 %vm4379_vm2, %v4378_v22 }
 0xc6e   :  { %4235 = vmatprep.subr.mxu0 %v4378_v22 }
 0xc6f   :  { %v2583_v6 = vpop.f32.mrf.mxu0 }
 0xc70   :  { %4213 = vmatmul.mubr.msk.f32.vlgmr.msra.gmra.mxu1 %vm1299_vm3, %v2583_v6 }
 0xc71   :  { %4221 = vmatpush3.xpose.msk.msra.mxu1 %vm1299_vm3, %v4796_v59  ;;  %v4209_v51 = vpop.f32.mrf.mxu0  ;;  %4222 = vmatprep.mubr.msk.f32.mxu1 %vm4379_vm2, %v4378_v22 }
 0xc72   :  { %4230 = vmatprep.subr.mxu1 %v4378_v22 }
 0xc74   :  { %4223 = vmatmul.mubr.msk.f32.vlgmr.msra.gmra.mxu1 %vm1299_vm3, %v4793_v58 }
 0xc75   :  { %4231 = vmatpush3.msra.mxu1 %v4894_v24  ;;  %4232 = vmatprep.mubr.msk.f32.mxu1 %vm4379_vm2, %v4378_v22 }
 0xc76   :  { %4240 = vmatprep.subr.mxu1 %v4378_v22 }
 0xd2c   :  { %v2729_v2 = vpop.f32.mrf.mxu0 }
 0xd2e   :  { %v4219_v12 = vpop.f32.mrf.mxu0 }
 0xd30   :  { %v2656_v63 = vpop.f32.mrf.mxu1 }
 0xd31   :  { %v2730_v59 = vadd.f32 %v2729_v2, %v2656_v63 }
 0xd32   :  { %v4214_v5 = vpop.f32.mrf.mxu1 }
 0xd33   :  { %v224_v5 = vld [vmem:[%s5141_s14 + $0x18] sm:$0xff] }
 0xd34   :  { %v2805_v33 = vpop.f32.mrf.mxu1 }
 0xd35   :  { %v2809_v34 = vmul.f32 0.35355338, %v2805_v33  ;;  %v223_v33 = vld [vmem:[%s5141_s14 + $0x10] sm:$0xff] }
 0xd36   :  { %v4224_v35 = vpop.f32.mrf.mxu1 }
 0xd37   :  { %v2810_v36 = vadd.f32 %v4952_v38, %v2809_v34  ;;  %v221_v34 = vld [vmem:[%s5141_s14] sm:$0xff] }
 0xd39   :  { %v2811_v7 = vsel %vm1299_vm3, %v2810_v36, -inf }
 0xd3a   :  { %2812 = vmax.xlane.f32.xlu0 %v2811_v7 }
 0xdc3   :  { %v2813_v58 = vpop.xlane.xlu0 %2812 }
 0xdc4   :  { %v2814_v24 = vsub.f32 %v2810_v36, %v2813_v58 }
 0xdc6   :  { %v2815_v39 = vmul.f32 1.442695, %v2814_v24 }
 0xdc8   :  { %4322 = vpow2.f32 %v2815_v39 }
 0xdd5   :  { %v4323_v40 = vpop.eup %4322 }
 0xdd6   :  { %v2817_v41 = vsel %vm1299_vm3, %v4323_v40, 0.0 }
 0xdd7   :  { %2818 = vadd.xlane.f32.xlu1 %v2817_v41  ;;  %v233_v41 = vld [vmem:[%s5143_s16 + $0x38] sm:$0xff] }
 0xe60   :  { %v2819_v42 = vpop.xlane.xlu1 %2818 }
 0xe61   :  { %4324 = vrcp.f32 %v2819_v42  ;;  %v232_v42 = vld [vmem:[%s5143_s16 + $0x30] sm:$0xff] }
 0xe6e   :  { %v4325_v44 = vpop.eup %4324 }
 0xe6f   :  { %v2821_v45 = vmul.f32 %v4325_v44, %v4323_v40  ;;  %v231_v44 = vld [vmem:[%s5143_s16 + $0x28] sm:$0xff] }
 0xe71   :  { %4228 = vmatmul.mubr.msk.f32.vlgmr.msra.gmra.mxu0 %vm1299_vm3, %v2821_v45  ;;  %v230_v45 = vld [vmem:[%s5143_s16 + $0x20] sm:$0xff] }
 0xe72   :  { %4236 = vmatpush3.xpose.msk.msra.mxu0 %vm1299_vm3, %v4831_v10  ;;  %4237 = vmatprep.mubr.msk.f32.mxu0 %vm4379_vm2, %v4378_v22  ;;  %v3829_v10 = vld [vmem:[%s5138_s11] ss:$0 sm:$0xff] }
 0xe73   :  { %4245 = vmatprep.subr.mxu0 %v4378_v22 }
 0xe75   :  { %4238 = vmatmul.mubr.msk.f32.vlgmr.msra.gmra.mxu0 %vm1299_vm3, %v4816_v3  ;;  %v3211_v3 = vadd.f32 %v3829_v10, %v4960_v20 }
 0xe76   :  { %4246 = vmatpush3.msra.mxu0 %v4921_v50  ;;  %4247 = vmatprep.mubr.msk.f32.mxu0 %vm4379_vm2, %v4378_v22 }
 0xe77   :  { %v3213_v43 = vadd.f32 %v3211_v3, %v4566_v46  ;;  %4261 = vmatprep.subr.mxu0 %v233_v41  ;;  %v3832_v3 = vld [vmem:[%s5142_s15] ss:$0 sm:$0xff]  ;;  %s4356_s15 = scalar_lea.vmem %s3688_s2, 16 }
 0xe78   :  { %p4357_p0 = scmp.ne.s32.totalorder %s3688_s2, %s4356_s15 }
 0xe79   :  { %v3215_v56 = vsel %vm248_vm1, %v3213_v43, 0.0 }
 0xf31   :  { %v2891_v14 = vpop.f32.mrf.mxu0 }
 0xf32   :  { %4233 = vmatmul.mubr.msk.f32.vlgmr.msra.gmra.mxu1 %vm1299_vm3, %v2891_v14  ;;  %v229_v14 = vld [vmem:[%s5143_s16 + $0x18] sm:$0xff] }
 0xf33   :  { %4241 = vmatpush3.msra.mxu1 %v4834_v11  ;;  %v4229_v52 = vpop.f32.mrf.mxu0  ;;  %4242 = vmatprep.mubr.msk.f32.mxu1 %vm4379_vm2, %v4378_v22 }
 0xf34   :  { %4250 = vmatprep.subr.mxu1 %v224_v5  ;;  %v227_v52 = vld [vmem:[%s5143_s16 + $0x8] sm:$0xff] }
 0xf35   :  { %v3041_v53 = vpop.f32.mrf.mxu0 }
 0xf36   :  { %v3045_v50 = vmul.f32 0.35355338, %v3041_v53  ;;  %v226_v53 = vld [vmem:[%s5143_s16] sm:$0xff] }
 0xf37   :  { %v4239_v28 = vpop.f32.mrf.mxu0 }
 0xf38   :  { %v3046_v27 = vadd.f32 %v4952_v38, %v3045_v50 }
 0xf3a   :  { %v3047_v48 = vsel %vm1299_vm3, %v3046_v27, -inf }
 0xf3b   :  { %3048 = vmax.xlane.f32.xlu0 %v3047_v48 }
 0xf3f   :  { %3216 = vadd.xlane.f32.xlu0 %v3215_v56 }
 0xfc4   :  { %v3049_v11 = vpop.xlane.xlu0 %3048 }
 0xfc5   :  { %v3050_v57 = vsub.f32 %v3046_v27, %v3049_v11 }
 0xfc7   :  { %v3051_v0 = vmul.f32 1.442695, %v3050_v57 }
 0xfc8   :  { %v3217_v1 = vpop.xlane.xlu0 %3216 }
 0xfc9   :  { %4326 = vpow2.f32 %v3051_v0  ;;  %v3222_v22 = vmul.f32 0.03125, %v3217_v1 }
 0xfcb   :  { %v3224_v37 = vsub.f32 %v3213_v43, %v3222_v22 }
 0xfcd   :  { %v3226_v8 = vmul.f32 %v3224_v37, %v3224_v37 }
 0xfcf   :  { %v3228_v62 = vsel %vm248_vm1, %v3226_v8, 0.0 }
 0xfd0   :  { %3229 = vadd.xlane.f32.xlu0 %v3228_v62 }
 0xfd6   :  { %v4327_v38 = vpop.eup %4326 }
 0xfd7   :  { %v3053_v55 = vsel %vm1299_vm3, %v4327_v38, 0.0 }
 0xfd8   :  { %3054 = vadd.xlane.f32.xlu1 %v3053_v55 }
 0xff2   :  { %v2964_v46 = vpop.f32.mrf.mxu1 }
 0xff3   :  { %v2968_v61 = vadd.f32 %v2964_v46, %v2730_v59 }
 0xff4   :  { %v4234_v4 = vpop.f32.mrf.mxu1 }
0x1059   :  { %v3230_v9 = vpop.xlane.xlu0 %3229 }
0x105a   :  { %v3234_v13 = vmul.f32 0.03125, %v3230_v9 }
0x105c   :  { %v3236_v15 = vadd.f32 1e-12, %v3234_v13 }
0x105e   :  { %4328 = vrsqrt.f32 %v3236_v15 }
0x1061   :  { %v3055_v16 = vpop.xlane.xlu1 %3054 }
0x1062   :  { %4330 = vrcp.f32 %v3055_v16  ;;  %v3835_v16 = vld [vmem:[%s5144_s17] ss:$0 sm:$0xff] }
0x106b   :  { %v4329_v17 = vpop.eup %4328 }
0x106c   :  { %v3240_v19 = vmul.f32 %v4329_v17, %v3224_v37 }
0x106e   :  { %v3248_v60 = vmul.f32 %v3830_v18, %v3240_v19 }
0x106f   :  { %v4331_v20 = vpop.eup %4330 }
0x1070   :  { %v3057_v21 = vmul.f32 %v4331_v20, %v4327_v38  ;;  %v5023_v23 = vadd.f32 %v3831_v54, %v3248_v60 }
0x1072   :  { %4243 = vmatmul.mubr.msk.f32.vlgmr.msra.gmra.mxu1 %vm1299_vm3, %v3057_v21 }
0x1073   :  { %4258 = vmatprep.mubr.msk.f32.mxu1 %vm248_vm1, %v5023_v23  ;;  %4251 = vmatpush3.msra.mxu1 %v224_v5  ;;  %v3495_v5 = vld [vmem:[%s5147_s20] sm:$0xff] }
0x1074   :  { %4252 = vmatprep.subr.mxu1 %v223_v33 }
0x1075   :  { %4253 = vmatpush3.msra.mxu1 %v223_v33 }
0x1132   :  { %v3127_v25 = vpop.f32.mrf.mxu1 }
0x1133   :  { %4248 = vmatmul.mubr.msk.f32.vlgmr.msra.gmra.mxu0 %vm1299_vm3, %v3127_v25 }
0x1134   :  { %v4244_v26 = vpop.f32.mrf.mxu1  ;;  %4262 = vmatpush3.msra.mxu0 %v233_v41 }
0x1135   :  { %4263 = vmatprep.subr.mxu0 %v232_v42 }
0x1136   :  { %4264 = vmatpush3.msra.mxu0 %v232_v42 }
0x1137   :  { %4265 = vmatprep.subr.mxu0 %v231_v44 }
0x1138   :  { %4266 = vmatpush3.msra.mxu0 %v231_v44  ;;  %v3839_v44 = vld [vmem:[%s5146_s19] ss:$0 sm:$0xff] }
0x1139   :  { %4267 = vmatprep.subr.mxu0 %v230_v45 }
0x113a   :  { %4268 = vmatpush3.msra.mxu0 %v230_v45 }
0x113b   :  { %4269 = vmatprep.subr.mxu0 %v229_v14 }
0x113c   :  { %4270 = vmatpush3.msra.mxu0 %v229_v14 }
0x11f3   :  { %v3200_v29 = vpop.f32.mrf.mxu0 }
0x11f4   :  { %v3204_v30 = vadd.f32 %v3200_v29, %v2968_v61 }
0x11f5   :  { %v4249_v31 = vpop.f32.mrf.mxu0 }
0x11f6   :  { %v3212_v32 = vadd.f32 %v3829_v10, %v3204_v30  ;;  %v228_v10 = vld [vmem:[%s5143_s16 + $0x10] sm:$0xff]  ;;  %s4360_s16 = scalar_lea.vmem %s3688_s2, 32 }
0x11f7   :  { %4271 = vmatprep.subr.mxu0 %v228_v10  ;;  %p4362_p2 = scmp.lt.s32.totalorder %s4360_s16, %s4356_s15 }
0x11f8   :  { %v3214_v49 = vadd.f32 %v3212_v32, %v4568_v47  ;;  %v222_v47 = vld [vmem:[%s5141_s14 + $0x8] sm:$0xff]  ;;  %4272 = vmatpush3.msra.mxu0 %v228_v10 }
0x11f9   :  { %4254 = vmatprep.subr.mxu1 %v222_v47  ;;  %4273 = vmatprep.subr.mxu0 %v227_v52  ;;  %p4363_p3 = por %p4362_p2, %p4361_p1 }
0x11fa   :  { %v3218_v6 = vsel %vm248_vm1, %v3214_v49, 0.0  ;;  %4255 = vmatpush3.msra.mxu1 %v222_v47  ;;  %4274 = vmatpush3.msra.mxu0 %v227_v52  ;;  %v3840_v52 = vld [vmem:[%s5148_s21] ss:$0 sm:$0xff] }
0x11fb   :  { %3219 = vadd.xlane.f32.xlu1 %v3218_v6  ;;  %4256 = vmatprep.subr.mxu1 %v221_v34  ;;  %p4364_p4 = pnand %p4363_p3, %p4357_p0 }
0x11fc   :  { %4257 = vmatpush3.msra.mxu1 %v221_v34  ;;  %4275 = vmatprep.subr.mxu0 %v226_v53 }
0x11fd   :  { %4276 = vmatpush3.msra.mxu0 %v226_v53 }
0x1284   :  { %v3220_v51 = vpop.xlane.xlu1 %3219 }
0x1285   :  { %v3223_v2 = vmul.f32 0.03125, %v3220_v51 }
0x1287   :  { %v3225_v12 = vsub.f32 %v3214_v49, %v3223_v2 }
0x1289   :  { %v3227_v63 = vmul.f32 %v3225_v12, %v3225_v12 }
0x128b   :  { %v3231_v59 = vsel %vm248_vm1, %v3227_v63, 0.0  ;;  %v3497_v63 = vld [vmem:[%s5147_s20 + $0x10] sm:$0xff] }
0x128c   :  { %3232 = vadd.xlane.f32.xlu1 %v3231_v59  ;;  %v3496_v59 = vld [vmem:[%s5147_s20 + $0x8] sm:$0xff] }
0x1315   :  { %v3233_v35 = vpop.xlane.xlu1 %3232 }
0x1316   :  { %v3235_v36 = vmul.f32 0.03125, %v3233_v35 }
0x1318   :  { %v3237_v7 = vadd.f32 1e-12, %v3235_v36 }
0x131a   :  { %4332 = vrsqrt.f32 %v3237_v7 }
0x1327   :  { %v4333_v58 = vpop.eup %4332 }
0x1328   :  { %v3241_v24 = vmul.f32 %v4333_v58, %v3225_v12 }
0x132a   :  { %v3249_v39 = vmul.f32 %v3830_v18, %v3241_v24  ;;  %v3838_v24 = vld [vmem:[%s5145_s18] ss:$0 sm:$0xff] }
0x132c   :  { %v3257_v40 = vadd.f32 %v3831_v54, %v3249_v39 }
0x132e   :  { %4259 = vmatmul.mubr.msk.f32.vlgmr.msra.gmra.mxu1 %vm248_vm1, %v3257_v40 }
0x13ee   :  { %v4260_v50 = vpop.f32.mrf.mxu1 }
0x13ef   :  { %v3342_v28 = vadd.f32 %v4260_v50, %v3832_v3 }
0x13f0   :  { %v3336_v27 = vpop.f32.mrf.mxu1 }
0x13f1   :  { %v3348_v48 = vmul.f32 0.044715, %v3342_v28  ;;  %v3337_v43 = vadd.f32 %v3832_v3, %v3336_v27  ;;  %v3346_v9 = vmul.f32 0.5, %v3342_v28 }
0x13f3   :  { %v3350_v56 = vmul.f32 %v3348_v48, %v3342_v28  ;;  %v3347_v11 = vmul.f32 0.044715, %v3337_v43  ;;  %v3345_v61 = vmul.f32 0.5, %v3337_v43 }
0x13f5   :  { %v3352_v57 = vmul.f32 %v3350_v56, %v3342_v28  ;;  %v3349_v0 = vmul.f32 %v3347_v11, %v3337_v43 }
0x13f7   :  { %v3354_v1 = vadd.f32 %v3352_v57, %v3342_v28  ;;  %v3351_v22 = vmul.f32 %v3349_v0, %v3337_v43 }
0x13f9   :  { %v3356_v37 = vmul.f32 0.7978846, %v3354_v1  ;;  %v3353_v8 = vadd.f32 %v3351_v22, %v3337_v43 }
0x13fb   :  { %4334 = vtanh.f32 %v3356_v37  ;;  %v3355_v62 = vmul.f32 0.7978846, %v3353_v8 }
0x13fd   :  { %4336 = vtanh.f32 %v3355_v62 }
0x1408   :  { %v4335_v38 = vpop.eup %4334 }
0x1409   :  { %v3360_v46 = vadd.f32 1.0, %v4335_v38 }
0x140a   :  { %v4337_v55 = vpop.eup %4336 }
0x140b   :  { %v3359_v4 = vadd.f32 1.0, %v4337_v55  ;;  %v3362_v15 = vmul.f32 %v3360_v46, %v3346_v9  ;;  %v3843_v46 = vld [vmem:[%s5149_s22] ss:$0 sm:$0xff] }
0x140d   :  { %v3361_v13 = vmul.f32 %v3359_v4, %v3345_v61 }
0x140f   :  { %4277 = vmatprep.mubr.msk.f32.mxu0 %vm3369_vm4, %v3361_v13 }
0x1410   :  { %4278 = vmatmul.mubr.msk.f32.vlgmr.msra.gmra.mxu0 %vm3369_vm4, %v3362_v15 }
0x14d0   :  { %v4279_v17 = vpop.f32.mrf.mxu0 }
0x14d1   :  { %v3448_v18 = vadd.f32 %v4279_v17, %v3835_v16 }
0x14d2   :  { %v3442_v19 = vpop.f32.mrf.mxu0 }
0x14d3   :  { %v3443_v54 = vadd.f32 %v3835_v16, %v3442_v19  ;;  %v3452_v60 = vadd.f32 %v3448_v18, %v3257_v40  ;;  %v3844_v19 = vld [vmem:[#allocation2] ss:$0 sm:$0xff] }
0x14d5   :  { %v3456_v20 = vsel %vm248_vm1, %v3452_v60, 0.0  ;;  %v3451_v21 = vadd.f32 %v3443_v54, %v5023_v23  ;;  %v3498_v23 = vld [vmem:[%s5147_s20 + $0x18] sm:$0xff] }
0x14d6   :  { %3457 = vadd.xlane.f32.xlu1 %v3456_v20  ;;  %4280 = vmatprep.subr.mxu1 %v3498_v23 }
0x14d7   :  { %v3453_v25 = vsel %vm248_vm1, %v3451_v21, 0.0  ;;  %4281 = vmatpush3.msra.mxu1 %v3498_v23 }
0x14d8   :  { %3454 = vadd.xlane.f32.xlu0 %v3453_v25  ;;  %4282 = vmatprep.subr.mxu1 %v3497_v63 }
0x14d9   :  { %4283 = vmatpush3.msra.mxu1 %v3497_v63 }
0x14da   :  { %4284 = vmatprep.subr.mxu1 %v3496_v59 }
0x14db   :  { %4285 = vmatpush3.msra.mxu1 %v3496_v59 }
0x14dc   :  { %4286 = vmatprep.subr.mxu1 %v3495_v5 }
0x14dd   :  { %4287 = vmatpush3.msra.mxu1 %v3495_v5 }
0x155f   :  { %v3458_v26 = vpop.xlane.xlu1 %3457 }
0x1560   :  { %v3460_v29 = vmul.f32 0.03125, %v3458_v26 }
0x1561   :  { %v3455_v30 = vpop.xlane.xlu0 %3454 }
0x1562   :  { %v3462_v31 = vsub.f32 %v3452_v60, %v3460_v29  ;;  %v3459_v32 = vmul.f32 0.03125, %v3455_v30 }
0x1564   :  { %v3461_v49 = vsub.f32 %v3451_v21, %v3459_v32  ;;  %v3464_v6 = vmul.f32 %v3462_v31, %v3462_v31  ;;  %v3654_v32 = vld [vmem:[%s5174_s1 + $0x8] sm:$0xff] }
0x1566   :  { %v3468_v51 = vsel %vm248_vm1, %v3464_v6, 0.0  ;;  %v3463_v2 = vmul.f32 %v3461_v49, %v3461_v49 }
0x1567   :  { %3469 = vadd.xlane.f32.xlu1 %v3468_v51  ;;  %v3668_v51 = vsel %vm3657_vm5, %v3654_v32, 0.0 }
0x1568   :  { %v3465_v12 = vsel %vm248_vm1, %v3463_v2, 0.0 }
0x1569   :  { %3466 = vadd.xlane.f32.xlu0 %v3465_v12 }
0x15f0   :  { %v3470_v33 = vpop.xlane.xlu1 %3469 }
0x15f1   :  { %v3472_v47 = vmul.f32 0.03125, %v3470_v33 }
0x15f2   :  { %v3467_v34 = vpop.xlane.xlu0 %3466 }
0x15f3   :  { %v3474_v35 = vadd.f32 1e-12, %v3472_v47  ;;  %v3471_v36 = vmul.f32 0.03125, %v3467_v34 }
0x15f5   :  { %4338 = vrsqrt.f32 %v3474_v35  ;;  %v3473_v7 = vadd.f32 1e-12, %v3471_v36  ;;  %v3630_v36 = vld [vmem:[%s5175_s28 + $0x8] sm:$0xff] }
0x15f7   :  { %4340 = vrsqrt.f32 %v3473_v7 }
0x1602   :  { %v4339_v58 = vpop.eup %4338 }
0x1603   :  { %v3478_v39 = vmul.f32 %v4339_v58, %v3462_v31 }
0x1604   :  { %v4341_v40 = vpop.eup %4340 }
0x1605   :  { %v3477_v41 = vmul.f32 %v4341_v40, %v3461_v49  ;;  %v3486_v42 = vmul.f32 %v3838_v24, %v3478_v39  ;;  %v3653_v49 = vld [vmem:[%s5174_s1] sm:$0xff] }
0x1606   :  { %v3667_v2 = vsel %vm3657_vm5, %v3653_v49, 0.0 }
0x1607   :  { %v3485_v45 = vmul.f32 %v3838_v24, %v3477_v41  ;;  %v3494_v10 = vadd.f32 %v3839_v44, %v3486_v42  ;;  %v3669_v12 = vadd.f32 %v3668_v51, %v3667_v2  ;;  %v3629_v24 = vld [vmem:[%s5175_s28] sm:$0xff] }
0x1609   :  { %v3493_v14 = vadd.f32 %v3839_v44, %v3485_v45  ;;  %v3670_v23 = vrot.slane %v3669_v12, 4 }
0x160b   :  { %4288 = vmatprep.mubr.msk.f32.mxu1 %vm248_vm1, %v3493_v14  ;;  %v3671_v5 = vadd.f32 %v3670_v23, %v3669_v12 }
0x160c   :  { %4289 = vmatmul.mubr.msk.f32.vlgmr.msra.gmra.mxu1 %vm248_vm1, %v3494_v10 }
0x160d   :  { %v3672_v34 = vrot.slane %v3671_v5, 2 }
0x160f   :  { %v3673_v35 = vadd.f32 %v3672_v34, %v3671_v5 }
0x1611   :  { %v3674_v39 = vrot.slane %v3673_v35, 1 }
0x1613   :  { %v3675_v14 = vadd.f32 %v3674_v39, %v3673_v35 }
0x16cc   :  { %v4290_v53 = vpop.f32.mrf.mxu1 }
0x16cd   :  { %v3584_v3 = vadd.f32 %v4290_v53, %v3840_v52 }
0x16ce   :  { %v3578_v50 = vpop.f32.mrf.mxu1 }
0x16cf   :  { %v3590_v28 = vmul.f32 0.044715, %v3584_v3  ;;  %v3579_v27 = vadd.f32 %v3840_v52, %v3578_v50  ;;  %v3588_v62 = vmul.f32 0.5, %v3584_v3  ;;  %v3676_v50 = vmax.f32 %v3675_v14, 1.0 }
0x16d1   :  { %v3592_v48 = vmul.f32 %v3590_v28, %v3584_v3  ;;  %v3589_v43 = vmul.f32 0.044715, %v3579_v27  ;;  %v3587_v4 = vmul.f32 0.5, %v3579_v27 }
0x16d3   :  { %v3591_v56 = vmul.f32 %v3589_v43, %v3579_v27  ;;  %v3594_v11 = vmul.f32 %v3592_v48, %v3584_v3 }
0x16d5   :  { %v3596_v57 = vadd.f32 %v3594_v11, %v3584_v3  ;;  %v3593_v0 = vmul.f32 %v3591_v56, %v3579_v27 }
0x16d7   :  { %v3598_v1 = vmul.f32 0.7978846, %v3596_v57  ;;  %v3595_v22 = vadd.f32 %v3593_v0, %v3579_v27 }
0x16d9   :  { %4342 = vtanh.f32 %v3598_v1  ;;  %v3597_v37 = vmul.f32 0.7978846, %v3595_v22 }
0x16db   :  { %4344 = vtanh.f32 %v3597_v37 }
0x16e6   :  { %v4343_v8 = vpop.eup %4342 }
0x16e7   :  { %v3602_v38 = vadd.f32 1.0, %v4343_v8 }
0x16e8   :  { %v4345_v55 = vpop.eup %4344 }
0x16e9   :  { %v3604_v61 = vmul.f32 %v3602_v38, %v3588_v62  ;;  %v3601_v9 = vadd.f32 1.0, %v4345_v55 }
0x16eb   :  { %v3613_v13 = vmul.f32 %v3843_v46, %v3604_v61  ;;  %v3603_v15 = vmul.f32 %v3601_v9, %v3587_v4 }
0x16ed   :  { %v3617_v16 = vsel %vm248_vm1, %v3613_v13, 0.0  ;;  %v3612_v17 = vmul.f32 %v3843_v46, %v3603_v15 }
0x16ee   :  { %3618 = vadd.xlane.f32.xlu1 %v3617_v16 }
0x16ef   :  { %v3614_v18 = vsel %vm248_vm1, %v3612_v17, 0.0 }
0x16f0   :  { %3615 = vadd.xlane.f32.xlu0 %v3614_v18 }
0x1777   :  { %v3619_v54 = vpop.xlane.xlu1 %3618 }
0x1778   :  { %v3628_v60 = vadd.f32 %v3844_v19, %v3619_v54 }
0x1779   :  { %v3616_v20 = vpop.xlane.xlu0 %3615 }
0x177a   :  { %v3638_v21 = vand.u32 2147483647, %v3628_v60  ;;  %v3627_v25 = vadd.f32 %v3844_v19, %v3616_v20  ;;  %v3632_v7 = vmax.f32 %v3628_v60, 0.0  ;;  %v3634_v58 = vmul.f32 %v3630_v36, %v3628_v60 }
0x177c   :  { %v3640_v26 = vsub.f32 0.0, %v3638_v21  ;;  %v3637_v29 = vand.u32 2147483647, %v3627_v25  ;;  %v3631_v41 = vmax.f32 %v3627_v25, 0.0  ;;  %v3633_v42 = vmul.f32 %v3629_v24, %v3627_v25 }
0x177d   :  { %v3636_v44 = vsub.f32 %v3632_v7, %v3634_v58 }
0x177e   :  { %v3643_v30 = vmul.f32 1.442695, %v3640_v26  ;;  %v3639_v31 = vsub.f32 0.0, %v3637_v29  ;;  %v3635_v53 = vsub.f32 %v3631_v41, %v3633_v42 }
0x1780   :  { %4346 = vpow2.f32 %v3643_v30  ;;  %v3641_v6 = vmul.f32 1.442695, %v3639_v31 }
0x1782   :  { %4348 = vpow2.f32 %v3641_v6 }
0x178d   :  { %v4347_v63 = vpop.eup %4346 }
0x178e   :  { %v3646_v59 = vadd.f32 1.0, %v4347_v63 }
0x178f   :  { %v4349_v33 = vpop.eup %4348 }
0x1790   :  { %4350 = vlog2.f32 %v3646_v59  ;;  %v3645_v47 = vadd.f32 1.0, %v4349_v33 }
0x1792   :  { %4352 = vlog2.f32 %v3645_v47 }
0x1793   :  { %4354 = vrcp.f32 %v3676_v50 }
0x179d   :  { %v4351_v40 = vpop.eup %4350 }
0x179e   :  { %v3650_v45 = vmul.f32 0.6931472, %v4351_v40 }
0x179f   :  { %v4353_v10 = vpop.eup %4352 }
0x17a0   :  { %v3652_v52 = vadd.f32 %v3650_v45, %v3636_v44  ;;  %v3648_v3 = vmul.f32 0.6931472, %v4353_v10  ;;  %v4355_v8 = vpop.eup %4354 }
0x17a2   :  { %v3656_v28 = vmul.f32 %v3654_v32, %v3652_v52  ;;  %v3651_v27 = vadd.f32 %v3648_v3, %v3635_v53 }
0x17a4   :  { %v3655_v48 = vmul.f32 %v3653_v49, %v3651_v27  ;;  %v3659_v56 = vsel %vm3657_vm5, %v3656_v28, 0.0 }
0x17a6   :  { %v3658_v43 = vsel %vm3657_vm5, %v3655_v48, 0.0 }
0x17a7   :  { %v3660_v11 = vadd.f32 %v3659_v56, %v3658_v43 }
0x17a9   :  { %v3661_v57 = vrot.slane %v3660_v11, 4 }
0x17ab   :  { %v3662_v0 = vadd.f32 %v3661_v57, %v3660_v11 }
0x17ad   :  { %v3663_v1 = vrot.slane %v3662_v0, 2 }
0x17af   :  { %v3664_v22 = vadd.f32 %v3663_v1, %v3662_v0 }
0x17b1   :  { %v3665_v37 = vrot.slane %v3664_v22, 1 }
0x17b3   :  { %v3666_v62 = vadd.f32 %v3665_v37, %v3664_v22 }
0x17b5   :  { %v3678_v38 = vmul.f32 %v4355_v8, %v3666_v62 }
0x17b7   :  { %3680 = vst.msk [vmem:[#allocation3] sm:$0x1] %vm3679_vm6, %v3678_v38 }
0x17b8   :  { %4367 = shalt.err (!%p4364_p4)
}
0x17b9   :  { %3690 = dma.vmem_to_hbm [thread:$0]  %s3688_s2, 16, %s5151_s24, [#allocation4]  }
0x17ba   :  { %4376 = dma.done.wait [#allocation4], 16  }
0x17bb   :  { %4377 = vsyncadd [#allocation4], 4294967280 }
0x17bc   :  { %3694 = vsyncpa [#allocation4], 1 }

// kernel: pelectra_forward.3
= control target key start
LH: loop header
LB: loop body
LE: loop exit
PB: predicated region body
PF: predicated region fallthrough
CT: control target
= control target key end

     0   :  { %vm59_vm0 = vcmask 261120   ;;  %vm1339_vm1 = vcmask 64512   ;;  %vm1437_vm2 = vcmask 130048   ;;  %vm3801_vm3 = vcmask 523264   ;;  %s5731_s0 = inlined_call_operand.vmem [shape: f32[32,32], index: 0, kind: input, shape index: {}]   ;;  %s5732_s4 = inlined_call_operand.vmem [shape: f32[12,32,8], index: 4, kind: input, shape index: {}]   ;;  %s5733_s2 = inlined_call_operand.vmem [shape: f32[1,32], index: 2, kind: input, shape index: {}]   ;;  %s5734_s3 = inlined_call_operand.vmem [shape: f32[1,32], index: 3, kind: input, shape index: {}]   ;;  %s5735_s5 = inlined_call_operand.vmem [shape: f32[12,1,8], index: 5, kind: input, shape index: {}]   ;;  %s5736_s6 = inlined_call_operand.vmem [shape: f32[4,8,32], index: 6, kind: input, shape index: {}]   ;;  %s5737_s1 = inlined_call_operand.vmem [shape: f32[2,1,16], index: 1, kind: input, shape index: {}]   ;;  %s5738_s7 = inlined_call_operand.vmem [shape: f32[1,32], index: 7, kind: input, shape index: {}]   ;;  %s5739_s10 = inlined_call_operand.vmem [shape: f32[32,64], index: 10, kind: input, shape index: {}]   ;;  %s5740_s8 = inlined_call_operand.vmem [shape: f32[1,32], index: 8, kind: input, shape index: {}]   ;;  %s5741_s9 = inlined_call_operand.vmem [shape: f32[1,32], index: 9, kind: input, shape index: {}]   ;;  %s5742_s12 = inlined_call_operand.vmem [shape: f32[64,32], index: 12, kind: input, shape index: {}]   ;;  %s5743_s11 = inlined_call_operand.vmem [shape: f32[1,64], index: 11, kind: input, shape index: {}]   ;;  %s5744_s13 = inlined_call_operand.vmem [shape: f32[1,32], index: 13, kind: input, shape index: {}]   ;;  %s5745_s14 = inlined_call_operand.vmem [shape: f32[1,32], index: 14, kind: input, shape index: {}]   ;;  %s5746_s15 = inlined_call_operand.vmem [shape: f32[1,32], index: 15, kind: input, shape index: {}]   ;;  %s5747_s16 = inlined_call_operand.vmem [shape: f32[32,32], index: 16, kind: output, shape index: {}]  }
   0x1   :  { %5750 = sst [smem:[#allocation3_spill]] %s5731_s0  ;;  %v155_v28 = vld [vmem:[%s5732_s4 + $0x18] sm:$0xff]  ;;  %v154_v30 = vld [vmem:[%s5732_s4 + $0x10] sm:$0xff]  ;;  %v153_v32 = vld [vmem:[%s5732_s4 + $0x8] sm:$0xff] }
   0x2   :  { %s5751_s23 = sld [smem:[#allocation3_spill]]  ;;  %v3993_v29 = vld [vmem:[%s5732_s4 + $0x98] sm:$0xff]  ;;  %4389 = vmatprep.subr.mxu0 %v155_v28  ;;  %v3992_v31 = vld [vmem:[%s5732_s4 + $0x90] sm:$0xff]  ;;  %v3991_v33 = vld [vmem:[%s5732_s4 + $0x88] sm:$0xff] }
   0x3   :  { %4403 = vmatprep.subr.mxu1 %v3993_v29  ;;  %4390 = vmatpush3.msra.mxu0 %v155_v28  ;;  %v152_v34 = vld [vmem:[%s5732_s4] sm:$0xff]  ;;  %v4003_v36 = vld [vmem:[%s5732_s4 + $0x118] sm:$0xff]  ;;  %v4062_v28 = vld [vmem:[%s5732_s4 + $0x150] sm:$0xff] }
   0x4   :  { %4404 = vmatpush3.msra.mxu1 %v3993_v29  ;;  %4391 = vmatprep.subr.mxu0 %v154_v30  ;;  %v3990_v35 = vld [vmem:[%s5732_s4 + $0x80] sm:$0xff]  ;;  %v4013_v37 = vld [vmem:[%s5732_s4 + $0x38] sm:$0xff]  ;;  %v4072_v29 = vld [vmem:[%s5732_s4 + $0x70] sm:$0xff] }
   0x5   :  { %4405 = vmatprep.subr.mxu1 %v3992_v31  ;;  %4392 = vmatpush3.msra.mxu0 %v154_v30  ;;  %v3983_v51 = vld [vmem:[%s5733_s2] ss:$0 sm:$0xff]  ;;  %v4061_v30 = vld [vmem:[%s5732_s4 + $0x148] sm:$0xff] }
   0x6   :  { %4406 = vmatpush3.msra.mxu1 %v3992_v31  ;;  %4393 = vmatprep.subr.mxu0 %v153_v32  ;;  %v3984_v53 = vld [vmem:[%s5734_s3] ss:$0 sm:$0xff]  ;;  %v4071_v31 = vld [vmem:[%s5732_s4 + $0x68] sm:$0xff] }
   0x7   :  { %4407 = vmatprep.subr.mxu1 %v3991_v33  ;;  %4394 = vmatpush3.msra.mxu0 %v153_v32  ;;  %v4060_v32 = vld [vmem:[%s5732_s4 + $0x140] sm:$0xff] }
   0x8   :  { %v53_v0 = vld [vmem:[%s5751_s23] sm:$0xff]  ;;  %v55_v1 = vld [vmem:[%s5751_s23 + $0x10] sm:$0xff]  ;;  %v54_v2 = vld [vmem:[%s5751_s23 + $0x8] sm:$0xff]  ;;  %4408 = vmatpush3.msra.mxu1 %v3991_v33  ;;  %4395 = vmatprep.subr.mxu0 %v152_v34 }
   0x9   :  { %v60_v3 = vsel %vm59_vm0, %v53_v0, 0.0  ;;  %v66_v4 = vsel %vm59_vm0, %v55_v1, 0.0  ;;  %v56_v5 = vld [vmem:[%s5751_s23 + $0x18] sm:$0xff]  ;;  %v63_v6 = vsel %vm59_vm0, %v54_v2, 0.0  ;;  %4409 = vmatprep.subr.mxu1 %v3990_v35  ;;  %4396 = vmatpush3.msra.mxu0 %v152_v34  ;;  %v4070_v33 = vld [vmem:[%s5732_s4 + $0x60] sm:$0xff] }
   0xa   :  { %61 = vadd.xlane.f32.xlu0 %v60_v3  ;;  %67 = vadd.xlane.f32.xlu1 %v66_v4  ;;  %v69_v7 = vsel %vm59_vm0, %v56_v5, 0.0  ;;  %v4002_v3 = vld [vmem:[%s5732_s4 + $0x110] sm:$0xff]  ;;  %v4083_v34 = vld [vmem:[%s5732_s4 + $0xf8] sm:$0xff] }
   0xb   :  { %4410 = vmatpush3.msra.mxu1 %v3990_v35  ;;  %4417 = vmatprep.subr.mxu0 %v4003_v36  ;;  %v4012_v4 = vld [vmem:[%s5732_s4 + $0x30] sm:$0xff]  ;;  %v4093_v35 = vld [vmem:[%s5732_s4 + $0x178] sm:$0xff] }
   0xc   :  { %4431 = vmatprep.subr.mxu1 %v4013_v37 }
   0xe   :  { %64 = vadd.xlane.f32.xlu0 %v63_v6  ;;  %70 = vadd.xlane.f32.xlu1 %v69_v7  ;;  %v4001_v6 = vld [vmem:[%s5732_s4 + $0x108] sm:$0xff] }
   0xf   :  { %v4011_v7 = vld [vmem:[%s5732_s4 + $0x28] sm:$0xff] }
  0x93   :  { %v62_v8 = vpop.xlane.xlu0 %61  ;;  %v68_v9 = vpop.xlane.xlu1 %67 }
  0x94   :  { %v73_v10 = vmul.f32 0.03125, %v62_v8  ;;  %v75_v11 = vmul.f32 0.03125, %v68_v9  ;;  %v4000_v8 = vld [vmem:[%s5732_s4 + $0x100] sm:$0xff] }
  0x95   :  { %v4010_v9 = vld [vmem:[%s5732_s4 + $0x20] sm:$0xff] }
  0x96   :  { %v4942_v12 = vsub.f32 %v53_v0, %v73_v10  ;;  %v4944_v13 = vsub.f32 %v55_v1, %v75_v11  ;;  %v4023_v10 = vld [vmem:[%s5732_s4 + $0xb8] sm:$0xff] }
  0x97   :  { %v65_v14 = vpop.xlane.xlu0 %64  ;;  %v71_v15 = vpop.xlane.xlu1 %70  ;;  %v4033_v11 = vld [vmem:[%s5732_s4 + $0x138] sm:$0xff] }
  0x98   :  { %v74_v16 = vmul.f32 0.03125, %v65_v14  ;;  %v76_v17 = vmul.f32 0.03125, %v71_v15  ;;  %v81_v18 = vmul.f32 %v4942_v12, %v4942_v12  ;;  %v83_v19 = vmul.f32 %v4944_v13, %v4944_v13  ;;  %v4021_v14 = vld [vmem:[%s5732_s4 + $0xa8] sm:$0xff] }
  0x99   :  { %v4031_v15 = vld [vmem:[%s5732_s4 + $0x128] sm:$0xff] }
  0x9a   :  { %v4950_v20 = vsub.f32 %v54_v2, %v74_v16  ;;  %v4952_v21 = vsub.f32 %v56_v5, %v76_v17  ;;  %v85_v22 = vsel %vm59_vm0, %v81_v18, 0.0  ;;  %v91_v23 = vsel %vm59_vm0, %v83_v19, 0.0  ;;  %v4020_v16 = vld [vmem:[%s5732_s4 + $0xa0] sm:$0xff]  ;;  %v4043_v18 = vld [vmem:[%s5732_s4 + $0x58] sm:$0xff] }
  0x9b   :  { %86 = vadd.xlane.f32.xlu0 %v85_v22  ;;  %v4030_v17 = vld [vmem:[%s5732_s4 + $0x120] sm:$0xff]  ;;  %v4053_v19 = vld [vmem:[%s5732_s4 + $0xd8] sm:$0xff]  ;;  %v4041_v22 = vld [vmem:[%s5732_s4 + $0x48] sm:$0xff] }
  0x9c   :  { %v82_v24 = vmul.f32 %v4950_v20, %v4950_v20  ;;  %v84_v25 = vmul.f32 %v4952_v21, %v4952_v21 }
  0x9e   :  { %v88_v26 = vsel %vm59_vm0, %v82_v24, 0.0  ;;  %v94_v27 = vsel %vm59_vm0, %v84_v25, 0.0  ;;  %v4040_v24 = vld [vmem:[%s5732_s4 + $0x40] sm:$0xff] }
  0x9f   :  { %92 = vadd.xlane.f32.xlu0 %v91_v23  ;;  %89 = vadd.xlane.f32.xlu1 %v88_v26  ;;  %v4051_v23 = vld [vmem:[%s5732_s4 + $0xc8] sm:$0xff]  ;;  %v4050_v25 = vld [vmem:[%s5732_s4 + $0xc0] sm:$0xff]  ;;  %v4063_v26 = vld [vmem:[%s5732_s4 + $0x158] sm:$0xff] }
  0xa3   :  { %95 = vadd.xlane.f32.xlu1 %v94_v27  ;;  %v4073_v27 = vld [vmem:[%s5732_s4 + $0x78] sm:$0xff] }
 0x124   :  { %v87_v38 = vpop.xlane.xlu0 %86 }
 0x125   :  { %v97_v39 = vmul.f32 0.03125, %v87_v38  ;;  %v4081_v38 = vld [vmem:[%s5732_s4 + $0xe8] sm:$0xff] }
 0x127   :  { %v101_v40 = vadd.f32 1e-12, %v97_v39  ;;  %v4091_v39 = vld [vmem:[%s5732_s4 + $0x168] sm:$0xff] }
 0x128   :  { %v90_v41 = vpop.xlane.xlu1 %89  ;;  %v93_v42 = vpop.xlane.xlu0 %92 }
 0x129   :  { %4745 = vrsqrt.f32 %v101_v40  ;;  %v98_v43 = vmul.f32 0.03125, %v90_v41  ;;  %v99_v44 = vmul.f32 0.03125, %v93_v42  ;;  %v4080_v40 = vld [vmem:[%s5732_s4 + $0xe0] sm:$0xff] }
 0x12a   :  { %v4090_v41 = vld [vmem:[%s5732_s4 + $0x160] sm:$0xff] }
 0x12b   :  { %v102_v45 = vadd.f32 1e-12, %v98_v43  ;;  %v103_v46 = vadd.f32 1e-12, %v99_v44  ;;  %v3995_v42 = vld [vmem:[%s5735_s5 + $0x4] ss:$0 sm:$0xff] }
 0x12c   :  { %v96_v47 = vpop.xlane.xlu1 %95 }
 0x12d   :  { %4747 = vrsqrt.f32 %v102_v45  ;;  %v100_v48 = vmul.f32 0.03125, %v96_v47 }
 0x12e   :  { %4749 = vrsqrt.f32 %v103_v46  ;;  %v3985_v46 = vld [vmem:[%s5735_s5] ss:$0 sm:$0xff] }
 0x12f   :  { %v104_v49 = vadd.f32 1e-12, %v100_v48 }
 0x131   :  { %4751 = vrsqrt.f32 %v104_v49 }
 0x136   :  { %v4746_v50 = vpop.eup %4745 }
 0x137   :  { %v109_v52 = vmul.f32 %v4746_v50, %v4942_v12  ;;  %v4022_v12 = vld [vmem:[%s5732_s4 + $0xb0] sm:$0xff] }
 0x139   :  { %v119_v54 = vmul.f32 %v3983_v51, %v109_v52 }
 0x13a   :  { %v4748_v55 = vpop.eup %4747 }
 0x13b   :  { %v4750_v56 = vpop.eup %4749  ;;  %v4999_v57 = vadd.f32 %v3984_v53, %v119_v54  ;;  %v110_v58 = vmul.f32 %v4748_v55, %v4950_v20  ;;  %v4042_v20 = vld [vmem:[%s5732_s4 + $0x50] sm:$0xff] }
 0x13c   :  { %v111_v59 = vmul.f32 %v4750_v56, %v4944_v13  ;;  %v4032_v13 = vld [vmem:[%s5732_s4 + $0x130] sm:$0xff] }
 0x13d   :  { %v120_v60 = vmul.f32 %v3983_v51, %v110_v58  ;;  %4397 = vmatprep.mubr.msk.f32.mxu0 %vm59_vm0, %v4999_v57  ;;  %4411 = vmatprep.mubr.msk.f32.mxu1 %vm59_vm0, %v4999_v57 }
 0x13e   :  { %v4752_v61 = vpop.eup %4751  ;;  %v121_v62 = vmul.f32 %v3983_v51, %v111_v59 }
 0x13f   :  { %v5007_v63 = vadd.f32 %v3984_v53, %v120_v60  ;;  %v112_v0 = vmul.f32 %v4752_v61, %v4952_v21  ;;  %v4052_v21 = vld [vmem:[%s5732_s4 + $0xd0] sm:$0xff]  ;;  %v4005_v61 = vld [vmem:[%s5735_s5 + $0x8] ss:$0 sm:$0xff] }
 0x140   :  { %v5010_v1 = vadd.f32 %v3984_v53, %v121_v62 }
 0x141   :  { %v122_v2 = vmul.f32 %v3983_v51, %v112_v0  ;;  %4398 = vmatmul.mubr.msk.f32.vlgmr.msra.gmra.mxu0 %vm59_vm0, %v5007_v63  ;;  %4412 = vmatmul.mubr.msk.f32.vlgmr.msra.gmra.mxu1 %vm59_vm0, %v5007_v63 }
 0x142   :  { %5752 = vst [vmem:[#allocation2_spill] sm:$0xff] %v5010_v1  ;;  %4400 = vmatprep.mubr.msk.f32.mxu0 %vm59_vm0, %v5010_v1  ;;  %4414 = vmatprep.mubr.msk.f32.mxu1 %vm59_vm0, %v5010_v1 }
 0x143   :  { %v5026_v5 = vadd.f32 %v3984_v53, %v122_v2  ;;  %4418 = vmatpush3.msra.mxu0 %v4003_v36  ;;  %4432 = vmatpush3.msra.mxu1 %v4013_v37  ;;  %v4082_v36 = vld [vmem:[%s5732_s4 + $0xf0] sm:$0xff] }
 0x144   :  { %4419 = vmatprep.subr.mxu0 %v4002_v3  ;;  %4433 = vmatprep.subr.mxu1 %v4012_v4  ;;  %v4092_v37 = vld [vmem:[%s5732_s4 + $0x170] sm:$0xff] }
 0x145   :  { %4420 = vmatpush3.msra.mxu0 %v4002_v3  ;;  %4434 = vmatpush3.msra.mxu1 %v4012_v4  ;;  %v4015_v3 = vld [vmem:[%s5735_s5 + $0x1] ss:$0 sm:$0xff] }
 0x146   :  { %4401 = vmatmul.mubr.msk.f32.gmra.mxu0 %vm59_vm0, %v5026_v5  ;;  %4415 = vmatmul.mubr.msk.f32.gmra.mxu1 %vm59_vm0, %v5026_v5 }
 0x147   :  { %4421 = vmatprep.subr.mxu0 %v4001_v6  ;;  %4435 = vmatprep.subr.mxu1 %v4011_v7 }
 0x148   :  { %4422 = vmatpush3.msra.mxu0 %v4001_v6  ;;  %4425 = vmatprep.mubr.msk.f32.mxu0 %vm59_vm0, %v4999_v57 }
 0x149   :  { %4436 = vmatpush3.msra.mxu1 %v4011_v7  ;;  %4439 = vmatprep.mubr.msk.f32.mxu1 %vm59_vm0, %v4999_v57 }
 0x14a   :  { %4423 = vmatprep.subr.mxu0 %v4000_v8  ;;  %4437 = vmatprep.subr.mxu1 %v4010_v9 }
 0x14b   :  { %4424 = vmatpush3.msra.mxu0 %v4000_v8  ;;  %4438 = vmatpush3.msra.mxu1 %v4010_v9 }
 0x14c   :  { %4426 = vmatmul.mubr.msk.f32.vlgmr.msra.gmra.mxu0 %vm59_vm0, %v5007_v63  ;;  %4440 = vmatmul.mubr.msk.f32.vlgmr.msra.gmra.mxu1 %vm59_vm0, %v5007_v63 }
 0x14d   :  { %4445 = vmatprep.subr.mxu0 %v4023_v10  ;;  %4459 = vmatprep.subr.mxu1 %v4033_v11 }
 0x14e   :  { %4428 = vmatprep.mubr.msk.f32.mxu0 %vm59_vm0, %v5010_v1  ;;  %4442 = vmatprep.mubr.msk.f32.mxu1 %vm59_vm0, %v5010_v1 }
 0x14f   :  { %4446 = vmatpush3.msra.mxu0 %v4023_v10  ;;  %4460 = vmatpush3.msra.mxu1 %v4033_v11 }
 0x150   :  { %4447 = vmatprep.subr.mxu0 %v4022_v12  ;;  %4461 = vmatprep.subr.mxu1 %v4032_v13 }
 0x151   :  { %4448 = vmatpush3.msra.mxu0 %v4022_v12  ;;  %4462 = vmatpush3.msra.mxu1 %v4032_v13 }
 0x152   :  { %4429 = vmatmul.mubr.msk.f32.gmra.mxu0 %vm59_vm0, %v5026_v5  ;;  %4443 = vmatmul.mubr.msk.f32.gmra.mxu1 %vm59_vm0, %v5026_v5 }
 0x153   :  { %4449 = vmatprep.subr.mxu0 %v4021_v14  ;;  %4463 = vmatprep.subr.mxu1 %v4031_v15 }
 0x154   :  { %4450 = vmatpush3.msra.mxu0 %v4021_v14  ;;  %4453 = vmatprep.mubr.msk.f32.mxu0 %vm59_vm0, %v4999_v57 }
 0x155   :  { %4464 = vmatpush3.msra.mxu1 %v4031_v15  ;;  %4467 = vmatprep.mubr.msk.f32.mxu1 %vm59_vm0, %v4999_v57 }
 0x156   :  { %4451 = vmatprep.subr.mxu0 %v4020_v16  ;;  %4465 = vmatprep.subr.mxu1 %v4030_v17 }
 0x157   :  { %4452 = vmatpush3.msra.mxu0 %v4020_v16  ;;  %4466 = vmatpush3.msra.mxu1 %v4030_v17  ;;  %v4025_v17 = vld [vmem:[%s5735_s5 + $0x5] ss:$0 sm:$0xff] }
 0x158   :  { %4454 = vmatmul.mubr.msk.f32.vlgmr.msra.gmra.mxu0 %vm59_vm0, %v5007_v63  ;;  %4468 = vmatmul.mubr.msk.f32.vlgmr.msra.gmra.mxu1 %vm59_vm0, %v5007_v63 }
 0x159   :  { %4473 = vmatprep.subr.mxu0 %v4043_v18  ;;  %4487 = vmatprep.subr.mxu1 %v4053_v19 }
 0x15a   :  { %4456 = vmatprep.mubr.msk.f32.mxu0 %vm59_vm0, %v5010_v1  ;;  %4470 = vmatprep.mubr.msk.f32.mxu1 %vm59_vm0, %v5010_v1 }
 0x15b   :  { %4474 = vmatpush3.msra.mxu0 %v4043_v18  ;;  %4488 = vmatpush3.msra.mxu1 %v4053_v19  ;;  %v4035_v18 = vld [vmem:[%s5735_s5 + $0x9] ss:$0 sm:$0xff] }
 0x15c   :  { %4475 = vmatprep.subr.mxu0 %v4042_v20  ;;  %4489 = vmatprep.subr.mxu1 %v4052_v21 }
 0x15d   :  { %4476 = vmatpush3.msra.mxu0 %v4042_v20  ;;  %4490 = vmatpush3.msra.mxu1 %v4052_v21 }
 0x15e   :  { %4457 = vmatmul.mubr.msk.f32.gmra.mxu0 %vm59_vm0, %v5026_v5  ;;  %4471 = vmatmul.mubr.msk.f32.gmra.mxu1 %vm59_vm0, %v5026_v5 }
 0x15f   :  { %4477 = vmatprep.subr.mxu0 %v4041_v22  ;;  %4491 = vmatprep.subr.mxu1 %v4051_v23 }
 0x160   :  { %4478 = vmatpush3.msra.mxu0 %v4041_v22  ;;  %4481 = vmatprep.mubr.msk.f32.mxu0 %vm59_vm0, %v4999_v57 }
 0x161   :  { %4492 = vmatpush3.msra.mxu1 %v4051_v23  ;;  %4495 = vmatprep.mubr.msk.f32.mxu1 %vm59_vm0, %v4999_v57 }
 0x162   :  { %4479 = vmatprep.subr.mxu0 %v4040_v24  ;;  %4493 = vmatprep.subr.mxu1 %v4050_v25 }
 0x163   :  { %4480 = vmatpush3.msra.mxu0 %v4040_v24  ;;  %4494 = vmatpush3.msra.mxu1 %v4050_v25 }
 0x164   :  { %4482 = vmatmul.mubr.msk.f32.vlgmr.msra.gmra.mxu0 %vm59_vm0, %v5007_v63  ;;  %4496 = vmatmul.mubr.msk.f32.vlgmr.msra.gmra.mxu1 %vm59_vm0, %v5007_v63 }
 0x165   :  { %4501 = vmatprep.subr.mxu0 %v4063_v26  ;;  %4515 = vmatprep.subr.mxu1 %v4073_v27 }
 0x166   :  { %4484 = vmatprep.mubr.msk.f32.mxu0 %vm59_vm0, %v5010_v1  ;;  %4498 = vmatprep.mubr.msk.f32.mxu1 %vm59_vm0, %v5010_v1 }
 0x167   :  { %4502 = vmatpush3.msra.mxu0 %v4063_v26  ;;  %4516 = vmatpush3.msra.mxu1 %v4073_v27 }
 0x168   :  { %4503 = vmatprep.subr.mxu0 %v4062_v28  ;;  %4517 = vmatprep.subr.mxu1 %v4072_v29 }
 0x169   :  { %4504 = vmatpush3.msra.mxu0 %v4062_v28  ;;  %4518 = vmatpush3.msra.mxu1 %v4072_v29  ;;  %v5272_v29 = vld [vmem:[%s5736_s6] sm:$0xff] }
 0x16a   :  { %4485 = vmatmul.mubr.msk.f32.gmra.mxu0 %vm59_vm0, %v5026_v5  ;;  %4499 = vmatmul.mubr.msk.f32.gmra.mxu1 %vm59_vm0, %v5026_v5 }
 0x16b   :  { %4505 = vmatprep.subr.mxu0 %v4061_v30  ;;  %4519 = vmatprep.subr.mxu1 %v4071_v31 }
 0x16c   :  { %4506 = vmatpush3.msra.mxu0 %v4061_v30  ;;  %4509 = vmatprep.mubr.msk.f32.mxu0 %vm59_vm0, %v4999_v57 }
 0x16d   :  { %4520 = vmatpush3.msra.mxu1 %v4071_v31  ;;  %4523 = vmatprep.mubr.msk.f32.mxu1 %vm59_vm0, %v4999_v57 }
 0x16e   :  { %4507 = vmatprep.subr.mxu0 %v4060_v32  ;;  %4521 = vmatprep.subr.mxu1 %v4070_v33 }
 0x16f   :  { %4508 = vmatpush3.msra.mxu0 %v4060_v32  ;;  %4522 = vmatpush3.msra.mxu1 %v4070_v33 }
 0x170   :  { %4510 = vmatmul.mubr.msk.f32.vlgmr.msra.gmra.mxu0 %vm59_vm0, %v5007_v63  ;;  %4524 = vmatmul.mubr.msk.f32.vlgmr.msra.gmra.mxu1 %vm59_vm0, %v5007_v63 }
 0x171   :  { %4529 = vmatprep.subr.mxu0 %v4083_v34  ;;  %4543 = vmatprep.subr.mxu1 %v4093_v35 }
 0x172   :  { %4512 = vmatprep.mubr.msk.f32.mxu0 %vm59_vm0, %v5010_v1  ;;  %4526 = vmatprep.mubr.msk.f32.mxu1 %vm59_vm0, %v5010_v1 }
 0x173   :  { %4530 = vmatpush3.msra.mxu0 %v4083_v34  ;;  %4544 = vmatpush3.msra.mxu1 %v4093_v35 }
 0x174   :  { %4531 = vmatprep.subr.mxu0 %v4082_v36  ;;  %4545 = vmatprep.subr.mxu1 %v4092_v37 }
 0x175   :  { %4532 = vmatpush3.msra.mxu0 %v4082_v36  ;;  %4546 = vmatpush3.msra.mxu1 %v4092_v37  ;;  %v4045_v37 = vld [vmem:[%s5735_s5 + $0x2] ss:$0 sm:$0xff] }
 0x176   :  { %4513 = vmatmul.mubr.msk.f32.gmra.mxu0 %vm59_vm0, %v5026_v5  ;;  %4527 = vmatmul.mubr.msk.f32.gmra.mxu1 %vm59_vm0, %v5026_v5 }
 0x177   :  { %4533 = vmatprep.subr.mxu0 %v4081_v38  ;;  %4547 = vmatprep.subr.mxu1 %v4091_v39 }
 0x178   :  { %4534 = vmatpush3.msra.mxu0 %v4081_v38  ;;  %4537 = vmatprep.mubr.msk.f32.mxu0 %vm59_vm0, %v4999_v57  ;;  %v4055_v38 = vld [vmem:[%s5735_s5 + $0x6] ss:$0 sm:$0xff] }
 0x179   :  { %4548 = vmatpush3.msra.mxu1 %v4091_v39  ;;  %4551 = vmatprep.mubr.msk.f32.mxu1 %vm59_vm0, %v4999_v57 }
 0x17a   :  { %4535 = vmatprep.subr.mxu0 %v4080_v40  ;;  %4549 = vmatprep.subr.mxu1 %v4090_v41 }
 0x17b   :  { %4536 = vmatpush3.msra.mxu0 %v4080_v40  ;;  %4550 = vmatpush3.msra.mxu1 %v4090_v41 }
 0x17c   :  { %4538 = vmatmul.mubr.msk.f32.vlgmr.msra.gmra.mxu0 %vm59_vm0, %v5007_v63  ;;  %4552 = vmatmul.mubr.msk.f32.vlgmr.msra.gmra.mxu1 %vm59_vm0, %v5007_v63 }
 0x17d   :  { %4540 = vmatprep.mubr.msk.f32.mxu0 %vm59_vm0, %v5010_v1  ;;  %4554 = vmatprep.mubr.msk.f32.mxu1 %vm59_vm0, %v5010_v1 }
 0x180   :  { %4541 = vmatmul.mubr.msk.f32.gmra.mxu0 %vm59_vm0, %v5026_v5  ;;  %4555 = vmatmul.mubr.msk.f32.gmra.mxu1 %vm59_vm0, %v5026_v5 }
 0x201   :  { %v4399_v43 = vpop.f32.mrf.mxu0  ;;  %v4413_v44 = vpop.f32.mrf.mxu1 }
 0x202   :  { %v345_v45 = vadd.f32 %v4413_v44, %v3995_v42  ;;  %v247_v60 = vadd.f32 %v4399_v43, %v3985_v46 }
 0x203   :  { %v241_v47 = vpop.f32.mrf.mxu0  ;;  %v339_v48 = vpop.f32.mrf.mxu1 }
 0x204   :  { %v242_v49 = vadd.f32 %v3985_v46, %v241_v47  ;;  %v340_v50 = vadd.f32 %v3995_v42, %v339_v48  ;;  %4557 = vmatprep.subr.msk.mxu1 %vm1339_vm1, %v345_v45 }
 0x205   :  { %4558 = vmatpush3.xpose.msk.msra.mxu1 %vm1339_vm1, %v345_v45 }
 0x206   :  { %v4402_v51 = vpop.f32.mrf.mxu0  ;;  %v4416_v52 = vpop.f32.mrf.mxu1  ;;  %4559 = vmatprep.subr.msk.mxu1 %vm1339_vm1, %v340_v50  ;;  %4561 = vmatprep.mubr.msk.f32.mxu1 %vm1339_vm1, %v242_v49 }
 0x207   :  { %v5230_v53 = vadd.f32 %v4402_v51, %v3985_v46  ;;  %v5232_v54 = vadd.f32 %v4416_v52, %v3995_v42 }
 0x208   :  { %v251_v55 = vpop.f32.mrf.mxu0  ;;  %v349_v56 = vpop.f32.mrf.mxu1 }
 0x209   :  { %v5234_v58 = vadd.f32 %v3985_v46, %v251_v55  ;;  %v5236_v59 = vadd.f32 %v3995_v42, %v349_v56  ;;  %4560 = vmatpush3.xpose.msk.msra.mxu1 %vm1339_vm1, %v340_v50 }
 0x20c   :  { %v4427_v62 = vpop.f32.mrf.mxu0  ;;  %v4441_v0 = vpop.f32.mrf.mxu1  ;;  %4562 = vmatmul.mubr.msk.f32.vlgmr.msra.gmra.mxu1 %vm1339_vm1, %v247_v60  ;;  %v4065_v60 = vld [vmem:[%s5735_s5 + $0xa] ss:$0 sm:$0xff] }
 0x20d   :  { %v443_v2 = vadd.f32 %v4427_v62, %v4005_v61  ;;  %v541_v34 = vadd.f32 %v4441_v0, %v4015_v3 }
 0x20e   :  { %v437_v4 = vpop.f32.mrf.mxu0  ;;  %v535_v6 = vpop.f32.mrf.mxu1 }
 0x20f   :  { %v438_v7 = vadd.f32 %v4005_v61, %v437_v4  ;;  %v536_v8 = vadd.f32 %v4015_v3, %v535_v6  ;;  %4564 = vmatprep.subr.mxu1 %v443_v2 }
 0x210   :  { %4565 = vmatpush3.msra.mxu1 %v443_v2 }
 0x211   :  { %4566 = vmatprep.subr.mxu1 %v438_v7  ;;  %4575 = vmatprep.mubr.msk.f32.mxu0 %vm1339_vm1, %v536_v8 }
 0x212   :  { %v4430_v9 = vpop.f32.mrf.mxu0  ;;  %v4444_v10 = vpop.f32.mrf.mxu1  ;;  %4567 = vmatpush3.msra.mxu1 %v438_v7 }
 0x213   :  { %v5247_v11 = vadd.f32 %v4430_v9, %v4005_v61  ;;  %v5249_v12 = vadd.f32 %v4444_v10, %v4015_v3 }
 0x214   :  { %v447_v13 = vpop.f32.mrf.mxu0  ;;  %v545_v14 = vpop.f32.mrf.mxu1 }
 0x215   :  { %v5251_v15 = vadd.f32 %v4005_v61, %v447_v13  ;;  %v5253_v16 = vadd.f32 %v4015_v3, %v545_v14  ;;  %v4075_v61 = vld [vmem:[%s5735_s5 + $0x3] ss:$0 sm:$0xff] }
 0x218   :  { %v4455_v19 = vpop.f32.mrf.mxu0  ;;  %v4469_v20 = vpop.f32.mrf.mxu1 }
 0x219   :  { %v639_v21 = vadd.f32 %v4455_v19, %v4025_v17  ;;  %v5261_v22 = vadd.f32 %v4469_v20, %v4035_v18 }
 0x21a   :  { %v633_v23 = vpop.f32.mrf.mxu0  ;;  %v731_v24 = vpop.f32.mrf.mxu1 }
 0x21b   :  { %v634_v25 = vadd.f32 %v4025_v17, %v633_v23  ;;  %v5263_v26 = vadd.f32 %v4035_v18, %v731_v24  ;;  %4571 = vmatprep.subr.msk.mxu0 %vm1339_vm1, %v639_v21  ;;  %4578 = vmatprep.subr.mxu1 %v5261_v22  ;;  %v5339_v23 = vld [vmem:[%s5735_s5 + $0xb] ss:$0 sm:$0xff] }
 0x21c   :  { %4572 = vmatpush3.xpose.msk.msra.mxu0 %vm1339_vm1, %v639_v21  ;;  %v5334_v21 = vld [vmem:[%s5735_s5 + $0x7] ss:$0 sm:$0xff] }
 0x21d   :  { %4573 = vmatprep.subr.msk.mxu0 %vm1339_vm1, %v634_v25 }
 0x21e   :  { %v4458_v27 = vpop.f32.mrf.mxu0  ;;  %v4472_v28 = vpop.f32.mrf.mxu1 }
 0x21f   :  { %v5274_v30 = vadd.f32 %v4458_v27, %v4025_v17  ;;  %v5276_v31 = vadd.f32 %v4472_v28, %v4035_v18 }
 0x220   :  { %v643_v32 = vpop.f32.mrf.mxu0  ;;  %v741_v33 = vpop.f32.mrf.mxu1  ;;  %4574 = vmatpush3.xpose.msk.msra.mxu0 %vm1339_vm1, %v634_v25 }
 0x221   :  { %v5279_v35 = vadd.f32 %v4025_v17, %v643_v32  ;;  %v5281_v36 = vadd.f32 %v4035_v18, %v741_v33  ;;  %4590 = vmatprep.subr.mxu0 %v5272_v29 }
 0x223   :  { %4576 = vmatmul.mubr.msk.f32.vlgmr.msra.gmra.mxu0 %vm1339_vm1, %v541_v34 }
 0x224   :  { %v4483_v39 = vpop.f32.mrf.mxu0  ;;  %v4497_v40 = vpop.f32.mrf.mxu1  ;;  %4591 = vmatpush3.msra.mxu0 %v5272_v29 }
 0x225   :  { %v5292_v41 = vadd.f32 %v4483_v39, %v4045_v37  ;;  %v5294_v42 = vadd.f32 %v4497_v40, %v4055_v38 }
 0x226   :  { %v829_v43 = vpop.f32.mrf.mxu0  ;;  %v927_v44 = vpop.f32.mrf.mxu1 }
 0x227   :  { %v5296_v45 = vadd.f32 %v4045_v37, %v829_v43  ;;  %v5298_v46 = vadd.f32 %v4055_v38, %v927_v44 }
 0x22a   :  { %v4486_v47 = vpop.f32.mrf.mxu0  ;;  %v4500_v48 = vpop.f32.mrf.mxu1 }
 0x22b   :  { %v5300_v49 = vadd.f32 %v4486_v47, %v4045_v37  ;;  %v5302_v50 = vadd.f32 %v4500_v48, %v4055_v38  ;;  %v5364_v48 = vld [vmem:[%s5737_s1] ss:$0 sm:$0xff] }
 0x22c   :  { %v839_v51 = vpop.f32.mrf.mxu0  ;;  %v937_v52 = vpop.f32.mrf.mxu1 }
 0x22d   :  { %v5304_v55 = vadd.f32 %v4045_v37, %v839_v51  ;;  %v5306_v56 = vadd.f32 %v4055_v38, %v937_v52 }
 0x230   :  { %v4511_v62 = vpop.f32.mrf.mxu0  ;;  %v4525_v0 = vpop.f32.mrf.mxu1 }
 0x231   :  { %v5314_v2 = vadd.f32 %v4511_v62, %v4065_v60  ;;  %v5316_v3 = vadd.f32 %v4525_v0, %v4075_v61 }
 0x232   :  { %v1025_v4 = vpop.f32.mrf.mxu0  ;;  %v1123_v6 = vpop.f32.mrf.mxu1 }
 0x233   :  { %v5318_v7 = vadd.f32 %v4065_v60, %v1025_v4  ;;  %v5320_v8 = vadd.f32 %v4075_v61, %v1123_v6  ;;  %4602 = vmatprep.subr.mxu0 %v5314_v2 }
 0x236   :  { %v4514_v9 = vpop.f32.mrf.mxu0  ;;  %v4528_v10 = vpop.f32.mrf.mxu1 }
 0x237   :  { %v5323_v13 = vadd.f32 %v4514_v9, %v4065_v60  ;;  %v5325_v14 = vadd.f32 %v4528_v10, %v4075_v61 }
 0x238   :  { %v1035_v17 = vpop.f32.mrf.mxu0  ;;  %v1133_v18 = vpop.f32.mrf.mxu1 }
 0x239   :  { %v5327_v19 = vadd.f32 %v4065_v60, %v1035_v17  ;;  %v5329_v20 = vadd.f32 %v4075_v61, %v1133_v18 }
 0x23c   :  { %v4539_v24 = vpop.f32.mrf.mxu0  ;;  %v4553_v25 = vpop.f32.mrf.mxu1 }
 0x23d   :  { %v5342_v27 = vadd.f32 %v4539_v24, %v5334_v21  ;;  %v5345_v28 = vadd.f32 %v4553_v25, %v5339_v23 }
 0x23e   :  { %v1221_v32 = vpop.f32.mrf.mxu0  ;;  %v1319_v33 = vpop.f32.mrf.mxu1 }
 0x23f   :  { %v5348_v34 = vadd.f32 %v5334_v21, %v1221_v32  ;;  %v5351_v37 = vadd.f32 %v5339_v23, %v1319_v33 }
 0x240   :  { %v4542_v38 = vpop.f32.mrf.mxu0  ;;  %v4556_v39 = vpop.f32.mrf.mxu1 }
 0x241   :  { %v5354_v40 = vadd.f32 %v4542_v38, %v5334_v21  ;;  %v5357_v43 = vadd.f32 %v4556_v39, %v5339_v23 }
 0x242   :  { %v5359_v44 = vpop.f32.mrf.mxu1  ;;  %v5370_v6 = vpop.f32.mrf.mxu0 }
 0x2cc   :  { %v4563_v47 = vpop.f32.mrf.mxu1 }
 0x2cd   :  { %v1428_v51 = vmul.f32 0.35355338, %v4563_v47 }
 0x2ce   :  { %v1418_v52 = vpop.f32.mrf.mxu1 }
 0x2cf   :  { %v1427_v60 = vmul.f32 0.35355338, %v1418_v52  ;;  %v1436_v61 = vadd.f32 %v5364_v48, %v1428_v51 }
 0x2d1   :  { %v1441_v62 = vsel %vm1437_vm2, %v1436_v61, -inf  ;;  %v1435_v0 = vadd.f32 %v5364_v48, %v1427_v60 }
 0x2d2   :  { %1442 = vmax.xlane.f32.xlu1 %v1441_v62 }
 0x2d3   :  { %v1438_v4 = vsel %vm1437_vm2, %v1435_v0, -inf }
 0x2d4   :  { %1439 = vmax.xlane.f32.xlu0 %v1438_v4 }
 0x2e3   :  { %v4577_v9 = vpop.f32.mrf.mxu0 }
 0x2e4   :  { %v1630_v10 = vmul.f32 0.35355338, %v4577_v9 }
 0x2e5   :  { %v1620_v17 = vpop.f32.mrf.mxu0 }
 0x2e6   :  { %v1629_v18 = vmul.f32 0.35355338, %v1620_v17  ;;  %v1632_v24 = vadd.f32 %v5364_v48, %v1630_v10 }
 0x2e8   :  { %v1636_v25 = vsel %vm1437_vm2, %v1632_v24, -inf  ;;  %v1631_v32 = vadd.f32 %v5364_v48, %v1629_v18 }
 0x2e9   :  { %1637 = vmax.xlane.f32.xlu1 %v1636_v25 }
 0x2ea   :  { %v1633_v33 = vsel %vm1437_vm2, %v1631_v32, -inf }
 0x2eb   :  { %1634 = vmax.xlane.f32.xlu0 %v1633_v33 }
 0x35b   :  { %v1443_v38 = vpop.xlane.xlu1 %1442 }
 0x35c   :  { %v1445_v39 = vsub.f32 %v1436_v61, %v1443_v38 }
 0x35d   :  { %v1440_v47 = vpop.xlane.xlu0 %1439 }
 0x35e   :  { %v1448_v51 = vmul.f32 1.442695, %v1445_v39  ;;  %v1444_v52 = vsub.f32 %v1435_v0, %v1440_v47 }
 0x360   :  { %4753 = vpow2.f32 %v1448_v51  ;;  %v1446_v60 = vmul.f32 1.442695, %v1444_v52 }
 0x362   :  { %4755 = vpow2.f32 %v1446_v60 }
 0x36d   :  { %v4754_v62 = vpop.eup %4753 }
 0x36e   :  { %v1453_v4 = vsel %vm1437_vm2, %v4754_v62, 0.0 }
 0x36f   :  { %v4756_v9 = vpop.eup %4755  ;;  %1454 = vadd.xlane.f32.xlu1 %v1453_v4 }
 0x370   :  { %v1450_v10 = vsel %vm1437_vm2, %v4756_v9, 0.0 }
 0x371   :  { %1451 = vadd.xlane.f32.xlu0 %v1450_v10 }
 0x372   :  { %v1638_v17 = vpop.xlane.xlu1 %1637 }
 0x373   :  { %v1640_v18 = vsub.f32 %v1632_v24, %v1638_v17 }
 0x374   :  { %v1635_v25 = vpop.xlane.xlu0 %1634 }
 0x375   :  { %v1643_v33 = vmul.f32 1.442695, %v1640_v18  ;;  %v1639_v1 = vsub.f32 %v1631_v32, %v1635_v25 }
 0x377   :  { %4757 = vpow2.f32 %v1643_v33  ;;  %v1641_v61 = vmul.f32 1.442695, %v1639_v1  ;;  %v5386_v1 = vld [vmem:[%s5736_s6 + $0x8] sm:$0xff] }
 0x379   :  { %4759 = vpow2.f32 %v1641_v61 }
 0x384   :  { %v4758_v0 = vpop.eup %4757 }
 0x385   :  { %v1648_v38 = vsel %vm1437_vm2, %v4758_v0, 0.0 }
 0x386   :  { %v4760_v39 = vpop.eup %4759  ;;  %1649 = vadd.xlane.f32.xlu1 %v1648_v38 }
 0x387   :  { %v1645_v47 = vsel %vm1437_vm2, %v4760_v39, 0.0 }
 0x388   :  { %1646 = vadd.xlane.f32.xlu0 %v1645_v47 }
 0x3f8   :  { %v1455_v51 = vpop.xlane.xlu1 %1454 }
 0x3f9   :  { %4761 = vrcp.f32 %v1455_v51 }
 0x3fa   :  { %v1452_v52 = vpop.xlane.xlu0 %1451 }
 0x3fb   :  { %4763 = vrcp.f32 %v1452_v52 }
 0x406   :  { %v4762_v60 = vpop.eup %4761 }
 0x407   :  { %v1459_v10 = vmul.f32 %v4762_v60, %v4754_v62 }
 0x408   :  { %v4764_v24 = vpop.eup %4763 }
 0x409   :  { %v1457_v4 = vmul.f32 %v4764_v24, %v4756_v9 }
 0x40b   :  { %4568 = vmatprep.mubr.msk.f32.mxu1 %vm1437_vm2, %v1457_v4 }
 0x40c   :  { %4569 = vmatmul.mubr.msk.f32.vlgmr.msra.gmra.mxu1 %vm1437_vm2, %v1459_v10 }
 0x40d   :  { %4579 = vmatpush3.msra.mxu1 %v5261_v22 }
 0x40e   :  { %4580 = vmatprep.subr.mxu1 %v5263_v26 }
 0x40f   :  { %v1650_v32 = vpop.xlane.xlu1 %1649  ;;  %4581 = vmatpush3.msra.mxu1 %v5263_v26 }
 0x410   :  { %4585 = vmatprep.subr.mxu1 %v5386_v1  ;;  %4765 = vrcp.f32 %v1650_v32 }
 0x411   :  { %v1647_v62 = vpop.xlane.xlu0 %1646 }
 0x412   :  { %4767 = vrcp.f32 %v1647_v62 }
 0x41d   :  { %v4766_v9 = vpop.eup %4765 }
 0x41e   :  { %v1654_v25 = vmul.f32 %v4766_v9, %v4758_v0 }
 0x41f   :  { %v4768_v17 = vpop.eup %4767 }
 0x420   :  { %v1652_v18 = vmul.f32 %v4768_v17, %v4760_v39 }
 0x422   :  { %4582 = vmatprep.mubr.msk.f32.mxu1 %vm1437_vm2, %v1652_v18  ;;  %v5459_v18 = vld [vmem:[%s5736_s6 + $0x10] sm:$0xff] }
 0x423   :  { %4583 = vmatmul.mubr.msk.f32.vlgmr.msra.gmra.mxu1 %vm1437_vm2, %v1654_v25 }
 0x424   :  { %4586 = vmatpush3.msra.mxu1 %v5386_v1 }
 0x425   :  { %4595 = vmatprep.subr.msk.mxu1 %vm1339_vm1, %v5294_v42 }
 0x4cc   :  { %v4570_v22 = vpop.f32.mrf.mxu1 }
 0x4ce   :  { %v1532_v26 = vpop.f32.mrf.mxu1 }
 0x4cf   :  { %4592 = vmatprep.mubr.msk.f32.mxu0 %vm1339_vm1, %v1532_v26 }
 0x4d0   :  { %4593 = vmatmul.mubr.msk.f32.vlgmr.msra.gmra.mxu0 %vm1339_vm1, %v4570_v22 }
 0x4d1   :  { %4603 = vmatpush3.msra.mxu0 %v5314_v2 }
 0x4d2   :  { %4604 = vmatprep.subr.mxu0 %v5318_v7 }
 0x4d3   :  { %4605 = vmatpush3.msra.mxu0 %v5318_v7 }
 0x4d4   :  { %4609 = vmatprep.subr.mxu0 %v5459_v18 }
 0x4e3   :  { %v4584_v33 = vpop.f32.mrf.mxu1 }
 0x4e5   :  { %v1727_v61 = vpop.f32.mrf.mxu1 }
 0x4e6   :  { %4587 = vmatprep.mubr.msk.f32.mxu1 %vm1339_vm1, %v1727_v61 }
 0x4e7   :  { %4588 = vmatmul.mubr.msk.f32.vlgmr.msra.gmra.mxu1 %vm1339_vm1, %v4584_v33 }
 0x4e8   :  { %4596 = vmatpush3.xpose.msk.msra.mxu1 %vm1339_vm1, %v5294_v42  ;;  %4599 = vmatprep.mubr.msk.f32.mxu1 %vm1339_vm1, %v5296_v45 }
 0x4e9   :  { %4597 = vmatprep.subr.msk.mxu1 %vm1339_vm1, %v5298_v46 }
 0x4ec   :  { %4598 = vmatpush3.xpose.msk.msra.mxu1 %vm1339_vm1, %v5298_v46 }
 0x4ed   :  { %4614 = vmatprep.subr.msk.mxu1 %vm1339_vm1, %v5342_v27 }
 0x4ef   :  { %4600 = vmatmul.mubr.msk.f32.vlgmr.msra.gmra.mxu1 %vm1339_vm1, %v5292_v41 }
 0x4f0   :  { %4615 = vmatpush3.xpose.msk.msra.mxu1 %vm1339_vm1, %v5342_v27  ;;  %4618 = vmatprep.mubr.msk.f32.mxu1 %vm1339_vm1, %v5320_v8 }
 0x4f1   :  { %4616 = vmatprep.subr.msk.mxu1 %vm1339_vm1, %v5348_v34 }
 0x4f4   :  { %4617 = vmatpush3.xpose.msk.msra.mxu1 %vm1339_vm1, %v5348_v34 }
 0x4f5   :  { %4633 = vmatprep.subr.msk.mxu1 %vm1339_vm1, %v5232_v54 }
 0x4f7   :  { %4619 = vmatmul.mubr.msk.f32.vlgmr.msra.gmra.mxu1 %vm1339_vm1, %v5316_v3 }
 0x4f8   :  { %4634 = vmatpush3.xpose.msk.msra.mxu1 %vm1339_vm1, %v5232_v54  ;;  %4637 = vmatprep.mubr.msk.f32.mxu1 %vm1339_vm1, %v5234_v58 }
 0x4f9   :  { %4635 = vmatprep.subr.msk.mxu1 %vm1339_vm1, %v5236_v59 }
 0x4fc   :  { %4636 = vmatpush3.xpose.msk.msra.mxu1 %vm1339_vm1, %v5236_v59 }
 0x4fd   :  { %4654 = vmatprep.subr.mxu1 %v5276_v31 }
 0x4ff   :  { %4638 = vmatmul.mubr.msk.f32.vlgmr.msra.gmra.mxu1 %vm1339_vm1, %v5230_v53 }
 0x500   :  { %4655 = vmatpush3.msra.mxu1 %v5276_v31 }
 0x501   :  { %4656 = vmatprep.subr.mxu1 %v5281_v36 }
 0x502   :  { %4657 = vmatpush3.msra.mxu1 %v5281_v36 }
 0x503   :  { %4661 = vmatprep.subr.mxu1 %v5386_v1 }
 0x590   :  { %v4594_v54 = vpop.f32.mrf.mxu0 }
 0x5a7   :  { %v4589_v58 = vpop.f32.mrf.mxu1 }
 0x5a8   :  { %v5442_v41 = vadd.f32 %v4594_v54, %v4589_v58 }
 0x5a9   :  { %v5444_v42 = vpop.f32.mrf.mxu1 }
 0x5af   :  { %v4601_v59 = vpop.f32.mrf.mxu1 }
 0x5b0   :  { %v1988_v45 = vmul.f32 0.35355338, %v4601_v59 }
 0x5b1   :  { %v1978_v46 = vpop.f32.mrf.mxu1 }
 0x5b2   :  { %v1987_v2 = vmul.f32 0.35355338, %v1978_v46  ;;  %v1990_v53 = vadd.f32 %v5364_v48, %v1988_v45 }
 0x5b4   :  { %v1994_v31 = vsel %vm1437_vm2, %v1990_v53, -inf  ;;  %v1989_v3 = vadd.f32 %v5364_v48, %v1987_v2 }
 0x5b5   :  { %1995 = vmax.xlane.f32.xlu1 %v1994_v31 }
 0x5b6   :  { %v1991_v36 = vsel %vm1437_vm2, %v1989_v3, -inf }
 0x5b7   :  { %1992 = vmax.xlane.f32.xlu0 %v1991_v36  ;;  %v4620_v39 = vpop.f32.mrf.mxu1  ;;  %v5467_v36 = vld [vmem:[%s5737_s1 + $0x1] ss:$0 sm:$0xff] }
 0x5b8   :  { %v2267_v51 = vmul.f32 0.35355338, %v4620_v39 }
 0x5b9   :  { %v2257_v47 = vpop.f32.mrf.mxu1 }
 0x5ba   :  { %v2266_v52 = vmul.f32 0.35355338, %v2257_v47  ;;  %v2269_v4 = vadd.f32 %v5364_v48, %v2267_v51 }
 0x5bc   :  { %v2268_v62 = vadd.f32 %v5364_v48, %v2266_v52  ;;  %v2273_v9 = vsel %vm1437_vm2, %v2269_v4, -inf }
 0x5be   :  { %v2270_v17 = vsel %vm1437_vm2, %v2268_v62, -inf }
 0x5bf   :  { %v4639_v59 = vpop.f32.mrf.mxu1 }
 0x63e   :  { %v1996_v7 = vpop.xlane.xlu1 %1995 }
 0x63f   :  { %v1998_v8 = vsub.f32 %v1990_v53, %v1996_v7  ;;  %v2538_v53 = vpop.f32.mrf.mxu1 }
 0x640   :  { %v1993_v27 = vpop.xlane.xlu0 %1992  ;;  %v2547_v7 = vmul.f32 0.35355338, %v2538_v53 }
 0x641   :  { %v2001_v34 = vmul.f32 1.442695, %v1998_v8  ;;  %v1997_v0 = vsub.f32 %v1989_v3, %v1993_v27  ;;  %v2548_v3 = vmul.f32 0.35355338, %v4639_v59 }
 0x642   :  { %v2555_v39 = vadd.f32 %v5467_v36, %v2547_v7 }
 0x643   :  { %4769 = vpow2.f32 %v2001_v34  ;;  %v1999_v38 = vmul.f32 1.442695, %v1997_v0  ;;  %v2556_v34 = vadd.f32 %v5467_v36, %v2548_v3 }
 0x644   :  { %v2557_v51 = vsel %vm1437_vm2, %v2555_v39, -inf }
 0x645   :  { %4771 = vpow2.f32 %v1999_v38  ;;  %v2560_v47 = vsel %vm1437_vm2, %v2556_v34, -inf }
 0x650   :  { %v4770_v60 = vpop.eup %4769 }
 0x651   :  { %v2006_v24 = vsel %vm1437_vm2, %v4770_v60, 0.0 }
 0x652   :  { %v4772_v10 = vpop.eup %4771  ;;  %2007 = vadd.xlane.f32.xlu1 %v2006_v24 }
 0x653   :  { %v2003_v32 = vsel %vm1437_vm2, %v4772_v10, 0.0 }
 0x654   :  { %2004 = vadd.xlane.f32.xlu0 %v2003_v32 }
 0x656   :  { %2274 = vmax.xlane.f32.xlu1 %v2273_v9 }
 0x658   :  { %2271 = vmax.xlane.f32.xlu0 %v2270_v17 }
 0x6db   :  { %v2008_v25 = vpop.xlane.xlu1 %2007 }
 0x6dc   :  { %4773 = vrcp.f32 %v2008_v25 }
 0x6dd   :  { %v2005_v22 = vpop.xlane.xlu0 %2004 }
 0x6de   :  { %4775 = vrcp.f32 %v2005_v22 }
 0x6df   :  { %v2275_v26 = vpop.xlane.xlu1 %2274 }
 0x6e0   :  { %v2277_v48 = vsub.f32 %v2269_v4, %v2275_v26 }
 0x6e1   :  { %v2272_v33 = vpop.xlane.xlu0 %2271 }
 0x6e2   :  { %v2280_v61 = vmul.f32 1.442695, %v2277_v48  ;;  %v2276_v54 = vsub.f32 %v2268_v62, %v2272_v33  ;;  %v1891_v48 = vpop.f32.mrf.mxu0 }
 0x6e4   :  { %4777 = vpow2.f32 %v2280_v61  ;;  %v2278_v58 = vmul.f32 1.442695, %v2276_v54 }
 0x6e6   :  { %4779 = vpow2.f32 %v2278_v58 }
 0x6e9   :  { %v4774_v45 = vpop.eup %4773 }
 0x6ea   :  { %v2012_v31 = vmul.f32 %v4774_v45, %v4770_v60  ;;  %v5486_v45 = vld [vmem:[%s5736_s6 + $0x18] sm:$0xff] }
 0x6eb   :  { %v4776_v46 = vpop.eup %4775 }
 0x6ec   :  { %v2010_v2 = vmul.f32 %v4776_v46, %v4772_v10 }
 0x6ee   :  { %4606 = vmatprep.mubr.msk.f32.mxu0 %vm1437_vm2, %v2010_v2 }
 0x6ef   :  { %4607 = vmatmul.mubr.msk.f32.vlgmr.msra.gmra.mxu0 %vm1437_vm2, %v2012_v31  ;;  %v1892_v31 = vadd.f32 %v1891_v48, %v5444_v42 }
 0x6f0   :  { %4610 = vmatpush3.msra.mxu0 %v5459_v18 }
 0x6f1   :  { %v4778_v8 = vpop.eup %4777  ;;  %4621 = vmatprep.subr.mxu0 %v5345_v28 }
 0x6f2   :  { %v2285_v27 = vsel %vm1437_vm2, %v4778_v8, 0.0 }
 0x6f3   :  { %v4780_v0 = vpop.eup %4779  ;;  %2286 = vadd.xlane.f32.xlu1 %v2285_v27 }
 0x6f4   :  { %v2282_v38 = vsel %vm1437_vm2, %v4780_v0, 0.0 }
 0x6f5   :  { %2283 = vadd.xlane.f32.xlu0 %v2282_v38 }
 0x6f7   :  { %2561 = vmax.xlane.f32.xlu1 %v2560_v47 }
 0x6f9   :  { %2558 = vmax.xlane.f32.xlu0 %v2557_v51 }
 0x77c   :  { %v2287_v52 = vpop.xlane.xlu1 %2286 }
 0x77e   :  { %v2284_v60 = vpop.xlane.xlu0 %2283 }
 0x780   :  { %v2562_v24 = vpop.xlane.xlu1 %2561 }
 0x781   :  { %v2564_v4 = vsub.f32 %v2556_v34, %v2562_v24 }
 0x782   :  { %v2559_v10 = vpop.xlane.xlu0 %2558 }
 0x783   :  { %v2567_v32 = vmul.f32 1.442695, %v2564_v4  ;;  %v2563_v62 = vsub.f32 %v2555_v39, %v2559_v10 }
 0x785   :  { %4781 = vpow2.f32 %v2567_v32  ;;  %v2565_v9 = vmul.f32 1.442695, %v2563_v62 }
 0x787   :  { %4783 = vpow2.f32 %v2565_v9 }
 0x788   :  { %4785 = vrcp.f32 %v2284_v60 }
 0x789   :  { %4787 = vrcp.f32 %v2287_v52 }
 0x792   :  { %v4782_v17 = vpop.eup %4781 }
 0x793   :  { %v2572_v25 = vsel %vm1437_vm2, %v4782_v17, 0.0 }
 0x794   :  { %v4784_v22 = vpop.eup %4783  ;;  %2573 = vadd.xlane.f32.xlu1 %v2572_v25 }
 0x795   :  { %v2569_v26 = vsel %vm1437_vm2, %v4784_v22, 0.0  ;;  %v4786_v33 = vpop.eup %4785 }
 0x796   :  { %2570 = vadd.xlane.f32.xlu0 %v2569_v26  ;;  %v4788_v58 = vpop.eup %4787  ;;  %v2289_v59 = vmul.f32 %v4786_v33, %v4780_v0 }
 0x797   :  { %v2291_v46 = vmul.f32 %v4788_v58, %v4778_v8 }
 0x7af   :  { %v4608_v61 = vpop.f32.mrf.mxu0 }
 0x7b1   :  { %v2085_v54 = vpop.f32.mrf.mxu0 }
 0x7b2   :  { %4611 = vmatprep.mubr.msk.f32.mxu0 %vm1339_vm1, %v2085_v54 }
 0x7b3   :  { %4612 = vmatmul.mubr.msk.f32.vlgmr.msra.gmra.mxu0 %vm1339_vm1, %v4608_v61 }
 0x7b4   :  { %4622 = vmatpush3.msra.mxu0 %v5345_v28  ;;  %4625 = vmatprep.mubr.msk.f32.mxu0 %vm1437_vm2, %v2289_v59 }
 0x7b5   :  { %4623 = vmatprep.subr.mxu0 %v5351_v37 }
 0x7b6   :  { %4624 = vmatpush3.msra.mxu0 %v5351_v37 }
 0x7b7   :  { %4628 = vmatprep.subr.mxu0 %v5486_v45  ;;  %4626 = vmatmul.mubr.msk.f32.vlgmr.msra.gmra.mxu0 %vm1437_vm2, %v2291_v46 }
 0x7b8   :  { %4629 = vmatpush3.msra.mxu0 %v5486_v45 }
 0x7b9   :  { %4640 = vmatprep.subr.mxu0 %v5247_v11 }
 0x81d   :  { %v2574_v2 = vpop.xlane.xlu1 %2573 }
 0x81f   :  { %v2571_v28 = vpop.xlane.xlu0 %2570 }
 0x820   :  { %4789 = vrcp.f32 %v2571_v28 }
 0x821   :  { %4791 = vrcp.f32 %v2574_v2 }
 0x82d   :  { %v4790_v37 = vpop.eup %4789 }
 0x82e   :  { %v4792_v0 = vpop.eup %4791  ;;  %v2576_v38 = vmul.f32 %v4790_v37, %v4784_v22 }
 0x82f   :  { %v2578_v42 = vmul.f32 %v4792_v0, %v4782_v17 }
 0x873   :  { %v4613_v53 = vpop.f32.mrf.mxu0 }
 0x874   :  { %v2178_v3 = vadd.f32 %v4613_v53, %v5442_v41 }
 0x875   :  { %v2168_v7 = vpop.f32.mrf.mxu0 }
 0x876   :  { %v2177_v8 = vadd.f32 %v2168_v7, %v1892_v31 }
 0x877   :  { %v4627_v27 = vpop.f32.mrf.mxu0 }
 0x879   :  { %v2364_v34 = vpop.f32.mrf.mxu0 }
 0x87a   :  { %4630 = vmatprep.mubr.msk.f32.mxu0 %vm1339_vm1, %v2364_v34 }
 0x87b   :  { %4631 = vmatmul.mubr.msk.f32.vlgmr.msra.gmra.mxu0 %vm1339_vm1, %v4627_v27 }
 0x87c   :  { %4641 = vmatpush3.msra.mxu0 %v5247_v11  ;;  %4644 = vmatprep.mubr.msk.f32.mxu0 %vm1437_vm2, %v2576_v38 }
 0x87d   :  { %4642 = vmatprep.subr.mxu0 %v5251_v15 }
 0x87e   :  { %4643 = vmatpush3.msra.mxu0 %v5251_v15 }
 0x87f   :  { %4647 = vmatprep.subr.msk.mxu0 %vm1339_vm1, %v5274_v30  ;;  %4645 = vmatmul.mubr.msk.f32.vlgmr.msra.gmra.mxu0 %vm1437_vm2, %v2578_v42 }
 0x880   :  { %4648 = vmatpush3.xpose.msk.msra.mxu0 %vm1339_vm1, %v5274_v30  ;;  %4651 = vmatprep.mubr.msk.f32.mxu0 %vm1339_vm1, %v5253_v16 }
 0x881   :  { %4649 = vmatprep.subr.msk.mxu0 %vm1339_vm1, %v5279_v35 }
 0x884   :  { %4650 = vmatpush3.xpose.msk.msra.mxu0 %vm1339_vm1, %v5279_v35 }
 0x885   :  { %4666 = vmatprep.subr.mxu0 %v5272_v29 }
 0x887   :  { %4652 = vmatmul.mubr.msk.f32.vlgmr.msra.gmra.mxu0 %vm1339_vm1, %v5249_v12 }
 0x888   :  { %4667 = vmatpush3.msra.mxu0 %v5272_v29 }
 0x889   :  { %4678 = vmatprep.subr.mxu0 %v5323_v13 }
 0x93b   :  { %v4632_v11 = vpop.f32.mrf.mxu0 }
 0x93c   :  { %v5518_v15 = vadd.f32 %v4632_v11, %v2178_v3 }
 0x93d   :  { %v2447_v30 = vpop.f32.mrf.mxu0 }
 0x93e   :  { %v5520_v16 = vadd.f32 %v2447_v30, %v2177_v8 }
 0x93f   :  { %v4646_v41 = vpop.f32.mrf.mxu0 }
 0x941   :  { %v2651_v39 = vpop.f32.mrf.mxu0 }
 0x942   :  { %4668 = vmatprep.mubr.msk.f32.mxu0 %vm1339_vm1, %v2651_v39 }
 0x943   :  { %4669 = vmatmul.mubr.msk.f32.vlgmr.msra.gmra.mxu0 %vm1339_vm1, %v4646_v41 }
 0x944   :  { %4679 = vmatpush3.msra.mxu0 %v5323_v13 }
 0x945   :  { %4680 = vmatprep.subr.mxu0 %v5327_v19 }
 0x946   :  { %4681 = vmatpush3.msra.mxu0 %v5327_v19 }
 0x947   :  { %v4653_v12 = vpop.f32.mrf.mxu0  ;;  %4685 = vmatprep.subr.mxu0 %v5459_v18 }
 0x948   :  { %v2748_v29 = vmul.f32 0.35355338, %v4653_v12 }
 0x949   :  { %v2738_v35 = vpop.f32.mrf.mxu0 }
 0x94a   :  { %v2747_v47 = vmul.f32 0.35355338, %v2738_v35  ;;  %v2750_v51 = vadd.f32 %v5467_v36, %v2748_v29 }
 0x94c   :  { %v2754_v52 = vsel %vm1437_vm2, %v2750_v51, -inf  ;;  %v2749_v60 = vadd.f32 %v5467_v36, %v2747_v47 }
 0x94d   :  { %2755 = vmax.xlane.f32.xlu1 %v2754_v52 }
 0x94e   :  { %v2751_v24 = vsel %vm1437_vm2, %v2749_v60, -inf }
 0x94f   :  { %2752 = vmax.xlane.f32.xlu0 %v2751_v24 }
 0x9d6   :  { %v2756_v13 = vpop.xlane.xlu1 %2755 }
 0x9d7   :  { %v2758_v4 = vsub.f32 %v2750_v51, %v2756_v13 }
 0x9d8   :  { %v2753_v10 = vpop.xlane.xlu0 %2752 }
 0x9d9   :  { %v2761_v19 = vmul.f32 1.442695, %v2758_v4  ;;  %v2757_v32 = vsub.f32 %v2749_v60, %v2753_v10 }
 0x9db   :  { %4793 = vpow2.f32 %v2761_v19  ;;  %v2759_v62 = vmul.f32 1.442695, %v2757_v32  ;;  %v5580_v19 = vld [vmem:[%s5738_s7] ss:$0 sm:$0xff] }
 0x9dd   :  { %4795 = vpow2.f32 %v2759_v62 }
 0x9e8   :  { %v4794_v9 = vpop.eup %4793 }
 0x9e9   :  { %v2766_v17 = vsel %vm1437_vm2, %v4794_v9, 0.0 }
 0x9ea   :  { %v4796_v25 = vpop.eup %4795  ;;  %2767 = vadd.xlane.f32.xlu1 %v2766_v17  ;;  %v3576_v17 = vadd.f32 %v5580_v19, %v5520_v16 }
 0x9eb   :  { %v2763_v22 = vsel %vm1437_vm2, %v4796_v25, 0.0 }
 0x9ec   :  { %2764 = vadd.xlane.f32.xlu0 %v2763_v22 }
 0xa73   :  { %v2768_v26 = vpop.xlane.xlu1 %2767 }
 0xa74   :  { %4797 = vrcp.f32 %v2768_v26 }
 0xa75   :  { %v2765_v48 = vpop.xlane.xlu0 %2764 }
 0xa76   :  { %4799 = vrcp.f32 %v2765_v48 }
 0xa81   :  { %v4798_v33 = vpop.eup %4797 }
 0xa82   :  { %v2772_v58 = vmul.f32 %v4798_v33, %v4794_v9  ;;  %v3577_v9 = vadd.f32 %v5580_v19, %v5518_v15  ;;  %v3580_v33 = vadd.f32 %v3576_v17, %v4999_v57 }
 0xa83   :  { %v4800_v61 = vpop.eup %4799 }
 0xa84   :  { %v2770_v54 = vmul.f32 %v4800_v61, %v4796_v25  ;;  %v3581_v26 = vadd.f32 %v3577_v9, %v5007_v63  ;;  %v3584_v16 = vsel %vm59_vm0, %v3580_v33, 0.0 }
 0xa86   :  { %4658 = vmatprep.mubr.msk.f32.mxu1 %vm1437_vm2, %v2770_v54  ;;  %v3587_v61 = vsel %vm59_vm0, %v3581_v26, 0.0 }
 0xa87   :  { %4659 = vmatmul.mubr.msk.f32.vlgmr.msra.gmra.mxu1 %vm1437_vm2, %v2772_v58  ;;  %v4670_v58 = vpop.f32.mrf.mxu0 }
 0xa88   :  { %4662 = vmatpush3.msra.mxu1 %v5386_v1  ;;  %v1232_v1 = vadd.f32 %v5334_v21, %v5370_v6 }
 0xa89   :  { %4671 = vmatprep.subr.msk.mxu1 %vm1339_vm1, %v5302_v50 }
 0xb47   :  { %v4660_v59 = vpop.f32.mrf.mxu1 }
 0xb49   :  { %v2845_v46 = vpop.f32.mrf.mxu1 }
 0xb4a   :  { %4663 = vmatprep.mubr.msk.f32.mxu1 %vm1339_vm1, %v2845_v46 }
 0xb4b   :  { %4664 = vmatmul.mubr.msk.f32.vlgmr.msra.gmra.mxu1 %vm1339_vm1, %v4660_v59  ;;  %v3007_v59 = vpop.f32.mrf.mxu0 }
 0xb4c   :  { %4672 = vmatpush3.xpose.msk.msra.mxu1 %vm1339_vm1, %v5302_v50  ;;  %4675 = vmatprep.mubr.msk.f32.mxu1 %vm1339_vm1, %v5304_v55 }
 0xb4d   :  { %4673 = vmatprep.subr.msk.mxu1 %vm1339_vm1, %v5306_v56 }
 0xb50   :  { %4674 = vmatpush3.xpose.msk.msra.mxu1 %vm1339_vm1, %v5306_v56 }
 0xb51   :  { %4690 = vmatprep.subr.msk.mxu1 %vm1339_vm1, %v5354_v40 }
 0xb53   :  { %4676 = vmatmul.mubr.msk.f32.vlgmr.msra.gmra.mxu1 %vm1339_vm1, %v5300_v49 }
 0xb54   :  { %4691 = vmatpush3.xpose.msk.msra.mxu1 %vm1339_vm1, %v5354_v40  ;;  %4694 = vmatprep.mubr.msk.f32.mxu1 %vm1339_vm1, %v5329_v20 }
 0xb55   :  { %4692 = vmatprep.subr.msk.mxu1 %vm1339_vm1, %v1232_v1 }
 0xb58   :  { %4693 = vmatpush3.xpose.msk.msra.mxu1 %vm1339_vm1, %v1232_v1 }
 0xb5b   :  { %4695 = vmatmul.mubr.msk.f32.vlgmr.msra.gmra.mxu1 %vm1339_vm1, %v5325_v14 }
 0xc0b   :  { %v5563_v50 = vpop.f32.mrf.mxu1 }
 0xc0d   :  { %v5565_v55 = vpop.f32.mrf.mxu1 }
 0xc13   :  { %v4677_v56 = vpop.f32.mrf.mxu1 }
 0xc14   :  { %v3104_v21 = vmul.f32 0.35355338, %v4677_v56 }
 0xc15   :  { %v3094_v49 = vpop.f32.mrf.mxu1 }
 0xc16   :  { %v3103_v6 = vmul.f32 0.35355338, %v3094_v49  ;;  %v3106_v40 = vadd.f32 %v5467_v36, %v3104_v21  ;;  %v1330_v21 = vadd.f32 %v5339_v23, %v5359_v44  ;;  %v3008_v23 = vadd.f32 %v3007_v59, %v5565_v55 }
 0xc18   :  { %v3110_v28 = vsel %vm1437_vm2, %v3106_v40, -inf  ;;  %v3105_v20 = vadd.f32 %v5467_v36, %v3103_v6  ;;  %v3013_v6 = vadd.f32 %v4670_v58, %v5563_v50  ;;  %v4172_v58 = vld [vmem:[%s5741_s9] ss:$0 sm:$0xff] }
 0xc19   :  { %3111 = vmax.xlane.f32.xlu1 %v3110_v28 }
 0xc1a   :  { %v3107_v2 = vsel %vm1437_vm2, %v3105_v20, -inf }
 0xc1b   :  { %3108 = vmax.xlane.f32.xlu0 %v3107_v2  ;;  %v4696_v37 = vpop.f32.mrf.mxu1 }
 0xc1c   :  { %v3381_v34 = vmul.f32 0.35355338, %v4696_v37 }
 0xc1d   :  { %v3371_v27 = vpop.f32.mrf.mxu1 }
 0xc1e   :  { %v3380_v0 = vmul.f32 0.35355338, %v3371_v27  ;;  %v3383_v11 = vadd.f32 %v5467_v36, %v3381_v34 }
 0xc20   :  { %v3382_v39 = vadd.f32 %v5467_v36, %v3380_v0  ;;  %v3387_v12 = vsel %vm1437_vm2, %v3383_v11, -inf }
 0xc22   :  { %v3384_v29 = vsel %vm1437_vm2, %v3382_v39, -inf }
 0xca2   :  { %v3112_v53 = vpop.xlane.xlu1 %3111 }
 0xca3   :  { %v3114_v14 = vsub.f32 %v3106_v40, %v3112_v53 }
 0xca4   :  { %v3109_v31 = vpop.xlane.xlu0 %3108 }
 0xca5   :  { %v3117_v3 = vmul.f32 1.442695, %v3114_v14  ;;  %v3113_v7 = vsub.f32 %v3105_v20, %v3109_v31 }
 0xca7   :  { %4801 = vpow2.f32 %v3117_v3  ;;  %v3115_v8 = vmul.f32 1.442695, %v3113_v7 }
 0xca9   :  { %4803 = vpow2.f32 %v3115_v8 }
 0xcb4   :  { %v4802_v38 = vpop.eup %4801 }
 0xcb5   :  { %v3122_v42 = vsel %vm1437_vm2, %v4802_v38, 0.0 }
 0xcb6   :  { %v4804_v30 = vpop.eup %4803  ;;  %3123 = vadd.xlane.f32.xlu1 %v3122_v42  ;;  %v5753_v42 = vld [vmem:[#allocation2_spill] sm:$0xff] }
 0xcb7   :  { %v3119_v41 = vsel %vm1437_vm2, %v4804_v30, 0.0 }
 0xcb8   :  { %3120 = vadd.xlane.f32.xlu0 %v3119_v41 }
 0xcba   :  { %3388 = vmax.xlane.f32.xlu1 %v3387_v12 }
 0xcbc   :  { %3385 = vmax.xlane.f32.xlu0 %v3384_v29 }
 0xd3f   :  { %v3124_v35 = vpop.xlane.xlu1 %3123 }
 0xd40   :  { %4805 = vrcp.f32 %v3124_v35  ;;  %v138_v35 = vld [vmem:[%s5739_s10 + $0x10] sm:$0xff] }
 0xd41   :  { %v3121_v47 = vpop.xlane.xlu0 %3120 }
 0xd42   :  { %4807 = vrcp.f32 %v3121_v47  ;;  %v137_v47 = vld [vmem:[%s5739_s10 + $0x8] sm:$0xff] }
 0xd43   :  { %v3389_v51 = vpop.xlane.xlu1 %3388 }
 0xd44   :  { %v3391_v52 = vsub.f32 %v3383_v11, %v3389_v51  ;;  %v136_v51 = vld [vmem:[%s5739_s10] sm:$0xff] }
 0xd45   :  { %v3386_v60 = vpop.xlane.xlu0 %3385 }
 0xd46   :  { %v3394_v24 = vmul.f32 1.442695, %v3391_v52  ;;  %v3390_v13 = vsub.f32 %v3382_v39, %v3386_v60 }
 0xd48   :  { %4809 = vpow2.f32 %v3394_v24  ;;  %v3392_v4 = vmul.f32 1.442695, %v3390_v13 }
 0xd4a   :  { %4811 = vpow2.f32 %v3392_v4 }
 0xd4d   :  { %v4806_v36 = vpop.eup %4805 }
 0xd4e   :  { %v3128_v62 = vmul.f32 %v4806_v36, %v4802_v38 }
 0xd4f   :  { %v4808_v10 = vpop.eup %4807 }
 0xd50   :  { %v3126_v32 = vmul.f32 %v4808_v10, %v4804_v30 }
 0xd52   :  { %4682 = vmatprep.mubr.msk.f32.mxu0 %vm1437_vm2, %v3126_v32 }
 0xd53   :  { %4683 = vmatmul.mubr.msk.f32.vlgmr.msra.gmra.mxu0 %vm1437_vm2, %v3128_v62 }
 0xd54   :  { %4686 = vmatpush3.msra.mxu0 %v5459_v18 }
 0xd55   :  { %v4810_v25 = vpop.eup %4809  ;;  %4697 = vmatprep.subr.mxu0 %v5357_v43 }
 0xd56   :  { %v3399_v22 = vsel %vm1437_vm2, %v4810_v25, 0.0 }
 0xd57   :  { %v4812_v48 = vpop.eup %4811  ;;  %3400 = vadd.xlane.f32.xlu1 %v3399_v22 }
 0xd58   :  { %v3396_v15 = vsel %vm1437_vm2, %v4812_v48, 0.0 }
 0xd59   :  { %3397 = vadd.xlane.f32.xlu0 %v3396_v15 }
 0xd5b   :  { %3588 = vadd.xlane.f32.xlu1 %v3587_v61  ;;  %v4171_v61 = vld [vmem:[%s5740_s8] ss:$0 sm:$0xff] }
 0xd5d   :  { %3585 = vadd.xlane.f32.xlu0 %v3584_v16 }
 0xde0   :  { %v3401_v54 = vpop.xlane.xlu1 %3400 }
 0xde2   :  { %v3398_v18 = vpop.xlane.xlu0 %3397 }
 0xde3   :  { %4813 = vrcp.f32 %v3398_v18 }
 0xde4   :  { %4815 = vrcp.f32 %v3401_v54  ;;  %v3589_v53 = vpop.xlane.xlu1 %3588 }
 0xde5   :  { %v3597_v31 = vmul.f32 0.03125, %v3589_v53 }
 0xde6   :  { %v3586_v14 = vpop.xlane.xlu0 %3585 }
 0xde7   :  { %v3596_v7 = vmul.f32 0.03125, %v3586_v14  ;;  %v3601_v50 = vsub.f32 %v3581_v26, %v3597_v31 }
 0xde9   :  { %v3600_v27 = vsub.f32 %v3580_v33, %v3596_v7  ;;  %v3605_v30 = vmul.f32 %v3601_v50, %v3601_v50 }
 0xdeb   :  { %v3604_v39 = vmul.f32 %v3600_v27, %v3600_v27  ;;  %v3611_v12 = vsel %vm59_vm0, %v3605_v30, 0.0 }
 0xded   :  { %v3608_v29 = vsel %vm59_vm0, %v3604_v39, 0.0 }
 0xdf0   :  { %v4814_v63 = vpop.eup %4813 }
 0xdf1   :  { %v4816_v56 = vpop.eup %4815  ;;  %v3403_v57 = vmul.f32 %v4814_v63, %v4812_v48 }
 0xdf2   :  { %v3405_v49 = vmul.f32 %v4816_v56, %v4810_v25  ;;  %v147_v56 = vld [vmem:[%s5742_s12 + $0x30] sm:$0xff] }
 0xe13   :  { %v4684_v46 = vpop.f32.mrf.mxu0 }
 0xe15   :  { %v3201_v1 = vpop.f32.mrf.mxu0 }
 0xe16   :  { %4687 = vmatprep.mubr.msk.f32.mxu0 %vm1339_vm1, %v3201_v1  ;;  %v148_v1 = vld [vmem:[%s5742_s12 + $0x38] sm:$0xff] }
 0xe17   :  { %4688 = vmatmul.mubr.msk.f32.vlgmr.msra.gmra.mxu0 %vm1339_vm1, %v4684_v46 }
 0xe18   :  { %4698 = vmatpush3.msra.mxu0 %v5357_v43  ;;  %4701 = vmatprep.mubr.msk.f32.mxu0 %vm1437_vm2, %v3403_v57  ;;  %v146_v57 = vld [vmem:[%s5742_s12 + $0x28] sm:$0xff] }
 0xe19   :  { %4699 = vmatprep.subr.mxu0 %v1330_v21 }
 0xe1a   :  { %4700 = vmatpush3.msra.mxu0 %v1330_v21  ;;  %v145_v21 = vld [vmem:[%s5742_s12 + $0x20] sm:$0xff] }
 0xe1b   :  { %4702 = vmatmul.mubr.msk.f32.vlgmr.msra.gmra.mxu0 %vm1437_vm2, %v3405_v49  ;;  %4704 = vmatprep.subr.mxu0 %v5486_v45  ;;  %v144_v49 = vld [vmem:[%s5742_s12 + $0x18] sm:$0xff] }
 0xe1c   :  { %4705 = vmatpush3.msra.mxu0 %v5486_v45 }
 0xe1d   :  { %4723 = vmatprep.subr.mxu0 %v148_v1 }
 0xed7   :  { %v4689_v40 = vpop.f32.mrf.mxu0 }
 0xed8   :  { %v3292_v44 = vadd.f32 %v4689_v40, %v3013_v6  ;;  %v143_v6 = vld [vmem:[%s5742_s12 + $0x10] sm:$0xff]  ;;  %v142_v40 = vld [vmem:[%s5742_s12 + $0x8] sm:$0xff] }
 0xed9   :  { %v3282_v28 = vpop.f32.mrf.mxu0 }
 0xeda   :  { %v3291_v20 = vadd.f32 %v3282_v28, %v3008_v23  ;;  %v141_v23 = vld [vmem:[%s5742_s12] sm:$0xff] }
 0xedb   :  { %v4703_v43 = vpop.f32.mrf.mxu0 }
 0xedd   :  { %v3478_v2 = vpop.f32.mrf.mxu0 }
 0xede   :  { %4706 = vmatprep.mubr.msk.f32.mxu0 %vm1339_vm1, %v3478_v2 }
 0xedf   :  { %4707 = vmatmul.mubr.msk.f32.vlgmr.msra.gmra.mxu0 %vm1339_vm1, %v4703_v43 }
 0xee0   :  { %4724 = vmatpush3.msra.mxu0 %v148_v1 }
 0xee1   :  { %4725 = vmatprep.subr.mxu0 %v147_v56 }
 0xee2   :  { %4726 = vmatpush3.msra.mxu0 %v147_v56 }
 0xee3   :  { %4727 = vmatprep.subr.mxu0 %v146_v57 }
 0xee4   :  { %4728 = vmatpush3.msra.mxu0 %v146_v57 }
 0xee5   :  { %4729 = vmatprep.subr.mxu0 %v145_v21 }
 0xee6   :  { %4730 = vmatpush3.msra.mxu0 %v145_v21 }
 0xee7   :  { %4731 = vmatprep.subr.mxu0 %v144_v49 }
 0xee8   :  { %4732 = vmatpush3.msra.mxu0 %v144_v49 }
 0xee9   :  { %4733 = vmatprep.subr.mxu0 %v143_v6 }
 0xeea   :  { %4734 = vmatpush3.msra.mxu0 %v143_v6  ;;  %v4178_v6 = vld [vmem:[%s5744_s13] ss:$0 sm:$0xff] }
 0xeeb   :  { %4735 = vmatprep.subr.mxu0 %v142_v40 }
 0xeec   :  { %4736 = vmatpush3.msra.mxu0 %v142_v40 }
 0xeed   :  { %4737 = vmatprep.subr.mxu0 %v141_v23 }
 0xeee   :  { %4738 = vmatpush3.msra.mxu0 %v141_v23 }
 0xf9f   :  { %v4708_v3 = vpop.f32.mrf.mxu0 }
 0xfa0   :  { %v3569_v45 = vadd.f32 %v4708_v3, %v3292_v44 }
 0xfa1   :  { %v3559_v8 = vpop.f32.mrf.mxu0 }
 0xfa2   :  { %v3579_v37 = vadd.f32 %v5580_v19, %v3569_v45  ;;  %v3568_v55 = vadd.f32 %v3559_v8, %v3291_v20 }
 0xfa4   :  { %v3578_v34 = vadd.f32 %v5580_v19, %v3568_v55  ;;  %v3583_v0 = vadd.f32 %v3579_v37, %v5026_v5  ;;  %v139_v5 = vld [vmem:[%s5739_s10 + $0x18] sm:$0xff]  ;;  %v4173_v55 = vld [vmem:[%s5743_s11] ss:$0 sm:$0xff] }
 0xfa5   :  { %4709 = vmatprep.subr.mxu1 %v139_v5 }
 0xfa6   :  { %v3593_v38 = vsel %vm59_vm0, %v3583_v0, 0.0  ;;  %v3582_v11 = vadd.f32 %v3578_v34, %v5753_v42  ;;  %4710 = vmatpush3.msra.mxu1 %v139_v5 }
 0xfa7   :  { %3594 = vadd.xlane.f32.xlu1 %v3593_v38  ;;  %4711 = vmatprep.subr.mxu1 %v138_v35 }
 0xfa8   :  { %v3590_v41 = vsel %vm59_vm0, %v3582_v11, 0.0  ;;  %4712 = vmatpush3.msra.mxu1 %v138_v35 }
 0xfa9   :  { %3591 = vadd.xlane.f32.xlu0 %v3590_v41  ;;  %4713 = vmatprep.subr.mxu1 %v137_v47 }
 0xfaa   :  { %4714 = vmatpush3.msra.mxu1 %v137_v47 }
 0xfab   :  { %3612 = vadd.xlane.f32.xlu1 %v3611_v12  ;;  %4715 = vmatprep.subr.mxu1 %v136_v51 }
 0xfac   :  { %4716 = vmatpush3.msra.mxu1 %v136_v51 }
 0xfad   :  { %3609 = vadd.xlane.f32.xlu0 %v3608_v29 }
0x1030   :  { %v3595_v52 = vpop.xlane.xlu1 %3594 }
0x1031   :  { %v3599_v60 = vmul.f32 0.03125, %v3595_v52 }
0x1032   :  { %v3592_v24 = vpop.xlane.xlu0 %3591 }
0x1033   :  { %v5629_v13 = vsub.f32 %v3583_v0, %v3599_v60  ;;  %v3598_v4 = vmul.f32 0.03125, %v3592_v24 }
0x1034   :  { %v3613_v36 = vpop.xlane.xlu1 %3612 }
0x1035   :  { %v5631_v10 = vsub.f32 %v3582_v11, %v3598_v4  ;;  %v3621_v19 = vmul.f32 0.03125, %v3613_v36  ;;  %v3607_v32 = vmul.f32 %v5629_v13, %v5629_v13 }
0x1036   :  { %v3610_v62 = vpop.xlane.xlu0 %3609 }
0x1037   :  { %v3625_v9 = vadd.f32 1e-12, %v3621_v19  ;;  %v3620_v17 = vmul.f32 0.03125, %v3610_v62  ;;  %v3617_v25 = vsel %vm59_vm0, %v3607_v32, 0.0  ;;  %v3606_v22 = vmul.f32 %v5631_v10, %v5631_v10 }
0x1038   :  { %3618 = vadd.xlane.f32.xlu1 %v3617_v25 }
0x1039   :  { %4817 = vrsqrt.f32 %v3625_v9  ;;  %v3624_v26 = vadd.f32 1e-12, %v3620_v17  ;;  %v3614_v48 = vsel %vm59_vm0, %v3606_v22, 0.0 }
0x103a   :  { %3615 = vadd.xlane.f32.xlu0 %v3614_v48 }
0x103b   :  { %4819 = vrsqrt.f32 %v3624_v26 }
0x1046   :  { %v4818_v15 = vpop.eup %4817 }
0x1047   :  { %v3633_v33 = vmul.f32 %v4818_v15, %v3601_v50 }
0x1048   :  { %v4820_v16 = vpop.eup %4819 }
0x1049   :  { %v3632_v18 = vmul.f32 %v4820_v16, %v3600_v27  ;;  %v3643_v54 = vmul.f32 %v4171_v61, %v3633_v33 }
0x104b   :  { %v3642_v59 = vmul.f32 %v4171_v61, %v3632_v18  ;;  %v5647_v46 = vadd.f32 %v4172_v58, %v3643_v54 }
0x104d   :  { %v5645_v63 = vadd.f32 %v4172_v58, %v3642_v59 }
0x104f   :  { %4717 = vmatprep.mubr.msk.f32.mxu1 %vm59_vm0, %v5645_v63 }
0x1050   :  { %4718 = vmatmul.mubr.msk.f32.vlgmr.msra.gmra.mxu1 %vm59_vm0, %v5647_v46 }
0x10c1   :  { %v3619_v44 = vpop.xlane.xlu1 %3618 }
0x10c2   :  { %v3623_v28 = vmul.f32 0.03125, %v3619_v44 }
0x10c3   :  { %v3616_v20 = vpop.xlane.xlu0 %3615 }
0x10c4   :  { %v3627_v43 = vadd.f32 1e-12, %v3623_v28  ;;  %v3622_v2 = vmul.f32 0.03125, %v3616_v20 }
0x10c6   :  { %4821 = vrsqrt.f32 %v3627_v43  ;;  %v3626_v53 = vadd.f32 1e-12, %v3622_v2 }
0x10c8   :  { %4823 = vrsqrt.f32 %v3626_v53 }
0x10d3   :  { %v4822_v14 = vpop.eup %4821 }
0x10d4   :  { %v3635_v31 = vmul.f32 %v4822_v14, %v5629_v13 }
0x10d5   :  { %v4824_v3 = vpop.eup %4823 }
0x10d6   :  { %v3634_v7 = vmul.f32 %v4824_v3, %v5631_v10  ;;  %v3645_v45 = vmul.f32 %v4171_v61, %v3635_v31 }
0x10d8   :  { %v3644_v8 = vmul.f32 %v4171_v61, %v3634_v7  ;;  %v5681_v37 = vadd.f32 %v4172_v58, %v3645_v45 }
0x10da   :  { %v5679_v50 = vadd.f32 %v4172_v58, %v3644_v8 }
0x10dc   :  { %4720 = vmatprep.mubr.msk.f32.mxu1 %vm59_vm0, %v5679_v50 }
0x10dd   :  { %4721 = vmatmul.mubr.msk.f32.gmra.mxu1 %vm59_vm0, %v5681_v37 }
0x1110   :  { %v4719_v27 = vpop.f32.mrf.mxu1 }
0x1111   :  { %v3746_v34 = vadd.f32 %v4719_v27, %v4173_v55 }
0x1112   :  { %v3740_v0 = vpop.f32.mrf.mxu1 }
0x1113   :  { %v3764_v38 = vmul.f32 0.044715, %v3746_v34  ;;  %v3741_v42 = vadd.f32 %v4173_v55, %v3740_v0  ;;  %v3760_v4 = vmul.f32 0.5, %v3746_v34 }
0x1115   :  { %v3768_v11 = vmul.f32 %v3764_v38, %v3746_v34  ;;  %v3763_v30 = vmul.f32 0.044715, %v3741_v42  ;;  %v3759_v24 = vmul.f32 0.5, %v3741_v42 }
0x1117   :  { %v3772_v41 = vmul.f32 %v3768_v11, %v3746_v34  ;;  %v3767_v39 = vmul.f32 %v3763_v30, %v3741_v42 }
0x1119   :  { %v3776_v12 = vadd.f32 %v3772_v41, %v3746_v34  ;;  %v3771_v29 = vmul.f32 %v3767_v39, %v3741_v42 }
0x111b   :  { %v3780_v5 = vmul.f32 0.7978846, %v3776_v12  ;;  %v3775_v35 = vadd.f32 %v3771_v29, %v3741_v42 }
0x111d   :  { %4825 = vtanh.f32 %v3780_v5  ;;  %v3779_v47 = vmul.f32 0.7978846, %v3775_v35 }
0x111f   :  { %4827 = vtanh.f32 %v3779_v47 }
0x112a   :  { %v4826_v51 = vpop.eup %4825 }
0x112b   :  { %v3788_v60 = vadd.f32 1.0, %v4826_v51 }
0x112c   :  { %v4828_v52 = vpop.eup %4827 }
0x112d   :  { %v3787_v13 = vadd.f32 1.0, %v4828_v52  ;;  %v3792_v10 = vmul.f32 %v3788_v60, %v3760_v4 }
0x112f   :  { %v3791_v36 = vmul.f32 %v3787_v13, %v3759_v24 }
0x1131   :  { %4739 = vmatprep.mubr.msk.f32.mxu0 %vm3801_vm3, %v3791_v36 }
0x1132   :  { %4740 = vmatmul.mubr.msk.f32.vlgmr.msra.gmra.mxu0 %vm3801_vm3, %v3792_v10 }
0x119d   :  { %v4722_v19 = vpop.f32.mrf.mxu1 }
0x119e   :  { %v3756_v32 = vadd.f32 %v4722_v19, %v4173_v55 }
0x119f   :  { %v3750_v62 = vpop.f32.mrf.mxu1 }
0x11a0   :  { %v3766_v9 = vmul.f32 0.044715, %v3756_v32  ;;  %v3751_v17 = vadd.f32 %v4173_v55, %v3750_v62  ;;  %v3762_v57 = vmul.f32 0.5, %v3756_v32  ;;  %v4183_v62 = vld [vmem:[%s5745_s14] ss:$0 sm:$0xff] }
0x11a2   :  { %v3770_v25 = vmul.f32 %v3766_v9, %v3756_v32  ;;  %v3765_v22 = vmul.f32 0.044715, %v3751_v17  ;;  %v3761_v1 = vmul.f32 0.5, %v3751_v17 }
0x11a4   :  { %v3774_v26 = vmul.f32 %v3770_v25, %v3756_v32  ;;  %v3769_v48 = vmul.f32 %v3765_v22, %v3751_v17  ;;  %v4184_v25 = vld [vmem:[%s5746_s15] ss:$0 sm:$0xff] }
0x11a6   :  { %v3778_v15 = vadd.f32 %v3774_v26, %v3756_v32  ;;  %v3773_v33 = vmul.f32 %v3769_v48, %v3751_v17 }
0x11a8   :  { %v3777_v61 = vadd.f32 %v3773_v33, %v3751_v17  ;;  %v3782_v16 = vmul.f32 0.7978846, %v3778_v15 }
0x11aa   :  { %v3781_v18 = vmul.f32 0.7978846, %v3777_v61  ;;  %4829 = vtanh.f32 %v3782_v16 }
0x11ac   :  { %4831 = vtanh.f32 %v3781_v18 }
0x11b7   :  { %v4830_v54 = vpop.eup %4829 }
0x11b8   :  { %v3790_v59 = vadd.f32 1.0, %v4830_v54 }
0x11b9   :  { %v4832_v58 = vpop.eup %4831 }
0x11ba   :  { %v3789_v56 = vadd.f32 1.0, %v4832_v58  ;;  %v3794_v49 = vmul.f32 %v3790_v59, %v3762_v57 }
0x11bc   :  { %v3793_v21 = vmul.f32 %v3789_v56, %v3761_v1 }
0x11be   :  { %4742 = vmatprep.mubr.msk.f32.mxu0 %vm3801_vm3, %v3793_v21 }
0x11bf   :  { %4743 = vmatmul.mubr.msk.f32.gmra.mxu0 %vm3801_vm3, %v3794_v49 }
0x11f2   :  { %v4741_v40 = vpop.f32.mrf.mxu0 }
0x11f3   :  { %v3886_v23 = vadd.f32 %v4741_v40, %v4178_v6 }
0x11f4   :  { %v3880_v44 = vpop.f32.mrf.mxu0 }
0x11f5   :  { %v3881_v28 = vadd.f32 %v4178_v6, %v3880_v44  ;;  %v3900_v20 = vadd.f32 %v3886_v23, %v5647_v46 }
0x11f7   :  { %v3906_v43 = vsel %vm59_vm0, %v3900_v20, 0.0  ;;  %v3899_v2 = vadd.f32 %v3881_v28, %v5645_v63 }
0x11f8   :  { %3907 = vadd.xlane.f32.xlu1 %v3906_v43 }
0x11f9   :  { %v3903_v53 = vsel %vm59_vm0, %v3899_v2, 0.0 }
0x11fa   :  { %3904 = vadd.xlane.f32.xlu0 %v3903_v53 }
0x127f   :  { %v4744_v14 = vpop.f32.mrf.mxu0 }
0x1280   :  { %v3896_v31 = vadd.f32 %v4744_v14, %v4178_v6 }
0x1281   :  { %v3908_v3 = vpop.xlane.xlu1 %3907  ;;  %v3890_v7 = vpop.f32.mrf.mxu0 }
0x1282   :  { %v3916_v45 = vmul.f32 0.03125, %v3908_v3  ;;  %v3891_v8 = vadd.f32 %v4178_v6, %v3890_v7  ;;  %v3902_v55 = vadd.f32 %v3896_v31, %v5681_v37 }
0x1283   :  { %v3905_v27 = vpop.xlane.xlu0 %3904 }
0x1284   :  { %v3920_v34 = vsub.f32 %v3900_v20, %v3916_v45  ;;  %v3915_v0 = vmul.f32 0.03125, %v3905_v27  ;;  %v3912_v46 = vsel %vm59_vm0, %v3902_v55, 0.0  ;;  %v3901_v38 = vadd.f32 %v3891_v8, %v5679_v50 }
0x1285   :  { %3913 = vadd.xlane.f32.xlu1 %v3912_v46 }
0x1286   :  { %v3919_v63 = vsub.f32 %v3899_v2, %v3915_v0  ;;  %v3909_v42 = vsel %vm59_vm0, %v3901_v38, 0.0  ;;  %v3924_v11 = vmul.f32 %v3920_v34, %v3920_v34 }
0x1287   :  { %3910 = vadd.xlane.f32.xlu0 %v3909_v42 }
0x1288   :  { %v3930_v30 = vsel %vm59_vm0, %v3924_v11, 0.0  ;;  %v3923_v41 = vmul.f32 %v3919_v63, %v3919_v63 }
0x1289   :  { %3931 = vadd.xlane.f32.xlu1 %v3930_v30 }
0x128a   :  { %v3927_v39 = vsel %vm59_vm0, %v3923_v41, 0.0 }
0x128b   :  { %3928 = vadd.xlane.f32.xlu0 %v3927_v39 }
0x130e   :  { %v3914_v37 = vpop.xlane.xlu1 %3913 }
0x130f   :  { %v3918_v12 = vmul.f32 0.03125, %v3914_v37 }
0x1310   :  { %v3911_v29 = vpop.xlane.xlu0 %3910 }
0x1311   :  { %v3922_v5 = vsub.f32 %v3902_v55, %v3918_v12  ;;  %v3917_v35 = vmul.f32 0.03125, %v3911_v29 }
0x1312   :  { %v3932_v47 = vpop.xlane.xlu1 %3931 }
0x1313   :  { %v3921_v50 = vsub.f32 %v3901_v38, %v3917_v35  ;;  %v3940_v51 = vmul.f32 0.03125, %v3932_v47  ;;  %v3926_v52 = vmul.f32 %v3922_v5, %v3922_v5 }
0x1314   :  { %v3929_v60 = vpop.xlane.xlu0 %3928 }
0x1315   :  { %v3944_v24 = vadd.f32 1e-12, %v3940_v51  ;;  %v3939_v13 = vmul.f32 0.03125, %v3929_v60  ;;  %v3936_v4 = vsel %vm59_vm0, %v3926_v52, 0.0  ;;  %v3925_v36 = vmul.f32 %v3921_v50, %v3921_v50 }
0x1316   :  { %3937 = vadd.xlane.f32.xlu1 %v3936_v4 }
0x1317   :  { %4833 = vrsqrt.f32 %v3944_v24  ;;  %v3943_v10 = vadd.f32 1e-12, %v3939_v13  ;;  %v3933_v19 = vsel %vm59_vm0, %v3925_v36, 0.0 }
0x1318   :  { %3934 = vadd.xlane.f32.xlu0 %v3933_v19 }
0x1319   :  { %4835 = vrsqrt.f32 %v3943_v10 }
0x1324   :  { %v4834_v32 = vpop.eup %4833 }
0x1325   :  { %v3952_v9 = vmul.f32 %v4834_v32, %v3920_v34 }
0x1326   :  { %v4836_v17 = vpop.eup %4835 }
0x1327   :  { %v3962_v22 = vmul.f32 %v4183_v62, %v3952_v9  ;;  %v3951_v26 = vmul.f32 %v4836_v17, %v3919_v63 }
0x1329   :  { %v3972_v48 = vadd.f32 %v4184_v25, %v3962_v22  ;;  %v3961_v15 = vmul.f32 %v4183_v62, %v3951_v26 }
0x132b   :  { %3976 = vst.msk [vmem:[%s5747_s16 + $0x8] sm:$0xff] %vm59_vm0, %v3972_v48  ;;  %v3971_v33 = vadd.f32 %v4184_v25, %v3961_v15 }
0x132d   :  { %3975 = vst.msk [vmem:[%s5747_s16] sm:$0xff] %vm59_vm0, %v3971_v33 }
0x139f   :  { %v3938_v61 = vpop.xlane.xlu1 %3937 }
0x13a0   :  { %v3942_v16 = vmul.f32 0.03125, %v3938_v61 }
0x13a1   :  { %v3935_v18 = vpop.xlane.xlu0 %3934 }
0x13a2   :  { %v3946_v54 = vadd.f32 1e-12, %v3942_v16  ;;  %v3941_v58 = vmul.f32 0.03125, %v3935_v18 }
0x13a4   :  { %4837 = vrsqrt.f32 %v3946_v54  ;;  %v3945_v59 = vadd.f32 1e-12, %v3941_v58 }
0x13a6   :  { %4839 = vrsqrt.f32 %v3945_v59 }
0x13b1   :  { %v4838_v1 = vpop.eup %4837 }
0x13b2   :  { %v3954_v56 = vmul.f32 %v4838_v1, %v3922_v5 }
0x13b3   :  { %v4840_v57 = vpop.eup %4839 }
0x13b4   :  { %v3964_v21 = vmul.f32 %v4183_v62, %v3954_v56  ;;  %v3953_v49 = vmul.f32 %v4840_v57, %v3921_v50 }
0x13b6   :  { %v3974_v6 = vadd.f32 %v4184_v25, %v3964_v21  ;;  %v3963_v40 = vmul.f32 %v4183_v62, %v3953_v49 }
0x13b8   :  { %3978 = vst.msk [vmem:[%s5747_s16 + $0x18] sm:$0xff] %vm59_vm0, %v3974_v6  ;;  %v3973_v23 = vadd.f32 %v4184_v25, %v3963_v40 }
0x13ba   :  { %3977 = vst.msk [vmem:[%s5747_s16 + $0x10] sm:$0xff] %vm59_vm0, %v3973_v23 }

// kernel: pelectra_forward.4
= control target key start
LH: loop header
LB: loop body
LE: loop exit
PB: predicated region body
PF: predicated region fallthrough
CT: control target
= control target key end

     0   :  { %s8149_s6 = smov 1   ;;  %s8150_s10 = smov 2   ;;  %s9266_s0 = inlined_call_operand.smem [shape: u32[30], index: -1, kind: input, shape index: {}] }
   0x1   :  { %s8190_s5 = sld [smem:[%s9266_s0]]   ;;  %s8151_s14 = smov 3  }
   0x2   :  { %s8195_s9 = sld [smem:[%s9266_s0 + %s8149_s6]]   ;;  %s8152_s18 = smov 4  }
   0x3   :  { %s8200_s13 = sld [smem:[%s9266_s0 + %s8150_s10]]   ;;  %s8153_s22 = smov 5  }
   0x4   :  { %s8205_s17 = sld [smem:[%s9266_s0 + %s8151_s14]]   ;;  %s8154_s26 = smov 6  }
   0x5   :  { %s8210_s21 = sld [smem:[%s9266_s0 + %s8152_s18]]   ;;  %s8155_s30 = smov 7  }
   0x6   :  { %s8215_s25 = sld [smem:[%s9266_s0 + %s8153_s22]]   ;;  %s8156_s4 = smov 8  }
   0x7   :  { %s8220_s29 = sld [smem:[%s9266_s0 + %s8154_s26]]   ;;  %s8157_s10 = smov 9  }
   0x8   :  { %s8225_s3 = sld [smem:[%s9266_s0 + %s8155_s30]]   ;;  %s8158_s15 = smov 10  }
   0x9   :  { %s8230_s8 = sld [smem:[%s9266_s0 + %s8156_s4]]   ;;  %s8159_s20 = smov 11  }
   0xa   :  { %s8235_s14 = sld [smem:[%s9266_s0 + %s8157_s10]]   ;;  %s8160_s26 = smov 12  }
   0xb   :  { %9272 = sst [smem:[#allocation5_spill]] %s8210_s21  ;;  %s8161_s1 = smov 13  }
   0xc   :  { %9273 = sst [smem:[#allocation6_spill]] %s8215_s25  ;;  %s8162_s7 = smov 14  }
   0xd   :  { %s8240_s19 = sld [smem:[%s9266_s0 + %s8158_s15]]   ;;  %s8163_s15 = smov 15  }
   0xe   :  { %s8245_s24 = sld [smem:[%s9266_s0 + %s8159_s20]]   ;;  %s8164_s22 = smov 16  }
   0xf   :  { %s8250_s30 = sld [smem:[%s9266_s0 + %s8160_s26]]   ;;  %s8165_s28 = smov 17  }
  0x10   :  { %s8255_s6 = sld [smem:[%s9266_s0 + %s8161_s1]]  }
  0x11   :  { %s8260_s12 = sld [smem:[%s9266_s0 + %s8162_s7]]   ;;  %s8166_s7 = smov 18  }
  0x12   :  { %s8265_s20 = sld [smem:[%s9266_s0 + %s8163_s15]]   ;;  %s8167_s15 = smov 19  }
  0x13   :  { %s8270_s27 = sld [smem:[%s9266_s0 + %s8164_s22]]   ;;  %s8168_s22 = smov 20  }
  0x14   :  { %s8275_s4 = sld [smem:[%s9266_s0 + %s8165_s28]]   ;;  %s8169_s28 = smov 21  }
  0x15   :  { %s8280_s25 = sld [smem:[%s9266_s0 + %s8166_s7]]   ;;  %s8170_s7 = smov 22  }
  0x16   :  { %s8285_s21 = sld [smem:[%s9266_s0 + %s8167_s15]]   ;;  %s8171_s15 = smov 23  }
  0x19   :  { %9274 = sst [smem:[#allocation7_spill]] %s8270_s27 }
  0x1a   :  { %9275 = sst [smem:[#allocation8_spill]] %s8275_s4 }
  0x1b   :  { %9276 = sst [smem:[#allocation9_spill]] %s8280_s25 }
  0x1c   :  { %9277 = sst [smem:[#allocation10_spill]] %s8285_s21 }
  0x1d   :  { %s8290_s27 = sld [smem:[%s9266_s0 + %s8168_s22]]   ;;  %s8172_s22 = smov 24  }
  0x1e   :  { %s8295_s4 = sld [smem:[%s9266_s0 + %s8169_s28]]   ;;  %s8173_s28 = smov 25  }
  0x1f   :  { %s8300_s25 = sld [smem:[%s9266_s0 + %s8170_s7]]   ;;  %s8174_s7 = smov 26  }
  0x20   :  { %s8305_s21 = sld [smem:[%s9266_s0 + %s8171_s15]]   ;;  %s8175_s15 = smov 27  }
  0x23   :  { %9278 = sst [smem:[#allocation11_spill]] %s8290_s27 }
  0x24   :  { %9279 = sst [smem:[#allocation12_spill]] %s8295_s4 }
  0x25   :  { %9280 = sst [smem:[#allocation13_spill]] %s8300_s25 }
  0x26   :  { %9281 = sst [smem:[#allocation14_spill]] %s8305_s21 }
  0x27   :  { %s8310_s27 = sld [smem:[%s9266_s0 + %s8172_s22]]   ;;  %s8176_s22 = smov 28  }
  0x28   :  { %s8315_s4 = sld [smem:[%s9266_s0 + %s8173_s28]]   ;;  %s8177_s28 = smov 29  }
  0x29   :  { %s8320_s25 = sld [smem:[%s9266_s0 + %s8174_s7]]  }
  0x2a   :  { %s8325_s21 = sld [smem:[%s9266_s0 + %s8175_s15]]  }
  0x2d   :  { %9282 = sst [smem:[#allocation15_spill]] %s8310_s27 }
  0x2e   :  { %9283 = sst [smem:[#allocation16_spill]] %s8315_s4 }
  0x2f   :  { %s8330_s27 = sld [smem:[%s9266_s0 + %s8176_s22]]  }
  0x30   :  { %s8335_s4 = sld [smem:[%s9266_s0 + %s8177_s28]]  }
  0x31   :  { %v122_v0 = vld [vmem:[%s8190_s5] sm:$0xff]  ;;  %vm126_vm0 = vcmask 261120   ;;  %v123_v1 = vld [vmem:[%s8190_s5 + $0x8] sm:$0xff] }
  0x32   :  { %65 = vsyncpa [#allocation3], 0  ;;  %v127_v2 = vsel %vm126_vm0, %v122_v0, 0.0  ;;  %v130_v3 = vsel %vm126_vm0, %v123_v1, 0.0  ;;  %v174_v14 = vld [vmem:[%s8230_s8 + $0x18] sm:$0xff]  ;;  %v173_v16 = vld [vmem:[%s8230_s8 + $0x10] sm:$0xff] }
  0x33   :  { %128 = vadd.xlane.f32.xlu0 %v127_v2  ;;  %v6810_v15 = vld [vmem:[%s8230_s8 + $0x98] sm:$0xff]  ;;  %7397 = vmatprep.subr.mxu0 %v174_v14  ;;  %v6809_v17 = vld [vmem:[%s8230_s8 + $0x90] sm:$0xff]  ;;  %v172_v18 = vld [vmem:[%s8230_s8 + $0x8] sm:$0xff]  ;;  %vm8179_vm1 = vmmov 0   ;;  %vm1232_vm2 = vcmask 64512   ;;  %vm4437_vm3 = vcmask 130048  }
  0x34   :  { %7408 = vmatprep.subr.mxu1 %v6810_v15  ;;  %7398 = vmatpush3.msra.mxu0 %v174_v14  ;;  %v6808_v19 = vld [vmem:[%s8230_s8 + $0x88] sm:$0xff]  ;;  %v171_v20 = vld [vmem:[%s8230_s8] sm:$0xff]  ;;  %v6818_v22 = vld [vmem:[%s8230_s8 + $0x118] sm:$0xff]  ;;  %v8178_v14 = vmov 0.0   ;;  %s9284_s0 = sld [smem:[#allocation7_spill]]  ;;  %vm6459_vm4 = vcmask 523264  }
  0x35   :  { %7409 = vmatpush3.msra.mxu1 %v6810_v15  ;;  %7399 = vmatprep.subr.mxu0 %v173_v16  ;;  %v6807_v21 = vld [vmem:[%s8230_s8 + $0x80] sm:$0xff]  ;;  %v6826_v23 = vld [vmem:[%s8230_s8 + $0x38] sm:$0xff]  ;;  %v6817_v40 = vld [vmem:[%s8230_s8 + $0x110] sm:$0xff]  ;;  %s9285_s5 = sld [smem:[#allocation8_spill]]  ;;  %vm6731_vm7 = vcmask 7168   ;;  %vm6753_vm8 = vcmask 0  }
  0x36   :  { %7410 = vmatprep.subr.mxu1 %v6809_v17  ;;  %7400 = vmatpush3.msra.mxu0 %v173_v16  ;;  %v6802_v31 = vld [vmem:[%s8220_s29] ss:$0 sm:$0xff]  ;;  %v6825_v41 = vld [vmem:[%s8230_s8 + $0x30] sm:$0xff]  ;;  %v6816_v42 = vld [vmem:[%s8230_s8 + $0x108] sm:$0xff]  ;;  %s9289_s29 = sld [smem:[#allocation13_spill]] }
  0x37   :  { %131 = vadd.xlane.f32.xlu0 %v130_v3  ;;  %7411 = vmatpush3.msra.mxu1 %v6809_v17  ;;  %v6803_v33 = vld [vmem:[%s8225_s3] ss:$0 sm:$0xff]  ;;  %v6824_v43 = vld [vmem:[%s8230_s8 + $0x28] sm:$0xff]  ;;  %v6834_v46 = vld [vmem:[%s8230_s8 + $0xb8] sm:$0xff]  ;;  %s9290_s3 = sld [smem:[#allocation12_spill]] }
  0x38   :  { %7401 = vmatprep.subr.mxu0 %v172_v18  ;;  %7412 = vmatprep.subr.mxu1 %v6808_v19  ;;  %v6815_v44 = vld [vmem:[%s8230_s8 + $0x100] sm:$0xff]  ;;  %v6842_v47 = vld [vmem:[%s8230_s8 + $0x138] sm:$0xff]  ;;  %v6833_v48 = vld [vmem:[%s8230_s8 + $0xb0] sm:$0xff] }
  0x39   :  { %7402 = vmatpush3.msra.mxu0 %v172_v18  ;;  %7413 = vmatpush3.msra.mxu1 %v6808_v19  ;;  %v6823_v45 = vld [vmem:[%s8230_s8 + $0x20] sm:$0xff]  ;;  %v6841_v49 = vld [vmem:[%s8230_s8 + $0x130] sm:$0xff]  ;;  %v6832_v50 = vld [vmem:[%s8230_s8 + $0xa8] sm:$0xff] }
  0x3a   :  { %7403 = vmatprep.subr.mxu0 %v171_v20  ;;  %7414 = vmatprep.subr.mxu1 %v6807_v21  ;;  %v6840_v51 = vld [vmem:[%s8230_s8 + $0x128] sm:$0xff]  ;;  %v6831_v52 = vld [vmem:[%s8230_s8 + $0xa0] sm:$0xff]  ;;  %v6850_v54 = vld [vmem:[%s8230_s8 + $0x58] sm:$0xff] }
  0x3b   :  { %7404 = vmatpush3.msra.mxu0 %v171_v20  ;;  %7415 = vmatpush3.msra.mxu1 %v6807_v21  ;;  %v6839_v53 = vld [vmem:[%s8230_s8 + $0x120] sm:$0xff]  ;;  %v6858_v55 = vld [vmem:[%s8230_s8 + $0xd8] sm:$0xff]  ;;  %v6849_v56 = vld [vmem:[%s8230_s8 + $0x50] sm:$0xff] }
  0x3c   :  { %7419 = vmatprep.subr.mxu0 %v6818_v22  ;;  %7430 = vmatprep.subr.mxu1 %v6826_v23  ;;  %v6857_v57 = vld [vmem:[%s8230_s8 + $0xd0] sm:$0xff]  ;;  %v6848_v58 = vld [vmem:[%s8230_s8 + $0x48] sm:$0xff]  ;;  %v6847_v60 = vld [vmem:[%s8230_s8 + $0x40] sm:$0xff] }
  0x3d   :  { %v6856_v59 = vld [vmem:[%s8230_s8 + $0xc8] sm:$0xff]  ;;  %v6855_v61 = vld [vmem:[%s8230_s8 + $0xc0] sm:$0xff]  ;;  %v6866_v62 = vld [vmem:[%s8230_s8 + $0x158] sm:$0xff] }
  0x3e   :  { %v6874_v63 = vld [vmem:[%s8230_s8 + $0x78] sm:$0xff]  ;;  %v6864_v2 = vld [vmem:[%s8230_s8 + $0x148] sm:$0xff]  ;;  %v6804_v15 = vld [vmem:[%s8235_s14] ss:$0 sm:$0xff] }
  0x3f   :  { %v6872_v3 = vld [vmem:[%s8230_s8 + $0x68] sm:$0xff]  ;;  %v6812_v16 = vld [vmem:[%s8235_s14 + $0x4] ss:$0 sm:$0xff] }
  0xbc   :  { %v129_v4 = vpop.xlane.xlu0 %128 }
  0xbd   :  { %v134_v5 = vmul.f32 0.03125, %v129_v4  ;;  %v6863_v4 = vld [vmem:[%s8230_s8 + $0x140] sm:$0xff] }
  0xbf   :  { %v136_v6 = vsub.f32 %v122_v0, %v134_v5  ;;  %v6865_v0 = vld [vmem:[%s8230_s8 + $0x150] sm:$0xff]  ;;  %v6871_v5 = vld [vmem:[%s8230_s8 + $0x60] sm:$0xff] }
  0xc0   :  { %v132_v7 = vpop.xlane.xlu0 %131 }
  0xc1   :  { %v135_v8 = vmul.f32 0.03125, %v132_v7  ;;  %v138_v9 = vmul.f32 %v136_v6, %v136_v6  ;;  %v6890_v7 = vld [vmem:[%s8230_s8 + $0x178] sm:$0xff] }
  0xc3   :  { %v137_v10 = vsub.f32 %v123_v1, %v135_v8  ;;  %v140_v11 = vsel %vm126_vm0, %v138_v9, 0.0  ;;  %v6873_v1 = vld [vmem:[%s8230_s8 + $0x70] sm:$0xff] }
  0xc4   :  { %141 = vadd.xlane.f32.xlu1 %v140_v11  ;;  %v6881_v8 = vld [vmem:[%s8230_s8 + $0xf0] sm:$0xff]  ;;  %v6888_v11 = vld [vmem:[%s8230_s8 + $0x168] sm:$0xff] }
  0xc5   :  { %v139_v12 = vmul.f32 %v137_v10, %v137_v10  ;;  %v6889_v9 = vld [vmem:[%s8230_s8 + $0x170] sm:$0xff] }
  0xc7   :  { %v143_v13 = vsel %vm126_vm0, %v139_v12, 0.0  ;;  %v6879_v12 = vld [vmem:[%s8230_s8 + $0xe0] sm:$0xff] }
  0xc8   :  { %144 = vadd.xlane.f32.xlu1 %v143_v13  ;;  %v6887_v13 = vld [vmem:[%s8230_s8 + $0x160] sm:$0xff] }
 0x14d   :  { %v142_v24 = vpop.xlane.xlu1 %141 }
 0x14e   :  { %v146_v25 = vmul.f32 0.03125, %v142_v24 }
 0x150   :  { %v148_v26 = vadd.f32 1e-12, %v146_v25  ;;  %v6820_v25 = vld [vmem:[%s8235_s14 + $0x8] ss:$0 sm:$0xff] }
 0x151   :  { %v145_v27 = vpop.xlane.xlu1 %144 }
 0x152   :  { %8033 = vrsqrt.f32 %v148_v26  ;;  %v147_v28 = vmul.f32 0.03125, %v145_v27  ;;  %v6828_v26 = vld [vmem:[%s8235_s14 + $0x1] ss:$0 sm:$0xff] }
 0x154   :  { %v149_v29 = vadd.f32 1e-12, %v147_v28 }
 0x156   :  { %8035 = vrsqrt.f32 %v149_v29 }
 0x15f   :  { %v8034_v30 = vpop.eup %8033 }
 0x160   :  { %v152_v32 = vmul.f32 %v8034_v30, %v136_v6  ;;  %v6882_v6 = vld [vmem:[%s8230_s8 + $0xf8] sm:$0xff] }
 0x162   :  { %v160_v34 = vmul.f32 %v6802_v31, %v152_v32 }
 0x163   :  { %v8036_v35 = vpop.eup %8035 }
 0x164   :  { %v8355_v36 = vadd.f32 %v6803_v33, %v160_v34  ;;  %v153_v37 = vmul.f32 %v8036_v35, %v137_v10  ;;  %v6880_v10 = vld [vmem:[%s8230_s8 + $0xe8] sm:$0xff]  ;;  %v6836_v34 = vld [vmem:[%s8235_s14 + $0x5] ss:$0 sm:$0xff]  ;;  %s9291_s8 = sld [smem:[#allocation14_spill]] }
 0x165   :  { %v8471_v35 = vld [vmem:[%s8235_s14 + $0x9] ss:$0 sm:$0xff] }
 0x166   :  { %v161_v38 = vmul.f32 %v6802_v31, %v153_v37  ;;  %7405 = vmatprep.mubr.msk.f32.mxu0 %vm126_vm0, %v8355_v36  ;;  %7416 = vmatprep.mubr.msk.f32.mxu1 %vm126_vm0, %v8355_v36 }
 0x168   :  { %v8361_v39 = vadd.f32 %v6803_v33, %v161_v38 }
 0x16a   :  { %7406 = vmatmul.mubr.msk.f32.vlgmr.msra.gmra.mxu0 %vm126_vm0, %v8361_v39  ;;  %7417 = vmatmul.mubr.msk.f32.vlgmr.msra.gmra.mxu1 %vm126_vm0, %v8361_v39 }
 0x16b   :  { %7420 = vmatpush3.msra.mxu0 %v6818_v22  ;;  %7431 = vmatpush3.msra.mxu1 %v6826_v23 }
 0x16c   :  { %7421 = vmatprep.subr.mxu0 %v6817_v40  ;;  %7427 = vmatprep.mubr.msk.f32.mxu0 %vm126_vm0, %v8355_v36 }
 0x16d   :  { %7432 = vmatprep.subr.mxu1 %v6825_v41  ;;  %7438 = vmatprep.mubr.msk.f32.mxu1 %vm126_vm0, %v8355_v36 }
 0x16e   :  { %7422 = vmatpush3.msra.mxu0 %v6817_v40  ;;  %7433 = vmatpush3.msra.mxu1 %v6825_v41 }
 0x16f   :  { %7423 = vmatprep.subr.mxu0 %v6816_v42  ;;  %7434 = vmatprep.subr.mxu1 %v6824_v43 }
 0x170   :  { %7424 = vmatpush3.msra.mxu0 %v6816_v42  ;;  %7435 = vmatpush3.msra.mxu1 %v6824_v43 }
 0x171   :  { %7425 = vmatprep.subr.mxu0 %v6815_v44  ;;  %7436 = vmatprep.subr.mxu1 %v6823_v45 }
 0x172   :  { %7426 = vmatpush3.msra.mxu0 %v6815_v44  ;;  %7437 = vmatpush3.msra.mxu1 %v6823_v45 }
 0x173   :  { %7428 = vmatmul.mubr.msk.f32.vlgmr.msra.gmra.mxu0 %vm126_vm0, %v8361_v39  ;;  %7439 = vmatmul.mubr.msk.f32.vlgmr.msra.gmra.mxu1 %vm126_vm0, %v8361_v39 }
 0x174   :  { %7441 = vmatprep.subr.mxu0 %v6834_v46  ;;  %7452 = vmatprep.subr.mxu1 %v6842_v47 }
 0x175   :  { %7442 = vmatpush3.msra.mxu0 %v6834_v46  ;;  %7449 = vmatprep.mubr.msk.f32.mxu0 %vm126_vm0, %v8355_v36  ;;  %v8481_v46 = vld [vmem:[%s8235_s14 + $0x2] ss:$0 sm:$0xff] }
 0x176   :  { %7453 = vmatpush3.msra.mxu1 %v6842_v47  ;;  %7460 = vmatprep.mubr.msk.f32.mxu1 %vm126_vm0, %v8355_v36  ;;  %v8484_v47 = vld [vmem:[%s8235_s14 + $0x6] ss:$0 sm:$0xff] }
 0x177   :  { %7443 = vmatprep.subr.mxu0 %v6833_v48  ;;  %7454 = vmatprep.subr.mxu1 %v6841_v49 }
 0x178   :  { %7444 = vmatpush3.msra.mxu0 %v6833_v48  ;;  %7455 = vmatpush3.msra.mxu1 %v6841_v49 }
 0x179   :  { %7445 = vmatprep.subr.mxu0 %v6832_v50  ;;  %7456 = vmatprep.subr.mxu1 %v6840_v51 }
 0x17a   :  { %7446 = vmatpush3.msra.mxu0 %v6832_v50  ;;  %7457 = vmatpush3.msra.mxu1 %v6840_v51 }
 0x17b   :  { %7447 = vmatprep.subr.mxu0 %v6831_v52  ;;  %7458 = vmatprep.subr.mxu1 %v6839_v53 }
 0x17c   :  { %7448 = vmatpush3.msra.mxu0 %v6831_v52  ;;  %7459 = vmatpush3.msra.mxu1 %v6839_v53 }
 0x17d   :  { %7450 = vmatmul.mubr.msk.f32.vlgmr.msra.gmra.mxu0 %vm126_vm0, %v8361_v39  ;;  %7461 = vmatmul.mubr.msk.f32.vlgmr.msra.gmra.mxu1 %vm126_vm0, %v8361_v39 }
 0x17e   :  { %7463 = vmatprep.subr.mxu0 %v6850_v54  ;;  %7474 = vmatprep.subr.mxu1 %v6858_v55 }
 0x17f   :  { %7464 = vmatpush3.msra.mxu0 %v6850_v54  ;;  %7471 = vmatprep.mubr.msk.f32.mxu0 %vm126_vm0, %v8355_v36  ;;  %v8500_v54 = vld [vmem:[%s8235_s14 + $0xa] ss:$0 sm:$0xff] }
 0x180   :  { %7475 = vmatpush3.msra.mxu1 %v6858_v55  ;;  %7482 = vmatprep.mubr.msk.f32.mxu1 %vm126_vm0, %v8355_v36  ;;  %v8503_v55 = vld [vmem:[%s8235_s14 + $0x3] ss:$0 sm:$0xff] }
 0x181   :  { %7465 = vmatprep.subr.mxu0 %v6849_v56  ;;  %7476 = vmatprep.subr.mxu1 %v6857_v57 }
 0x182   :  { %7466 = vmatpush3.msra.mxu0 %v6849_v56  ;;  %7477 = vmatpush3.msra.mxu1 %v6857_v57 }
 0x183   :  { %7467 = vmatprep.subr.mxu0 %v6848_v58  ;;  %7478 = vmatprep.subr.mxu1 %v6856_v59 }
 0x184   :  { %7468 = vmatpush3.msra.mxu0 %v6848_v58  ;;  %7479 = vmatpush3.msra.mxu1 %v6856_v59 }
 0x185   :  { %7469 = vmatprep.subr.mxu0 %v6847_v60  ;;  %7480 = vmatprep.subr.mxu1 %v6855_v61 }
 0x186   :  { %7470 = vmatpush3.msra.mxu0 %v6847_v60  ;;  %7481 = vmatpush3.msra.mxu1 %v6855_v61 }
 0x187   :  { %7472 = vmatmul.mubr.msk.f32.vlgmr.msra.gmra.mxu0 %vm126_vm0, %v8361_v39  ;;  %7483 = vmatmul.mubr.msk.f32.vlgmr.msra.gmra.mxu1 %vm126_vm0, %v8361_v39 }
 0x188   :  { %7485 = vmatprep.subr.mxu0 %v6866_v62  ;;  %7496 = vmatprep.subr.mxu1 %v6874_v63 }
 0x189   :  { %7486 = vmatpush3.msra.mxu0 %v6866_v62  ;;  %7493 = vmatprep.mubr.msk.f32.mxu0 %vm126_vm0, %v8355_v36  ;;  %v8514_v62 = vld [vmem:[%s8235_s14 + $0x7] ss:$0 sm:$0xff] }
 0x18a   :  { %7497 = vmatpush3.msra.mxu1 %v6874_v63  ;;  %7504 = vmatprep.mubr.msk.f32.mxu1 %vm126_vm0, %v8355_v36  ;;  %v8517_v63 = vld [vmem:[%s8235_s14 + $0xb] ss:$0 sm:$0xff]  ;;  %s9292_s14 = sld [smem:[#allocation15_spill]] }
 0x18b   :  { %7487 = vmatprep.subr.mxu0 %v6865_v0  ;;  %7498 = vmatprep.subr.mxu1 %v6873_v1 }
 0x18c   :  { %7488 = vmatpush3.msra.mxu0 %v6865_v0  ;;  %7499 = vmatpush3.msra.mxu1 %v6873_v1 }
 0x18d   :  { %7489 = vmatprep.subr.mxu0 %v6864_v2  ;;  %7500 = vmatprep.subr.mxu1 %v6872_v3 }
 0x18e   :  { %7490 = vmatpush3.msra.mxu0 %v6864_v2  ;;  %7501 = vmatpush3.msra.mxu1 %v6872_v3 }
 0x18f   :  { %7491 = vmatprep.subr.mxu0 %v6863_v4  ;;  %7502 = vmatprep.subr.mxu1 %v6871_v5 }
 0x190   :  { %7492 = vmatpush3.msra.mxu0 %v6863_v4  ;;  %7503 = vmatpush3.msra.mxu1 %v6871_v5 }
 0x191   :  { %7494 = vmatmul.mubr.msk.f32.vlgmr.msra.gmra.mxu0 %vm126_vm0, %v8361_v39  ;;  %7505 = vmatmul.mubr.msk.f32.vlgmr.msra.gmra.mxu1 %vm126_vm0, %v8361_v39 }
 0x192   :  { %7507 = vmatprep.subr.mxu0 %v6882_v6  ;;  %7518 = vmatprep.subr.mxu1 %v6890_v7 }
 0x193   :  { %7508 = vmatpush3.msra.mxu0 %v6882_v6  ;;  %7515 = vmatprep.mubr.msk.f32.mxu0 %vm126_vm0, %v8355_v36  ;;  %v8528_v6 = vld [vmem:[%s8200_s13] ss:$0 sm:$0xff] }
 0x194   :  { %7519 = vmatpush3.msra.mxu1 %v6890_v7  ;;  %7526 = vmatprep.mubr.msk.f32.mxu1 %vm126_vm0, %v8355_v36 }
 0x195   :  { %7509 = vmatprep.subr.mxu0 %v6881_v8  ;;  %7520 = vmatprep.subr.mxu1 %v6889_v9 }
 0x196   :  { %7510 = vmatpush3.msra.mxu0 %v6881_v8  ;;  %7521 = vmatpush3.msra.mxu1 %v6889_v9 }
 0x197   :  { %7511 = vmatprep.subr.mxu0 %v6880_v10  ;;  %7522 = vmatprep.subr.mxu1 %v6888_v11 }
 0x198   :  { %7512 = vmatpush3.msra.mxu0 %v6880_v10  ;;  %7523 = vmatpush3.msra.mxu1 %v6888_v11 }
 0x199   :  { %7513 = vmatprep.subr.mxu0 %v6879_v12  ;;  %7524 = vmatprep.subr.mxu1 %v6887_v13 }
 0x19a   :  { %7514 = vmatpush3.msra.mxu0 %v6879_v12  ;;  %7525 = vmatpush3.msra.mxu1 %v6887_v13 }
 0x19b   :  { %7516 = vmatmul.mubr.msk.f32.vlgmr.msra.gmra.mxu0 %vm126_vm0, %v8361_v39  ;;  %7527 = vmatmul.mubr.msk.f32.vlgmr.msra.gmra.mxu1 %vm126_vm0, %v8361_v39 }
 0x19c   :  { %7529 = vmatprep.subr.mxu0 %v8178_v14  ;;  %7534 = vmatprep.subr.mxu1 %v8178_v14 }
 0x19d   :  { %7531 = vmatprep.mubr.msk.f32.mxu0 %vm8179_vm1, %v8178_v14  ;;  %7536 = vmatprep.mubr.msk.f32.mxu1 %vm8179_vm1, %v8178_v14 }
 0x22a   :  { %v7407_v17 = vpop.f32.mrf.mxu0  ;;  %v7418_v18 = vpop.f32.mrf.mxu1 }
 0x22b   :  { %v8453_v19 = vadd.f32 %v7407_v17, %v6804_v15  ;;  %v8455_v20 = vadd.f32 %v7418_v18, %v6812_v16 }
 0x22c   :  { %v342_v21 = vpop.f32.mrf.mxu1  ;;  %v254_v22 = vpop.f32.mrf.mxu0 }
 0x22d   :  { %v343_v23 = vadd.f32 %v6812_v16, %v342_v21  ;;  %v255_v24 = vadd.f32 %v6804_v15, %v254_v22 }
 0x22f   :  { %7530 = vmatpush3.xpose.msk.msra.mxu0 %vm1232_vm2, %v343_v23 }
 0x230   :  { %7539 = vmatprep.subr.mxu0 %v8178_v14 }
 0x232   :  { %7532 = vmatmul.mubr.msk.f32.vlgmr.msra.gmra.mxu0 %vm1232_vm2, %v255_v24 }
 0x233   :  { %v7429_v27 = vpop.f32.mrf.mxu0  ;;  %v7440_v28 = vpop.f32.mrf.mxu1  ;;  %7541 = vmatprep.mubr.msk.f32.mxu0 %vm8179_vm1, %v8178_v14 }
 0x234   :  { %v8464_v29 = vadd.f32 %v7429_v27, %v6820_v25  ;;  %v8466_v30 = vadd.f32 %v7440_v28, %v6828_v26 }
 0x235   :  { %v430_v31 = vpop.f32.mrf.mxu0  ;;  %v518_v33 = vpop.f32.mrf.mxu1 }
 0x236   :  { %v431_v32 = vadd.f32 %v6820_v25, %v430_v31  ;;  %v519_v44 = vadd.f32 %v6828_v26, %v518_v33 }
 0x238   :  { %7535 = vmatpush3.msra.mxu1 %v431_v32 }
 0x239   :  { %7544 = vmatprep.subr.mxu1 %v8178_v14 }
 0x23d   :  { %v7451_v37 = vpop.f32.mrf.mxu0  ;;  %v7462_v38 = vpop.f32.mrf.mxu1 }
 0x23e   :  { %v8473_v40 = vadd.f32 %v7451_v37, %v6836_v34  ;;  %v8476_v41 = vadd.f32 %v7462_v38, %v8471_v35 }
 0x23f   :  { %v606_v42 = vpop.f32.mrf.mxu0  ;;  %v694_v45 = vpop.f32.mrf.mxu1 }
 0x240   :  { %v607_v43 = vadd.f32 %v6836_v34, %v606_v42  ;;  %v695_v34 = vadd.f32 %v8471_v35, %v694_v45  ;;  %v8550_v35 = vld [vmem:[%s8240_s19 + $0x8] sm:$0xff] }
 0x242   :  { %7540 = vmatpush3.xpose.msk.msra.mxu0 %vm1232_vm2, %v607_v43  ;;  %v8542_v43 = vld [vmem:[%s8240_s19] sm:$0xff] }
 0x243   :  { %7549 = vmatprep.subr.mxu0 %v8178_v14 }
 0x245   :  { %7542 = vmatmul.mubr.msk.f32.vlgmr.msra.gmra.mxu0 %vm1232_vm2, %v519_v44 }
 0x246   :  { %7551 = vmatprep.mubr.msk.f32.mxu0 %vm8179_vm1, %v8178_v14  ;;  %7550 = vmatpush3.msra.mxu0 %v8550_v35 }
 0x247   :  { %v7473_v48 = vpop.f32.mrf.mxu0  ;;  %v7484_v49 = vpop.f32.mrf.mxu1  ;;  %7559 = vmatprep.subr.mxu0 %v8178_v14 }
 0x248   :  { %v8490_v50 = vadd.f32 %v7473_v48, %v8481_v46  ;;  %v8493_v51 = vadd.f32 %v7484_v49, %v8484_v47 }
 0x249   :  { %v8495_v52 = vpop.f32.mrf.mxu0  ;;  %v8497_v53 = vpop.f32.mrf.mxu1 }
 0x251   :  { %v7495_v56 = vpop.f32.mrf.mxu0  ;;  %v7506_v57 = vpop.f32.mrf.mxu1 }
 0x252   :  { %v8506_v58 = vadd.f32 %v7495_v56, %v8500_v54  ;;  %v8509_v59 = vadd.f32 %v7506_v57, %v8503_v55  ;;  %v871_v56 = vadd.f32 %v8484_v47, %v8497_v53 }
 0x253   :  { %v958_v60 = vpop.f32.mrf.mxu0  ;;  %v8511_v61 = vpop.f32.mrf.mxu1 }
 0x254   :  { %v959_v45 = vadd.f32 %v8500_v54, %v958_v60  ;;  %v783_v54 = vadd.f32 %v8481_v46, %v8495_v52 }
 0x25b   :  { %v7517_v0 = vpop.f32.mrf.mxu0  ;;  %v7528_v1 = vpop.f32.mrf.mxu1 }
 0x25c   :  { %v8520_v2 = vadd.f32 %v7517_v0, %v8514_v62  ;;  %v8523_v3 = vadd.f32 %v7528_v1, %v8517_v63 }
 0x25d   :  { %v8525_v4 = vpop.f32.mrf.mxu0  ;;  %v1222_v44 = vpop.f32.mrf.mxu1 }
 0x2f2   :  { %v1305_v5 = vpop.f32.mrf.mxu0 }
 0x2f3   :  { %v1309_v7 = vmul.f32 0.35355338, %v1305_v5 }
 0x2f4   :  { %v7533_v8 = vpop.f32.mrf.mxu0 }
 0x2f5   :  { %v1316_v9 = vadd.f32 %v8528_v6, %v1309_v7 }
 0x2f7   :  { %v1317_v10 = vsel %vm1232_vm2, %v1316_v9, -inf }
 0x2f8   :  { %1318 = vmax.xlane.f32.xlu0 %v1317_v10 }
 0x305   :  { %v1474_v11 = vpop.f32.mrf.mxu0 }
 0x306   :  { %v1478_v12 = vmul.f32 0.35355338, %v1474_v11 }
 0x307   :  { %v7543_v13 = vpop.f32.mrf.mxu0 }
 0x308   :  { %v1479_v15 = vadd.f32 %v8528_v6, %v1478_v12 }
 0x30a   :  { %v1480_v16 = vsel %vm1232_vm2, %v1479_v15, -inf }
 0x30b   :  { %1481 = vmax.xlane.f32.xlu1 %v1480_v16  ;;  %v8575_v16 = vld [vmem:[%s8240_s19 + $0x10] sm:$0xff] }
 0x381   :  { %v1319_v17 = vpop.xlane.xlu0 %1318 }
 0x382   :  { %v1320_v18 = vsub.f32 %v1316_v9, %v1319_v17 }
 0x384   :  { %v1321_v21 = vmul.f32 1.442695, %v1320_v18 }
 0x386   :  { %8037 = vpow2.f32 %v1321_v21 }
 0x393   :  { %v8038_v22 = vpop.eup %8037 }
 0x394   :  { %v1482_v23 = vpop.xlane.xlu1 %1481  ;;  %v1323_v24 = vsel %vm1232_vm2, %v8038_v22, 0.0 }
 0x395   :  { %v1483_v25 = vsub.f32 %v1479_v15, %v1482_v23  ;;  %1324 = vadd.xlane.f32.xlu0 %v1323_v24  ;;  %v1047_v23 = vadd.f32 %v8503_v55, %v8511_v61  ;;  %v1223_v24 = vadd.f32 %v8517_v63, %v1222_v44 }
 0x397   :  { %v1484_v26 = vmul.f32 1.442695, %v1483_v25 }
 0x399   :  { %8039 = vpow2.f32 %v1484_v26 }
 0x3a6   :  { %v8040_v27 = vpop.eup %8039 }
 0x3a7   :  { %v1486_v28 = vsel %vm1232_vm2, %v8040_v27, 0.0 }
 0x3a8   :  { %1487 = vadd.xlane.f32.xlu1 %v1486_v28 }
 0x41e   :  { %v1325_v31 = vpop.xlane.xlu0 %1324 }
 0x41f   :  { %8041 = vrcp.f32 %v1325_v31 }
 0x42c   :  { %v8042_v32 = vpop.eup %8041 }
 0x42d   :  { %v1327_v33 = vmul.f32 %v8042_v32, %v8038_v22  ;;  %v1135_v22 = vadd.f32 %v8514_v62, %v8525_v4 }
 0x42f   :  { %7537 = vmatmul.mubr.msk.f32.vlgmr.msra.gmra.mxu1 %vm1232_vm2, %v1327_v33 }
 0x430   :  { %7545 = vmatpush3.msra.mxu1 %v695_v34  ;;  %7546 = vmatprep.mubr.msk.f32.mxu1 %vm8179_vm1, %v8178_v14 }
 0x431   :  { %v1488_v37 = vpop.xlane.xlu1 %1487  ;;  %7554 = vmatprep.subr.mxu1 %v8178_v14 }
 0x432   :  { %8043 = vrcp.f32 %v1488_v37 }
 0x43f   :  { %v8044_v38 = vpop.eup %8043 }
 0x440   :  { %v1490_v42 = vmul.f32 %v8044_v38, %v8040_v27 }
 0x442   :  { %7547 = vmatmul.mubr.msk.f32.vlgmr.msra.gmra.mxu1 %vm1232_vm2, %v1490_v42  ;;  %v8600_v42 = vld [vmem:[%s8240_s19 + $0x18] sm:$0xff]  ;;  %s9293_s19 = sld [smem:[#allocation16_spill]] }
 0x443   :  { %7555 = vmatpush3.msra.mxu1 %v8542_v43  ;;  %7556 = vmatprep.mubr.msk.f32.mxu1 %vm8179_vm1, %v8178_v14 }
 0x444   :  { %7564 = vmatprep.subr.mxu1 %v8178_v14 }
 0x4ef   :  { %v1397_v48 = vpop.f32.mrf.mxu1 }
 0x4f0   :  { %7557 = vmatmul.mubr.msk.f32.vlgmr.msra.gmra.mxu1 %vm1232_vm2, %v1397_v48 }
 0x4f1   :  { %7565 = vmatpush3.msra.mxu1 %v959_v45  ;;  %v7538_v49 = vpop.f32.mrf.mxu1  ;;  %7566 = vmatprep.mubr.msk.f32.mxu1 %vm8179_vm1, %v8178_v14 }
 0x4f2   :  { %7574 = vmatprep.subr.mxu1 %v8178_v14 }
 0x502   :  { %v1560_v57 = vpop.f32.mrf.mxu1 }
 0x503   :  { %7552 = vmatmul.mubr.msk.f32.vlgmr.msra.gmra.mxu0 %vm1232_vm2, %v1560_v57 }
 0x504   :  { %7560 = vmatpush3.xpose.msk.msra.mxu0 %vm1232_vm2, %v871_v56  ;;  %v7548_v0 = vpop.f32.mrf.mxu1  ;;  %7561 = vmatprep.mubr.msk.f32.mxu0 %vm8179_vm1, %v8178_v14 }
 0x505   :  { %7569 = vmatprep.subr.mxu0 %v8178_v14 }
 0x507   :  { %7562 = vmatmul.mubr.msk.f32.vlgmr.msra.gmra.mxu0 %vm1232_vm2, %v783_v54 }
 0x508   :  { %7571 = vmatprep.mubr.msk.f32.mxu0 %vm8179_vm1, %v8178_v14  ;;  %7570 = vmatpush3.msra.mxu0 %v8575_v16 }
 0x509   :  { %7579 = vmatprep.subr.mxu0 %v8178_v14 }
 0x5b0   :  { %v1708_v47 = vpop.f32.mrf.mxu1 }
 0x5b2   :  { %v7558_v53 = vpop.f32.mrf.mxu1 }
 0x5c3   :  { %v1635_v60 = vpop.f32.mrf.mxu0 }
 0x5c4   :  { %v1709_v1 = vadd.f32 %v1708_v47, %v1635_v60 }
 0x5c5   :  { %v7553_v5 = vpop.f32.mrf.mxu0 }
 0x5c7   :  { %v1784_v7 = vpop.f32.mrf.mxu0 }
 0x5c8   :  { %v1788_v8 = vmul.f32 0.35355338, %v1784_v7 }
 0x5c9   :  { %v7563_v9 = vpop.f32.mrf.mxu0 }
 0x5ca   :  { %v1789_v10 = vadd.f32 %v8528_v6, %v1788_v8 }
 0x5cc   :  { %v1790_v46 = vsel %vm1232_vm2, %v1789_v10, -inf }
 0x5cd   :  { %1791 = vmax.xlane.f32.xlu0 %v1790_v46 }
 0x656   :  { %v1792_v52 = vpop.xlane.xlu0 %1791 }
 0x657   :  { %v1793_v11 = vsub.f32 %v1789_v10, %v1792_v52 }
 0x659   :  { %v1794_v12 = vmul.f32 1.442695, %v1793_v11 }
 0x65b   :  { %8045 = vpow2.f32 %v1794_v12 }
 0x668   :  { %v8046_v13 = vpop.eup %8045 }
 0x669   :  { %v1796_v15 = vsel %vm1232_vm2, %v8046_v13, 0.0 }
 0x66a   :  { %1797 = vadd.xlane.f32.xlu1 %v1796_v15 }
 0x6f3   :  { %v1798_v17 = vpop.xlane.xlu1 %1797 }
 0x6f4   :  { %8047 = vrcp.f32 %v1798_v17 }
 0x701   :  { %v8048_v18 = vpop.eup %8047 }
 0x702   :  { %v1800_v21 = vmul.f32 %v8048_v18, %v8046_v13 }
 0x704   :  { %7567 = vmatmul.mubr.msk.f32.vlgmr.msra.gmra.mxu1 %vm1232_vm2, %v1800_v21 }
 0x705   :  { %7575 = vmatpush3.xpose.msk.msra.mxu1 %vm1232_vm2, %v1135_v22  ;;  %7576 = vmatprep.mubr.msk.f32.mxu1 %vm8179_vm1, %v8178_v14 }
 0x706   :  { %7584 = vmatprep.subr.mxu1 %v8178_v14 }
 0x708   :  { %7577 = vmatmul.mubr.msk.f32.vlgmr.msra.gmra.mxu1 %vm1232_vm2, %v1047_v23 }
 0x709   :  { %7586 = vmatprep.mubr.msk.f32.mxu1 %vm8179_vm1, %v8178_v14  ;;  %7585 = vmatpush3.msra.mxu1 %v8600_v42 }
 0x70a   :  { %7594 = vmatprep.subr.mxu1 %v8178_v14 }
 0x7c4   :  { %v1870_v62 = vpop.f32.mrf.mxu1 }
 0x7c5   :  { %7572 = vmatmul.mubr.msk.f32.vlgmr.msra.gmra.mxu0 %vm1232_vm2, %v1870_v62 }
 0x7c6   :  { %7580 = vmatpush3.msra.mxu0 %v1223_v24  ;;  %v7568_v4 = vpop.f32.mrf.mxu1  ;;  %7581 = vmatprep.mubr.msk.f32.mxu0 %vm8179_vm1, %v8178_v14 }
 0x7c7   :  { %7589 = vmatprep.subr.mxu0 %v8178_v14 }
 0x7c8   :  { %v2022_v55 = vpop.f32.mrf.mxu1 }
 0x7c9   :  { %v2026_v61 = vmul.f32 0.35355338, %v2022_v55 }
 0x7ca   :  { %v7578_v25 = vpop.f32.mrf.mxu1 }
 0x7cb   :  { %v2027_v26 = vadd.f32 %v8528_v6, %v2026_v61 }
 0x7cd   :  { %v2028_v27 = vsel %vm1232_vm2, %v2027_v26, -inf }
 0x7ce   :  { %2029 = vmax.xlane.f32.xlu0 %v2028_v27 }
 0x857   :  { %v2030_v63 = vpop.xlane.xlu0 %2029 }
 0x858   :  { %v2031_v28 = vsub.f32 %v2027_v26, %v2030_v63 }
 0x85a   :  { %v2032_v31 = vmul.f32 1.442695, %v2031_v28 }
 0x85c   :  { %8049 = vpow2.f32 %v2032_v31 }
 0x869   :  { %v8050_v32 = vpop.eup %8049 }
 0x86a   :  { %v2034_v33 = vsel %vm1232_vm2, %v8050_v32, 0.0 }
 0x86b   :  { %2035 = vadd.xlane.f32.xlu1 %v2034_v33 }
 0x885   :  { %v1945_v34 = vpop.f32.mrf.mxu0 }
 0x886   :  { %v1949_v37 = vadd.f32 %v1945_v34, %v1709_v1 }
 0x887   :  { %v7573_v38 = vpop.f32.mrf.mxu0 }
 0x8f4   :  { %v2036_v6 = vpop.xlane.xlu1 %2035 }
 0x8f5   :  { %8051 = vrcp.f32 %v2036_v6 }
 0x902   :  { %v8052_v44 = vpop.eup %8051 }
 0x903   :  { %v2038_v45 = vmul.f32 %v8052_v44, %v8050_v32  ;;  %v8682_v44 = vld [vmem:[%s8245_s24] ss:$0 sm:$0xff]  ;;  %s8181_s24 = smov [#allocation2]  }
 0x905   :  { %7582 = vmatmul.mubr.msk.f32.vlgmr.msra.gmra.mxu0 %vm1232_vm2, %v2038_v45 }
 0x906   :  { %7590 = vmatpush3.xpose.msk.msra.mxu0 %vm1232_vm2, %v8455_v20  ;;  %7591 = vmatprep.mubr.msk.f32.mxu0 %vm8179_vm1, %v8178_v14 }
 0x907   :  { %7599 = vmatprep.subr.mxu0 %v8178_v14 }
 0x909   :  { %7592 = vmatmul.mubr.msk.f32.vlgmr.msra.gmra.mxu0 %vm1232_vm2, %v8453_v19 }
 0x90a   :  { %7600 = vmatpush3.xpose.msk.msra.mxu0 %vm1232_vm2, %v8473_v40  ;;  %7601 = vmatprep.mubr.msk.f32.mxu0 %vm8179_vm1, %v8178_v14 }
 0x90b   :  { %7609 = vmatprep.subr.mxu0 %v8178_v14 }
 0x90d   :  { %7602 = vmatmul.mubr.msk.f32.vlgmr.msra.gmra.mxu0 %vm1232_vm2, %v8466_v30  ;;  %v8629_v30 = vld [vmem:[%s8200_s13 + $0x1] ss:$0 sm:$0xff]  ;;  %s9287_s13 = sld [smem:[#allocation10_spill]] }
 0x90e   :  { %7610 = vmatpush3.msra.mxu0 %v8550_v35  ;;  %7611 = vmatprep.mubr.msk.f32.mxu0 %vm8179_vm1, %v8178_v14 }
 0x90f   :  { %7619 = vmatprep.subr.mxu0 %v8178_v14 }
 0x9c5   :  { %v2108_v20 = vpop.f32.mrf.mxu0 }
 0x9c6   :  { %7587 = vmatmul.mubr.msk.f32.vlgmr.msra.gmra.mxu1 %vm1232_vm2, %v2108_v20 }
 0x9c7   :  { %7595 = vmatpush3.msra.mxu1 %v8464_v29  ;;  %v7583_v19 = vpop.f32.mrf.mxu0  ;;  %7596 = vmatprep.mubr.msk.f32.mxu1 %vm8179_vm1, %v8178_v14 }
 0x9c8   :  { %7604 = vmatprep.subr.mxu1 %v8178_v14 }
 0x9c9   :  { %v2262_v40 = vpop.f32.mrf.mxu0 }
 0x9ca   :  { %v2266_v35 = vmul.f32 0.35355338, %v2262_v40 }
 0x9cb   :  { %v7593_v48 = vpop.f32.mrf.mxu0 }
 0x9cc   :  { %v2273_v49 = vadd.f32 %v8629_v30, %v2266_v35 }
 0x9cd   :  { %v2430_v56 = vpop.f32.mrf.mxu0 }
 0x9ce   :  { %v2434_v57 = vmul.f32 0.35355338, %v2430_v56  ;;  %v2274_v0 = vsel %vm1232_vm2, %v2273_v49, -inf }
 0x9cf   :  { %2275 = vmax.xlane.f32.xlu0 %v2274_v0  ;;  %v7603_v54 = vpop.f32.mrf.mxu0 }
 0x9d0   :  { %v2435_v29 = vadd.f32 %v8629_v30, %v2434_v57 }
 0x9d2   :  { %v2436_v47 = vsel %vm1232_vm2, %v2435_v29, -inf }
 0x9d3   :  { %2437 = vmax.xlane.f32.xlu1 %v2436_v47 }
 0xa58   :  { %v2276_v53 = vpop.xlane.xlu0 %2275 }
 0xa59   :  { %v2277_v60 = vsub.f32 %v2273_v49, %v2276_v53 }
 0xa5b   :  { %v2278_v1 = vmul.f32 1.442695, %v2277_v60 }
 0xa5c   :  { %v2438_v5 = vpop.xlane.xlu1 %2437 }
 0xa5d   :  { %8053 = vpow2.f32 %v2278_v1  ;;  %v2439_v7 = vsub.f32 %v2435_v29, %v2438_v5 }
 0xa5f   :  { %v2440_v8 = vmul.f32 1.442695, %v2439_v7 }
 0xa61   :  { %8055 = vpow2.f32 %v2440_v8 }
 0xa6a   :  { %v8054_v9 = vpop.eup %8053 }
 0xa6b   :  { %v2280_v10 = vsel %vm1232_vm2, %v8054_v9, 0.0 }
 0xa6c   :  { %2281 = vadd.xlane.f32.xlu0 %v2280_v10 }
 0xa6e   :  { %v8056_v46 = vpop.eup %8055 }
 0xa6f   :  { %v2442_v52 = vsel %vm1232_vm2, %v8056_v46, 0.0 }
 0xa70   :  { %2443 = vadd.xlane.f32.xlu1 %v2442_v52 }
 0xa86   :  { %v2183_v11 = vpop.f32.mrf.mxu1 }
 0xa87   :  { %v8637_v12 = vadd.f32 %v2183_v11, %v1949_v37  ;;  %v8699_v11 = vld [vmem:[%s8255_s6] ss:$0 sm:$0xff] }
 0xa88   :  { %v7588_v13 = vpop.f32.mrf.mxu1 }
 0xaf5   :  { %v2282_v15 = vpop.xlane.xlu0 %2281 }
 0xaf6   :  { %8057 = vrcp.f32 %v2282_v15 }
 0xaf9   :  { %v2444_v17 = vpop.xlane.xlu1 %2443 }
 0xafa   :  { %8059 = vrcp.f32 %v2444_v17 }
 0xb03   :  { %v8058_v18 = vpop.eup %8057 }
 0xb04   :  { %v2284_v21 = vmul.f32 %v8058_v18, %v8054_v9  ;;  %v6942_v18 = vld [vmem:[%s8260_s12 + $0x98] sm:$0xff] }
 0xb06   :  { %7597 = vmatmul.mubr.msk.f32.vlgmr.msra.gmra.mxu1 %vm1232_vm2, %v2284_v21  ;;  %v8710_v21 = vld [vmem:[%s8195_s9] sm:$0xff] }
 0xb07   :  { %v8060_v22 = vpop.eup %8059  ;;  %7605 = vmatpush3.msra.mxu1 %v8476_v41  ;;  %7606 = vmatprep.mubr.msk.f32.mxu1 %vm8179_vm1, %v8178_v14 }
 0xb08   :  { %v2446_v23 = vmul.f32 %v8060_v22, %v8056_v46  ;;  %7614 = vmatprep.subr.mxu1 %v8178_v14  ;;  %v8696_v46 = vld [vmem:[%s8250_s30] ss:$0 sm:$0xff]  ;;  %s6763_s30 = sshll.u32 %s8181_s24, 4  ;;  %s6764_s30 = int_to_ptr.vmem [resolvable:$true] %s6763_s30 }
 0xb09   :  { %s8127_s6 = scalar_lea.vmem %s6764_s30, 16  ;;  %p8132_p1 = scmp.lt.s32.totalorder %s6764_s30, %s6764_s30 }
 0xb0a   :  { %7607 = vmatmul.mubr.msk.f32.vlgmr.msra.gmra.mxu1 %vm1232_vm2, %v2446_v23  ;;  %v6941_v23 = vld [vmem:[%s8260_s12 + $0x90] sm:$0xff]  ;;  %p8128_p0 = scmp.ne.s32.totalorder %s6764_s30, %s8127_s6 }
 0xb0b   :  { %7615 = vmatpush3.msra.mxu1 %v8542_v43  ;;  %7616 = vmatprep.mubr.msk.f32.mxu1 %vm8179_vm1, %v8178_v14 }
 0xb0c   :  { %7624 = vmatprep.subr.mxu1 %v8178_v14 }
 0xbc6   :  { %v2354_v24 = vpop.f32.mrf.mxu1 }
 0xbc7   :  { %7617 = vmatmul.mubr.msk.f32.vlgmr.msra.gmra.mxu1 %vm1232_vm2, %v2354_v24 }
 0xbc8   :  { %7625 = vmatpush3.msra.mxu1 %v8506_v58  ;;  %v7598_v41 = vpop.f32.mrf.mxu1  ;;  %7626 = vmatprep.mubr.msk.f32.mxu1 %vm8179_vm1, %v8178_v14 }
 0xbc9   :  { %7634 = vmatprep.subr.mxu1 %v8178_v14  ;;  %v6940_v41 = vld [vmem:[%s8260_s12 + $0x88] sm:$0xff] }
 0xbca   :  { %v2516_v62 = vpop.f32.mrf.mxu1 }
 0xbcb   :  { %7612 = vmatmul.mubr.msk.f32.vlgmr.msra.gmra.mxu0 %vm1232_vm2, %v2516_v62  ;;  %v6939_v62 = vld [vmem:[%s8260_s12 + $0x80] sm:$0xff] }
 0xbcc   :  { %7620 = vmatpush3.xpose.msk.msra.mxu0 %vm1232_vm2, %v8493_v51  ;;  %v7608_v43 = vpop.f32.mrf.mxu1  ;;  %7621 = vmatprep.mubr.msk.f32.mxu0 %vm8179_vm1, %v8178_v14 }
 0xbcd   :  { %7629 = vmatprep.subr.mxu0 %v8178_v14  ;;  %v8719_v43 = vld [vmem:[%s8195_s9 + $0x8] sm:$0xff] }
 0xbcf   :  { %7622 = vmatmul.mubr.msk.f32.vlgmr.msra.gmra.mxu0 %vm1232_vm2, %v8490_v50 }
 0xbd0   :  { %7630 = vmatpush3.msra.mxu0 %v8575_v16  ;;  %7631 = vmatprep.mubr.msk.f32.mxu0 %vm8179_vm1, %v8178_v14 }
 0xbd1   :  { %7639 = vmatprep.subr.mxu0 %v8178_v14 }
 0xc87   :  { %v2662_v58 = vpop.f32.mrf.mxu1 }
 0xc89   :  { %v7618_v4 = vpop.f32.mrf.mxu1 }
 0xc8a   :  { %v8729_v4 = vld [vmem:[%s8195_s9 + $0x18] sm:$0xff] }
 0xc8b   :  { %v2589_v55 = vpop.f32.mrf.mxu0 }
 0xc8c   :  { %v2663_v51 = vadd.f32 %v2662_v58, %v2589_v55  ;;  %v8722_v58 = vld [vmem:[%s8195_s9 + $0x10] sm:$0xff]  ;;  %s9286_s9 = sld [smem:[#allocation9_spill]] }
 0xc8d   :  { %v7613_v61 = vpop.f32.mrf.mxu0 }
 0xc8f   :  { %v2738_v25 = vpop.f32.mrf.mxu0 }
 0xc90   :  { %v2742_v26 = vmul.f32 0.35355338, %v2738_v25 }
 0xc91   :  { %v7623_v27 = vpop.f32.mrf.mxu0 }
 0xc92   :  { %v2743_v63 = vadd.f32 %v8629_v30, %v2742_v26 }
 0xc94   :  { %v2744_v28 = vsel %vm1232_vm2, %v2743_v63, -inf }
 0xc95   :  { %2745 = vmax.xlane.f32.xlu0 %v2744_v28 }
 0xd1e   :  { %v2746_v50 = vpop.xlane.xlu0 %2745 }
 0xd1f   :  { %v2747_v16 = vsub.f32 %v2743_v63, %v2746_v50 }
 0xd21   :  { %v2748_v31 = vmul.f32 1.442695, %v2747_v16 }
 0xd23   :  { %8061 = vpow2.f32 %v2748_v31 }
 0xd30   :  { %v8062_v32 = vpop.eup %8061 }
 0xd31   :  { %v2750_v33 = vsel %vm1232_vm2, %v8062_v32, 0.0 }
 0xd32   :  { %2751 = vadd.xlane.f32.xlu1 %v2750_v33  ;;  %v6962_v33 = vld [vmem:[%s8260_s12 + $0x38] sm:$0xff] }
 0xdbb   :  { %v2752_v34 = vpop.xlane.xlu1 %2751 }
 0xdbc   :  { %8063 = vrcp.f32 %v2752_v34  ;;  %v3199_v34 = vld [vmem:[%s8260_s12 + $0x10] sm:$0xff] }
 0xdc9   :  { %v8064_v37 = vpop.eup %8063 }
 0xdca   :  { %v2754_v38 = vmul.f32 %v8064_v37, %v8062_v32  ;;  %v3200_v32 = vld [vmem:[%s8260_s12 + $0x18] sm:$0xff]  ;;  %v3198_v37 = vld [vmem:[%s8260_s12 + $0x8] sm:$0xff] }
 0xdcc   :  { %7627 = vmatmul.mubr.msk.f32.vlgmr.msra.gmra.mxu1 %vm1232_vm2, %v2754_v38  ;;  %v6960_v38 = vld [vmem:[%s8260_s12 + $0x28] sm:$0xff] }
 0xdcd   :  { %7635 = vmatpush3.xpose.msk.msra.mxu1 %vm1232_vm2, %v8520_v2  ;;  %7636 = vmatprep.mubr.msk.f32.mxu1 %vm8179_vm1, %v8178_v14 }
 0xdce   :  { %7644 = vmatprep.subr.mxu1 %v8178_v14 }
 0xdd0   :  { %7637 = vmatmul.mubr.msk.f32.vlgmr.msra.gmra.mxu1 %vm1232_vm2, %v8509_v59  ;;  %v3144_v59 = vadd.f32 %v8682_v44, %v8637_v12 }
 0xdd1   :  { %7645 = vmatpush3.msra.mxu1 %v8600_v42  ;;  %7646 = vmatprep.mubr.msk.f32.mxu1 %vm8179_vm1, %v8178_v14 }
 0xdd2   :  { %v3146_v35 = vadd.f32 %v3144_v59, %v8355_v36  ;;  %7660 = vmatprep.subr.mxu1 %v6942_v18 }
 0xdd4   :  { %v3150_v48 = vsel %vm126_vm0, %v3146_v35, 0.0 }
 0xe8c   :  { %v2824_v6 = vpop.f32.mrf.mxu1 }
 0xe8d   :  { %7632 = vmatmul.mubr.msk.f32.vlgmr.msra.gmra.mxu0 %vm1232_vm2, %v2824_v6  ;;  %v3197_v6 = vld [vmem:[%s8260_s12] sm:$0xff] }
 0xe8e   :  { %7640 = vmatpush3.msra.mxu0 %v8523_v3  ;;  %v7628_v2 = vpop.f32.mrf.mxu1  ;;  %7641 = vmatprep.mubr.msk.f32.mxu0 %vm8179_vm1, %v8178_v14 }
 0xe8f   :  { %7649 = vmatprep.subr.mxu0 %v3200_v32  ;;  %v6952_v2 = vld [vmem:[%s8260_s12 + $0x118] sm:$0xff] }
 0xe90   :  { %v2974_v45 = vpop.f32.mrf.mxu1 }
 0xe91   :  { %v2978_v20 = vmul.f32 0.35355338, %v2974_v45  ;;  %v6980_v45 = vld [vmem:[%s8260_s12 + $0x138] sm:$0xff] }
 0xe92   :  { %v7638_v42 = vpop.f32.mrf.mxu1 }
 0xe93   :  { %v2979_v19 = vadd.f32 %v8629_v30, %v2978_v20  ;;  %v8754_v42 = vld [vmem:[%s8265_s20 + $0x4] ss:$0 sm:$0xff] }
 0xe95   :  { %v2980_v40 = vsel %vm1232_vm2, %v2979_v19, -inf }
 0xe96   :  { %2981 = vmax.xlane.f32.xlu0 %v2980_v40 }
 0xe9a   :  { %3151 = vadd.xlane.f32.xlu0 %v3150_v48 }
 0xf1f   :  { %v2982_v3 = vpop.xlane.xlu0 %2981 }
 0xf20   :  { %v2983_v49 = vsub.f32 %v2979_v19, %v2982_v3 }
 0xf22   :  { %v2984_v56 = vmul.f32 1.442695, %v2983_v49 }
 0xf23   :  { %v3152_v57 = vpop.xlane.xlu0 %3151 }
 0xf24   :  { %8065 = vpow2.f32 %v2984_v56  ;;  %v3156_v0 = vmul.f32 0.03125, %v3152_v57 }
 0xf26   :  { %v3158_v54 = vsub.f32 %v3146_v35, %v3156_v0 }
 0xf28   :  { %v3160_v29 = vmul.f32 %v3158_v54, %v3158_v54 }
 0xf2a   :  { %v3162_v47 = vsel %vm126_vm0, %v3160_v29, 0.0  ;;  %v6979_v29 = vld [vmem:[%s8260_s12 + $0x130] sm:$0xff] }
 0xf2b   :  { %3163 = vadd.xlane.f32.xlu0 %v3162_v47  ;;  %v6950_v47 = vld [vmem:[%s8260_s12 + $0x108] sm:$0xff] }
 0xf31   :  { %v8066_v30 = vpop.eup %8065 }
 0xf32   :  { %v2986_v36 = vsel %vm1232_vm2, %v8066_v30, 0.0 }
 0xf33   :  { %2987 = vadd.xlane.f32.xlu1 %v2986_v36  ;;  %v6949_v36 = vld [vmem:[%s8260_s12 + $0x100] sm:$0xff] }
 0xf4d   :  { %v2897_v53 = vpop.f32.mrf.mxu0 }
 0xf4e   :  { %v2901_v60 = vadd.f32 %v2897_v53, %v2663_v51  ;;  %v6977_v53 = vld [vmem:[%s8260_s12 + $0x120] sm:$0xff] }
 0xf4f   :  { %v7633_v1 = vpop.f32.mrf.mxu0 }
 0xf50   :  { %v6998_v1 = vld [vmem:[%s8260_s12 + $0xd8] sm:$0xff] }
 0xfb4   :  { %v3164_v5 = vpop.xlane.xlu0 %3163 }
 0xfb5   :  { %v3168_v7 = vmul.f32 0.03125, %v3164_v5  ;;  %v6969_v5 = vld [vmem:[%s8260_s12 + $0xb0] sm:$0xff] }
 0xfb7   :  { %v3170_v8 = vadd.f32 1e-12, %v3168_v7  ;;  %v6997_v7 = vld [vmem:[%s8260_s12 + $0xd0] sm:$0xff] }
 0xfb9   :  { %8067 = vrsqrt.f32 %v3170_v8  ;;  %v6968_v8 = vld [vmem:[%s8260_s12 + $0xa8] sm:$0xff] }
 0xfbc   :  { %v2988_v9 = vpop.xlane.xlu1 %2987 }
 0xfbd   :  { %8069 = vrcp.f32 %v2988_v9  ;;  %v6996_v9 = vld [vmem:[%s8260_s12 + $0xc8] sm:$0xff] }
 0xfc6   :  { %v8068_v10 = vpop.eup %8067 }
 0xfc7   :  { %v3174_v52 = vmul.f32 %v8068_v10, %v3158_v54  ;;  %v6951_v54 = vld [vmem:[%s8260_s12 + $0x110] sm:$0xff]  ;;  %v6967_v10 = vld [vmem:[%s8260_s12 + $0xa0] sm:$0xff] }
 0xfc9   :  { %v3182_v12 = vmul.f32 %v8696_v46, %v3174_v52  ;;  %v6990_v52 = vld [vmem:[%s8260_s12 + $0x58] sm:$0xff] }
 0xfca   :  { %v8070_v13 = vpop.eup %8069 }
 0xfcb   :  { %v2990_v15 = vmul.f32 %v8070_v13, %v8066_v30  ;;  %v8703_v17 = vadd.f32 %v8699_v11, %v3182_v12  ;;  %v6978_v30 = vld [vmem:[%s8260_s12 + $0x128] sm:$0xff]  ;;  %v6989_v12 = vld [vmem:[%s8260_s12 + $0x50] sm:$0xff] }
 0xfcc   :  { %v7017_v13 = vld [vmem:[%s8260_s12 + $0x70] sm:$0xff] }
 0xfcd   :  { %7642 = vmatmul.mubr.msk.f32.vlgmr.msra.gmra.mxu0 %vm1232_vm2, %v2990_v15  ;;  %v6988_v15 = vld [vmem:[%s8260_s12 + $0x48] sm:$0xff] }
 0xfce   :  { %7657 = vmatprep.mubr.msk.f32.mxu0 %vm126_vm0, %v8703_v17  ;;  %7650 = vmatpush3.msra.mxu0 %v3200_v32  ;;  %v6936_v32 = vld [vmem:[%s8265_s20] ss:$0 sm:$0xff] }
 0xfcf   :  { %7651 = vmatprep.subr.mxu0 %v3199_v34 }
 0xfd0   :  { %7652 = vmatpush3.msra.mxu0 %v3199_v34 }
 0xfd1   :  { %7653 = vmatprep.subr.mxu0 %v3198_v37 }
 0xfd2   :  { %7654 = vmatpush3.msra.mxu0 %v3198_v37 }
 0xfd3   :  { %7655 = vmatprep.subr.mxu0 %v3197_v6 }
 0xfd4   :  { %7656 = vmatpush3.msra.mxu0 %v3197_v6 }
 0xfd5   :  { %7674 = vmatprep.subr.mxu0 %v6952_v2 }
0x108d   :  { %v3060_v22 = vpop.f32.mrf.mxu0 }
0x108e   :  { %7647 = vmatmul.mubr.msk.f32.vlgmr.msra.gmra.mxu1 %vm1232_vm2, %v3060_v22  ;;  %v6987_v22 = vld [vmem:[%s8260_s12 + $0x40] sm:$0xff] }
0x108f   :  { %7661 = vmatpush3.msra.mxu1 %v6942_v18  ;;  %v7643_v24 = vpop.f32.mrf.mxu0  ;;  %7668 = vmatprep.mubr.msk.f32.mxu1 %vm126_vm0, %v8710_v21  ;;  %v7016_v18 = vld [vmem:[%s8260_s12 + $0x68] sm:$0xff] }
0x1090   :  { %7662 = vmatprep.subr.mxu1 %v6941_v23  ;;  %v7008_v24 = vld [vmem:[%s8260_s12 + $0x158] sm:$0xff] }
0x1091   :  { %7663 = vmatpush3.msra.mxu1 %v6941_v23  ;;  %v7015_v23 = vld [vmem:[%s8260_s12 + $0x60] sm:$0xff] }
0x1092   :  { %7664 = vmatprep.subr.mxu1 %v6940_v41 }
0x1093   :  { %7665 = vmatpush3.msra.mxu1 %v6940_v41  ;;  %v7007_v41 = vld [vmem:[%s8260_s12 + $0x150] sm:$0xff] }
0x1094   :  { %7666 = vmatprep.subr.mxu1 %v6939_v62 }
0x1095   :  { %7667 = vmatpush3.msra.mxu1 %v6939_v62  ;;  %v7006_v62 = vld [vmem:[%s8260_s12 + $0x148] sm:$0xff] }
0x1096   :  { %7669 = vmatmul.mubr.msk.f32.vlgmr.msra.gmra.mxu1 %vm126_vm0, %v8719_v43  ;;  %7688 = vmatprep.subr.mxu1 %v6962_v33 }
0x1097   :  { %7671 = vmatprep.mubr.msk.f32.mxu1 %vm126_vm0, %v8722_v58  ;;  %7689 = vmatpush3.msra.mxu1 %v6962_v33  ;;  %v6964_v33 = vld [vmem:[%s8265_s20 + $0x1] ss:$0 sm:$0xff] }
0x109a   :  { %7672 = vmatmul.mubr.msk.f32.gmra.mxu1 %vm126_vm0, %v8729_v4 }
0x109b   :  { %7696 = vmatprep.mubr.msk.f32.mxu1 %vm126_vm0, %v8703_v17 }
0x114e   :  { %v3133_v55 = vpop.f32.mrf.mxu1 }
0x114f   :  { %v3137_v51 = vadd.f32 %v3133_v55, %v2901_v60  ;;  %v6970_v60 = vld [vmem:[%s8260_s12 + $0xb8] sm:$0xff]  ;;  %v7005_v55 = vld [vmem:[%s8260_s12 + $0x140] sm:$0xff] }
0x1150   :  { %v7648_v61 = vpop.f32.mrf.mxu1 }
0x1151   :  { %v3145_v25 = vadd.f32 %v8682_v44, %v3137_v51  ;;  %v6959_v44 = vld [vmem:[%s8260_s12 + $0x20] sm:$0xff]  ;;  %v7026_v51 = vld [vmem:[%s8260_s12 + $0xf8] sm:$0xff]  ;;  %v7025_v61 = vld [vmem:[%s8260_s12 + $0xf0] sm:$0xff] }
0x1153   :  { %v3147_v26 = vadd.f32 %v3145_v25, %v8361_v39  ;;  %v6961_v39 = vld [vmem:[%s8260_s12 + $0x30] sm:$0xff]  ;;  %v7024_v25 = vld [vmem:[%s8260_s12 + $0xe8] sm:$0xff] }
0x1154   :  { %7690 = vmatprep.subr.mxu1 %v6961_v39 }
0x1155   :  { %v3153_v27 = vsel %vm126_vm0, %v3147_v26, 0.0  ;;  %7691 = vmatpush3.msra.mxu1 %v6961_v39 }
0x1156   :  { %3154 = vadd.xlane.f32.xlu1 %v3153_v27  ;;  %7692 = vmatprep.subr.mxu1 %v6960_v38  ;;  %v8749_v59 = vpop.f32.mrf.mxu1 }
0x1157   :  { %7693 = vmatpush3.msra.mxu1 %v6960_v38  ;;  %v3386_v27 = vadd.f32 %v8749_v59, %v8754_v42 }
0x1158   :  { %7694 = vmatprep.subr.mxu1 %v6959_v44  ;;  %v8751_v20 = vpop.f32.mrf.mxu1 }
0x1159   :  { %7695 = vmatpush3.msra.mxu1 %v6959_v44 }
0x115a   :  { %7713 = vmatprep.subr.mxu1 %v6980_v45  ;;  %v7673_v19 = vpop.f32.mrf.mxu1 }
0x115b   :  { %v8757_v40 = vadd.f32 %v7673_v19, %v8754_v42 }
0x11df   :  { %v3155_v63 = vpop.xlane.xlu1 %3154 }
0x11e0   :  { %v3157_v28 = vmul.f32 0.03125, %v3155_v63  ;;  %v3381_v63 = vadd.f32 %v8754_v42, %v8751_v20 }
0x11e2   :  { %v3159_v50 = vsub.f32 %v3147_v26, %v3157_v28  ;;  %v7023_v26 = vld [vmem:[%s8260_s12 + $0xe0] sm:$0xff]  ;;  %v7035_v28 = vld [vmem:[%s8260_s12 + $0x170] sm:$0xff] }
0x11e4   :  { %v3161_v16 = vmul.f32 %v3159_v50, %v3159_v50 }
0x11e6   :  { %v3165_v31 = vsel %vm126_vm0, %v3161_v16, 0.0  ;;  %v7033_v16 = vld [vmem:[%s8260_s12 + $0x160] sm:$0xff] }
0x11e7   :  { %3166 = vadd.xlane.f32.xlu1 %v3165_v31  ;;  %v8879_v31 = vpop.f32.mrf.mxu1 }
0x1270   :  { %v3167_v35 = vpop.xlane.xlu1 %3166 }
0x1271   :  { %v3169_v48 = vmul.f32 0.03125, %v3167_v35 }
0x1273   :  { %v3171_v3 = vadd.f32 1e-12, %v3169_v48  ;;  %v8898_v48 = vld [vmem:[%s8265_s20 + $0x9] ss:$0 sm:$0xff] }
0x1275   :  { %8071 = vrsqrt.f32 %v3171_v3 }
0x1282   :  { %v8072_v49 = vpop.eup %8071 }
0x1283   :  { %v3175_v56 = vmul.f32 %v8072_v49, %v3159_v50  ;;  %v7034_v50 = vld [vmem:[%s8260_s12 + $0x168] sm:$0xff] }
0x1285   :  { %v3183_v57 = vmul.f32 %v8696_v46, %v3175_v56  ;;  %v6995_v46 = vld [vmem:[%s8260_s12 + $0xc0] sm:$0xff] }
0x1287   :  { %v8761_v0 = vadd.f32 %v8699_v11, %v3183_v57  ;;  %v7018_v11 = vld [vmem:[%s8260_s12 + $0x78] sm:$0xff] }
0x1289   :  { %7658 = vmatmul.mubr.msk.f32.vlgmr.msra.gmra.mxu0 %vm126_vm0, %v8761_v0  ;;  %7697 = vmatmul.mubr.msk.f32.vlgmr.msra.gmra.mxu1 %vm126_vm0, %v8761_v0 }
0x128a   :  { %7675 = vmatpush3.msra.mxu0 %v6952_v2  ;;  %7714 = vmatpush3.msra.mxu1 %v6980_v45 }
0x128b   :  { %7676 = vmatprep.subr.mxu0 %v6951_v54  ;;  %7715 = vmatprep.subr.mxu1 %v6979_v29 }
0x128c   :  { %7677 = vmatpush3.msra.mxu0 %v6951_v54  ;;  %7716 = vmatpush3.msra.mxu1 %v6979_v29 }
0x128d   :  { %7678 = vmatprep.subr.mxu0 %v6950_v47  ;;  %7717 = vmatprep.subr.mxu1 %v6978_v30 }
0x128e   :  { %7679 = vmatpush3.msra.mxu0 %v6950_v47  ;;  %7718 = vmatpush3.msra.mxu1 %v6978_v30  ;;  %v6972_v30 = vld [vmem:[%s8265_s20 + $0x5] ss:$0 sm:$0xff] }
0x128f   :  { %7680 = vmatprep.subr.mxu0 %v6949_v36  ;;  %7719 = vmatprep.subr.mxu1 %v6977_v53 }
0x1290   :  { %7681 = vmatpush3.msra.mxu0 %v6949_v36  ;;  %7682 = vmatprep.mubr.msk.f32.mxu0 %vm126_vm0, %v8710_v21 }
0x1291   :  { %7720 = vmatpush3.msra.mxu1 %v6977_v53  ;;  %7721 = vmatprep.mubr.msk.f32.mxu1 %vm126_vm0, %v8710_v21 }
0x1292   :  { %7683 = vmatmul.mubr.msk.f32.vlgmr.msra.gmra.mxu0 %vm126_vm0, %v8719_v43  ;;  %7699 = vmatprep.subr.mxu0 %v6970_v60 }
0x1293   :  { %7722 = vmatmul.mubr.msk.f32.vlgmr.msra.gmra.mxu1 %vm126_vm0, %v8719_v43  ;;  %7738 = vmatprep.subr.mxu1 %v6998_v1 }
0x1294   :  { %7700 = vmatpush3.msra.mxu0 %v6970_v60  ;;  %7739 = vmatpush3.msra.mxu1 %v6998_v1 }
0x1295   :  { %7701 = vmatprep.subr.mxu0 %v6969_v5  ;;  %7740 = vmatprep.subr.mxu1 %v6997_v7 }
0x1296   :  { %7685 = vmatprep.mubr.msk.f32.mxu0 %vm126_vm0, %v8722_v58  ;;  %7702 = vmatpush3.msra.mxu0 %v6969_v5 }
0x1297   :  { %7724 = vmatprep.mubr.msk.f32.mxu1 %vm126_vm0, %v8722_v58  ;;  %7741 = vmatpush3.msra.mxu1 %v6997_v7 }
0x1298   :  { %7686 = vmatmul.mubr.msk.f32.gmra.mxu0 %vm126_vm0, %v8729_v4  ;;  %7703 = vmatprep.subr.mxu0 %v6968_v8 }
0x1299   :  { %7725 = vmatmul.mubr.msk.f32.gmra.mxu1 %vm126_vm0, %v8729_v4  ;;  %7742 = vmatprep.subr.mxu1 %v6996_v9 }
0x129a   :  { %7704 = vmatpush3.msra.mxu0 %v6968_v8  ;;  %7743 = vmatpush3.msra.mxu1 %v6996_v9  ;;  %v8918_v9 = vld [vmem:[%s8265_s20 + $0x6] ss:$0 sm:$0xff] }
0x129b   :  { %7705 = vmatprep.subr.mxu0 %v6967_v10  ;;  %7744 = vmatprep.subr.mxu1 %v6995_v46 }
0x129c   :  { %7706 = vmatpush3.msra.mxu0 %v6967_v10  ;;  %7707 = vmatprep.mubr.msk.f32.mxu0 %vm126_vm0, %v8710_v21 }
0x129d   :  { %7745 = vmatpush3.msra.mxu1 %v6995_v46  ;;  %7746 = vmatprep.mubr.msk.f32.mxu1 %vm126_vm0, %v8710_v21 }
0x129e   :  { %7708 = vmatmul.mubr.msk.f32.vlgmr.msra.gmra.mxu0 %vm126_vm0, %v8719_v43  ;;  %7727 = vmatprep.subr.mxu0 %v6990_v52 }
0x129f   :  { %7747 = vmatmul.mubr.msk.f32.vlgmr.msra.gmra.mxu1 %vm126_vm0, %v8719_v43  ;;  %7766 = vmatprep.subr.mxu1 %v7018_v11 }
0x12a0   :  { %7728 = vmatpush3.msra.mxu0 %v6990_v52  ;;  %7767 = vmatpush3.msra.mxu1 %v7018_v11 }
0x12a1   :  { %7729 = vmatprep.subr.mxu0 %v6989_v12  ;;  %7768 = vmatprep.subr.mxu1 %v7017_v13 }
0x12a2   :  { %7710 = vmatprep.mubr.msk.f32.mxu0 %vm126_vm0, %v8722_v58  ;;  %7730 = vmatpush3.msra.mxu0 %v6989_v12 }
0x12a3   :  { %7749 = vmatprep.mubr.msk.f32.mxu1 %vm126_vm0, %v8722_v58  ;;  %7769 = vmatpush3.msra.mxu1 %v7017_v13 }
0x12a4   :  { %7711 = vmatmul.mubr.msk.f32.gmra.mxu0 %vm126_vm0, %v8729_v4  ;;  %7731 = vmatprep.subr.mxu0 %v6988_v15 }
0x12a5   :  { %7750 = vmatmul.mubr.msk.f32.gmra.mxu1 %vm126_vm0, %v8729_v4  ;;  %7770 = vmatprep.subr.mxu1 %v7016_v18 }
0x12a6   :  { %7732 = vmatpush3.msra.mxu0 %v6988_v15  ;;  %7735 = vmatprep.mubr.msk.f32.mxu0 %vm126_vm0, %v8703_v17 }
0x12a7   :  { %7771 = vmatpush3.msra.mxu1 %v7016_v18  ;;  %7774 = vmatprep.mubr.msk.f32.mxu1 %vm126_vm0, %v8703_v17 }
0x12a8   :  { %7733 = vmatprep.subr.mxu0 %v6987_v22  ;;  %7772 = vmatprep.subr.mxu1 %v7015_v23 }
0x12a9   :  { %7734 = vmatpush3.msra.mxu0 %v6987_v22  ;;  %7773 = vmatpush3.msra.mxu1 %v7015_v23  ;;  %v8933_v22 = vld [vmem:[%s8265_s20 + $0x2] ss:$0 sm:$0xff]  ;;  %v8936_v23 = vld [vmem:[%s8265_s20 + $0x3] ss:$0 sm:$0xff] }
0x12aa   :  { %7736 = vmatmul.mubr.msk.f32.vlgmr.msra.gmra.mxu0 %vm126_vm0, %v8761_v0  ;;  %7775 = vmatmul.mubr.msk.f32.vlgmr.msra.gmra.mxu1 %vm126_vm0, %v8761_v0 }
0x12ab   :  { %7752 = vmatprep.subr.mxu0 %v7008_v24  ;;  %7760 = vmatprep.mubr.msk.f32.mxu0 %vm126_vm0, %v8710_v21 }
0x12ac   :  { %7753 = vmatpush3.msra.mxu0 %v7008_v24  ;;  %7799 = vmatprep.mubr.msk.f32.mxu1 %vm126_vm0, %v8710_v21 }
0x12ad   :  { %7754 = vmatprep.subr.mxu0 %v7007_v41 }
0x12ae   :  { %7755 = vmatpush3.msra.mxu0 %v7007_v41 }
0x12af   :  { %7756 = vmatprep.subr.mxu0 %v7006_v62 }
0x12b0   :  { %7757 = vmatpush3.msra.mxu0 %v7006_v62 }
0x12b1   :  { %7758 = vmatprep.subr.mxu0 %v7005_v55 }
0x12b2   :  { %7759 = vmatpush3.msra.mxu0 %v7005_v55 }
0x12b3   :  { %7761 = vmatmul.mubr.msk.f32.vlgmr.msra.gmra.mxu0 %vm126_vm0, %v8719_v43  ;;  %7777 = vmatprep.subr.mxu0 %v7026_v51 }
0x12b4   :  { %7778 = vmatpush3.msra.mxu0 %v7026_v51  ;;  %7763 = vmatprep.mubr.msk.f32.mxu0 %vm126_vm0, %v8722_v58 }
0x12b5   :  { %7779 = vmatprep.subr.mxu0 %v7025_v61 }
0x12b6   :  { %7780 = vmatpush3.msra.mxu0 %v7025_v61 }
0x12b7   :  { %7764 = vmatmul.mubr.msk.f32.gmra.mxu0 %vm126_vm0, %v8729_v4  ;;  %7781 = vmatprep.subr.mxu0 %v7024_v25 }
0x12b8   :  { %7782 = vmatpush3.msra.mxu0 %v7024_v25  ;;  %7785 = vmatprep.mubr.msk.f32.mxu0 %vm126_vm0, %v8710_v21  ;;  %v7036_v21 = vld [vmem:[%s8260_s12 + $0x178] sm:$0xff]  ;;  %s8131_s12 = scalar_lea.vmem %s6764_s30, 32 }
0x12b9   :  { %7783 = vmatprep.subr.mxu0 %v7023_v26  ;;  %7791 = vmatprep.subr.mxu1 %v7036_v21  ;;  %p8133_p2 = scmp.lt.s32.totalorder %s8131_s12, %s8127_s6 }
0x12ba   :  { %7784 = vmatpush3.msra.mxu0 %v7023_v26  ;;  %7792 = vmatpush3.msra.mxu1 %v7036_v21  ;;  %v8954_v26 = vld [vmem:[%s8265_s20 + $0xa] ss:$0 sm:$0xff] }
0x12bb   :  { %7786 = vmatmul.mubr.msk.f32.vlgmr.msra.gmra.mxu0 %vm126_vm0, %v8719_v43  ;;  %7805 = vmatprep.subr.mxu0 %v8178_v14  ;;  %p8134_p3 = por %p8133_p2, %p8132_p1 }
0x12bc   :  { %7806 = vmatpush3.xpose.msk.msra.mxu0 %vm1232_vm2, %v3386_v27  ;;  %7788 = vmatprep.mubr.msk.f32.mxu0 %vm126_vm0, %v8722_v58 }
0x12bd   :  { %7807 = vmatprep.subr.mxu0 %v8178_v14  ;;  %7793 = vmatprep.subr.mxu1 %v7035_v28  ;;  %p8135_p4 = pnand %p8134_p3, %p8128_p0 }
0x12be   :  { %7794 = vmatpush3.msra.mxu1 %v7035_v28 }
0x12bf   :  { %7789 = vmatmul.mubr.msk.f32.gmra.mxu0 %vm126_vm0, %v8729_v4  ;;  %7795 = vmatprep.subr.mxu1 %v7034_v50 }
0x12c0   :  { %7808 = vmatpush3.xpose.msk.msra.mxu0 %vm1232_vm2, %v3381_v63  ;;  %7809 = vmatprep.mubr.msk.f32.mxu0 %vm8179_vm1, %v8178_v14 }
0x12c1   :  { %7819 = vmatprep.subr.mxu0 %v8178_v14  ;;  %7796 = vmatpush3.msra.mxu1 %v7034_v50 }
0x12c2   :  { %7797 = vmatprep.subr.mxu1 %v7033_v16 }
0x12c3   :  { %7798 = vmatpush3.msra.mxu1 %v7033_v16 }
0x12c4   :  { %7812 = vmatprep.subr.mxu1 %v8178_v14  ;;  %7800 = vmatmul.mubr.msk.f32.vlgmr.msra.gmra.mxu1 %vm126_vm0, %v8719_v43 }
0x12c5   :  { %7802 = vmatprep.mubr.msk.f32.mxu1 %vm126_vm0, %v8722_v58  ;;  %v6954_v58 = vld [vmem:[%s8265_s20 + $0x8] ss:$0 sm:$0xff] }
0x12c8   :  { %7803 = vmatmul.mubr.msk.f32.gmra.mxu1 %vm126_vm0, %v8729_v4 }
0x12c9   :  { %7816 = vmatprep.mubr.msk.f32.mxu1 %vm8179_vm1, %v8178_v14 }
0x1349   :  { %v7659_v34 = vpop.f32.mrf.mxu0  ;;  %v7698_v39 = vpop.f32.mrf.mxu1 }
0x134a   :  { %v8883_v37 = vadd.f32 %v7659_v34, %v6936_v32  ;;  %v8885_v38 = vadd.f32 %v7698_v39, %v6964_v33 }
0x134b   :  { %v3280_v43 = vpop.f32.mrf.mxu0  ;;  %v3576_v4 = vpop.f32.mrf.mxu1 }
0x134c   :  { %v3281_v6 = vadd.f32 %v6936_v32, %v3280_v43  ;;  %v3577_v52 = vadd.f32 %v6964_v33, %v3576_v4  ;;  %v8967_v32 = vld [vmem:[%s8265_s20 + $0x7] ss:$0 sm:$0xff] }
0x134e   :  { %7810 = vmatmul.mubr.msk.f32.vlgmr.msra.gmra.mxu0 %vm1232_vm2, %v3281_v6  ;;  %v8975_v6 = vld [vmem:[%s8205_s17] ss:$0 sm:$0xff] }
0x134f   :  { %7823 = vmatprep.mubr.msk.f32.mxu0 %vm8179_vm1, %v8178_v14 }
0x1352   :  { %v7684_v44 = vpop.f32.mrf.mxu0 }
0x1353   :  { %v3484_v2 = vadd.f32 %v7684_v44, %v6954_v58  ;;  %v8891_v45 = vpop.f32.mrf.mxu1 }
0x1354   :  { %v3478_v59 = vpop.f32.mrf.mxu0 }
0x1355   :  { %v3479_v20 = vadd.f32 %v6954_v58, %v3478_v59  ;;  %v8893_v19 = vpop.f32.mrf.mxu1  ;;  %7813 = vmatpush3.msra.mxu1 %v3484_v2 }
0x1356   :  { %7814 = vmatprep.subr.mxu1 %v8178_v14 }
0x1357   :  { %7815 = vmatpush3.msra.mxu1 %v3479_v20 }
0x1358   :  { %v7687_v35 = vpop.f32.mrf.mxu0  ;;  %7826 = vmatprep.subr.mxu1 %v8178_v14 }
0x1359   :  { %v8900_v3 = vadd.f32 %v7687_v35, %v6954_v58  ;;  %v7726_v49 = vpop.f32.mrf.mxu1 }
0x135a   :  { %v8903_v56 = vadd.f32 %v7726_v49, %v8898_v48  ;;  %v3488_v57 = vpop.f32.mrf.mxu0 }
0x135b   :  { %v8905_v54 = vadd.f32 %v6954_v58, %v3488_v57  ;;  %v3772_v29 = vpop.f32.mrf.mxu1 }
0x135c   :  { %v8908_v47 = vadd.f32 %v8898_v48, %v3772_v29 }
0x135e   :  { %v7709_v36 = vpop.f32.mrf.mxu0 }
0x135f   :  { %v3670_v53 = vadd.f32 %v7709_v36, %v6972_v30  ;;  %v8911_v60 = vpop.f32.mrf.mxu1 }
0x1360   :  { %v3664_v1 = vpop.f32.mrf.mxu0 }
0x1361   :  { %v8913_v5 = vpop.f32.mrf.mxu1  ;;  %7820 = vmatpush3.xpose.msk.msra.mxu0 %vm1232_vm2, %v3670_v53  ;;  %v3665_v7 = vadd.f32 %v6972_v30, %v3664_v1 }
0x1362   :  { %7821 = vmatprep.subr.mxu0 %v8178_v14 }
0x1364   :  { %v7712_v8 = vpop.f32.mrf.mxu0 }
0x1365   :  { %v8920_v10 = vadd.f32 %v7712_v8, %v6972_v30  ;;  %v7751_v46 = vpop.f32.mrf.mxu1  ;;  %7822 = vmatpush3.xpose.msk.msra.mxu0 %vm1232_vm2, %v3665_v7 }
0x1366   :  { %v8924_v11 = vadd.f32 %v7751_v46, %v8918_v9  ;;  %v3674_v12 = vpop.f32.mrf.mxu0  ;;  %7838 = vmatprep.subr.mxu0 %v8178_v14 }
0x1367   :  { %v8927_v13 = vadd.f32 %v6972_v30, %v3674_v12  ;;  %v3958_v15 = vpop.f32.mrf.mxu1 }
0x1368   :  { %v8930_v18 = vadd.f32 %v8918_v9, %v3958_v15  ;;  %7824 = vmatmul.mubr.msk.f32.vlgmr.msra.gmra.mxu0 %vm1232_vm2, %v3577_v52 }
0x1369   :  { %7840 = vmatprep.mubr.msk.f32.mxu0 %vm8179_vm1, %v8178_v14 }
0x136a   :  { %v7737_v24 = vpop.f32.mrf.mxu0  ;;  %v7776_v41 = vpop.f32.mrf.mxu1 }
0x136b   :  { %v8942_v62 = vadd.f32 %v7737_v24, %v8933_v22  ;;  %v8945_v55 = vadd.f32 %v7776_v41, %v8936_v23  ;;  %v8986_v41 = vld [vmem:[%s9284_s0] sm:$0xff] }
0x136c   :  { %v8947_v51 = vpop.f32.mrf.mxu0  ;;  %v4144_v15 = vpop.f32.mrf.mxu1  ;;  %7839 = vmatpush3.msra.mxu0 %v8986_v41 }
0x136d   :  { %7850 = vmatprep.subr.mxu0 %v8178_v14 }
0x1373   :  { %v8949_v61 = vpop.f32.mrf.mxu0 }
0x1375   :  { %v8951_v25 = vpop.f32.mrf.mxu0 }
0x1377   :  { %v7765_v27 = vpop.f32.mrf.mxu0 }
0x1378   :  { %v8957_v63 = vadd.f32 %v7765_v27, %v8954_v26 }
0x1379   :  { %v4056_v21 = vpop.f32.mrf.mxu0 }
0x137a   :  { %v8960_v28 = vadd.f32 %v8954_v26, %v4056_v21  ;;  %v8993_v21 = vld [vmem:[%s8265_s20 + $0xb] ss:$0 sm:$0xff] }
0x137b   :  { %v8962_v50 = vpop.f32.mrf.mxu0 }
0x137d   :  { %v8964_v16 = vpop.f32.mrf.mxu0 }
0x137f   :  { %v7790_v33 = vpop.f32.mrf.mxu0 }
0x1380   :  { %v8970_v34 = vadd.f32 %v7790_v33, %v8967_v32 }
0x1381   :  { %v8972_v39 = vpop.f32.mrf.mxu0 }
0x1384   :  { %v8983_v24 = vpop.f32.mrf.mxu1 }
0x1386   :  { %v8989_v27 = vpop.f32.mrf.mxu1 }
0x1388   :  { %v7804_v33 = vpop.f32.mrf.mxu1 }
0x140e   :  { %v4425_v43 = vpop.f32.mrf.mxu0 }
0x140f   :  { %v4429_v58 = vmul.f32 0.35355338, %v4425_v43  ;;  %v8996_v43 = vadd.f32 %v7804_v33, %v8993_v21 }
0x1410   :  { %v7811_v4 = vpop.f32.mrf.mxu0 }
0x1411   :  { %v4436_v44 = vadd.f32 %v8975_v6, %v4429_v58 }
0x1413   :  { %v4438_v2 = vsel %vm4437_vm3, %v4436_v44, -inf }
0x1414   :  { %4439 = vmax.xlane.f32.xlu0 %v4438_v2 }
0x1428   :  { %v4598_v59 = vpop.f32.mrf.mxu0 }
0x1429   :  { %v4602_v20 = vmul.f32 0.35355338, %v4598_v59  ;;  %v3763_v59 = vadd.f32 %v8898_v48, %v8893_v19  ;;  %v9015_v19 = vpop.f32.mrf.mxu1 }
0x142a   :  { %v7825_v35 = vpop.f32.mrf.mxu0 }
0x142b   :  { %v4603_v49 = vadd.f32 %v8975_v6, %v4602_v20 }
0x142d   :  { %v4604_v57 = vsel %vm4437_vm3, %v4603_v49, -inf }
0x142e   :  { %4605 = vmax.xlane.f32.xlu1 %v4604_v57 }
0x149d   :  { %v4440_v29 = vpop.xlane.xlu0 %4439 }
0x149e   :  { %v4441_v30 = vsub.f32 %v4436_v44, %v4440_v29  ;;  %v3768_v44 = vadd.f32 %v8891_v45, %v8898_v48  ;;  %v9011_v45 = vld [vmem:[%s9284_s0 + $0x8] sm:$0xff]  ;;  %v4052_v48 = vadd.f32 %v8949_v61, %v8954_v26  ;;  %v4047_v29 = vadd.f32 %v8954_v26, %v8951_v25 }
0x149f   :  { %v3949_v25 = vadd.f32 %v8918_v9, %v8913_v5  ;;  %v3861_v26 = vadd.f32 %v8933_v22, %v8947_v51  ;;  %v4233_v5 = vadd.f32 %v8967_v32, %v8964_v16  ;;  %v3391_v22 = vadd.f32 %v8754_v42, %v8879_v31 }
0x14a0   :  { %v4442_v36 = vmul.f32 1.442695, %v4441_v30 }
0x14a2   :  { %8073 = vpow2.f32 %v4442_v36  ;;  %v3954_v36 = vadd.f32 %v8911_v60, %v8918_v9  ;;  %v4238_v60 = vadd.f32 %v8962_v50, %v8967_v32  ;;  %v4145_v9 = vadd.f32 %v8936_v23, %v4144_v15  ;;  %v9076_v15 = vld [vmem:[%s8205_s17 + $0x1] ss:$0 sm:$0xff]  ;;  %s9288_s17 = sld [smem:[#allocation11_spill]] }
0x14af   :  { %v8074_v53 = vpop.eup %8073 }
0x14b0   :  { %v4444_v1 = vsel %vm4437_vm3, %v8074_v53, 0.0 }
0x14b1   :  { %4445 = vadd.xlane.f32.xlu0 %v4444_v1 }
0x14b7   :  { %v4606_v7 = vpop.xlane.xlu1 %4605 }
0x14b8   :  { %v4607_v8 = vsub.f32 %v4603_v49, %v4606_v7 }
0x14ba   :  { %v4608_v46 = vmul.f32 1.442695, %v4607_v8 }
0x14bc   :  { %8075 = vpow2.f32 %v4608_v46 }
0x14c9   :  { %v8076_v52 = vpop.eup %8075 }
0x14ca   :  { %v4610_v12 = vsel %vm4437_vm3, %v8076_v52, 0.0 }
0x14cb   :  { %4611 = vadd.xlane.f32.xlu1 %v4610_v12 }
0x153a   :  { %v4446_v58 = vpop.xlane.xlu0 %4445 }
0x153b   :  { %8077 = vrcp.f32 %v4446_v58 }
0x1548   :  { %v8078_v4 = vpop.eup %8077 }
0x1549   :  { %v4448_v2 = vmul.f32 %v8078_v4, %v8074_v53 }
0x154b   :  { %7817 = vmatmul.mubr.msk.f32.vlgmr.msra.gmra.mxu1 %vm4437_vm3, %v4448_v2 }
0x154c   :  { %7827 = vmatpush3.msra.mxu1 %v3768_v44  ;;  %7830 = vmatprep.mubr.msk.f32.mxu1 %vm8179_vm1, %v8178_v14 }
0x154d   :  { %7828 = vmatprep.subr.mxu1 %v8178_v14 }
0x154e   :  { %7829 = vmatpush3.msra.mxu1 %v3763_v59 }
0x154f   :  { %7833 = vmatprep.subr.mxu1 %v8178_v14 }
0x1554   :  { %v4612_v20 = vpop.xlane.xlu1 %4611 }
0x1555   :  { %8079 = vrcp.f32 %v4612_v20 }
0x1562   :  { %v8080_v35 = vpop.eup %8079 }
0x1563   :  { %v4614_v49 = vmul.f32 %v8080_v35, %v8076_v52 }
0x1565   :  { %7831 = vmatmul.mubr.msk.f32.vlgmr.msra.gmra.mxu1 %vm4437_vm3, %v4614_v49 }
0x1566   :  { %7835 = vmatprep.mubr.msk.f32.mxu1 %vm8179_vm1, %v8178_v14  ;;  %7834 = vmatpush3.msra.mxu1 %v9011_v45 }
0x1567   :  { %7843 = vmatprep.subr.mxu1 %v8178_v14 }
0x160b   :  { %v4518_v57 = vpop.f32.mrf.mxu1 }
0x160c   :  { %7841 = vmatmul.mubr.msk.f32.vlgmr.msra.gmra.mxu0 %vm1232_vm2, %v4518_v57 }
0x160d   :  { %7851 = vmatpush3.msra.mxu0 %v4052_v48  ;;  %v7818_v30 = vpop.f32.mrf.mxu1  ;;  %7854 = vmatprep.mubr.msk.f32.mxu0 %vm8179_vm1, %v8178_v14 }
0x160e   :  { %7852 = vmatprep.subr.mxu0 %v8178_v14 }
0x160f   :  { %7853 = vmatpush3.msra.mxu0 %v4047_v29 }
0x1610   :  { %7857 = vmatprep.subr.mxu0 %v8178_v14 }
0x1625   :  { %v4684_v61 = vpop.f32.mrf.mxu1 }
0x1626   :  { %7836 = vmatmul.mubr.msk.f32.vlgmr.msra.gmra.mxu1 %vm1232_vm2, %v4684_v61 }
0x1627   :  { %7844 = vmatpush3.xpose.msk.msra.mxu1 %vm1232_vm2, %v3954_v36  ;;  %v7832_v53 = vpop.f32.mrf.mxu1  ;;  %7847 = vmatprep.mubr.msk.f32.mxu1 %vm8179_vm1, %v8178_v14 }
0x1628   :  { %7845 = vmatprep.subr.mxu1 %v8178_v14 }
0x162b   :  { %7846 = vmatpush3.xpose.msk.msra.mxu1 %vm1232_vm2, %v3949_v25 }
0x162c   :  { %7862 = vmatprep.subr.mxu1 %v8178_v14 }
0x162e   :  { %7848 = vmatmul.mubr.msk.f32.vlgmr.msra.gmra.mxu1 %vm1232_vm2, %v3861_v26 }
0x162f   :  { %7863 = vmatpush3.xpose.msk.msra.mxu1 %vm1232_vm2, %v4238_v60  ;;  %7866 = vmatprep.mubr.msk.f32.mxu1 %vm8179_vm1, %v8178_v14 }
0x1630   :  { %7864 = vmatprep.subr.mxu1 %v8178_v14 }
0x1633   :  { %7865 = vmatpush3.xpose.msk.msra.mxu1 %vm1232_vm2, %v4233_v5 }
0x1634   :  { %7881 = vmatprep.subr.mxu1 %v8178_v14 }
0x1636   :  { %7867 = vmatmul.mubr.msk.f32.vlgmr.msra.gmra.mxu1 %vm1232_vm2, %v4145_v9 }
0x1637   :  { %7882 = vmatpush3.xpose.msk.msra.mxu1 %vm1232_vm2, %v8757_v40  ;;  %7885 = vmatprep.mubr.msk.f32.mxu1 %vm8179_vm1, %v8178_v14 }
0x1638   :  { %7883 = vmatprep.subr.mxu1 %v8178_v14 }
0x163b   :  { %7884 = vmatpush3.xpose.msk.msra.mxu1 %vm1232_vm2, %v3391_v22  ;;  %v9084_v22 = vld [vmem:[%s9284_s0 + $0x10] sm:$0xff] }
0x163c   :  { %7902 = vmatprep.subr.mxu1 %v8178_v14 }
0x163e   :  { %7886 = vmatmul.mubr.msk.f32.vlgmr.msra.gmra.mxu1 %vm1232_vm2, %v8883_v37 }
0x163f   :  { %7903 = vmatpush3.msra.mxu1 %v8903_v56  ;;  %7906 = vmatprep.mubr.msk.f32.mxu1 %vm8179_vm1, %v8178_v14 }
0x1640   :  { %7904 = vmatprep.subr.mxu1 %v8178_v14 }
0x1641   :  { %7905 = vmatpush3.msra.mxu1 %v8908_v47 }
0x1642   :  { %7909 = vmatprep.subr.mxu1 %v8178_v14 }
0x16cc   :  { %v4832_v40 = vpop.f32.mrf.mxu0 }
0x16ce   :  { %v7842_v42 = vpop.f32.mrf.mxu0 }
0x16e6   :  { %v4759_v31 = vpop.f32.mrf.mxu1 }
0x16e7   :  { %v9069_v23 = vadd.f32 %v4832_v40, %v4759_v31  ;;  %v4336_v31 = vadd.f32 %v8983_v24, %v8993_v21  ;;  %v9104_v24 = vld [vmem:[%s9284_s0 + $0x18] sm:$0xff] }
0x16e8   :  { %v7837_v51 = vpop.f32.mrf.mxu1 }
0x16ee   :  { %v4911_v50 = vpop.f32.mrf.mxu1 }
0x16ef   :  { %v4915_v37 = vmul.f32 0.35355338, %v4911_v50  ;;  %v4331_v50 = vadd.f32 %v8993_v21, %v8989_v27 }
0x16f0   :  { %v7849_v16 = vpop.f32.mrf.mxu1 }
0x16f1   :  { %v4916_v56 = vadd.f32 %v8975_v6, %v4915_v37 }
0x16f3   :  { %v4917_v1 = vsel %vm4437_vm3, %v4916_v56, -inf }
0x16f4   :  { %4918 = vmax.xlane.f32.xlu0 %v4917_v1 }
0x16f6   :  { %v5152_v7 = vpop.f32.mrf.mxu1 }
0x16f7   :  { %v5156_v8 = vmul.f32 0.35355338, %v5152_v7 }
0x16f8   :  { %v7868_v47 = vpop.f32.mrf.mxu1 }
0x16f9   :  { %v5157_v46 = vadd.f32 %v8975_v6, %v5156_v8 }
0x16fb   :  { %v5158_v52 = vsel %vm4437_vm3, %v5157_v46, -inf }
0x16fc   :  { %5159 = vmax.xlane.f32.xlu0 %v5158_v52 }
0x16fe   :  { %v5395_v12 = vpop.f32.mrf.mxu1 }
0x16ff   :  { %v5399_v33 = vmul.f32 0.35355338, %v5395_v12 }
0x1700   :  { %v7887_v58 = vpop.f32.mrf.mxu1 }
0x1701   :  { %v5406_v4 = vadd.f32 %v9076_v15, %v5399_v33 }
0x1703   :  { %v5407_v44 = vsel %vm4437_vm3, %v5406_v4, -inf }
0x1704   :  { %5408 = vmax.xlane.f32.xlu0 %v5407_v44 }
0x177d   :  { %v4919_v2 = vpop.xlane.xlu0 %4918 }
0x177e   :  { %v4920_v59 = vsub.f32 %v4916_v56, %v4919_v2 }
0x1780   :  { %v4921_v20 = vmul.f32 1.442695, %v4920_v59 }
0x1782   :  { %8081 = vpow2.f32 %v4921_v20 }
0x1785   :  { %v5160_v35 = vpop.xlane.xlu0 %5159 }
0x1786   :  { %v5161_v49 = vsub.f32 %v5157_v46, %v5160_v35 }
0x1788   :  { %v5162_v6 = vmul.f32 1.442695, %v5161_v49 }
0x178a   :  { %8083 = vpow2.f32 %v5162_v6 }
0x178d   :  { %v5409_v48 = vpop.xlane.xlu0 %5408 }
0x178e   :  { %v5410_v57 = vsub.f32 %v5406_v4, %v5409_v48 }
0x178f   :  { %v8082_v29 = vpop.eup %8081 }
0x1790   :  { %v5411_v30 = vmul.f32 1.442695, %v5410_v57  ;;  %v4923_v36 = vsel %vm4437_vm3, %v8082_v29, 0.0 }
0x1791   :  { %4924 = vadd.xlane.f32.xlu1 %v4923_v36 }
0x1792   :  { %8085 = vpow2.f32 %v5411_v30 }
0x1797   :  { %v8084_v61 = vpop.eup %8083 }
0x1798   :  { %v5164_v53 = vsel %vm4437_vm3, %v8084_v61, 0.0 }
0x1799   :  { %5165 = vadd.xlane.f32.xlu1 %v5164_v53 }
0x179f   :  { %v8086_v25 = vpop.eup %8085 }
0x17a0   :  { %v5413_v26 = vsel %vm4437_vm3, %v8086_v25, 0.0 }
0x17a1   :  { %5414 = vadd.xlane.f32.xlu1 %v5413_v26 }
0x181a   :  { %v4925_v60 = vpop.xlane.xlu1 %4924 }
0x181b   :  { %8087 = vrcp.f32 %v4925_v60 }
0x1822   :  { %v5166_v40 = vpop.xlane.xlu1 %5165 }
0x1823   :  { %8089 = vrcp.f32 %v5166_v40 }
0x1828   :  { %v8088_v5 = vpop.eup %8087 }
0x1829   :  { %v4927_v9 = vmul.f32 %v8088_v5, %v8082_v29 }
0x182a   :  { %v5415_v27 = vpop.xlane.xlu1 %5414 }
0x182b   :  { %7855 = vmatmul.mubr.msk.f32.vlgmr.msra.gmra.mxu0 %vm4437_vm3, %v4927_v9  ;;  %8091 = vrcp.f32 %v5415_v27 }
0x182c   :  { %7858 = vmatpush3.msra.mxu0 %v9084_v22  ;;  %7859 = vmatprep.mubr.msk.f32.mxu0 %vm8179_vm1, %v8178_v14 }
0x182d   :  { %7869 = vmatprep.subr.mxu0 %v8178_v14 }
0x1830   :  { %v8090_v42 = vpop.eup %8089 }
0x1831   :  { %v5168_v16 = vmul.f32 %v8090_v42, %v8084_v61  ;;  %v9174_v61 = vld [vmem:[%s9285_s5] ss:$0 sm:$0xff] }
0x1838   :  { %v8092_v8 = vpop.eup %8091 }
0x1839   :  { %v5417_v52 = vmul.f32 %v8092_v8, %v8086_v25 }
0x18eb   :  { %v4997_v51 = vpop.f32.mrf.mxu0 }
0x18ec   :  { %7860 = vmatmul.mubr.msk.f32.vlgmr.msra.gmra.mxu0 %vm1232_vm2, %v4997_v51 }
0x18ed   :  { %7870 = vmatpush3.msra.mxu0 %v4336_v31  ;;  %v7856_v37 = vpop.f32.mrf.mxu0  ;;  %7873 = vmatprep.mubr.msk.f32.mxu0 %vm8179_vm1, %v8178_v14 }
0x18ee   :  { %7871 = vmatprep.subr.mxu0 %v8178_v14 }
0x18ef   :  { %7872 = vmatpush3.msra.mxu0 %v4331_v50 }
0x18f0   :  { %7874 = vmatmul.mubr.msk.f32.vlgmr.msra.gmra.mxu0 %vm4437_vm3, %v5168_v16  ;;  %7876 = vmatprep.subr.mxu0 %v8178_v14 }
0x18f1   :  { %7878 = vmatprep.mubr.msk.f32.mxu0 %vm8179_vm1, %v8178_v14  ;;  %7877 = vmatpush3.msra.mxu0 %v9104_v24 }
0x18f2   :  { %7888 = vmatprep.subr.mxu0 %v8178_v14 }
0x19ac   :  { %v5072_v56 = vpop.f32.mrf.mxu0 }
0x19ad   :  { %v5076_v1 = vadd.f32 %v5072_v56, %v9069_v23 }
0x19ae   :  { %v7861_v7 = vpop.f32.mrf.mxu0 }
0x19b0   :  { %v5238_v47 = vpop.f32.mrf.mxu0 }
0x19b1   :  { %7879 = vmatmul.mubr.msk.f32.vlgmr.msra.gmra.mxu0 %vm1232_vm2, %v5238_v47 }
0x19b2   :  { %7889 = vmatpush3.msra.mxu0 %v8900_v3  ;;  %v7875_v46 = vpop.f32.mrf.mxu0  ;;  %7892 = vmatprep.mubr.msk.f32.mxu0 %vm8179_vm1, %v8178_v14 }
0x19b3   :  { %7890 = vmatprep.subr.mxu0 %v8178_v14 }
0x19b4   :  { %7891 = vmatpush3.msra.mxu0 %v8905_v54 }
0x19b5   :  { %7895 = vmatprep.subr.mxu0 %v8178_v14  ;;  %7893 = vmatmul.mubr.msk.f32.vlgmr.msra.gmra.mxu0 %vm4437_vm3, %v5417_v52 }
0x19b6   :  { %7896 = vmatpush3.xpose.msk.msra.mxu0 %vm1232_vm2, %v8920_v10  ;;  %7899 = vmatprep.mubr.msk.f32.mxu0 %vm8179_vm1, %v8178_v14 }
0x19b7   :  { %7897 = vmatprep.subr.mxu0 %v8178_v14 }
0x19ba   :  { %7898 = vmatpush3.xpose.msk.msra.mxu0 %vm1232_vm2, %v8927_v13 }
0x19bb   :  { %7914 = vmatprep.subr.mxu0 %v8178_v14 }
0x19bd   :  { %7900 = vmatmul.mubr.msk.f32.vlgmr.msra.gmra.mxu0 %vm1232_vm2, %v8885_v38 }
0x19be   :  { %7915 = vmatpush3.msra.mxu0 %v8986_v41  ;;  %7916 = vmatprep.mubr.msk.f32.mxu0 %vm8179_vm1, %v8178_v14 }
0x19bf   :  { %7926 = vmatprep.subr.mxu0 %v8178_v14 }
0x1a71   :  { %v5313_v3 = vpop.f32.mrf.mxu0 }
0x1a72   :  { %v5317_v54 = vadd.f32 %v5313_v3, %v5076_v1 }
0x1a73   :  { %v7880_v10 = vpop.f32.mrf.mxu0 }
0x1a75   :  { %v5487_v23 = vpop.f32.mrf.mxu0 }
0x1a76   :  { %7917 = vmatmul.mubr.msk.f32.vlgmr.msra.gmra.mxu0 %vm1232_vm2, %v5487_v23 }
0x1a77   :  { %7927 = vmatpush3.msra.mxu0 %v8957_v63  ;;  %v7894_v13 = vpop.f32.mrf.mxu0  ;;  %7930 = vmatprep.mubr.msk.f32.mxu0 %vm8179_vm1, %v8178_v14 }
0x1a78   :  { %7928 = vmatprep.subr.mxu0 %v8178_v14  ;;  %v9186_v13 = vld [vmem:[%s9286_s9] ss:$0 sm:$0xff] }
0x1a79   :  { %7929 = vmatpush3.msra.mxu0 %v8960_v28 }
0x1a7a   :  { %7933 = vmatprep.subr.mxu0 %v8178_v14 }
0x1a7d   :  { %v5566_v38 = vpop.f32.mrf.mxu0 }
0x1a7e   :  { %v5570_v41 = vmul.f32 0.35355338, %v5566_v38 }
0x1a7f   :  { %v7901_v12 = vpop.f32.mrf.mxu0 }
0x1a80   :  { %v5571_v33 = vadd.f32 %v9076_v15, %v5570_v41  ;;  %v7091_v41 = vld [vmem:[%s9287_s13] ss:$0 sm:$0xff] }
0x1a82   :  { %v5572_v58 = vsel %vm4437_vm3, %v5571_v33, -inf }
0x1a83   :  { %5573 = vmax.xlane.f32.xlu0 %v5572_v58 }
0x1b0c   :  { %v5574_v4 = vpop.xlane.xlu0 %5573 }
0x1b0d   :  { %v5575_v63 = vsub.f32 %v5571_v33, %v5574_v4 }
0x1b0f   :  { %v5576_v44 = vmul.f32 1.442695, %v5575_v63 }
0x1b11   :  { %8093 = vpow2.f32 %v5576_v44 }
0x1b1e   :  { %v8094_v2 = vpop.eup %8093 }
0x1b1f   :  { %v5578_v59 = vsel %vm4437_vm3, %v8094_v2, 0.0 }
0x1b20   :  { %5579 = vadd.xlane.f32.xlu1 %v5578_v59 }
0x1b36   :  { %v9141_v20 = vpop.f32.mrf.mxu0 }
0x1b38   :  { %v7918_v28 = vpop.f32.mrf.mxu0 }
0x1ba9   :  { %v5580_v35 = vpop.xlane.xlu1 %5579 }
0x1baa   :  { %8095 = vrcp.f32 %v5580_v35 }
0x1bb7   :  { %v8096_v49 = vpop.eup %8095 }
0x1bb8   :  { %v5582_v6 = vmul.f32 %v8096_v49, %v8094_v2 }
0x1bba   :  { %7907 = vmatmul.mubr.msk.f32.vlgmr.msra.gmra.mxu1 %vm4437_vm3, %v5582_v6 }
0x1bbb   :  { %7910 = vmatpush3.msra.mxu1 %v9011_v45  ;;  %7911 = vmatprep.mubr.msk.f32.mxu1 %vm8179_vm1, %v8178_v14 }
0x1bbc   :  { %7919 = vmatprep.subr.mxu1 %v8178_v14 }
0x1c7a   :  { %v5652_v48 = vpop.f32.mrf.mxu1 }
0x1c7b   :  { %7912 = vmatmul.mubr.msk.f32.vlgmr.msra.gmra.mxu1 %vm1232_vm2, %v5652_v48 }
0x1c7c   :  { %7920 = vmatpush3.xpose.msk.msra.mxu1 %vm1232_vm2, %v8924_v11  ;;  %v7908_v57 = vpop.f32.mrf.mxu1  ;;  %7923 = vmatprep.mubr.msk.f32.mxu1 %vm8179_vm1, %v8178_v14  ;;  %v4243_v11 = vadd.f32 %v8967_v32, %v8972_v39  ;;  %v6286_v32 = vadd.f32 %v9174_v61, %v5317_v54 }
0x1c7d   :  { %7921 = vmatprep.subr.mxu1 %v8178_v14 }
0x1c7e   :  { %v6288_v60 = vadd.f32 %v6286_v32, %v8703_v17 }
0x1c80   :  { %7922 = vmatpush3.xpose.msk.msra.mxu1 %vm1232_vm2, %v8930_v18  ;;  %v6292_v5 = vsel %vm126_vm0, %v6288_v60, 0.0 }
0x1c81   :  { %7938 = vmatprep.subr.mxu1 %v8178_v14 }
0x1c83   :  { %7924 = vmatmul.mubr.msk.f32.vlgmr.msra.gmra.mxu1 %vm1232_vm2, %v8942_v62 }
0x1c84   :  { %7939 = vmatpush3.xpose.msk.msra.mxu1 %vm1232_vm2, %v8970_v34  ;;  %7942 = vmatprep.mubr.msk.f32.mxu1 %vm8179_vm1, %v8178_v14 }
0x1c85   :  { %7940 = vmatprep.subr.mxu1 %v8178_v14 }
0x1c88   :  { %7941 = vmatpush3.xpose.msk.msra.mxu1 %vm1232_vm2, %v4243_v11 }
0x1c8b   :  { %7943 = vmatmul.mubr.msk.f32.vlgmr.msra.gmra.mxu1 %vm1232_vm2, %v8945_v55 }
0x1d3b   :  { %v9169_v18 = vpop.f32.mrf.mxu1 }
0x1d3d   :  { %v7913_v45 = vpop.f32.mrf.mxu1 }
0x1d43   :  { %v5877_v62 = vpop.f32.mrf.mxu1 }
0x1d44   :  { %v5881_v29 = vmul.f32 0.35355338, %v5877_v62 }
0x1d45   :  { %v7925_v30 = vpop.f32.mrf.mxu1 }
0x1d46   :  { %v5882_v34 = vadd.f32 %v9076_v15, %v5881_v29  ;;  %v6337_v29 = vld [vmem:[%s9288_s17 + $0x18] sm:$0xff]  ;;  %v6336_v30 = vld [vmem:[%s9288_s17 + $0x10] sm:$0xff] }
0x1d47   :  { %7957 = vmatprep.subr.mxu1 %v6337_v29 }
0x1d48   :  { %v5883_v36 = vsel %vm4437_vm3, %v5882_v34, -inf  ;;  %7958 = vmatpush3.msra.mxu1 %v6337_v29  ;;  %v6587_v29 = vld [vmem:[%s8320_s25] sm:$0xff] }
0x1d49   :  { %5884 = vmax.xlane.f32.xlu0 %v5883_v36  ;;  %7959 = vmatprep.subr.mxu1 %v6336_v30 }
0x1d4a   :  { %7960 = vmatpush3.msra.mxu1 %v6336_v30 }
0x1d4b   :  { %v6116_v53 = vpop.f32.mrf.mxu1 }
0x1d4c   :  { %v6120_v39 = vmul.f32 0.35355338, %v6116_v53 }
0x1d4d   :  { %v7944_v25 = vpop.f32.mrf.mxu1 }
0x1d4e   :  { %v6121_v55 = vadd.f32 %v9076_v15, %v6120_v39 }
0x1d50   :  { %v6122_v26 = vsel %vm4437_vm3, %v6121_v55, -inf }
0x1d51   :  { %6123 = vmax.xlane.f32.xlu0 %v6122_v26  ;;  %v6451_v26 = vld [vmem:[%s9289_s29 + $0x38] sm:$0xff] }
0x1d55   :  { %6293 = vadd.xlane.f32.xlu0 %v6292_v5  ;;  %v6449_v5 = vld [vmem:[%s9289_s29 + $0x28] sm:$0xff] }
0x1dd2   :  { %v5885_v9 = vpop.xlane.xlu0 %5884 }
0x1dd3   :  { %v5886_v40 = vsub.f32 %v5882_v34, %v5885_v9  ;;  %v6335_v34 = vld [vmem:[%s9288_s17 + $0x8] sm:$0xff]  ;;  %v6448_v9 = vld [vmem:[%s9289_s29 + $0x20] sm:$0xff] }
0x1dd4   :  { %7961 = vmatprep.subr.mxu1 %v6335_v34 }
0x1dd5   :  { %v5887_v42 = vmul.f32 1.442695, %v5886_v40  ;;  %7962 = vmatpush3.msra.mxu1 %v6335_v34  ;;  %v6447_v40 = vld [vmem:[%s9289_s29 + $0x18] sm:$0xff] }
0x1dd7   :  { %8097 = vpow2.f32 %v5887_v42  ;;  %v6446_v42 = vld [vmem:[%s9289_s29 + $0x10] sm:$0xff] }
0x1dda   :  { %v6124_v31 = vpop.xlane.xlu0 %6123 }
0x1ddb   :  { %v6125_v51 = vsub.f32 %v6121_v55, %v6124_v31  ;;  %v6445_v31 = vld [vmem:[%s9289_s29 + $0x8] sm:$0xff] }
0x1ddd   :  { %v6126_v50 = vmul.f32 1.442695, %v6125_v51  ;;  %v6444_v51 = vld [vmem:[%s9289_s29] sm:$0xff] }
0x1dde   :  { %v6294_v37 = vpop.xlane.xlu0 %6293 }
0x1ddf   :  { %8099 = vpow2.f32 %v6126_v50  ;;  %v6298_v16 = vmul.f32 0.03125, %v6294_v37  ;;  %v7092_v50 = vld [vmem:[%s9290_s3] ss:$0 sm:$0xff] }
0x1de1   :  { %v6300_v27 = vsub.f32 %v6288_v60, %v6298_v16  ;;  %v6450_v60 = vld [vmem:[%s9289_s29 + $0x30] sm:$0xff] }
0x1de3   :  { %v6302_v15 = vmul.f32 %v6300_v27, %v6300_v27 }
0x1de4   :  { %v8098_v56 = vpop.eup %8097 }
0x1de5   :  { %v5889_v1 = vsel %vm4437_vm3, %v8098_v56, 0.0  ;;  %v6304_v17 = vsel %vm126_vm0, %v6302_v15, 0.0 }
0x1de6   :  { %5890 = vadd.xlane.f32.xlu1 %v5889_v1  ;;  %6305 = vadd.xlane.f32.xlu0 %v6304_v17 }
0x1dec   :  { %v8100_v7 = vpop.eup %8099 }
0x1ded   :  { %v6128_v8 = vsel %vm4437_vm3, %v8100_v7, 0.0 }
0x1dee   :  { %6129 = vadd.xlane.f32.xlu1 %v6128_v8 }
0x1e6f   :  { %v5891_v47 = vpop.xlane.xlu1 %5890  ;;  %v6306_v46 = vpop.xlane.xlu0 %6305 }
0x1e70   :  { %8101 = vrcp.f32 %v5891_v47  ;;  %v6310_v52 = vmul.f32 0.03125, %v6306_v46 }
0x1e72   :  { %v6312_v3 = vadd.f32 1e-12, %v6310_v52 }
0x1e74   :  { %8103 = vrsqrt.f32 %v6312_v3 }
0x1e77   :  { %v6130_v58 = vpop.xlane.xlu1 %6129 }
0x1e78   :  { %8105 = vrcp.f32 %v6130_v58 }
0x1e7d   :  { %v8102_v54 = vpop.eup %8101 }
0x1e7e   :  { %v5893_v10 = vmul.f32 %v8102_v54, %v8098_v56 }
0x1e80   :  { %7931 = vmatmul.mubr.msk.f32.vlgmr.msra.gmra.mxu0 %vm4437_vm3, %v5893_v10 }
0x1e81   :  { %v8104_v23 = vpop.eup %8103  ;;  %7934 = vmatpush3.msra.mxu0 %v9084_v22  ;;  %7935 = vmatprep.mubr.msk.f32.mxu0 %vm8179_vm1, %v8178_v14  ;;  %v4341_v22 = vadd.f32 %v8993_v21, %v9015_v19  ;;  %v5799_v21 = vadd.f32 %v9141_v20, %v9169_v18 }
0x1e82   :  { %v6316_v38 = vmul.f32 %v8104_v23, %v6300_v27  ;;  %7945 = vmatprep.subr.mxu0 %v8178_v14 }
0x1e84   :  { %v6324_v12 = vmul.f32 %v9186_v13, %v6316_v38 }
0x1e85   :  { %v8106_v4 = vpop.eup %8105 }
0x1e86   :  { %v9194_v33 = vadd.f32 %v7091_v41, %v6324_v12  ;;  %v6132_v2 = vmul.f32 %v8106_v4, %v8100_v7 }
0x1e88   :  { %7965 = vmatprep.mubr.msk.f32.mxu1 %vm126_vm0, %v9194_v33 }
0x1f40   :  { %v5963_v63 = vpop.f32.mrf.mxu0 }
0x1f41   :  { %7936 = vmatmul.mubr.msk.f32.vlgmr.msra.gmra.mxu0 %vm1232_vm2, %v5963_v63  ;;  %v7095_v63 = vld [vmem:[%s9291_s8] ss:$0 sm:$0xff] }
0x1f42   :  { %7946 = vmatpush3.msra.mxu0 %v8996_v43  ;;  %v7932_v44 = vpop.f32.mrf.mxu0  ;;  %7949 = vmatprep.mubr.msk.f32.mxu0 %vm8179_vm1, %v8178_v14 }
0x1f43   :  { %7947 = vmatprep.subr.mxu0 %v8178_v14 }
0x1f44   :  { %7948 = vmatpush3.msra.mxu0 %v4341_v22 }
0x1f45   :  { %7950 = vmatmul.mubr.msk.f32.vlgmr.msra.gmra.mxu0 %vm4437_vm3, %v6132_v2  ;;  %7952 = vmatprep.subr.mxu0 %v8178_v14 }
0x1f46   :  { %7953 = vmatpush3.msra.mxu0 %v9104_v24  ;;  %7954 = vmatprep.mubr.msk.f32.mxu0 %vm8179_vm1, %v8178_v14 }
0x1f47   :  { %7968 = vmatprep.subr.mxu0 %v6451_v26 }
0x2001   :  { %v6036_v43 = vpop.f32.mrf.mxu0 }
0x2002   :  { %v6040_v19 = vadd.f32 %v6036_v43, %v5799_v21 }
0x2003   :  { %v7937_v59 = vpop.f32.mrf.mxu0 }
0x2005   :  { %v6202_v28 = vpop.f32.mrf.mxu0 }
0x2006   :  { %7955 = vmatmul.mubr.msk.f32.vlgmr.msra.gmra.mxu0 %vm1232_vm2, %v6202_v28 }
0x2007   :  { %v7951_v35 = vpop.f32.mrf.mxu0  ;;  %7969 = vmatpush3.msra.mxu0 %v6451_v26 }
0x2008   :  { %7970 = vmatprep.subr.mxu0 %v6450_v60 }
0x2009   :  { %7971 = vmatpush3.msra.mxu0 %v6450_v60 }
0x200a   :  { %7972 = vmatprep.subr.mxu0 %v6449_v5 }
0x200b   :  { %7973 = vmatpush3.msra.mxu0 %v6449_v5  ;;  %v7099_v5 = vld [vmem:[%s9293_s19] ss:$0 sm:$0xff] }
0x200c   :  { %7974 = vmatprep.subr.mxu0 %v6448_v9 }
0x200d   :  { %7975 = vmatpush3.msra.mxu0 %v6448_v9 }
0x200e   :  { %7976 = vmatprep.subr.mxu0 %v6447_v40 }
0x200f   :  { %7977 = vmatpush3.msra.mxu0 %v6447_v40 }
0x2010   :  { %7978 = vmatprep.subr.mxu0 %v6446_v42 }
0x2011   :  { %7979 = vmatpush3.msra.mxu0 %v6446_v42 }
0x2012   :  { %7980 = vmatprep.subr.mxu0 %v6445_v31 }
0x2013   :  { %7981 = vmatpush3.msra.mxu0 %v6445_v31  ;;  %v8180_v31 = vmov 0  }
0x2014   :  { %7982 = vmatprep.subr.mxu0 %v6444_v51  ;;  %8032 = vset.pattern.permute.xlu1 %v8180_v31 }
0x2015   :  { %7983 = vmatpush3.msra.mxu0 %v6444_v51  ;;  %8031 = vset.pattern.permute.xlu0 %v8180_v31  ;;  %v7100_v51 = vld [vmem:[%s8325_s21] ss:$0 sm:$0xff]  ;;  %s9295_s21 = sld [smem:[#allocation6_spill]] }
0x20c6   :  { %v6275_v49 = vpop.f32.mrf.mxu0 }
0x20c7   :  { %v6279_v6 = vadd.f32 %v6275_v49, %v6040_v19 }
0x20c8   :  { %v7956_v48 = vpop.f32.mrf.mxu0 }
0x20c9   :  { %v6287_v24 = vadd.f32 %v9174_v61, %v6279_v6 }
0x20cb   :  { %v6289_v14 = vadd.f32 %v6287_v24, %v8761_v0  ;;  %v6334_v0 = vld [vmem:[%s9288_s17] sm:$0xff] }
0x20cc   :  { %7963 = vmatprep.subr.mxu1 %v6334_v0 }
0x20cd   :  { %v6295_v20 = vsel %vm126_vm0, %v6289_v14, 0.0  ;;  %7964 = vmatpush3.msra.mxu1 %v6334_v0 }
0x20ce   :  { %6296 = vadd.xlane.f32.xlu1 %v6295_v20 }
0x2157   :  { %v6297_v57 = vpop.xlane.xlu1 %6296 }
0x2158   :  { %v6299_v11 = vmul.f32 0.03125, %v6297_v57 }
0x215a   :  { %v6301_v18 = vsub.f32 %v6289_v14, %v6299_v11 }
0x215c   :  { %v6303_v45 = vmul.f32 %v6301_v18, %v6301_v18 }
0x215e   :  { %v6307_v62 = vsel %vm126_vm0, %v6303_v45, 0.0  ;;  %v6589_v45 = vld [vmem:[%s8320_s25 + $0x10] sm:$0xff] }
0x215f   :  { %6308 = vadd.xlane.f32.xlu1 %v6307_v62  ;;  %v6588_v62 = vld [vmem:[%s8320_s25 + $0x8] sm:$0xff] }
0x21e8   :  { %v6309_v36 = vpop.xlane.xlu1 %6308 }
0x21e9   :  { %v6311_v61 = vmul.f32 0.03125, %v6309_v36 }
0x21eb   :  { %v6313_v53 = vadd.f32 1e-12, %v6311_v61 }
0x21ed   :  { %8107 = vrsqrt.f32 %v6313_v53 }
0x21fa   :  { %v8108_v32 = vpop.eup %8107 }
0x21fb   :  { %v6317_v39 = vmul.f32 %v8108_v32, %v6301_v18  ;;  %v6590_v18 = vld [vmem:[%s8320_s25 + $0x18] sm:$0xff]  ;;  %s9294_s25 = sld [smem:[#allocation5_spill]] }
0x21fc   :  { %7987 = vmatprep.subr.mxu1 %v6590_v18 }
0x21fd   :  { %v6325_v25 = vmul.f32 %v9186_v13, %v6317_v39  ;;  %v7098_v39 = vld [vmem:[%s9292_s14] ss:$0 sm:$0xff] }
0x21ff   :  { %v6333_v55 = vadd.f32 %v7091_v41, %v6325_v25 }
0x2201   :  { %7966 = vmatmul.mubr.msk.f32.vlgmr.msra.gmra.mxu1 %vm126_vm0, %v6333_v55 }
0x2202   :  { %7988 = vmatpush3.msra.mxu1 %v6590_v18 }
0x2203   :  { %7989 = vmatprep.subr.mxu1 %v6589_v45 }
0x2204   :  { %7990 = vmatpush3.msra.mxu1 %v6589_v45 }
0x2205   :  { %7991 = vmatprep.subr.mxu1 %v6588_v62 }
0x2206   :  { %7992 = vmatpush3.msra.mxu1 %v6588_v62 }
0x2207   :  { %7993 = vmatprep.subr.mxu1 %v6587_v29 }
0x2208   :  { %7994 = vmatpush3.msra.mxu1 %v6587_v29 }
0x22c1   :  { %v7967_v37 = vpop.f32.mrf.mxu1 }
0x22c2   :  { %v6423_v16 = vadd.f32 %v7967_v37, %v7092_v50 }
0x22c3   :  { %v6417_v27 = vpop.f32.mrf.mxu1 }
0x22c4   :  { %v6429_v15 = vmul.f32 0.044715, %v6423_v16  ;;  %v6418_v56 = vadd.f32 %v7092_v50, %v6417_v27  ;;  %v6427_v12 = vmul.f32 0.5, %v6423_v16 }
0x22c6   :  { %v6431_v1 = vmul.f32 %v6429_v15, %v6423_v16  ;;  %v6428_v17 = vmul.f32 0.044715, %v6418_v56  ;;  %v6426_v38 = vmul.f32 0.5, %v6418_v56 }
0x22c8   :  { %v6433_v7 = vmul.f32 %v6431_v1, %v6423_v16  ;;  %v6430_v8 = vmul.f32 %v6428_v17, %v6418_v56  ;;  %v6682_v1 = vld [vmem:[%s9294_s25 + $0x8] sm:$0xff]  ;;  %v6681_v17 = vld [vmem:[%s9294_s25] sm:$0xff] }
0x22ca   :  { %v6435_v47 = vadd.f32 %v6433_v7, %v6423_v16  ;;  %v6432_v46 = vmul.f32 %v6430_v8, %v6418_v56 }
0x22cc   :  { %v6437_v52 = vmul.f32 0.7978846, %v6435_v47  ;;  %v6434_v3 = vadd.f32 %v6432_v46, %v6418_v56 }
0x22ce   :  { %8109 = vtanh.f32 %v6437_v52  ;;  %v6436_v54 = vmul.f32 0.7978846, %v6434_v3 }
0x22d0   :  { %8111 = vtanh.f32 %v6436_v54  ;;  %v6707_v54 = vlaneseq }
0x22db   :  { %v8110_v10 = vpop.eup %8109 }
0x22dc   :  { %v6441_v13 = vadd.f32 1.0, %v8110_v10 }
0x22dd   :  { %v8112_v23 = vpop.eup %8111 }
0x22de   :  { %v6440_v41 = vadd.f32 1.0, %v8112_v23  ;;  %v6443_v4 = vmul.f32 %v6441_v13, %v6427_v12  ;;  %v6708_v23 = vand.u32 127, %v6707_v54 }
0x22e0   :  { %v6442_v58 = vmul.f32 %v6440_v41, %v6426_v38 }
0x22e2   :  { %7984 = vmatprep.mubr.msk.f32.mxu0 %vm6459_vm4, %v6442_v58 }
0x22e3   :  { %7985 = vmatmul.mubr.msk.f32.vlgmr.msra.gmra.mxu0 %vm6459_vm4, %v6443_v4 }
0x23a3   :  { %v7986_v22 = vpop.f32.mrf.mxu0 }
0x23a4   :  { %v6538_v44 = vadd.f32 %v7986_v22, %v7095_v63 }
0x23a5   :  { %v6532_v2 = vpop.f32.mrf.mxu0 }
0x23a6   :  { %v6533_v21 = vadd.f32 %v7095_v63, %v6532_v2  ;;  %v6542_v43 = vadd.f32 %v6538_v44, %v6333_v55  ;;  %v6727_v2 = vld [vmem:[%s9295_s21] sm:$0xff] }
0x23a8   :  { %v6548_v19 = vsel %vm126_vm0, %v6542_v43, 0.0  ;;  %v6541_v59 = vadd.f32 %v6533_v21, %v9194_v33  ;;  %v6728_v21 = vld [vmem:[%s9295_s21 + $0x8] sm:$0xff] }
0x23a9   :  { %6549 = vadd.xlane.f32.xlu1 %v6548_v19  ;;  %v6742_v19 = vsel %vm6731_vm7, %v6728_v21, 0.0 }
0x23aa   :  { %v6545_v28 = vsel %vm126_vm0, %v6541_v59, 0.0 }
0x23ab   :  { %6546 = vadd.xlane.f32.xlu0 %v6545_v28 }
0x2432   :  { %v6550_v35 = vpop.xlane.xlu1 %6549 }
0x2433   :  { %v6552_v49 = vmul.f32 0.03125, %v6550_v35 }
0x2434   :  { %v6547_v6 = vpop.xlane.xlu0 %6546 }
0x2435   :  { %v6554_v48 = vsub.f32 %v6542_v43, %v6552_v49  ;;  %v6551_v24 = vmul.f32 0.03125, %v6547_v6  ;;  %v6741_v43 = vsel %vm6731_vm7, %v6727_v2, 0.0 }
0x2437   :  { %v6553_v14 = vsub.f32 %v6541_v59, %v6551_v24  ;;  %v6556_v20 = vmul.f32 %v6554_v48, %v6554_v48  ;;  %v6743_v59 = vadd.f32 %v6742_v19, %v6741_v43 }
0x2439   :  { %v6560_v57 = vsel %vm126_vm0, %v6556_v20, 0.0  ;;  %v6555_v11 = vmul.f32 %v6553_v14, %v6553_v14  ;;  %v6744_v28 = vrot.slane %v6743_v59, 4 }
0x243a   :  { %6561 = vadd.xlane.f32.xlu1 %v6560_v57 }
0x243b   :  { %v6557_v33 = vsel %vm126_vm0, %v6555_v11, 0.0  ;;  %v6745_v49 = vadd.f32 %v6744_v28, %v6743_v59 }
0x243c   :  { %6558 = vadd.xlane.f32.xlu0 %v6557_v33 }
0x24c3   :  { %v6562_v30 = vpop.xlane.xlu1 %6561 }
0x24c4   :  { %v6564_v34 = vmul.f32 0.03125, %v6562_v30 }
0x24c5   :  { %v6559_v0 = vpop.xlane.xlu0 %6558 }
0x24c6   :  { %v6566_v36 = vadd.f32 1e-12, %v6564_v34  ;;  %v6563_v61 = vmul.f32 0.03125, %v6559_v0 }
0x24c8   :  { %8113 = vrsqrt.f32 %v6566_v36  ;;  %v6565_v53 = vadd.f32 1e-12, %v6563_v61 }
0x24ca   :  { %8115 = vrsqrt.f32 %v6565_v53 }
0x24d5   :  { %v8114_v32 = vpop.eup %8113 }
0x24d6   :  { %v6570_v25 = vmul.f32 %v8114_v32, %v6554_v48  ;;  %v6746_v48 = vrot.slane %v6745_v49, 2 }
0x24d7   :  { %v8116_v55 = vpop.eup %8115 }
0x24d8   :  { %v6569_v26 = vmul.f32 %v8116_v55, %v6553_v14  ;;  %v6578_v60 = vmul.f32 %v7098_v39, %v6570_v25  ;;  %v6747_v24 = vadd.f32 %v6746_v48, %v6745_v49 }
0x24da   :  { %v6577_v9 = vmul.f32 %v7098_v39, %v6569_v26  ;;  %v6586_v42 = vadd.f32 %v7099_v5, %v6578_v60  ;;  %v6748_v20 = vrot.slane %v6747_v24, 1 }
0x24dc   :  { %v6585_v40 = vadd.f32 %v7099_v5, %v6577_v9  ;;  %v6749_v18 = vadd.f32 %v6748_v20, %v6747_v24 }
0x24de   :  { %7995 = vmatprep.mubr.msk.f32.mxu1 %vm126_vm0, %v6585_v40  ;;  %v6750_v0 = vmax.f32 %v6749_v18, 1.0 }
0x24df   :  { %7996 = vmatmul.mubr.msk.f32.vlgmr.msra.gmra.mxu1 %vm126_vm0, %v6586_v42 }
0x259f   :  { %v7997_v50 = vpop.f32.mrf.mxu1 }
0x25a0   :  { %v6676_v37 = vadd.f32 %v7997_v50, %v7100_v51 }
0x25a1   :  { %v6670_v16 = vpop.f32.mrf.mxu1 }
0x25a2   :  { %6680 = vst.msk [vmem:[%s8330_s27 + $0x8] sm:$0xff] %vm126_vm0, %v6676_v37  ;;  %v6671_v27 = vadd.f32 %v7100_v51, %v6670_v16  ;;  %v6686_v15 = vsel %vm126_vm0, %v6676_v37, -inf }
0x25a3   :  { %6687 = vmax.xlane.f32.xlu1 %v6686_v15 }
0x25a4   :  { %6679 = vst.msk [vmem:[%s8330_s27] sm:$0xff] %vm126_vm0, %v6671_v27  ;;  %v6683_v56 = vsel %vm126_vm0, %v6671_v27, -inf }
0x25a5   :  { %6684 = vmax.xlane.f32.xlu0 %v6683_v56 }
0x25b4   :  { %6713 = vperm.xlu1 %8032, %v6682_v1  }
0x25bb   :  { %6710 = vperm.xlu0 %8031, %v6681_v17  }
0x262c   :  { %v6688_v7 = vpop.xlane.xlu1 %6687 }
0x262d   :  { %v6690_v8 = vsub.f32 %v6676_v37, %v6688_v7 }
0x262e   :  { %v6685_v47 = vpop.xlane.xlu0 %6684 }
0x262f   :  { %v6693_v46 = vmul.f32 1.442695, %v6690_v8  ;;  %v6689_v52 = vsub.f32 %v6671_v27, %v6685_v47 }
0x2630   :  { %v6714_v12 = vpop.permute.xlu1 %6713 }
0x2631   :  { %8117 = vpow2.f32 %v6693_v46  ;;  %v6691_v3 = vmul.f32 1.442695, %v6689_v52  ;;  %vm6716_vm6 = vcmp.eq.s32.totalorder %v6708_v23, %v6714_v12 }
0x2632   :  { %v6718_v22 = vsel %vm6716_vm6, %v6676_v37, 0.0 }
0x2633   :  { %8119 = vpow2.f32 %v6691_v3  ;;  %v6722_v44 = vsel %vm126_vm0, %v6718_v22, 0.0 }
0x2636   :  { %v6711_v10 = vpop.permute.xlu0 %6710 }
0x2637   :  { %vm6715_vm5 = vcmp.eq.s32.totalorder %v6708_v23, %v6711_v10 }
0x2638   :  { %v6717_v4 = vsel %vm6715_vm5, %v6671_v27, 0.0 }
0x2639   :  { %v6719_v63 = vsel %vm126_vm0, %v6717_v4, 0.0 }
0x263e   :  { %v8118_v13 = vpop.eup %8117 }
0x263f   :  { %v6698_v38 = vsel %vm126_vm0, %v8118_v13, 0.0 }
0x2640   :  { %v8120_v41 = vpop.eup %8119  ;;  %6699 = vadd.xlane.f32.xlu0 %v6698_v38 }
0x2641   :  { %v6695_v58 = vsel %vm126_vm0, %v8120_v41, 0.0 }
0x2642   :  { %6696 = vadd.xlane.f32.xlu1 %v6695_v58 }
0x2646   :  { %6720 = vadd.xlane.f32.xlu1 %v6719_v63 }
0x264a   :  { %6723 = vadd.xlane.f32.xlu1 %v6722_v44 }
0x26c9   :  { %v6700_v35 = vpop.xlane.xlu0 %6699 }
0x26ca   :  { %8121 = vlog2.f32 %v6700_v35 }
0x26cb   :  { %v6697_v6 = vpop.xlane.xlu1 %6696 }
0x26cc   :  { %8123 = vlog2.f32 %v6697_v6 }
0x26cd   :  { %8125 = vrcp.f32 %v6750_v0 }
0x26cf   :  { %v6721_v14 = vpop.xlane.xlu1 %6720 }
0x26d3   :  { %v6724_v29 = vpop.xlane.xlu1 %6723 }
0x26d7   :  { %v8122_v57 = vpop.eup %8121 }
0x26d8   :  { %v6704_v11 = vmul.f32 0.6931472, %v8122_v57 }
0x26d9   :  { %v8124_v33 = vpop.eup %8123 }
0x26da   :  { %v6702_v45 = vmul.f32 0.6931472, %v8124_v33  ;;  %v6706_v62 = vadd.f32 %v6704_v11, %v6688_v7  ;;  %v8126_v40 = vpop.eup %8125 }
0x26dc   :  { %v6705_v30 = vadd.f32 %v6702_v45, %v6685_v47  ;;  %v6726_v34 = vsub.f32 %v6706_v62, %v6724_v29 }
0x26de   :  { %v6725_v36 = vsub.f32 %v6705_v30, %v6721_v14  ;;  %v6730_v61 = vmul.f32 %v6728_v21, %v6726_v34 }
0x26e0   :  { %v6729_v53 = vmul.f32 %v6727_v2, %v6725_v36  ;;  %v6733_v39 = vsel %vm6731_vm7, %v6730_v61, 0.0 }
0x26e2   :  { %v6732_v32 = vsel %vm6731_vm7, %v6729_v53, 0.0 }
0x26e3   :  { %v6734_v25 = vadd.f32 %v6733_v39, %v6732_v32 }
0x26e5   :  { %v6735_v55 = vrot.slane %v6734_v25, 4 }
0x26e7   :  { %v6736_v26 = vadd.f32 %v6735_v55, %v6734_v25 }
0x26e9   :  { %v6737_v60 = vrot.slane %v6736_v26, 2 }
0x26eb   :  { %v6738_v5 = vadd.f32 %v6737_v60, %v6736_v26 }
0x26ed   :  { %v6739_v9 = vrot.slane %v6738_v5, 1 }
0x26ef   :  { %v6740_v42 = vadd.f32 %v6739_v9, %v6738_v5 }
0x26f1   :  { %v6752_v31 = vmul.f32 %v8126_v40, %v6740_v42 }
0x26f3   :  { %6754 = vst.msk [vmem:[#allocation2] sm:$0x1] %vm6753_vm8, %v6752_v31 }
0x26f4   :  { %8138 = shalt.err (!%p8135_p4)
}
0x26f5   :  { %6766 = dma.vmem_to_hbm [thread:$0]  %s6764_s30, 16, %s8335_s4, [#allocation3]  }
0x26f6   :  { %8147 = dma.done.wait [#allocation3], 16  }
0x26f7   :  { %8148 = vsyncadd [#allocation3], 4294967280 }
0x26f8   :  { %6772 = vsyncpa [#allocation3], 1 }

</bundles_post_ra>
